<compile_context>
chip_gen: v6e
topology: v6e:2x2x1
jax: 0.10.0
libtpu: 0.0.40
codegen_flags: <defaults>
</compile_context>

<pallas_src>
import functools

import jax
import jax.numpy as jnp
from jax.experimental import pallas as pl
from jax.experimental.pallas import tpu as pltpu

_EPS = 1e-5            # nn.BatchNorm2d default eps
_LRELU_SLOPE = 0.2     # nn.LeakyReLU(0.2)


# ----------------------------------------------------------------------------
# Fused Pallas kernel for the whole ds_res_convdown block.
# ----------------------------------------------------------------------------
def _make_block_kernel(N, Ho, Wo, Cin, Cout, transpose_out):
    M = N * Ho * Wo
    f32 = jnp.float32
    bf16 = jnp.bfloat16

    def _bn(y, g, b):
        # train-mode BatchNorm2d over all (N, H, W) rows per channel, single pass:
        # var = E[y^2] - mean^2 (biased).  rsqrt runs on the EUP slot.
        mean = jnp.mean(y, axis=0, keepdims=True)
        var = jnp.mean(y * y, axis=0, keepdims=True) - mean * mean
        return (y - mean) * jax.lax.rsqrt(var + _EPS) * g + b

    def _lrelu(y):
        return jnp.where(y > 0, y, _LRELU_SLOPE * y)

    def _tap_slab(pad_ref, C):
        # Gather the 9 shifted 3x3 windows from a zero-padded VMEM buffer and
        # lane-concatenate them into one (M, 9*C) bf16 slab (single K=9*C matmul).
        taps = []
        for di in range(3):
            for dj in range(3):
                taps.append(pad_ref[:, di:di + Ho, dj:dj + Wo, :].reshape(M, C))
        return jnp.concatenate(taps, axis=-1)

    def _write_padded(pad_ref, interior_bf16, C):
        # Zero only the 1-pixel border (4 thin slabs) + one interior store.
        pad_ref[:, 0:1, :, :] = jnp.zeros((N, 1, Wo + 2, C), bf16)
        pad_ref[:, Ho + 1:Ho + 2, :, :] = jnp.zeros((N, 1, Wo + 2, C), bf16)
        pad_ref[:, 1:Ho + 1, 0:1, :] = jnp.zeros((N, Ho, 1, C), bf16)
        pad_ref[:, 1:Ho + 1, Wo + 1:Wo + 2, :] = jnp.zeros((N, Ho, 1, C), bf16)
        pad_ref[:, 1:Ho + 1, 1:Wo + 1, :] = interior_bf16

    def kernel(xph_ref, wd_ref, bd_ref, wci_ref, bci_ref,
               w1_ref, g1_ref, be1_ref,
               w2_ref, g2_ref, be2_ref,
               o_ref, xd_pad, f_pad):
        # ---- self.down : 3x3 / stride-2 / pad-1 conv (+ bias) ------------------
        # Tap (di, dj) of the stride-2 conv lives in polyphase phase (di%2, dj%2)
        # at offset (di//2, dj//2).  All slices are static; ONE K=9*Cin matmul.
        taps = []
        for di in range(3):
            for dj in range(3):
                ph = (di % 2) * 2 + (dj % 2)
                oi, oj = di // 2, dj // 2
                taps.append(
                    xph_ref[ph, :, oi:oi + Ho, oj:oj + Wo, :].reshape(M, Cin))
        slab_d = jnp.concatenate(taps, axis=-1)                       # (M, 9*Cin) bf16
        xd = jnp.dot(slab_d, wd_ref[...],
                     preferred_element_type=f32) + bd_ref[...]        # (M, Cin) f32

        # ---- self.conv_input : 1x1 conv (+ bias), residual / skip branch -------
        skip = jnp.dot(xd.astype(bf16), wci_ref[...],
                       preferred_element_type=f32) + bci_ref[...]     # (M, Cout)

        # ---- self.conv_1 (3x3, spectral-normed) + norm_1 + LeakyReLU(0.2) ------
        # conv_1 bias cancels under train-mode BN and is not applied.
        _write_padded(xd_pad, xd.reshape(N, Ho, Wo, Cin).astype(bf16), Cin)
        acc1 = jnp.dot(_tap_slab(xd_pad, Cin), w1_ref[...],
                       preferred_element_type=f32)                    # (M, Cout)
        f = _lrelu(_bn(acc1, g1_ref[...], be1_ref[...]))

        # ---- self.conv_2 (3x3) + norm_2 ----------------------------------------
        _write_padded(f_pad, f.reshape(N, Ho, Wo, Cout).astype(bf16), Cout)
        acc2 = jnp.dot(_tap_slab(f_pad, Cout), w2_ref[...],
                       preferred_element_type=f32)                    # (M, Cout)
        f2 = _bn(acc2, g2_ref[...], be2_ref[...])

        # ---- residual add + last LeakyReLU; lane-dense store --------------------
        res = _lrelu(skip + f2)                                       # (M, Cout)
        if transpose_out:
            o_ref[...] = res.T                                        # (Cout, M), M lanes
        else:
            o_ref[...] = res                                          # (M, Cout), Cout>=128

    return kernel


def _full_spec(shape):
    nd = len(shape)
    return pl.BlockSpec(tuple(shape), lambda i: (0,) * nd)


# ----------------------------------------------------------------------------
# Host-side glue: spectral norm of conv_1's weight, bf16 polyphase input split,
# packed weights, pallas_call.
# ----------------------------------------------------------------------------
def _spectral_normalize(w_hwio, u, n_iter=1, eps=1e-12):
    """torch.nn.utils.spectral_norm forward reparam (power iteration, W / sigma)."""
    cout = w_hwio.shape[-1]
    wm = jnp.transpose(w_hwio, (3, 0, 1, 2)).reshape(cout, -1)    # (Cout, k*k*Cin)

    def _l2n(v):
        return v / (jnp.linalg.norm(v) + eps)

    u = _l2n(u)
    for _ in range(n_iter):
        v = _l2n(wm.T @ u)
        u = _l2n(wm @ v)
    sigma = u @ (wm @ v)
    return w_hwio / sigma


def ds_res_convdown_forward(params, x_nchw, domain_id=0):
    f32, bf = jnp.float32, jnp.bfloat16
    x = jnp.transpose(x_nchw, (0, 2, 3, 1))                        # NCHW -> NHWC
    N, H, W, Cin = x.shape
    assert H % 2 == 0 and W % 2 == 0, "even spatial dims expected (stride-2 down)"
    Ho, Wo = H // 2, W // 2
    Cout = params["conv_1"]["w"].shape[-1]
    M = N * Ho * Wo

    # 2x2 polyphase split of the zero-padded input, in bf16 (layout only; half bytes).
    xp = jnp.pad(x.astype(bf), ((0, 0), (1, 1), (1, 1), (0, 0)))
    phases = jnp.stack([xp[:, p::2, q::2, :] for p in (0, 1) for q in (0, 1)],
                       axis=0)                                     # (4, N, Ho+1, Wo+1, Cin)

    # Pack each 3x3 conv weight as (9*Cin_or_Cout, Cout) so the kernel runs ONE
    # K=9*C matmul per conv (HWIO reshape order matches the in-kernel tap concat).
    w_down = params["down"]["w"].reshape(9 * Cin, Cin).astype(bf)
    w1 = _spectral_normalize(params["conv_1"]["w"],
                             params["sn_u"]).reshape(9 * Cin, Cout).astype(bf)
    w2 = params["conv_2"]["w"].reshape(9 * Cout, Cout).astype(bf)
    w_ci = params["conv_input"]["w"].reshape(Cin, Cout).astype(bf)

    g1 = params["norm_1"]["gamma"][domain_id].reshape(1, Cout).astype(f32)
    be1 = params["norm_1"]["beta"][domain_id].reshape(1, Cout).astype(f32)
    g2 = params["norm_2"]["gamma"][domain_id].reshape(1, Cout).astype(f32)
    be2 = params["norm_2"]["beta"][domain_id].reshape(1, Cout).astype(f32)

    # NOTE: conv_1 / conv_2 biases cancel exactly under train-mode BatchNorm and are
    # intentionally not passed to the kernel.
    args = [
        phases,
        w_down, params["down"]["b"].reshape(1, Cin).astype(f32),
        w_ci, params["conv_input"]["b"].reshape(1, Cout).astype(f32),
        w1, g1, be1,
        w2, g2, be2,
    ]

    transpose_out = Cout < 128                     # keep lane-dense stores for small Cout
    out_shape = (Cout, M) if transpose_out else (M, Cout)

    kernel = _make_block_kernel(N, Ho, Wo, Cin, Cout, transpose_out)
    out = pl.pallas_call(
        kernel,
        out_shape=jax.ShapeDtypeStruct(out_shape, f32),
        grid=(1,),
        in_specs=[_full_spec(a.shape) for a in args],
        out_specs=_full_spec(out_shape),
        scratch_shapes=[
            pltpu.VMEM((N, Ho + 2, Wo + 2, Cin), bf),    # padded down(x), bf16
            pltpu.VMEM((N, Ho + 2, Wo + 2, Cout), bf),   # padded conv_1 activations, bf16
        ],
        compiler_params=pltpu.CompilerParams(
            dimension_semantics=("arbitrary",),
            vmem_limit_bytes=48 * 1024 * 1024,
        ),
    )(*args)

    # layout plumbing only
    if transpose_out:
        return jnp.transpose(out.reshape(Cout, N, Ho, Wo), (1, 0, 2, 3))
    return jnp.transpose(out.reshape(N, Ho, Wo, Cout), (0, 3, 1, 2))


# ----------------------------------------------------------------------------
# Pure-JAX reference (f32) for a correctness check.
# ----------------------------------------------------------------------------
def _ref_forward(params, x_nchw, domain_id=0):
    dn = ("NHWC", "HWIO", "NHWC")
    x = jnp.transpose(x_nchw, (0, 2, 3, 1)).astype(jnp.float32)

    def conv(h, w, b, stride=1, pad=1):
        y = jax.lax.conv_general_dilated(h, w, (stride, stride),
                                         ((pad, pad), (pad, pad)),
                                         dimension_numbers=dn)
        return y + b.reshape(1, 1, 1, -1)

    def bn(h, g, b):
        mean = jnp.mean(h, axis=(0, 1, 2), keepdims=True)
        var = jnp.mean((h - mean) ** 2, axis=(0, 1, 2), keepdims=True)
        return ((h - mean) * jax.lax.rsqrt(var + _EPS) * g.reshape(1, 1, 1, -1)
                + b.reshape(1, 1, 1, -1))

    def lrelu(h):
        return jnp.where(h > 0, h, _LRELU_SLOPE * h)

    w1 = _spectral_normalize(params["conv_1"]["w"], params["sn_u"])
    xd = conv(x, params["down"]["w"], params["down"]["b"], stride=2)
    skip = conv(xd, params["conv_input"]["w"], params["conv_input"]["b"], pad=0)
    f = lrelu(bn(conv(xd, w1, params["conv_1"]["b"]),
                 params["norm_1"]["gamma"][domain_id],
                 params["norm_1"]["beta"][domain_id]))
    f = bn(conv(f, params["conv_2"]["w"], params["conv_2"]["b"]),
           params["norm_2"]["gamma"][domain_id],
           params["norm_2"]["beta"][domain_id])
    return jnp.transpose(lrelu(skip + f), (0, 3, 1, 2))


# ----------------------------------------------------------------------------
# Deterministic synthetic parameters.
# ----------------------------------------------------------------------------
def init_params(key, in_ch, out_ch, num_domains=2):
    ks = jax.random.split(key, 7)

    def cinit(k, kk, ci, co):
        kw, kb = jax.random.split(k)
        s = (kk * kk * ci) ** -0.5
        return {"w": jax.random.uniform(kw, (kk, kk, ci, co), jnp.float32, -s, s),
                "b": jax.random.uniform(kb, (co,), jnp.float32, -s, s)}

    def ninit(k, c):
        kg, kb = jax.random.split(k)
        return {"gamma": 1.0 + 0.1 * jax.random.normal(kg, (num_domains, c), jnp.float32),
                "beta": 0.1 * jax.random.normal(kb, (num_domains, c), jnp.float32)}

    return {
        "down": cinit(ks[0], 3, in_ch, in_ch),
        "conv_input": cinit(ks[1], 1, in_ch, out_ch),
        "conv_1": cinit(ks[2], 3, in_ch, out_ch),
        "norm_1": ninit(ks[3], out_ch),
        "conv_2": cinit(ks[4], 3, out_ch, out_ch),
        "norm_2": ninit(ks[5], out_ch),
        "sn_u": jax.random.normal(ks[6], (out_ch,), jnp.float32),  # spectral-norm u
    }


if __name__ == "__main__":
    key = jax.random.PRNGKey(0)
    kp, kx = jax.random.split(key)

    N, in_ch, out_ch, H = 2, 8, 16, 16
    params = init_params(kp, in_ch, out_ch)
    x = jax.random.normal(kx, (N, in_ch, H, H), jnp.float32)      # NCHW like PyTorch

    fwd = jax.jit(functools.partial(ds_res_convdown_forward, params))
    y = fwd(x)
    jax.block_until_ready(y)

    assert y.shape == (N, out_ch, H // 2, H // 2), y.shape
    assert bool(jnp.all(jnp.isfinite(y)))

    y_ref = _ref_forward(params, x)
    err = float(jnp.max(jnp.abs(y - y_ref)))
    assert err < 5e-2, f"max abs err vs f32 reference too large: {err}"
    print("KERNEL_OK")
</pallas_src>

<mosaic_0001>
module attributes {stable_mosaic.version = 11 : i64} {
  func.func @kernel(%arg0: i32, %arg1: memref<4x2x9x9x8xbf16, #tpu.memory_space<vmem>>, %arg2: memref<72x8xbf16, #tpu.memory_space<vmem>>, %arg3: memref<1x8xf32, #tpu.memory_space<vmem>>, %arg4: memref<8x16xbf16, #tpu.memory_space<vmem>>, %arg5: memref<1x16xf32, #tpu.memory_space<vmem>>, %arg6: memref<72x16xbf16, #tpu.memory_space<vmem>>, %arg7: memref<1x16xf32, #tpu.memory_space<vmem>>, %arg8: memref<1x16xf32, #tpu.memory_space<vmem>>, %arg9: memref<144x16xbf16, #tpu.memory_space<vmem>>, %arg10: memref<1x16xf32, #tpu.memory_space<vmem>>, %arg11: memref<1x16xf32, #tpu.memory_space<vmem>>, %arg12: memref<16x128xf32, #tpu.memory_space<vmem>>, %arg13: memref<2x10x10x8xbf16, #tpu.memory_space<vmem>>, %arg14: memref<2x10x10x16xbf16, #tpu.memory_space<vmem>>) attributes {dimension_semantics = [#tpu.dimension_semantics<arbitrary>], iteration_bounds = array<i64: 1>, scalar_prefetch = 0 : i64, scratch_operands = 2 : i64, tpu.core_type = #tpu.core_type<tc>, window_params = [{pipeline_mode = #tpu.pipeline_mode<synchronous>, transform_indices = @transform_0, window_bounds = array<i64: 4, 2, 9, 9, 8>}, {pipeline_mode = #tpu.pipeline_mode<synchronous>, transform_indices = @transform_1, window_bounds = array<i64: 72, 8>}, {pipeline_mode = #tpu.pipeline_mode<synchronous>, transform_indices = @transform_2, window_bounds = array<i64: 1, 8>}, {pipeline_mode = #tpu.pipeline_mode<synchronous>, transform_indices = @transform_3, window_bounds = array<i64: 8, 16>}, {pipeline_mode = #tpu.pipeline_mode<synchronous>, transform_indices = @transform_4, window_bounds = array<i64: 1, 16>}, {pipeline_mode = #tpu.pipeline_mode<synchronous>, transform_indices = @transform_5, window_bounds = array<i64: 72, 16>}, {pipeline_mode = #tpu.pipeline_mode<synchronous>, transform_indices = @transform_6, window_bounds = array<i64: 1, 16>}, {pipeline_mode = #tpu.pipeline_mode<synchronous>, transform_indices = @transform_7, window_bounds = array<i64: 1, 16>}, {pipeline_mode = #tpu.pipeline_mode<synchronous>, transform_indices = @transform_8, window_bounds = array<i64: 144, 16>}, {pipeline_mode = #tpu.pipeline_mode<synchronous>, transform_indices = @transform_9, window_bounds = array<i64: 1, 16>}, {pipeline_mode = #tpu.pipeline_mode<synchronous>, transform_indices = @transform_10, window_bounds = array<i64: 1, 16>}, {pipeline_mode = #tpu.pipeline_mode<synchronous>, transform_indices = @transform_11, window_bounds = array<i64: 16, 128>}]} {
    %c0 = arith.constant 0 : index
    %c0_0 = arith.constant 0 : index
    %c0_1 = arith.constant 0 : index
    %c0_2 = arith.constant 0 : index
    %c0_3 = arith.constant 0 : index
    %0 = vector.load %arg1[%c0, %c0_0, %c0_1, %c0_2, %c0_3] : memref<4x2x9x9x8xbf16, #tpu.memory_space<vmem>>, vector<1x2x8x8x8xbf16>
    %1 = vector.shape_cast %0 : vector<1x2x8x8x8xbf16> to vector<2x8x8x8xbf16>
    %2 = vector.shape_cast %1 : vector<2x8x8x8xbf16> to vector<128x8xbf16>
    %c1 = arith.constant 1 : index
    %c0_4 = arith.constant 0 : index
    %c0_5 = arith.constant 0 : index
    %c0_6 = arith.constant 0 : index
    %c0_7 = arith.constant 0 : index
    %3 = vector.load %arg1[%c1, %c0_4, %c0_5, %c0_6, %c0_7] : memref<4x2x9x9x8xbf16, #tpu.memory_space<vmem>>, vector<1x2x8x8x8xbf16>
    %4 = vector.shape_cast %3 : vector<1x2x8x8x8xbf16> to vector<2x8x8x8xbf16>
    %5 = vector.shape_cast %4 : vector<2x8x8x8xbf16> to vector<128x8xbf16>
    %c0_8 = arith.constant 0 : index
    %c0_9 = arith.constant 0 : index
    %c0_10 = arith.constant 0 : index
    %c1_11 = arith.constant 1 : index
    %c0_12 = arith.constant 0 : index
    %6 = vector.load %arg1[%c0_8, %c0_9, %c0_10, %c1_11, %c0_12] : memref<4x2x9x9x8xbf16, #tpu.memory_space<vmem>>, vector<1x2x8x8x8xbf16>
    %7 = vector.shape_cast %6 : vector<1x2x8x8x8xbf16> to vector<2x8x8x8xbf16>
    %8 = vector.shape_cast %7 : vector<2x8x8x8xbf16> to vector<128x8xbf16>
    %c2 = arith.constant 2 : index
    %c0_13 = arith.constant 0 : index
    %c0_14 = arith.constant 0 : index
    %c0_15 = arith.constant 0 : index
    %c0_16 = arith.constant 0 : index
    %9 = vector.load %arg1[%c2, %c0_13, %c0_14, %c0_15, %c0_16] : memref<4x2x9x9x8xbf16, #tpu.memory_space<vmem>>, vector<1x2x8x8x8xbf16>
    %10 = vector.shape_cast %9 : vector<1x2x8x8x8xbf16> to vector<2x8x8x8xbf16>
    %11 = vector.shape_cast %10 : vector<2x8x8x8xbf16> to vector<128x8xbf16>
    %c3 = arith.constant 3 : index
    %c0_17 = arith.constant 0 : index
    %c0_18 = arith.constant 0 : index
    %c0_19 = arith.constant 0 : index
    %c0_20 = arith.constant 0 : index
    %12 = vector.load %arg1[%c3, %c0_17, %c0_18, %c0_19, %c0_20] : memref<4x2x9x9x8xbf16, #tpu.memory_space<vmem>>, vector<1x2x8x8x8xbf16>
    %13 = vector.shape_cast %12 : vector<1x2x8x8x8xbf16> to vector<2x8x8x8xbf16>
    %14 = vector.shape_cast %13 : vector<2x8x8x8xbf16> to vector<128x8xbf16>
    %c2_21 = arith.constant 2 : index
    %c0_22 = arith.constant 0 : index
    %c0_23 = arith.constant 0 : index
    %c1_24 = arith.constant 1 : index
    %c0_25 = arith.constant 0 : index
    %15 = vector.load %arg1[%c2_21, %c0_22, %c0_23, %c1_24, %c0_25] : memref<4x2x9x9x8xbf16, #tpu.memory_space<vmem>>, vector<1x2x8x8x8xbf16>
    %16 = vector.shape_cast %15 : vector<1x2x8x8x8xbf16> to vector<2x8x8x8xbf16>
    %17 = vector.shape_cast %16 : vector<2x8x8x8xbf16> to vector<128x8xbf16>
    %c0_26 = arith.constant 0 : index
    %c0_27 = arith.constant 0 : index
    %c1_28 = arith.constant 1 : index
    %c0_29 = arith.constant 0 : index
    %c0_30 = arith.constant 0 : index
    %18 = vector.load %arg1[%c0_26, %c0_27, %c1_28, %c0_29, %c0_30] : memref<4x2x9x9x8xbf16, #tpu.memory_space<vmem>>, vector<1x2x8x8x8xbf16>
    %19 = vector.shape_cast %18 : vector<1x2x8x8x8xbf16> to vector<2x8x8x8xbf16>
    %20 = vector.shape_cast %19 : vector<2x8x8x8xbf16> to vector<128x8xbf16>
    %c1_31 = arith.constant 1 : index
    %c0_32 = arith.constant 0 : index
    %c1_33 = arith.constant 1 : index
    %c0_34 = arith.constant 0 : index
    %c0_35 = arith.constant 0 : index
    %21 = vector.load %arg1[%c1_31, %c0_32, %c1_33, %c0_34, %c0_35] : memref<4x2x9x9x8xbf16, #tpu.memory_space<vmem>>, vector<1x2x8x8x8xbf16>
    %22 = vector.shape_cast %21 : vector<1x2x8x8x8xbf16> to vector<2x8x8x8xbf16>
    %23 = vector.shape_cast %22 : vector<2x8x8x8xbf16> to vector<128x8xbf16>
    %c0_36 = arith.constant 0 : index
    %c0_37 = arith.constant 0 : index
    %c1_38 = arith.constant 1 : index
    %c1_39 = arith.constant 1 : index
    %c0_40 = arith.constant 0 : index
    %24 = vector.load %arg1[%c0_36, %c0_37, %c1_38, %c1_39, %c0_40] : memref<4x2x9x9x8xbf16, #tpu.memory_space<vmem>>, vector<1x2x8x8x8xbf16>
    %25 = vector.shape_cast %24 : vector<1x2x8x8x8xbf16> to vector<2x8x8x8xbf16>
    %26 = vector.shape_cast %25 : vector<2x8x8x8xbf16> to vector<128x8xbf16>
    %27 = tpu.concatenate %2, %5, %8, %11, %14, %17, %20, %23, %26 in 1 : vector<128x8xbf16>, vector<128x8xbf16>, vector<128x8xbf16>, vector<128x8xbf16>, vector<128x8xbf16>, vector<128x8xbf16>, vector<128x8xbf16>, vector<128x8xbf16>, vector<128x8xbf16> -> vector<128x72xbf16>
    %c0_41 = arith.constant 0 : index
    %c0_42 = arith.constant 0 : index
    %28 = vector.load %arg2[%c0_41, %c0_42] : memref<72x8xbf16, #tpu.memory_space<vmem>>, vector<72x8xbf16>
    %cst = arith.constant dense<0.000000e+00> : vector<128x8xf32>
    %29 = tpu.matmul %27, %28, %cst {dimension_numbers = #tpu.dot_dimension_numbers<[1], [0], [0], [1], [0, 0, 1, 1], [], []>} : vector<128x72xbf16>, vector<72x8xbf16>, vector<128x8xf32> -> vector<128x8xf32>
    %c0_43 = arith.constant 0 : index
    %c0_44 = arith.constant 0 : index
    %30 = vector.load %arg3[%c0_43, %c0_44] : memref<1x8xf32, #tpu.memory_space<vmem>>, vector<1x8xf32>
    %31 = vector.broadcast %30 : vector<1x8xf32> to vector<128x8xf32>
    %32 = arith.addf %29, %31 : vector<128x8xf32>
    %33 = arith.truncf %32 : vector<128x8xf32> to vector<128x8xbf16>
    %c0_45 = arith.constant 0 : index
    %c0_46 = arith.constant 0 : index
    %34 = vector.load %arg4[%c0_45, %c0_46] : memref<8x16xbf16, #tpu.memory_space<vmem>>, vector<8x16xbf16>
    %cst_47 = arith.constant dense<0.000000e+00> : vector<128x16xf32>
    %35 = tpu.matmul %33, %34, %cst_47 {dimension_numbers = #tpu.dot_dimension_numbers<[1], [0], [0], [1], [0, 0, 1, 1], [], []>} : vector<128x8xbf16>, vector<8x16xbf16>, vector<128x16xf32> -> vector<128x16xf32>
    %c0_48 = arith.constant 0 : index
    %c0_49 = arith.constant 0 : index
    %36 = vector.load %arg5[%c0_48, %c0_49] : memref<1x16xf32, #tpu.memory_space<vmem>>, vector<1x16xf32>
    %37 = vector.broadcast %36 : vector<1x16xf32> to vector<128x16xf32>
    %38 = arith.addf %35, %37 : vector<128x16xf32>
    %39 = vector.shape_cast %32 : vector<128x8xf32> to vector<2x8x8x8xf32>
    %40 = arith.truncf %39 : vector<2x8x8x8xf32> to vector<2x8x8x8xbf16>
    %cst_50 = arith.constant 0.000000e+00 : bf16
    %41 = vector.broadcast %cst_50 : bf16 to vector<2x1x10x8xbf16>
    %c0_51 = arith.constant 0 : index
    %c0_52 = arith.constant 0 : index
    %c0_53 = arith.constant 0 : index
    %c0_54 = arith.constant 0 : index
    %42 = vector.load %arg13[%c0_51, %c0_52, %c0_53, %c0_54] : memref<2x10x10x8xbf16, #tpu.memory_space<vmem>>, vector<2x1x10x8xbf16>
    tpu.vector_store %arg13[%c0_51, %c0_52, %c0_53, %c0_54], %41 {strides = array<i32>} : memref<2x10x10x8xbf16, #tpu.memory_space<vmem>>, vector<2x1x10x8xbf16>,
    %cst_55 = arith.constant 0.000000e+00 : bf16
    %43 = vector.broadcast %cst_55 : bf16 to vector<2x1x10x8xbf16>
    %c0_56 = arith.constant 0 : index
    %c9 = arith.constant 9 : index
    %c0_57 = arith.constant 0 : index
    %c0_58 = arith.constant 0 : index
    %44 = vector.load %arg13[%c0_56, %c9, %c0_57, %c0_58] : memref<2x10x10x8xbf16, #tpu.memory_space<vmem>>, vector<2x1x10x8xbf16>
    tpu.vector_store %arg13[%c0_56, %c9, %c0_57, %c0_58], %43 {strides = array<i32>} : memref<2x10x10x8xbf16, #tpu.memory_space<vmem>>, vector<2x1x10x8xbf16>,
    %cst_59 = arith.constant 0.000000e+00 : bf16
    %45 = vector.broadcast %cst_59 : bf16 to vector<2x8x1x8xbf16>
    %c0_60 = arith.constant 0 : index
    %c1_61 = arith.constant 1 : index
    %c0_62 = arith.constant 0 : index
    %c0_63 = arith.constant 0 : index
    %46 = vector.load %arg13[%c0_60, %c1_61, %c0_62, %c0_63] : memref<2x10x10x8xbf16, #tpu.memory_space<vmem>>, vector<2x8x1x8xbf16>
    tpu.vector_store %arg13[%c0_60, %c1_61, %c0_62, %c0_63], %45 {strides = array<i32>} : memref<2x10x10x8xbf16, #tpu.memory_space<vmem>>, vector<2x8x1x8xbf16>,
    %cst_64 = arith.constant 0.000000e+00 : bf16
    %47 = vector.broadcast %cst_64 : bf16 to vector<2x8x1x8xbf16>
    %c0_65 = arith.constant 0 : index
    %c1_66 = arith.constant 1 : index
    %c9_67 = arith.constant 9 : index
    %c0_68 = arith.constant 0 : index
    %48 = vector.load %arg13[%c0_65, %c1_66, %c9_67, %c0_68] : memref<2x10x10x8xbf16, #tpu.memory_space<vmem>>, vector<2x8x1x8xbf16>
    tpu.vector_store %arg13[%c0_65, %c1_66, %c9_67, %c0_68], %47 {strides = array<i32>} : memref<2x10x10x8xbf16, #tpu.memory_space<vmem>>, vector<2x8x1x8xbf16>,
    %c0_69 = arith.constant 0 : index
    %c1_70 = arith.constant 1 : index
    %c1_71 = arith.constant 1 : index
    %c0_72 = arith.constant 0 : index
    %49 = vector.load %arg13[%c0_69, %c1_70, %c1_71, %c0_72] : memref<2x10x10x8xbf16, #tpu.memory_space<vmem>>, vector<2x8x8x8xbf16>
    tpu.vector_store %arg13[%c0_69, %c1_70, %c1_71, %c0_72], %40 {strides = array<i32>} : memref<2x10x10x8xbf16, #tpu.memory_space<vmem>>, vector<2x8x8x8xbf16>,
    %c0_73 = arith.constant 0 : index
    %c0_74 = arith.constant 0 : index
    %c0_75 = arith.constant 0 : index
    %c0_76 = arith.constant 0 : index
    %50 = vector.load %arg13[%c0_73, %c0_74, %c0_75, %c0_76] : memref<2x10x10x8xbf16, #tpu.memory_space<vmem>>, vector<2x8x8x8xbf16>
    %51 = vector.shape_cast %50 : vector<2x8x8x8xbf16> to vector<128x8xbf16>
    %c0_77 = arith.constant 0 : index
    %c0_78 = arith.constant 0 : index
    %c1_79 = arith.constant 1 : index
    %c0_80 = arith.constant 0 : index
    %52 = vector.load %arg13[%c0_77, %c0_78, %c1_79, %c0_80] : memref<2x10x10x8xbf16, #tpu.memory_space<vmem>>, vector<2x8x8x8xbf16>
    %53 = vector.shape_cast %52 : vector<2x8x8x8xbf16> to vector<128x8xbf16>
    %c0_81 = arith.constant 0 : index
    %c0_82 = arith.constant 0 : index
    %c2_83 = arith.constant 2 : index
    %c0_84 = arith.constant 0 : index
    %54 = vector.load %arg13[%c0_81, %c0_82, %c2_83, %c0_84] : memref<2x10x10x8xbf16, #tpu.memory_space<vmem>>, vector<2x8x8x8xbf16>
    %55 = vector.shape_cast %54 : vector<2x8x8x8xbf16> to vector<128x8xbf16>
    %c0_85 = arith.constant 0 : index
    %c1_86 = arith.constant 1 : index
    %c0_87 = arith.constant 0 : index
    %c0_88 = arith.constant 0 : index
    %56 = vector.load %arg13[%c0_85, %c1_86, %c0_87, %c0_88] : memref<2x10x10x8xbf16, #tpu.memory_space<vmem>>, vector<2x8x8x8xbf16>
    %57 = vector.shape_cast %56 : vector<2x8x8x8xbf16> to vector<128x8xbf16>
    %c0_89 = arith.constant 0 : index
    %c1_90 = arith.constant 1 : index
    %c1_91 = arith.constant 1 : index
    %c0_92 = arith.constant 0 : index
    %58 = vector.load %arg13[%c0_89, %c1_90, %c1_91, %c0_92] : memref<2x10x10x8xbf16, #tpu.memory_space<vmem>>, vector<2x8x8x8xbf16>
    %59 = vector.shape_cast %58 : vector<2x8x8x8xbf16> to vector<128x8xbf16>
    %c0_93 = arith.constant 0 : index
    %c1_94 = arith.constant 1 : index
    %c2_95 = arith.constant 2 : index
    %c0_96 = arith.constant 0 : index
    %60 = vector.load %arg13[%c0_93, %c1_94, %c2_95, %c0_96] : memref<2x10x10x8xbf16, #tpu.memory_space<vmem>>, vector<2x8x8x8xbf16>
    %61 = vector.shape_cast %60 : vector<2x8x8x8xbf16> to vector<128x8xbf16>
    %c0_97 = arith.constant 0 : index
    %c2_98 = arith.constant 2 : index
    %c0_99 = arith.constant 0 : index
    %c0_100 = arith.constant 0 : index
    %62 = vector.load %arg13[%c0_97, %c2_98, %c0_99, %c0_100] : memref<2x10x10x8xbf16, #tpu.memory_space<vmem>>, vector<2x8x8x8xbf16>
    %63 = vector.shape_cast %62 : vector<2x8x8x8xbf16> to vector<128x8xbf16>
    %c0_101 = arith.constant 0 : index
    %c2_102 = arith.constant 2 : index
    %c1_103 = arith.constant 1 : index
    %c0_104 = arith.constant 0 : index
    %64 = vector.load %arg13[%c0_101, %c2_102, %c1_103, %c0_104] : memref<2x10x10x8xbf16, #tpu.memory_space<vmem>>, vector<2x8x8x8xbf16>
    %65 = vector.shape_cast %64 : vector<2x8x8x8xbf16> to vector<128x8xbf16>
    %c0_105 = arith.constant 0 : index
    %c2_106 = arith.constant 2 : index
    %c2_107 = arith.constant 2 : index
    %c0_108 = arith.constant 0 : index
    %66 = vector.load %arg13[%c0_105, %c2_106, %c2_107, %c0_108] : memref<2x10x10x8xbf16, #tpu.memory_space<vmem>>, vector<2x8x8x8xbf16>
    %67 = vector.shape_cast %66 : vector<2x8x8x8xbf16> to vector<128x8xbf16>
    %68 = tpu.concatenate %51, %53, %55, %57, %59, %61, %63, %65, %67 in 1 : vector<128x8xbf16>, vector<128x8xbf16>, vector<128x8xbf16>, vector<128x8xbf16>, vector<128x8xbf16>, vector<128x8xbf16>, vector<128x8xbf16>, vector<128x8xbf16>, vector<128x8xbf16> -> vector<128x72xbf16>
    %c0_109 = arith.constant 0 : index
    %c0_110 = arith.constant 0 : index
    %69 = vector.load %arg6[%c0_109, %c0_110] : memref<72x16xbf16, #tpu.memory_space<vmem>>, vector<72x16xbf16>
    %cst_111 = arith.constant dense<0.000000e+00> : vector<128x16xf32>
    %70 = tpu.matmul %68, %69, %cst_111 {dimension_numbers = #tpu.dot_dimension_numbers<[1], [0], [0], [1], [0, 0, 1, 1], [], []>} : vector<128x72xbf16>, vector<72x16xbf16>, vector<128x16xf32> -> vector<128x16xf32>
    %c0_112 = arith.constant 0 : index
    %c0_113 = arith.constant 0 : index
    %71 = vector.load %arg7[%c0_112, %c0_113] : memref<1x16xf32, #tpu.memory_space<vmem>>, vector<1x16xf32>
    %c0_114 = arith.constant 0 : index
    %c0_115 = arith.constant 0 : index
    %72 = vector.load %arg8[%c0_114, %c0_115] : memref<1x16xf32, #tpu.memory_space<vmem>>, vector<1x16xf32>
    %cst_116 = arith.constant dense<0.000000e+00> : vector<16xf32>
    %73 = vector.multi_reduction <add>, %70, %cst_116 [0] : vector<128x16xf32> to vector<16xf32>
    %74 = vector.shape_cast %73 : vector<16xf32> to vector<1x16xf32>
    %cst_117 = arith.constant 1.280000e+02 : f32
    %75 = vector.broadcast %cst_117 : f32 to vector<1x16xf32>
    %76 = arith.divf %74, %75 : vector<1x16xf32>
    %77 = arith.mulf %70, %70 : vector<128x16xf32>
    %cst_118 = arith.constant dense<0.000000e+00> : vector<16xf32>
    %78 = vector.multi_reduction <add>, %77, %cst_118 [0] : vector<128x16xf32> to vector<16xf32>
    %79 = vector.shape_cast %78 : vector<16xf32> to vector<1x16xf32>
    %cst_119 = arith.constant 1.280000e+02 : f32
    %80 = vector.broadcast %cst_119 : f32 to vector<1x16xf32>
    %81 = arith.divf %79, %80 : vector<1x16xf32>
    %82 = arith.mulf %76, %76 : vector<1x16xf32>
    %83 = arith.subf %81, %82 : vector<1x16xf32>
    %84 = vector.broadcast %76 : vector<1x16xf32> to vector<128x16xf32>
    %85 = arith.subf %70, %84 : vector<128x16xf32>
    %cst_120 = arith.constant 9.99999974E-6 : f32
    %86 = vector.broadcast %cst_120 : f32 to vector<1x16xf32>
    %87 = arith.addf %83, %86 : vector<1x16xf32>
    %88 = math.rsqrt %87 : vector<1x16xf32>
    %89 = vector.broadcast %88 : vector<1x16xf32> to vector<128x16xf32>
    %90 = arith.mulf %85, %89 : vector<128x16xf32>
    %91 = vector.broadcast %71 : vector<1x16xf32> to vector<128x16xf32>
    %92 = arith.mulf %90, %91 : vector<128x16xf32>
    %93 = vector.broadcast %72 : vector<1x16xf32> to vector<128x16xf32>
    %94 = arith.addf %92, %93 : vector<128x16xf32>
    %cst_121 = arith.constant 0.000000e+00 : f32
    %95 = vector.broadcast %cst_121 : f32 to vector<128x16xf32>
    %96 = arith.cmpf ogt, %94, %95 : vector<128x16xf32>
    %cst_122 = arith.constant 2.000000e-01 : f32
    %97 = vector.broadcast %cst_122 : f32 to vector<128x16xf32>
    %98 = arith.mulf %97, %94 : vector<128x16xf32>
    %99 = arith.select %96, %94, %98 : vector<128x16xi1>, vector<128x16xf32>
    %100 = vector.shape_cast %99 : vector<128x16xf32> to vector<2x8x8x16xf32>
    %101 = arith.truncf %100 : vector<2x8x8x16xf32> to vector<2x8x8x16xbf16>
    %cst_123 = arith.constant 0.000000e+00 : bf16
    %102 = vector.broadcast %cst_123 : bf16 to vector<2x1x10x16xbf16>
    %c0_124 = arith.constant 0 : index
    %c0_125 = arith.constant 0 : index
    %c0_126 = arith.constant 0 : index
    %c0_127 = arith.constant 0 : index
    %103 = vector.load %arg14[%c0_124, %c0_125, %c0_126, %c0_127] : memref<2x10x10x16xbf16, #tpu.memory_space<vmem>>, vector<2x1x10x16xbf16>
    tpu.vector_store %arg14[%c0_124, %c0_125, %c0_126, %c0_127], %102 {strides = array<i32>} : memref<2x10x10x16xbf16, #tpu.memory_space<vmem>>, vector<2x1x10x16xbf16>,
    %cst_128 = arith.constant 0.000000e+00 : bf16
    %104 = vector.broadcast %cst_128 : bf16 to vector<2x1x10x16xbf16>
    %c0_129 = arith.constant 0 : index
    %c9_130 = arith.constant 9 : index
    %c0_131 = arith.constant 0 : index
    %c0_132 = arith.constant 0 : index
    %105 = vector.load %arg14[%c0_129, %c9_130, %c0_131, %c0_132] : memref<2x10x10x16xbf16, #tpu.memory_space<vmem>>, vector<2x1x10x16xbf16>
    tpu.vector_store %arg14[%c0_129, %c9_130, %c0_131, %c0_132], %104 {strides = array<i32>} : memref<2x10x10x16xbf16, #tpu.memory_space<vmem>>, vector<2x1x10x16xbf16>,
    %cst_133 = arith.constant 0.000000e+00 : bf16
    %106 = vector.broadcast %cst_133 : bf16 to vector<2x8x1x16xbf16>
    %c0_134 = arith.constant 0 : index
    %c1_135 = arith.constant 1 : index
    %c0_136 = arith.constant 0 : index
    %c0_137 = arith.constant 0 : index
    %107 = vector.load %arg14[%c0_134, %c1_135, %c0_136, %c0_137] : memref<2x10x10x16xbf16, #tpu.memory_space<vmem>>, vector<2x8x1x16xbf16>
    tpu.vector_store %arg14[%c0_134, %c1_135, %c0_136, %c0_137], %106 {strides = array<i32>} : memref<2x10x10x16xbf16, #tpu.memory_space<vmem>>, vector<2x8x1x16xbf16>,
    %cst_138 = arith.constant 0.000000e+00 : bf16
    %108 = vector.broadcast %cst_138 : bf16 to vector<2x8x1x16xbf16>
    %c0_139 = arith.constant 0 : index
    %c1_140 = arith.constant 1 : index
    %c9_141 = arith.constant 9 : index
    %c0_142 = arith.constant 0 : index
    %109 = vector.load %arg14[%c0_139, %c1_140, %c9_141, %c0_142] : memref<2x10x10x16xbf16, #tpu.memory_space<vmem>>, vector<2x8x1x16xbf16>
    tpu.vector_store %arg14[%c0_139, %c1_140, %c9_141, %c0_142], %108 {strides = array<i32>} : memref<2x10x10x16xbf16, #tpu.memory_space<vmem>>, vector<2x8x1x16xbf16>,
    %c0_143 = arith.constant 0 : index
    %c1_144 = arith.constant 1 : index
    %c1_145 = arith.constant 1 : index
    %c0_146 = arith.constant 0 : index
    %110 = vector.load %arg14[%c0_143, %c1_144, %c1_145, %c0_146] : memref<2x10x10x16xbf16, #tpu.memory_space<vmem>>, vector<2x8x8x16xbf16>
    tpu.vector_store %arg14[%c0_143, %c1_144, %c1_145, %c0_146], %101 {strides = array<i32>} : memref<2x10x10x16xbf16, #tpu.memory_space<vmem>>, vector<2x8x8x16xbf16>,
    %c0_147 = arith.constant 0 : index
    %c0_148 = arith.constant 0 : index
    %c0_149 = arith.constant 0 : index
    %c0_150 = arith.constant 0 : index
    %111 = vector.load %arg14[%c0_147, %c0_148, %c0_149, %c0_150] : memref<2x10x10x16xbf16, #tpu.memory_space<vmem>>, vector<2x8x8x16xbf16>
    %112 = vector.shape_cast %111 : vector<2x8x8x16xbf16> to vector<128x16xbf16>
    %c0_151 = arith.constant 0 : index
    %c0_152 = arith.constant 0 : index
    %c1_153 = arith.constant 1 : index
    %c0_154 = arith.constant 0 : index
    %113 = vector.load %arg14[%c0_151, %c0_152, %c1_153, %c0_154] : memref<2x10x10x16xbf16, #tpu.memory_space<vmem>>, vector<2x8x8x16xbf16>
    %114 = vector.shape_cast %113 : vector<2x8x8x16xbf16> to vector<128x16xbf16>
    %c0_155 = arith.constant 0 : index
    %c0_156 = arith.constant 0 : index
    %c2_157 = arith.constant 2 : index
    %c0_158 = arith.constant 0 : index
    %115 = vector.load %arg14[%c0_155, %c0_156, %c2_157, %c0_158] : memref<2x10x10x16xbf16, #tpu.memory_space<vmem>>, vector<2x8x8x16xbf16>
    %116 = vector.shape_cast %115 : vector<2x8x8x16xbf16> to vector<128x16xbf16>
    %c0_159 = arith.constant 0 : index
    %c1_160 = arith.constant 1 : index
    %c0_161 = arith.constant 0 : index
    %c0_162 = arith.constant 0 : index
    %117 = vector.load %arg14[%c0_159, %c1_160, %c0_161, %c0_162] : memref<2x10x10x16xbf16, #tpu.memory_space<vmem>>, vector<2x8x8x16xbf16>
    %118 = vector.shape_cast %117 : vector<2x8x8x16xbf16> to vector<128x16xbf16>
    %c0_163 = arith.constant 0 : index
    %c1_164 = arith.constant 1 : index
    %c1_165 = arith.constant 1 : index
    %c0_166 = arith.constant 0 : index
    %119 = vector.load %arg14[%c0_163, %c1_164, %c1_165, %c0_166] : memref<2x10x10x16xbf16, #tpu.memory_space<vmem>>, vector<2x8x8x16xbf16>
    %120 = vector.shape_cast %119 : vector<2x8x8x16xbf16> to vector<128x16xbf16>
    %c0_167 = arith.constant 0 : index
    %c1_168 = arith.constant 1 : index
    %c2_169 = arith.constant 2 : index
    %c0_170 = arith.constant 0 : index
    %121 = vector.load %arg14[%c0_167, %c1_168, %c2_169, %c0_170] : memref<2x10x10x16xbf16, #tpu.memory_space<vmem>>, vector<2x8x8x16xbf16>
    %122 = vector.shape_cast %121 : vector<2x8x8x16xbf16> to vector<128x16xbf16>
    %c0_171 = arith.constant 0 : index
    %c2_172 = arith.constant 2 : index
    %c0_173 = arith.constant 0 : index
    %c0_174 = arith.constant 0 : index
    %123 = vector.load %arg14[%c0_171, %c2_172, %c0_173, %c0_174] : memref<2x10x10x16xbf16, #tpu.memory_space<vmem>>, vector<2x8x8x16xbf16>
    %124 = vector.shape_cast %123 : vector<2x8x8x16xbf16> to vector<128x16xbf16>
    %c0_175 = arith.constant 0 : index
    %c2_176 = arith.constant 2 : index
    %c1_177 = arith.constant 1 : index
    %c0_178 = arith.constant 0 : index
    %125 = vector.load %arg14[%c0_175, %c2_176, %c1_177, %c0_178] : memref<2x10x10x16xbf16, #tpu.memory_space<vmem>>, vector<2x8x8x16xbf16>
    %126 = vector.shape_cast %125 : vector<2x8x8x16xbf16> to vector<128x16xbf16>
    %c0_179 = arith.constant 0 : index
    %c2_180 = arith.constant 2 : index
    %c2_181 = arith.constant 2 : index
    %c0_182 = arith.constant 0 : index
    %127 = vector.load %arg14[%c0_179, %c2_180, %c2_181, %c0_182] : memref<2x10x10x16xbf16, #tpu.memory_space<vmem>>, vector<2x8x8x16xbf16>
    %128 = vector.shape_cast %127 : vector<2x8x8x16xbf16> to vector<128x16xbf16>
    %129 = tpu.concatenate %112, %114, %116, %118, %120, %122, %124, %126, %128 in 1 : vector<128x16xbf16>, vector<128x16xbf16>, vector<128x16xbf16>, vector<128x16xbf16>, vector<128x16xbf16>, vector<128x16xbf16>, vector<128x16xbf16>, vector<128x16xbf16>, vector<128x16xbf16> -> vector<128x144xbf16>
    %c0_183 = arith.constant 0 : index
    %c0_184 = arith.constant 0 : index
    %130 = vector.load %arg9[%c0_183, %c0_184] : memref<144x16xbf16, #tpu.memory_space<vmem>>, vector<144x16xbf16>
    %cst_185 = arith.constant dense<0.000000e+00> : vector<128x16xf32>
    %131 = tpu.matmul %129, %130, %cst_185 {dimension_numbers = #tpu.dot_dimension_numbers<[1], [0], [0], [1], [0, 0, 1, 1], [], []>} : vector<128x144xbf16>, vector<144x16xbf16>, vector<128x16xf32> -> vector<128x16xf32>
    %c0_186 = arith.constant 0 : index
    %c0_187 = arith.constant 0 : index
    %132 = vector.load %arg10[%c0_186, %c0_187] : memref<1x16xf32, #tpu.memory_space<vmem>>, vector<1x16xf32>
    %c0_188 = arith.constant 0 : index
    %c0_189 = arith.constant 0 : index
    %133 = vector.load %arg11[%c0_188, %c0_189] : memref<1x16xf32, #tpu.memory_space<vmem>>, vector<1x16xf32>
    %cst_190 = arith.constant dense<0.000000e+00> : vector<16xf32>
    %134 = vector.multi_reduction <add>, %131, %cst_190 [0] : vector<128x16xf32> to vector<16xf32>
    %135 = vector.shape_cast %134 : vector<16xf32> to vector<1x16xf32>
    %cst_191 = arith.constant 1.280000e+02 : f32
    %136 = vector.broadcast %cst_191 : f32 to vector<1x16xf32>
    %137 = arith.divf %135, %136 : vector<1x16xf32>
    %138 = arith.mulf %131, %131 : vector<128x16xf32>
    %cst_192 = arith.constant dense<0.000000e+00> : vector<16xf32>
    %139 = vector.multi_reduction <add>, %138, %cst_192 [0] : vector<128x16xf32> to vector<16xf32>
    %140 = vector.shape_cast %139 : vector<16xf32> to vector<1x16xf32>
    %cst_193 = arith.constant 1.280000e+02 : f32
    %141 = vector.broadcast %cst_193 : f32 to vector<1x16xf32>
    %142 = arith.divf %140, %141 : vector<1x16xf32>
    %143 = arith.mulf %137, %137 : vector<1x16xf32>
    %144 = arith.subf %142, %143 : vector<1x16xf32>
    %145 = vector.broadcast %137 : vector<1x16xf32> to vector<128x16xf32>
    %146 = arith.subf %131, %145 : vector<128x16xf32>
    %cst_194 = arith.constant 9.99999974E-6 : f32
    %147 = vector.broadcast %cst_194 : f32 to vector<1x16xf32>
    %148 = arith.addf %144, %147 : vector<1x16xf32>
    %149 = math.rsqrt %148 : vector<1x16xf32>
    %150 = vector.broadcast %149 : vector<1x16xf32> to vector<128x16xf32>
    %151 = arith.mulf %146, %150 : vector<128x16xf32>
    %152 = vector.broadcast %132 : vector<1x16xf32> to vector<128x16xf32>
    %153 = arith.mulf %151, %152 : vector<128x16xf32>
    %154 = vector.broadcast %133 : vector<1x16xf32> to vector<128x16xf32>
    %155 = arith.addf %153, %154 : vector<128x16xf32>
    %156 = arith.addf %38, %155 : vector<128x16xf32>
    %cst_195 = arith.constant 0.000000e+00 : f32
    %157 = vector.broadcast %cst_195 : f32 to vector<128x16xf32>
    %158 = arith.cmpf ogt, %156, %157 : vector<128x16xf32>
    %cst_196 = arith.constant 2.000000e-01 : f32
    %159 = vector.broadcast %cst_196 : f32 to vector<128x16xf32>
    %160 = arith.mulf %159, %156 : vector<128x16xf32>
    %161 = arith.select %158, %156, %160 : vector<128x16xi1>, vector<128x16xf32>
    %162 = tpu.transpose %161, [1, 0] : vector<128x16xf32> -> vector<16x128xf32>
    %c0_197 = arith.constant 0 : index
    %c0_198 = arith.constant 0 : index
    %163 = vector.load %arg12[%c0_197, %c0_198] : memref<16x128xf32, #tpu.memory_space<vmem>>, vector<16x128xf32>
    tpu.vector_store %arg12[%c0_197, %c0_198], %162 {strides = array<i32>} : memref<16x128xf32, #tpu.memory_space<vmem>>, vector<16x128xf32>,
    return
  }
  func.func @transform_0(%arg0: i32) -> (i32, i32, i32, i32, i32) {
    %c0_i32 = arith.constant 0 : i32
    %c0_i32_0 = arith.constant 0 : i32
    %c0_i32_1 = arith.constant 0 : i32
    %c0_i32_2 = arith.constant 0 : i32
    %c0_i32_3 = arith.constant 0 : i32
    %c0_i32_4 = arith.constant 0 : i32
    return %c0_i32, %c0_i32_0, %c0_i32_1, %c0_i32_2, %c0_i32_3 : i32, i32, i32, i32, i32
  }
  func.func @transform_1(%arg0: i32) -> (i32, i32) {
    %c0_i32 = arith.constant 0 : i32
    %c0_i32_0 = arith.constant 0 : i32
    %c0_i32_1 = arith.constant 0 : i32
    return %c0_i32, %c0_i32_0 : i32, i32
  }
  func.func @transform_2(%arg0: i32) -> (i32, i32) {
    %c0_i32 = arith.constant 0 : i32
    %c0_i32_0 = arith.constant 0 : i32
    %c0_i32_1 = arith.constant 0 : i32
    return %c0_i32, %c0_i32_0 : i32, i32
  }
  func.func @transform_3(%arg0: i32) -> (i32, i32) {
    %c0_i32 = arith.constant 0 : i32
    %c0_i32_0 = arith.constant 0 : i32
    %c0_i32_1 = arith.constant 0 : i32
    return %c0_i32, %c0_i32_0 : i32, i32
  }
  func.func @transform_4(%arg0: i32) -> (i32, i32) {
    %c0_i32 = arith.constant 0 : i32
    %c0_i32_0 = arith.constant 0 : i32
    %c0_i32_1 = arith.constant 0 : i32
    return %c0_i32, %c0_i32_0 : i32, i32
  }
  func.func @transform_5(%arg0: i32) -> (i32, i32) {
    %c0_i32 = arith.constant 0 : i32
    %c0_i32_0 = arith.constant 0 : i32
    %c0_i32_1 = arith.constant 0 : i32
    return %c0_i32, %c0_i32_0 : i32, i32
  }
  func.func @transform_6(%arg0: i32) -> (i32, i32) {
    %c0_i32 = arith.constant 0 : i32
    %c0_i32_0 = arith.constant 0 : i32
    %c0_i32_1 = arith.constant 0 : i32
    return %c0_i32, %c0_i32_0 : i32, i32
  }
  func.func @transform_7(%arg0: i32) -> (i32, i32) {
    %c0_i32 = arith.constant 0 : i32
    %c0_i32_0 = arith.constant 0 : i32
    %c0_i32_1 = arith.constant 0 : i32
    return %c0_i32, %c0_i32_0 : i32, i32
  }
  func.func @transform_8(%arg0: i32) -> (i32, i32) {
    %c0_i32 = arith.constant 0 : i32
    %c0_i32_0 = arith.constant 0 : i32
    %c0_i32_1 = arith.constant 0 : i32
    return %c0_i32, %c0_i32_0 : i32, i32
  }
  func.func @transform_9(%arg0: i32) -> (i32, i32) {
    %c0_i32 = arith.constant 0 : i32
    %c0_i32_0 = arith.constant 0 : i32
    %c0_i32_1 = arith.constant 0 : i32
    return %c0_i32, %c0_i32_0 : i32, i32
  }
  func.func @transform_10(%arg0: i32) -> (i32, i32) {
    %c0_i32 = arith.constant 0 : i32
    %c0_i32_0 = arith.constant 0 : i32
    %c0_i32_1 = arith.constant 0 : i32
    return %c0_i32, %c0_i32_0 : i32, i32
  }
  func.func @transform_11(%arg0: i32) -> (i32, i32) {
    %c0_i32 = arith.constant 0 : i32
    %c0_i32_0 = arith.constant 0 : i32
    %c0_i32_1 = arith.constant 0 : i32
    return %c0_i32, %c0_i32_0 : i32, i32
  }
}

</mosaic_0001>

<bundles_post_ra>
// kernel: ds_res_convdown_forward.1
= control target key start
LH: loop header
LB: loop body
LE: loop exit
PB: predicated region body
PF: predicated region fallthrough
CT: control target
= control target key end

     0   :  { %s7530_s23 = smov 8   ;;  %vm88_vm0 = vsmask.f32 3328  ;;  %vm89_vm1 = vsmask.f32 7440  ;;  %s7531_s26 = smov 24   ;;  %s11627_s0 = inlined_call_operand.vmem [shape: bf16[4,2,9,9,8], index: 0, kind: input, shape index: {}]   ;;  %s11628_s1 = inlined_call_operand.vmem [shape: bf16[72,8], index: 1, kind: input, shape index: {}]   ;;  %s11629_s3 = inlined_call_operand.vmem [shape: bf16[8,16], index: 3, kind: input, shape index: {}]   ;;  %s11630_s2 = inlined_call_operand.vmem [shape: f32[1,8], index: 2, kind: input, shape index: {}]   ;;  %s11631_s5 = inlined_call_operand.vmem [shape: bf16[72,16], index: 5, kind: input, shape index: {}]   ;;  %s11632_s6 = inlined_call_operand.vmem [shape: f32[1,16], index: 6, kind: input, shape index: {}]   ;;  %s11633_s7 = inlined_call_operand.vmem [shape: f32[1,16], index: 7, kind: input, shape index: {}]   ;;  %s11634_s8 = inlined_call_operand.vmem [shape: bf16[144,16], index: 8, kind: input, shape index: {}]   ;;  %s11635_s9 = inlined_call_operand.vmem [shape: f32[1,16], index: 9, kind: input, shape index: {}]   ;;  %s11636_s10 = inlined_call_operand.vmem [shape: f32[1,16], index: 10, kind: input, shape index: {}]   ;;  %s11637_s4 = inlined_call_operand.vmem [shape: f32[1,16], index: 4, kind: input, shape index: {}]   ;;  %s11638_s11 = inlined_call_operand.vmem [shape: f32[16,128], index: 11, kind: output, shape index: {}]  }
   0x1   :  { %v7391_v0 = vld [vmem:[%s11627_s0 + $0x90] ss:$8 sps:$4 sm:$0xff]   ;;  %v7393_v8 = vld [vmem:[%s11627_s0 + $0xa0] ss:$8 sps:$4 sm:$0xff]   ;;  %v72_v25 = vld [vmem:[%s11627_s0 + $0x4] sm:$0x1] }
   0x2   :  { %v6726_v1 = vld [vmem:[%s11627_s0 + $0x130] sm:$0xf]  ;;  %v6727_v2 = vld [vmem:[%s11627_s0 + $0x138] sm:$0xf]  ;;  %943 = vrot.lane.b32.xlu0 %v7391_v0, %s7530_s23  ;;  %v7394_v13 = vld [vmem:[%s11627_s0 + $0x1c0] ss:$8 sps:$4 sm:$0xff]  }
   0x3   :  { %v408_v3 = vshrl.u32 %v6727_v2, 16  ;;  %v411_v4 = vshll.u32 %v6727_v2, 16  ;;  %v6845_v5 = vcombine.low %v6726_v1, %v6727_v2  ;;  %v394_v6 = vshrl.u32 %v6726_v1, 16  ;;  %v6724_v14 = vld [vmem:[%s11627_s0 + $0x120] sm:$0xf]  ;;  %s7532_s20 = smov 32   ;;  %vm7677_vm2 = vmor %vm88_vm0, %vm89_vm1 }
   0x4   :  { %v397_v7 = vshll.u32 %v6726_v1, 16  ;;  %v6725_v16 = vld [vmem:[%s11627_s0 + $0x128] sm:$0xf]  ;;  %v366_v17 = vshrl.u32 %v6724_v14, 16  ;;  %v369_v18 = vshll.u32 %v6724_v14, 16  ;;  %v101_v36 = vshll.u32 %v72_v25, 16 }
   0x5   :  { %v410_v9 = vrot.slane %v408_v3, 4  ;;  %v413_v10 = vrot.slane %v411_v4, 5  ;;  %1041 = vrot.lane.b32.xlu1 %v6845_v5, %s7531_s26  ;;  %v396_v11 = vrot.slane %v394_v6, 4  ;;  %v7629_v19 = vld [vmem:[%s11627_s0] sm:$0xf]  ;;  %v380_v21 = vshrl.u32 %v6725_v16, 16 }
   0x6   :  { %v399_v12 = vrot.slane %v397_v7, 5  ;;  %945 = vrot.lane.b32.xlu0 %v7393_v8, %s7530_s23  ;;  %v383_v22 = vshll.u32 %v6725_v16, 16  ;;  %v6844_v23 = vcombine.low %v6724_v14, %v6725_v16  ;;  %v7634_v24 = vld [vmem:[%s11627_s0 + $0x8] sm:$0xf]  ;;  %v368_v27 = vrot.slane %v366_v17, 4  ;;  %s7533_s12 = smov 16  }
   0x7   :  { %v414_v15 = vor.u32 %v413_v10, %v410_v9  ;;  %v371_v28 = vrot.slane %v369_v18, 5  ;;  %v73_v29 = vld [vmem:[%s11627_s0 + $0xc] sm:$0x1]  ;;  %v92_v30 = vshrl.u32 %v7629_v19, 16  ;;  %v382_v32 = vrot.slane %v380_v21, 4  ;;  %s7534_s19 = smov 40  }
   0x8   :  { %v400_v20 = vor.u32 %v399_v12, %v396_v11  ;;  %v385_v33 = vrot.slane %v383_v22, 5  ;;  %v95_v34 = vshll.u32 %v7629_v19, 16  ;;  %v106_v37 = vshrl.u32 %v7634_v24, 16  ;;  %v7396_v41 = vld [vmem:[%s11627_s0 + $0x1b0] ss:$8 sps:$4 sm:$0xff]   ;;  %s7535_s13 = smov 48  }
   0x9   :  { %v7639_v26 = vrot.slane %v414_v15, 4  ;;  %1097 = vrot.lane.b32.xlu1 %v7394_v13, %s7532_s20  ;;  %v94_v35 = vrot.slane %v92_v30, 4  ;;  %v109_v38 = vshll.u32 %v7634_v24, 16  ;;  %v115_v40 = vshll.u32 %v73_v29, 16  ;;  %v7658_v42 = vld [vmem:[%s11627_s0 + $0x10] sm:$0xf] }
   0xa   :  { %v7646_v31 = vrot.slane %v400_v20, 4  ;;  %1039 = vrot.lane.b32.xlu0 %v6844_v23, %s7531_s26  ;;  %v97_v39 = vrot.slane %v95_v34, 5  ;;  %v372_v43 = vor.u32 %v371_v28, %v368_v27  ;;  %v386_v44 = vor.u32 %v385_v33, %v382_v32  ;;  %v7663_v48 = vld [vmem:[%s11627_s0 + $0x18] sm:$0xf]  ;;  %v74_v52 = vld [vmem:[%s11627_s0 + $0x14] sm:$0x1] }
   0xb   :  { %v103_v45 = vrot.slane %v101_v36, 5  ;;  %v108_v46 = vrot.slane %v106_v37, 4  ;;  %v111_v47 = vrot.slane %v109_v38, 5  ;;  %v120_v49 = vshrl.u32 %v7658_v42, 16  ;;  %v75_v53 = vld [vmem:[%s11627_s0 + $0x1c] sm:$0x1] }
   0xc   :  { %v98_v50 = vor.u32 %v97_v39, %v94_v35  ;;  %v117_v51 = vrot.slane %v115_v40, 5  ;;  %v123_v54 = vshll.u32 %v7658_v42, 16  ;;  %v6820_v55 = vcombine.low %v7629_v19, %v7634_v24  ;;  %v6756_v61 = vld [vmem:[%s11627_s0 + $0x124] sm:$0x1]  ;;  %v6757_v2 = vld [vmem:[%s11627_s0 + $0x12c] sm:$0x1] }
   0xd   :  { %v112_v57 = vor.u32 %v111_v47, %v108_v46  ;;  %v122_v58 = vrot.slane %v120_v49, 4  ;;  %v129_v59 = vshll.u32 %v74_v52, 16  ;;  %v134_v60 = vshrl.u32 %v7663_v48, 16  ;;  %v6758_v7 = vld [vmem:[%s11627_s0 + $0x134] sm:$0x1]  ;;  %s7536_s22 = smov 56  }
   0xe   :  { %1095 = vrot.lane.b32.xlu0 %v7396_v41, %s7532_s20  ;;  %v99_v62 = vrot.slane %v98_v50, 4  ;;  %v125_v63 = vrot.slane %v123_v54, 5  ;;  %v137_v0 = vshll.u32 %v7663_v48, 16  ;;  %v143_v1 = vshll.u32 %v75_v53, 16  ;;  %v6759_v12 = vld [vmem:[%s11627_s0 + $0x13c] sm:$0x1] }
   0xf   :  { %v113_v3 = vrot.slane %v112_v57, 4  ;;  %v131_v4 = vrot.slane %v129_v59, 5  ;;  %v136_v5 = vrot.slane %v134_v60, 4  ;;  %v373_v6 = vrot.slane %v372_v43, 4  ;;  %v6772_v13 = vld [vmem:[%s11627_s0 + $0x8] sm:$0xf] }
  0x10   :  { %v104_v8 = vsel %vm7677_vm2, %v99_v62, %v103_v45  ;;  %v126_v9 = vor.u32 %v125_v63, %v122_v58  ;;  %v139_v10 = vrot.slane %v137_v0, 5  ;;  %v145_v11 = vrot.slane %v143_v1, 5  ;;  %v6773_v23 = vld [vmem:[%s11627_s0 + $0x10] sm:$0xf]  ;;  %v7716_v39 = vld [vmem:[%s11627_s0 + $0x18] sm:$0xf] }
  0x11   :  { %v118_v14 = vsel %vm7677_vm2, %v113_v3, %v117_v51  ;;  %v375_v15 = vshll.u32 %v6756_v61, 16  ;;  %v387_v16 = vrot.slane %v386_v44, 4  ;;  %v389_v17 = vshll.u32 %v6757_v2, 16  ;;  %v6775_v45 = vld [vmem:[%s11627_s0 + $0x20] sm:$0xf]  ;;  %s7537_s24 = smov 64  }
  0x12   :  { %v6836_v18 = vcombine.low %v104_v8, %v118_v14  ;;  %v127_v20 = vrot.slane %v126_v9, 4  ;;  %v140_v21 = vor.u32 %v139_v10, %v136_v5  ;;  %v403_v22 = vshll.u32 %v6758_v7, 16  ;;  %v6804_v51 = vld [vmem:[%s11627_s0 + $0xc] sm:$0x1]  ;;  %v6805_v60 = vld [vmem:[%s11627_s0 + $0x14] sm:$0x1] }
  0x13   :  { %v377_v25 = vrot.slane %v375_v15, 5  ;;  %v391_v27 = vrot.slane %v389_v17, 5  ;;  %v417_v28 = vshll.u32 %v6759_v12, 16  ;;  %v640_v29 = vshrl.u32 %v6772_v13, 16  ;;  %v7399_v0 = vld [vmem:[%s11627_s0 + $0x98] ss:$8 sps:$4 sm:$0xff]  }
  0x14   :  { %983 = vrot.lane.b32.xlu1 %v6836_v18, %s7533_s12  ;;  %v132_v30 = vsel %vm7677_vm2, %v127_v20, %v131_v4  ;;  %v141_v32 = vrot.slane %v140_v21, 4  ;;  %v405_v33 = vrot.slane %v403_v22, 5  ;;  %v643_v34 = vshll.u32 %v6772_v13, 16  ;;  %v6806_v2 = vld [vmem:[%s11627_s0 + $0x1c] sm:$0x1]  ;;  %s7540_s18 = smov 80  }
  0x15   :  { %v378_v35 = vsel %vm7677_vm2, %v373_v6, %v377_v25  ;;  %v392_v36 = vsel %vm7677_vm2, %v387_v16, %v391_v27  ;;  %v419_v37 = vrot.slane %v417_v28, 5  ;;  %v642_v38 = vrot.slane %v640_v29, 4  ;;  %v6807_v3 = vld [vmem:[%s11627_s0 + $0x24] sm:$0x1]  ;;  %v7754_v20 = vld [vmem:[%s11627_s0 + $0x20] sm:$0xf] }
  0x16   :  { %v146_v40 = vsel %vm7677_vm2, %v141_v32, %v145_v11  ;;  %v6860_v41 = vcombine.low %v378_v35, %v392_v36  ;;  %v406_v43 = vsel %vm7677_vm2, %v7646_v31, %v405_v33  ;;  %v645_v44 = vrot.slane %v643_v34, 5  ;;  %v7761_v25 = vld [vmem:[%s11627_s0 + $0x28] sm:$0xf]  ;;  %v76_v27 = vld [vmem:[%s11627_s0 + $0x24] sm:$0x1] }
  0x17   :  { %v6837_v46 = vcombine.low %v132_v30, %v146_v40  ;;  %v420_v47 = vsel %vm7677_vm2, %v7639_v26, %v419_v37  ;;  %v654_v49 = vshrl.u32 %v6773_v23, 16  ;;  %v657_v50 = vshll.u32 %v6773_v23, 16  ;;  %v77_v32 = vld [vmem:[%s11627_s0 + $0x2c] sm:$0x1]  ;;  %v7781_v35 = vld [vmem:[%s11627_s0 + $0x30] sm:$0xf] }
  0x18   :  { %1135 = vrot.lane.b32.xlu0 %v6860_v41, %s7534_s19  ;;  %v6861_v31 = vcombine.low %v406_v43, %v420_v47  ;;  %v6868_v52 = vcombine.low %v6772_v13, %v6773_v23  ;;  %v668_v53 = vshrl.u32 %v7716_v39, 16  ;;  %v671_v54 = vshll.u32 %v7716_v39, 16  ;;  %v7400_v36 = vld [vmem:[%s11627_s0 + $0xa8] ss:$8 sps:$4 sm:$0xff]   ;;  %v78_v41 = vld [vmem:[%s11627_s0 + $0x34] sm:$0x1] }
  0x19   :  { %985 = vrot.lane.b32.xlu1 %v6837_v46, %s7533_s12  ;;  %v656_v57 = vrot.slane %v654_v49, 4  ;;  %v659_v58 = vrot.slane %v657_v50, 5  ;;  %v682_v26 = vshrl.u32 %v6775_v45, 16  ;;  %v685_v59 = vshll.u32 %v6775_v45, 16  ;;  %v7797_v47 = vld [vmem:[%s11627_s0 + $0x38] sm:$0xf] }
  0x1a   :  { %v670_v61 = vrot.slane %v668_v53, 4  ;;  %v673_v62 = vrot.slane %v671_v54, 5  ;;  %v6869_v63 = vcombine.low %v7716_v39, %v6775_v45  ;;  %v646_v1 = vor.u32 %v645_v44, %v642_v38 }
  0x1b   :  { %v684_v4 = vrot.slane %v682_v26, 4  ;;  %v687_v5 = vrot.slane %v685_v59, 5  ;;  %v649_v6 = vshll.u32 %v6804_v51, 16  ;;  %v660_v7 = vor.u32 %v659_v58, %v656_v57  ;;  %v7808_v26 = vld [vmem:[%s11627_s0 + $0x140] sm:$0xf] }
  0x1c   :  { %1191 = vrot.lane.b32.xlu0 %v6868_v52, %s7535_s13  ;;  %v647_v8 = vrot.slane %v646_v1, 4  ;;  %v663_v9 = vshll.u32 %v6805_v60, 16  ;;  %v674_v10 = vor.u32 %v673_v62, %v670_v61  ;;  %v677_v11 = vshll.u32 %v6806_v2, 16  ;;  %v7401_v59 = vld [vmem:[%s11627_s0 + $0xb0] ss:$8 sps:$4 sm:$0xff]  }
  0x1d   :  { %1137 = vrot.lane.b32.xlu1 %v6861_v31, %s7534_s19  ;;  %v651_v12 = vrot.slane %v649_v6, 5  ;;  %v661_v13 = vrot.slane %v660_v7, 4  ;;  %v688_v14 = vor.u32 %v687_v5, %v684_v4  ;;  %v691_v15 = vshll.u32 %v6807_v3, 16  ;;  %v79_v31 = vld [vmem:[%s11627_s0 + $0x3c] sm:$0x1] }
  0x1e   :  { %v665_v16 = vrot.slane %v663_v9, 5  ;;  %v675_v17 = vrot.slane %v674_v10, 4  ;;  %v679_v18 = vrot.slane %v677_v11, 5  ;;  %v6821_v28 = vcombine.low %v7658_v42, %v7663_v48  ;;  %v6729_v4 = vld [vmem:[%s11627_s0 + $0x148] sm:$0xf] }
  0x1f   :  { %v652_v21 = vsel %vm7677_vm2, %v647_v8, %v651_v12  ;;  %v689_v22 = vrot.slane %v688_v14, 4  ;;  %v693_v23 = vrot.slane %v691_v15, 5  ;;  %v148_v33 = vshrl.u32 %v7754_v20, 16  ;;  %v7402_v5 = vld [vmem:[%s11627_s0 + $0xc0] ss:$8 sps:$4 sm:$0xff]  }
  0x20   :  { %1247 = vrot.lane.b32.xlu0 %v7399_v0, %s7536_s22  ;;  %v666_v29 = vsel %vm7677_vm2, %v661_v13, %v665_v16  ;;  %v680_v30 = vsel %vm7677_vm2, %v675_v17, %v679_v18  ;;  %v151_v34 = vshll.u32 %v7754_v20, 16  ;;  %v157_v39 = vshll.u32 %v76_v27, 16  ;;  %v7826_v10 = vld [vmem:[%s11627_s0 + $0x150] sm:$0xf]  ;;  %v7835_v15 = vld [vmem:[%s11627_s0 + $0x158] sm:$0xf] }
  0x21   :  { %1193 = vrot.lane.b32.xlu1 %v6869_v63, %s7535_s13  ;;  %v6884_v37 = vcombine.low %v652_v21, %v666_v29  ;;  %v694_v38 = vsel %vm7677_vm2, %v689_v22, %v693_v23  ;;  %v162_v40 = vshrl.u32 %v7761_v25, 16  ;;  %v150_v44 = vrot.slane %v148_v33, 4 }
  0x22   :  { %v6885_v43 = vcombine.low %v680_v30, %v694_v38  ;;  %v153_v45 = vrot.slane %v151_v34, 5  ;;  %v165_v46 = vshll.u32 %v7761_v25, 16  ;;  %v159_v49 = vrot.slane %v157_v39, 5 }
  0x23   :  { %v164_v50 = vrot.slane %v162_v40, 4  ;;  %v171_v51 = vshll.u32 %v77_v32, 16  ;;  %v176_v52 = vshrl.u32 %v7781_v35, 16  ;;  %v179_v57 = vshll.u32 %v7781_v35, 16  ;;  %v6760_v40 = vld [vmem:[%s11627_s0 + $0x144] sm:$0x1] }
  0x24   :  { %1287 = vrot.lane.b32.xlu0 %v6884_v37, %s7537_s24  ;;  %v154_v53 = vor.u32 %v153_v45, %v150_v44  ;;  %v167_v54 = vrot.slane %v165_v46, 5  ;;  %v185_v58 = vshll.u32 %v78_v41, 16  ;;  %v190_v62 = vshrl.u32 %v7797_v47, 16  ;;  %v6761_v46 = vld [vmem:[%s11627_s0 + $0x14c] sm:$0x1] }
  0x25   :  { %1249 = vrot.lane.b32.xlu1 %v7400_v36, %s7536_s22  ;;  %v173_v60 = vrot.slane %v171_v51, 5  ;;  %v178_v61 = vrot.slane %v176_v52, 4  ;;  %v193_v63 = vshll.u32 %v7797_v47, 16  ;;  %v181_v2 = vrot.slane %v179_v57, 5 }
  0x26   :  { %v155_v0 = vrot.slane %v154_v53, 4  ;;  %v168_v1 = vor.u32 %v167_v54, %v164_v50  ;;  %v187_v3 = vrot.slane %v185_v58, 5  ;;  %v192_v6 = vrot.slane %v190_v62, 4  ;;  %v6763_v53 = vld [vmem:[%s11627_s0 + $0x15c] sm:$0x1] }
  0x27   :  { %v195_v7 = vrot.slane %v193_v63, 5  ;;  %v199_v8 = vshll.u32 %v79_v31, 16  ;;  %v422_v9 = vshrl.u32 %v7808_v26, 16  ;;  %v182_v13 = vor.u32 %v181_v2, %v178_v61  ;;  %v7405_v58 = vld [vmem:[%s11627_s0 + $0x1d0] ss:$8 sps:$4 sm:$0xff]  }
  0x28   :  { %1289 = vrot.lane.b32.xlu0 %v6885_v43, %s7537_s24  ;;  %v160_v11 = vsel %vm7677_vm2, %v155_v0, %v159_v49  ;;  %v169_v12 = vrot.slane %v168_v1, 4  ;;  %v425_v14 = vshll.u32 %v7808_v26, 16  ;;  %v436_v21 = vshrl.u32 %v6729_v4, 16  ;;  %v6762_v49 = vld [vmem:[%s11627_s0 + $0x154] sm:$0x1] }
  0x29   :  { %947 = vrot.lane.b32.xlu1 %v7401_v59, %s7530_s23  ;;  %v196_v16 = vor.u32 %v195_v7, %v192_v6  ;;  %v201_v17 = vrot.slane %v199_v8, 5  ;;  %v424_v18 = vrot.slane %v422_v9, 4  ;;  %v183_v23 = vrot.slane %v182_v13, 4  ;;  %v7876_v1 = vld [vmem:[%s11627_s0 + $0x30] sm:$0xf] }
  0x2a   :  { %v174_v22 = vsel %vm7677_vm2, %v169_v12, %v173_v60  ;;  %v427_v27 = vrot.slane %v425_v14, 5  ;;  %v439_v29 = vshll.u32 %v6729_v4, 16  ;;  %v438_v33 = vrot.slane %v436_v21, 4  ;;  %v7871_v60 = vld [vmem:[%s11627_s0 + $0x28] sm:$0xf] }
  0x2b   :  { %v6838_v30 = vcombine.low %v160_v11, %v174_v22  ;;  %v197_v32 = vrot.slane %v196_v16, 4  ;;  %v6846_v34 = vcombine.low %v7808_v26, %v6729_v4  ;;  %v188_v36 = vsel %vm7677_vm2, %v183_v23, %v187_v3  ;;  %v7883_v6 = vld [vmem:[%s11627_s0 + $0x38] sm:$0xf]  ;;  %v7406_v22 = vld [vmem:[%s11627_s0 + $0x1e0] ss:$8 sps:$4 sm:$0xff]  }
  0x2c   :  { %v441_v37 = vrot.slane %v439_v29, 5  ;;  %v450_v38 = vshrl.u32 %v7826_v10, 16  ;;  %v453_v39 = vshll.u32 %v7826_v10, 16  ;;  %v464_v43 = vshrl.u32 %v7835_v15, 16 }
  0x2d   :  { %949 = vrot.lane.b32.xlu1 %v7402_v5, %s7530_s23  ;;  %987 = vrot.lane.b32.xlu0 %v6838_v30, %s7533_s12  ;;  %v202_v41 = vsel %vm7677_vm2, %v197_v32, %v201_v17  ;;  %v467_v44 = vshll.u32 %v7835_v15, 16  ;;  %v6847_v45 = vcombine.low %v7826_v10, %v7835_v15  ;;  %v428_v52 = vor.u32 %v427_v27, %v424_v18  ;;  %v7892_v15 = vld [vmem:[%s11627_s0 + $0x40] sm:$0xf]  ;;  %v6808_v32 = vld [vmem:[%s11627_s0 + $0x2c] sm:$0x1] }
  0x2e   :  { %v6839_v50 = vcombine.low %v188_v36, %v202_v41  ;;  %v452_v51 = vrot.slane %v450_v38, 4  ;;  %v455_v31 = vrot.slane %v453_v39, 5  ;;  %v466_v54 = vrot.slane %v464_v43, 4  ;;  %v6809_v38 = vld [vmem:[%s11627_s0 + $0x34] sm:$0x1] }
  0x2f   :  { %v469_v57 = vrot.slane %v467_v44, 5  ;;  %v431_v26 = vshll.u32 %v6760_v40, 16  ;;  %v442_v59 = vor.u32 %v441_v37, %v438_v33  ;;  %v429_v61 = vrot.slane %v428_v52, 4 }
  0x30   :  { %v445_v62 = vshll.u32 %v6761_v46, 16  ;;  %v456_v63 = vor.u32 %v455_v31, %v452_v51  ;;  %v459_v0 = vshll.u32 %v6762_v49, 16  ;;  %v473_v5 = vshll.u32 %v6763_v53, 16 }
  0x31   :  { %989 = vrot.lane.b32.xlu1 %v6839_v50, %s7533_s12  ;;  %1043 = vrot.lane.b32.xlu0 %v6846_v34, %s7531_s26  ;;  %v433_v2 = vrot.slane %v431_v26, 5  ;;  %v443_v3 = vrot.slane %v442_v59, 4  ;;  %v470_v4 = vor.u32 %v469_v57, %v466_v54  ;;  %v696_v10 = vshrl.u32 %v7871_v60, 16  ;;  %v6810_v50 = vld [vmem:[%s11627_s0 + $0x3c] sm:$0x1] }
  0x32   :  { %v447_v7 = vrot.slane %v445_v62, 5  ;;  %v457_v8 = vrot.slane %v456_v63, 4  ;;  %v461_v9 = vrot.slane %v459_v0, 5  ;;  %v475_v13 = vrot.slane %v473_v5, 5  ;;  %v6811_v54 = vld [vmem:[%s11627_s0 + $0x44] sm:$0x1] }
  0x33   :  { %v434_v11 = vsel %vm7677_vm2, %v429_v61, %v433_v2  ;;  %v471_v12 = vrot.slane %v470_v4, 4  ;;  %v699_v14 = vshll.u32 %v7871_v60, 16  ;;  %v698_v18 = vrot.slane %v696_v10, 4  ;;  %v7937_v4 = vld [vmem:[%s11627_s0 + $0x48] sm:$0xf] }
  0x34   :  { %v448_v16 = vsel %vm7677_vm2, %v443_v3, %v447_v7  ;;  %v462_v17 = vsel %vm7677_vm2, %v457_v8, %v461_v9  ;;  %v710_v21 = vshrl.u32 %v7876_v1, 16  ;;  %v713_v30 = vshll.u32 %v7876_v1, 16  ;;  %v7942_v5 = vld [vmem:[%s11627_s0 + $0x50] sm:$0xf]  ;;  %v80_v10 = vld [vmem:[%s11627_s0 + $0x4c] sm:$0x1] }
  0x35   :  { %1045 = vrot.lane.b32.xlu1 %v6847_v45, %s7531_s26  ;;  %1099 = vrot.lane.b32.xlu0 %v7405_v58, %s7532_s20  ;;  %v6862_v23 = vcombine.low %v434_v11, %v448_v16  ;;  %v476_v27 = vsel %vm7677_vm2, %v471_v12, %v475_v13  ;;  %v701_v29 = vrot.slane %v699_v14, 5  ;;  %v6870_v36 = vcombine.low %v7871_v60, %v7876_v1  ;;  %v7409_v60 = vld [vmem:[%s11627_s0 + $0xb8] ss:$8 sps:$4 sm:$0xff]   ;;  %v81_v13 = vld [vmem:[%s11627_s0 + $0x54] sm:$0x1] }
  0x36   :  { %v6863_v33 = vcombine.low %v462_v17, %v476_v27  ;;  %v712_v34 = vrot.slane %v710_v21, 4  ;;  %v724_v37 = vshrl.u32 %v7883_v6, 16  ;;  %v715_v39 = vrot.slane %v713_v30, 5  ;;  %v7410_v17 = vld [vmem:[%s11627_s0 + $0xc8] ss:$8 sps:$4 sm:$0xff]  }
  0x37   :  { %v727_v40 = vshll.u32 %v7883_v6, 16  ;;  %v738_v41 = vshrl.u32 %v7892_v15, 16  ;;  %v741_v43 = vshll.u32 %v7892_v15, 16  ;;  %v6871_v45 = vcombine.low %v7883_v6, %v7892_v15  ;;  %v7969_v27 = vld [vmem:[%s11627_s0 + $0x58] sm:$0xf] }
  0x38   :  { %v726_v44 = vrot.slane %v724_v37, 4  ;;  %v702_v46 = vor.u32 %v701_v29, %v698_v18  ;;  %v705_v49 = vshll.u32 %v6808_v32, 16  ;;  %v716_v53 = vor.u32 %v715_v39, %v712_v34  ;;  %v7974_v29 = vld [vmem:[%s11627_s0 + $0x60] sm:$0xf]  ;;  %v83_v39 = vld [vmem:[%s11627_s0 + $0x64] sm:$0x1] }
  0x39   :  { %1101 = vrot.lane.b32.xlu1 %v7406_v22, %s7532_s20  ;;  %1139 = vrot.lane.b32.xlu0 %v6862_v23, %s7534_s19  ;;  %v729_v51 = vrot.slane %v727_v40, 5  ;;  %v740_v31 = vrot.slane %v738_v41, 4  ;;  %v743_v52 = vrot.slane %v741_v43, 5  ;;  %v719_v26 = vshll.u32 %v6809_v38, 16 }
  0x3a   :  { %v703_v57 = vrot.slane %v702_v46, 4  ;;  %v707_v58 = vrot.slane %v705_v49, 5  ;;  %v733_v59 = vshll.u32 %v6810_v50, 16  ;;  %v717_v61 = vrot.slane %v716_v53, 4  ;;  %v7997_v53 = vld [vmem:[%s11627_s0 + $0x170] sm:$0xf] }
  0x3b   :  { %v730_v62 = vor.u32 %v729_v51, %v726_v44  ;;  %v744_v63 = vor.u32 %v743_v52, %v740_v31  ;;  %v747_v0 = vshll.u32 %v6811_v54, 16  ;;  %v721_v2 = vrot.slane %v719_v26, 5  ;;  %v7411_v54 = vld [vmem:[%s11627_s0 + $0xd8] ss:$8 sps:$4 sm:$0xff]  }
  0x3c   :  { %v708_v1 = vsel %vm7677_vm2, %v703_v57, %v707_v58  ;;  %v735_v3 = vrot.slane %v733_v59, 5  ;;  %v6822_v6 = vcombine.low %v7754_v20, %v7761_v25  ;;  %v204_v11 = vshrl.u32 %v7937_v4, 16 }
  0x3d   :  { %1141 = vrot.lane.b32.xlu1 %v6863_v33, %s7534_s19  ;;  %1195 = vrot.lane.b32.xlu0 %v6870_v36, %s7535_s13  ;;  %v731_v7 = vrot.slane %v730_v62, 4  ;;  %v745_v8 = vrot.slane %v744_v63, 4  ;;  %v749_v9 = vrot.slane %v747_v0, 5  ;;  %v722_v12 = vsel %vm7677_vm2, %v717_v61, %v721_v2  ;;  %v82_v36 = vld [vmem:[%s11627_s0 + $0x5c] sm:$0x1] }
  0x3e   :  { %v207_v14 = vshll.u32 %v7937_v4, 16  ;;  %v213_v15 = vshll.u32 %v80_v10, 16  ;;  %v218_v16 = vshrl.u32 %v7942_v5, 16  ;;  %v6886_v18 = vcombine.low %v708_v1, %v722_v12  ;;  %v8008_v0 = vld [vmem:[%s11627_s0 + $0x178] sm:$0xf] }
  0x3f   :  { %v736_v21 = vsel %vm7677_vm2, %v731_v7, %v735_v3  ;;  %v750_v22 = vsel %vm7677_vm2, %v745_v8, %v749_v9  ;;  %v206_v23 = vrot.slane %v204_v11, 4  ;;  %v221_v37 = vshll.u32 %v7942_v5, 16  ;;  %v8017_v8 = vld [vmem:[%s11627_s0 + $0x180] sm:$0xf] }
  0x40   :  { %v6887_v30 = vcombine.low %v736_v21, %v750_v22  ;;  %v209_v32 = vrot.slane %v207_v14, 5  ;;  %v215_v33 = vrot.slane %v213_v15, 5  ;;  %v220_v34 = vrot.slane %v218_v16, 4 }
  0x41   :  { %1197 = vrot.lane.b32.xlu1 %v6871_v45, %s7535_s13  ;;  %1251 = vrot.lane.b32.xlu0 %v7409_v60, %s7536_s22  ;;  %v227_v38 = vshll.u32 %v81_v13, 16  ;;  %v232_v40 = vshrl.u32 %v7969_v27, 16  ;;  %v235_v41 = vshll.u32 %v7969_v27, 16  ;;  %v241_v44 = vshll.u32 %v82_v36, 16  ;;  %v7992_v45 = vld [vmem:[%s11627_s0 + $0x168] sm:$0xf] }
  0x42   :  { %v210_v43 = vor.u32 %v209_v32, %v206_v23  ;;  %v246_v46 = vshrl.u32 %v7974_v29, 16  ;;  %v249_v49 = vshll.u32 %v7974_v29, 16  ;;  %v223_v50 = vrot.slane %v221_v37, 5  ;;  %v6764_v32 = vld [vmem:[%s11627_s0 + $0x16c] sm:$0x1] }
  0x43   :  { %v229_v51 = vrot.slane %v227_v38, 5  ;;  %v234_v31 = vrot.slane %v232_v40, 4  ;;  %v237_v52 = vrot.slane %v235_v41, 5  ;;  %v243_v58 = vrot.slane %v241_v44, 5  ;;  %v6765_v37 = vld [vmem:[%s11627_s0 + $0x174] sm:$0x1] }
  0x44   :  { %v211_v57 = vrot.slane %v210_v43, 4  ;;  %v248_v26 = vrot.slane %v246_v46, 4  ;;  %v251_v59 = vrot.slane %v249_v49, 5  ;;  %v224_v60 = vor.u32 %v223_v50, %v220_v34  ;;  %v6766_v43 = vld [vmem:[%s11627_s0 + $0x17c] sm:$0x1] }
  0x45   :  { %1253 = vrot.lane.b32.xlu1 %v7410_v17, %s7536_s22  ;;  %1291 = vrot.lane.b32.xlu0 %v6886_v18, %s7537_s24  ;;  %v238_v61 = vor.u32 %v237_v52, %v234_v31  ;;  %v255_v62 = vshll.u32 %v83_v39, 16  ;;  %v478_v63 = vshrl.u32 %v7992_v45, 16  ;;  %v481_v3 = vshll.u32 %v7992_v45, 16  ;;  %v7412_v17 = vld [vmem:[%s11627_s0 + $0xe8] ss:$8 sps:$4 sm:$0xff]  }
  0x46   :  { %v216_v1 = vsel %vm7677_vm2, %v211_v57, %v215_v33  ;;  %v252_v2 = vor.u32 %v251_v59, %v248_v26  ;;  %v492_v7 = vshrl.u32 %v7997_v53, 16  ;;  %v225_v9 = vrot.slane %v224_v60, 4  ;;  %v6767_v50 = vld [vmem:[%s11627_s0 + $0x184] sm:$0x1]  ;;  %v8061_v60 = vld [vmem:[%s11627_s0 + $0x58] sm:$0xf] }
  0x47   :  { %v239_v10 = vrot.slane %v238_v61, 4  ;;  %v257_v11 = vrot.slane %v255_v62, 5  ;;  %v480_v12 = vrot.slane %v478_v63, 4  ;;  %v483_v14 = vrot.slane %v481_v3, 5  ;;  %v7415_v61 = vld [vmem:[%s11627_s0 + $0x1f8] ss:$8 sps:$4 sm:$0xff]  }
  0x48   :  { %v253_v13 = vrot.slane %v252_v2, 4  ;;  %v494_v15 = vrot.slane %v492_v7, 4  ;;  %v495_v16 = vshll.u32 %v7997_v53, 16  ;;  %v230_v18 = vsel %vm7677_vm2, %v225_v9, %v229_v51  ;;  %v8069_v2 = vld [vmem:[%s11627_s0 + $0x60] sm:$0xf] }
  0x49   :  { %951 = vrot.lane.b32.xlu1 %v7411_v54, %s7530_s23  ;;  %1293 = vrot.lane.b32.xlu0 %v6887_v30, %s7537_s24  ;;  %v244_v21 = vsel %vm7677_vm2, %v239_v10, %v243_v58  ;;  %v6848_v22 = vcombine.low %v7992_v45, %v7997_v53  ;;  %v506_v23 = vshrl.u32 %v8008_v0, 16  ;;  %v6840_v30 = vcombine.low %v216_v1, %v230_v18  ;;  %v8056_v54 = vld [vmem:[%s11627_s0 + $0x50] sm:$0xf] }
  0x4a   :  { %v258_v33 = vsel %vm7677_vm2, %v253_v13, %v257_v11  ;;  %v497_v34 = vrot.slane %v495_v16, 5  ;;  %v509_v36 = vshll.u32 %v8008_v0, 16  ;;  %v520_v40 = vshrl.u32 %v8017_v8, 16 }
  0x4b   :  { %v6841_v38 = vcombine.low %v244_v21, %v258_v33  ;;  %v508_v39 = vrot.slane %v506_v23, 4  ;;  %v523_v41 = vshll.u32 %v8017_v8, 16  ;;  %v6849_v46 = vcombine.low %v8008_v0, %v8017_v8  ;;  %v7416_v21 = vld [vmem:[%s11627_s0 + $0x208] ss:$8 sps:$4 sm:$0xff]   ;;  %v6812_v33 = vld [vmem:[%s11627_s0 + $0x54] sm:$0x1] }
  0x4c   :  { %v511_v44 = vrot.slane %v509_v36, 5  ;;  %v484_v49 = vor.u32 %v483_v14, %v480_v12  ;;  %v487_v45 = vshll.u32 %v6764_v32, 16  ;;  %v522_v51 = vrot.slane %v520_v40, 4  ;;  %v8082_v14 = vld [vmem:[%s11627_s0 + $0x68] sm:$0xf] }
  0x4d   :  { %953 = vrot.lane.b32.xlu1 %v7412_v17, %s7530_s23  ;;  %991 = vrot.lane.b32.xlu0 %v6840_v30, %s7533_s12  ;;  %v525_v31 = vrot.slane %v523_v41, 5  ;;  %v498_v52 = vor.u32 %v497_v34, %v494_v15  ;;  %v501_v53 = vshll.u32 %v6765_v37, 16  ;;  %v515_v59 = vshll.u32 %v6766_v43, 16 }
  0x4e   :  { %v485_v57 = vrot.slane %v484_v49, 4  ;;  %v489_v58 = vrot.slane %v487_v45, 5  ;;  %v512_v26 = vor.u32 %v511_v44, %v508_v39  ;;  %v529_v1 = vshll.u32 %v6767_v50, 16  ;;  %v6813_v39 = vld [vmem:[%s11627_s0 + $0x5c] sm:$0x1] }
  0x4f   :  { %v499_v62 = vrot.slane %v498_v52, 4  ;;  %v503_v63 = vrot.slane %v501_v53, 5  ;;  %v526_v0 = vor.u32 %v525_v31, %v522_v51  ;;  %v517_v8 = vrot.slane %v515_v59, 5 }
  0x50   :  { %v490_v3 = vsel %vm7677_vm2, %v485_v57, %v489_v58  ;;  %v513_v7 = vrot.slane %v512_v26, 4  ;;  %v752_v9 = vshrl.u32 %v8056_v54, 16  ;;  %v531_v12 = vrot.slane %v529_v1, 5  ;;  %v6814_v58 = vld [vmem:[%s11627_s0 + $0x64] sm:$0x1] }
  0x51   :  { %993 = vrot.lane.b32.xlu1 %v6841_v38, %s7533_s12  ;;  %1047 = vrot.lane.b32.xlu0 %v6848_v22, %s7531_s26  ;;  %v504_v10 = vsel %vm7677_vm2, %v499_v62, %v503_v63  ;;  %v527_v11 = vrot.slane %v526_v0, 4  ;;  %v755_v13 = vshll.u32 %v8056_v54, 16  ;;  %v766_v18 = vshrl.u32 %v8061_v60, 16  ;;  %v6815_v26 = vld [vmem:[%s11627_s0 + $0x6c] sm:$0x1] }
  0x52   :  { %v6864_v15 = vcombine.low %v490_v3, %v504_v10  ;;  %v518_v16 = vsel %vm7677_vm2, %v513_v7, %v517_v8  ;;  %v754_v17 = vrot.slane %v752_v9, 4  ;;  %v769_v32 = vshll.u32 %v8061_v60, 16  ;;  %v7419_v8 = vld [vmem:[%s11627_s0 + $0xe0] ss:$8 sps:$4 sm:$0xff]  }
  0x53   :  { %v532_v22 = vsel %vm7677_vm2, %v527_v11, %v531_v12  ;;  %v757_v23 = vrot.slane %v755_v13, 5  ;;  %v6872_v30 = vcombine.low %v8056_v54, %v8061_v60  ;;  %v768_v36 = vrot.slane %v766_v18, 4  ;;  %v8131_v12 = vld [vmem:[%s11627_s0 + $0x68] sm:$0xf]  ;;  %v8136_v13 = vld [vmem:[%s11627_s0 + $0x70] sm:$0xf] }
  0x54   :  { %v6865_v34 = vcombine.low %v518_v16, %v532_v22  ;;  %v780_v37 = vshrl.u32 %v8069_v2, 16  ;;  %v783_v38 = vshll.u32 %v8069_v2, 16  ;;  %v771_v40 = vrot.slane %v769_v32, 5  ;;  %v85_v18 = vld [vmem:[%s11627_s0 + $0x74] sm:$0x1] }
  0x55   :  { %1049 = vrot.lane.b32.xlu1 %v6849_v46, %s7531_s26  ;;  %1103 = vrot.lane.b32.xlu0 %v7415_v61, %s7532_s20  ;;  %v794_v41 = vshrl.u32 %v8082_v14, 16  ;;  %v797_v43 = vshll.u32 %v8082_v14, 16  ;;  %v6873_v44 = vcombine.low %v8069_v2, %v8082_v14  ;;  %v758_v50 = vor.u32 %v757_v23, %v754_v17  ;;  %v84_v17 = vld [vmem:[%s11627_s0 + $0x6c] sm:$0x1] }
  0x56   :  { %v782_v49 = vrot.slane %v780_v37, 4  ;;  %v785_v45 = vrot.slane %v783_v38, 5  ;;  %v761_v51 = vshll.u32 %v6812_v33, 16  ;;  %v772_v53 = vor.u32 %v771_v40, %v768_v36  ;;  %v8158_v37 = vld [vmem:[%s11627_s0 + $0x78] sm:$0xf] }
  0x57   :  { %v796_v31 = vrot.slane %v794_v41, 4  ;;  %v799_v52 = vrot.slane %v797_v43, 5  ;;  %v775_v54 = vshll.u32 %v6813_v39, 16  ;;  %v759_v57 = vrot.slane %v758_v50, 4  ;;  %v8166_v40 = vld [vmem:[%s11627_s0 + $0x80] sm:$0xf] }
  0x58   :  { %v763_v46 = vrot.slane %v761_v51, 5  ;;  %v786_v59 = vor.u32 %v785_v45, %v782_v49  ;;  %v6823_v60 = vcombine.low %v7781_v35, %v7797_v47  ;;  %v773_v61 = vrot.slane %v772_v53, 4  ;;  %v7420_v41 = vld [vmem:[%s11627_s0 + $0xf0] ss:$8 sps:$4 sm:$0xff]   ;;  %v86_v51 = vld [vmem:[%s11627_s0 + $0x7c] sm:$0x1] }
  0x59   :  { %1105 = vrot.lane.b32.xlu1 %v7416_v21, %s7532_s20  ;;  %1143 = vrot.lane.b32.xlu0 %v6864_v15, %s7534_s19  ;;  %v777_v62 = vrot.slane %v775_v54, 5  ;;  %v789_v63 = vshll.u32 %v6814_v58, 16  ;;  %v800_v0 = vor.u32 %v799_v52, %v796_v31  ;;  %v803_v3 = vshll.u32 %v6815_v26, 16  ;;  %v87_v53 = vld [vmem:[%s11627_s0 + $0x84] sm:$0x1] }
  0x5a   :  { %v764_v1 = vsel %vm7677_vm2, %v759_v57, %v763_v46  ;;  %v787_v2 = vrot.slane %v786_v59, 4  ;;  %v6824_v7 = vcombine.low %v7937_v4, %v7942_v5  ;;  %v6825_v14 = vcombine.low %v7969_v27, %v7974_v29 }
  0x5b   :  { %v778_v9 = vsel %vm7677_vm2, %v773_v61, %v777_v62  ;;  %v791_v10 = vrot.slane %v789_v63, 5  ;;  %v801_v11 = vrot.slane %v800_v0, 4  ;;  %v805_v16 = vrot.slane %v803_v3, 5  ;;  %v8186_v61 = vld [vmem:[%s11627_s0 + $0x188] sm:$0xf] }
  0x5c   :  { %v6888_v15 = vcombine.low %v764_v1, %v778_v9  ;;  %v260_v21 = vshrl.u32 %v8131_v12, 16  ;;  %v6826_v22 = vcombine.low %v8131_v12, %v8136_v13  ;;  %v263_v32 = vshll.u32 %v8131_v12, 16 }
  0x5d   :  { %1145 = vrot.lane.b32.xlu1 %v6865_v34, %s7534_s19  ;;  %1199 = vrot.lane.b32.xlu0 %v6872_v30, %s7535_s13  ;;  %v792_v23 = vsel %vm7677_vm2, %v787_v2, %v791_v10  ;;  %v269_v33 = vshll.u32 %v84_v17, 16  ;;  %v274_v36 = vshrl.u32 %v8136_v13, 16  ;;  %v806_v38 = vsel %vm7677_vm2, %v801_v11, %v805_v16  ;;  %v7421_v2 = vld [vmem:[%s11627_s0 + $0xf8] ss:$8 sps:$4 sm:$0xff]  }
  0x5e   :  { %v262_v39 = vrot.slane %v260_v21, 4  ;;  %v277_v34 = vshll.u32 %v8136_v13, 16  ;;  %v283_v30 = vshll.u32 %v85_v18, 16  ;;  %v6889_v43 = vcombine.low %v792_v23, %v806_v38  ;;  %v8200_v21 = vld [vmem:[%s11627_s0 + $0x198] sm:$0xf] }
  0x5f   :  { %v265_v49 = vrot.slane %v263_v32, 5  ;;  %v271_v45 = vrot.slane %v269_v33, 5  ;;  %v276_v50 = vrot.slane %v274_v36, 4  ;;  %v288_v54 = vshrl.u32 %v8158_v37, 16 }
  0x60   :  { %v279_v31 = vrot.slane %v277_v34, 5  ;;  %v285_v52 = vrot.slane %v283_v30, 5  ;;  %v291_v57 = vshll.u32 %v8158_v37, 16  ;;  %v297_v58 = vshll.u32 %v86_v51, 16 }
  0x61   :  { %1201 = vrot.lane.b32.xlu1 %v6873_v44, %s7535_s13  ;;  %1255 = vrot.lane.b32.xlu0 %v7419_v8, %s7536_s22  ;;  %v266_v46 = vor.u32 %v265_v49, %v262_v39  ;;  %v302_v26 = vshrl.u32 %v8166_v40, 16  ;;  %v305_v59 = vshll.u32 %v8166_v40, 16  ;;  %v290_v63 = vrot.slane %v288_v54, 4  ;;  %v8191_v44 = vld [vmem:[%s11627_s0 + $0x190] sm:$0xf] }
  0x62   :  { %v280_v62 = vor.u32 %v279_v31, %v276_v50  ;;  %v293_v0 = vrot.slane %v291_v57, 5  ;;  %v311_v1 = vshll.u32 %v87_v53, 16  ;;  %v299_v8 = vrot.slane %v297_v58, 5 }
  0x63   :  { %v267_v3 = vrot.slane %v266_v46, 4  ;;  %v304_v9 = vrot.slane %v302_v26, 4  ;;  %v307_v10 = vrot.slane %v305_v59, 5  ;;  %v534_v18 = vshrl.u32 %v8186_v61, 16  ;;  %v6768_v26 = vld [vmem:[%s11627_s0 + $0x18c] sm:$0x1] }
  0x64   :  { %v281_v11 = vrot.slane %v280_v62, 4  ;;  %v294_v16 = vor.u32 %v293_v0, %v290_v63  ;;  %v313_v17 = vrot.slane %v311_v1, 5  ;;  %v537_v33 = vshll.u32 %v8186_v61, 16  ;;  %v6770_v1 = vld [vmem:[%s11627_s0 + $0x19c] sm:$0x1] }
  0x65   :  { %1257 = vrot.lane.b32.xlu1 %v7420_v41, %s7536_s22  ;;  %1295 = vrot.lane.b32.xlu0 %v6888_v15, %s7537_s24  ;;  %v272_v23 = vsel %vm7677_vm2, %v267_v3, %v271_v45  ;;  %v308_v32 = vor.u32 %v307_v10, %v304_v9  ;;  %v548_v36 = vshrl.u32 %v8191_v44, 16  ;;  %v536_v34 = vrot.slane %v534_v18, 4  ;;  %v8214_v41 = vld [vmem:[%s11627_s0 + $0x1a0] sm:$0xf]  ;;  %v7422_v15 = vld [vmem:[%s11627_s0 + $0x108] ss:$8 sps:$4 sm:$0xff]  }
  0x66   :  { %v286_v38 = vsel %vm7677_vm2, %v281_v11, %v285_v52  ;;  %v295_v39 = vrot.slane %v294_v16, 4  ;;  %v551_v30 = vshll.u32 %v8191_v44, 16  ;;  %v539_v50 = vrot.slane %v537_v33, 5  ;;  %v6771_v10 = vld [vmem:[%s11627_s0 + $0x1a4] sm:$0x1] }
  0x67   :  { %v6842_v49 = vcombine.low %v272_v23, %v286_v38  ;;  %v309_v45 = vrot.slane %v308_v32, 4  ;;  %v550_v31 = vrot.slane %v548_v36, 4  ;;  %v562_v53 = vshrl.u32 %v8200_v21, 16  ;;  %v8253_v36 = vld [vmem:[%s11627_s0 + $0x78] sm:$0xf] }
  0x68   :  { %v300_v51 = vsel %vm7677_vm2, %v295_v39, %v299_v8  ;;  %v553_v52 = vrot.slane %v551_v30, 5  ;;  %v565_v57 = vshll.u32 %v8200_v21, 16  ;;  %v576_v46 = vshrl.u32 %v8214_v41, 16  ;;  %v8259_v30 = vld [vmem:[%s11627_s0 + $0x80] sm:$0xf] }
  0x69   :  { %955 = vrot.lane.b32.xlu1 %v7421_v2, %s7530_s23  ;;  %1297 = vrot.lane.b32.xlu0 %v6889_v43, %s7537_s24  ;;  %v314_v54 = vsel %vm7677_vm2, %v309_v45, %v313_v17  ;;  %v579_v58 = vshll.u32 %v8214_v41, 16  ;;  %v6850_v62 = vcombine.low %v8186_v61, %v8191_v44  ;;  %v564_v63 = vrot.slane %v562_v53, 4  ;;  %v6769_v43 = vld [vmem:[%s11627_s0 + $0x194] sm:$0x1]  ;;  %v8246_v17 = vld [vmem:[%s11627_s0 + $0x70] sm:$0xf] }
  0x6a   :  { %v6843_v59 = vcombine.low %v300_v51, %v314_v54  ;;  %v540_v0 = vor.u32 %v539_v50, %v536_v34  ;;  %v567_v2 = vrot.slane %v565_v57, 5  ;;  %v578_v3 = vrot.slane %v576_v46, 4  ;;  %v8266_v50 = vld [vmem:[%s11627_s0 + $0x88] sm:$0xf] }
  0x6b   :  { %v581_v8 = vrot.slane %v579_v58, 5  ;;  %v543_v9 = vshll.u32 %v6768_v26, 16  ;;  %v554_v61 = vor.u32 %v553_v52, %v550_v31  ;;  %v557_v44 = vshll.u32 %v6769_v43, 16 }
  0x6c   :  { %v541_v11 = vrot.slane %v540_v0, 4  ;;  %v571_v16 = vshll.u32 %v6770_v1, 16  ;;  %v568_v23 = vor.u32 %v567_v2, %v564_v63  ;;  %v585_v33 = vshll.u32 %v6771_v10, 16  ;;  %v6816_v2 = vld [vmem:[%s11627_s0 + $0x74] sm:$0x1] }
  0x6d   :  { %957 = vrot.lane.b32.xlu1 %v7422_v15, %s7530_s23  ;;  %995 = vrot.lane.b32.xlu0 %v6842_v49, %s7533_s12  ;;  %v545_v18 = vrot.slane %v543_v9, 5  ;;  %v582_v32 = vor.u32 %v581_v8, %v578_v3  ;;  %v555_v38 = vrot.slane %v554_v61, 4  ;;  %v559_v39 = vrot.slane %v557_v44, 5  ;;  %v6818_v61 = vld [vmem:[%s11627_s0 + $0x84] sm:$0x1] }
  0x6e   :  { %v808_v34 = vshrl.u32 %v8246_v17, 16  ;;  %v6851_v15 = vcombine.low %v8200_v21, %v8214_v41  ;;  %v569_v49 = vrot.slane %v568_v23, 4  ;;  %v573_v45 = vrot.slane %v571_v16, 5  ;;  %v7425_v21 = vld [vmem:[%s11627_s0 + $0x218] ss:$8 sps:$4 sm:$0xff]  }
  0x6f   :  { %v583_v51 = vrot.slane %v582_v32, 4  ;;  %v587_v31 = vrot.slane %v585_v33, 5  ;;  %v811_v52 = vshll.u32 %v8246_v17, 16  ;;  %v822_v53 = vshrl.u32 %v8253_v36, 16  ;;  %v6819_v32 = vld [vmem:[%s11627_s0 + $0x8c] sm:$0x1] }
  0x70   :  { %v546_v41 = vsel %vm7677_vm2, %v541_v11, %v545_v18  ;;  %v560_v54 = vsel %vm7677_vm2, %v555_v38, %v559_v39  ;;  %v810_v57 = vrot.slane %v808_v34, 4  ;;  %v825_v46 = vshll.u32 %v8253_v36, 16  ;;  %v6817_v11 = vld [vmem:[%s11627_s0 + $0x7c] sm:$0x1] }
  0x71   :  { %997 = vrot.lane.b32.xlu1 %v6843_v59, %s7533_s12  ;;  %1051 = vrot.lane.b32.xlu0 %v6850_v62, %s7531_s26  ;;  %v813_v58 = vrot.slane %v811_v52, 5  ;;  %v824_v26 = vrot.slane %v822_v53, 4  ;;  %v7426_v59 = vld [vmem:[%s11627_s0 + $0x228] ss:$8 sps:$4 sm:$0xff]   ;;  %v836_v43 = vshrl.u32 %v8259_v30, 16  ;;  %v839_v0 = vshll.u32 %v8259_v30, 16 }
  0x72   :  { %v827_v63 = vrot.slane %v825_v46, 5  ;;  %v850_v1 = vshrl.u32 %v8266_v50, 16  ;;  %v6866_v3 = vcombine.low %v546_v41, %v560_v54  ;;  %v574_v8 = vsel %vm7677_vm2, %v569_v49, %v573_v45 }
  0x73   :  { %v588_v9 = vsel %vm7677_vm2, %v583_v51, %v587_v31  ;;  %v853_v10 = vshll.u32 %v8266_v50, 16  ;;  %v838_v44 = vrot.slane %v836_v43, 4  ;;  %v841_v16 = vrot.slane %v839_v0, 5  ;;  %v7433_v31 = vld [vmem:[%s11628_s1 + $0x20] ss:$0 sps:$4 sm:$0xff]  }
  0x74   :  { %v8283_v62 = vpop.permute.xlu0 %943  ;;  %v852_v18 = vrot.slane %v850_v1, 4  ;;  %v814_v23 = vor.u32 %v813_v58, %v810_v57  ;;  %v817_v38 = vshll.u32 %v6816_v2, 16  ;;  %v828_v39 = vor.u32 %v827_v63, %v824_v26 }
  0x75   :  { %1053 = vrot.lane.b32.xlu1 %v6851_v15, %s7531_s26  ;;  %1107 = vrot.lane.b32.xlu0 %v7425_v21, %s7532_s20  ;;  %v855_v33 = vrot.slane %v853_v10, 5  ;;  %v831_v34 = vshll.u32 %v6817_v11, 16  ;;  %v6867_v49 = vcombine.low %v574_v8, %v588_v9  ;;  %v6874_v45 = vcombine.low %v8246_v17, %v8253_v36  ;;  %v7434_v17 = vld [vmem:[%s11628_s1 + $0x18] sm:$0xff]  }
  0x76   :  { %v815_v15 = vrot.slane %v814_v23, 4  ;;  %v819_v52 = vrot.slane %v817_v38, 5  ;;  %v842_v53 = vor.u32 %v841_v16, %v838_v44  ;;  %v845_v21 = vshll.u32 %v6818_v61, 16  ;;  %v7432_v10 = vld [vmem:[%s11627_s0 + $0x110] ss:$8 sps:$4 sm:$0xff]   ;;  %v7436_v16 = vld [vmem:[%s11628_s1 + $0x8] sm:$0xff]  }
  0x77   :  { %v859_v41 = vshll.u32 %v6819_v32, 16  ;;  %v1042_v54 = vpop.permute.xlu1 %1041  ;;  %v829_v57 = vrot.slane %v828_v39, 4  ;;  %v833_v46 = vrot.slane %v831_v34, 5  ;;  %v856_v58 = vor.u32 %v855_v33, %v852_v18  ;;  %v7438_v33 = vld [vmem:[%s11628_s1] sm:$0xff]  }
  0x78   :  { %v946_v51 = vpop.permute.xlu0 %945  ;;  %vm11645_vm3 = vcmask 1043456   ;;  %v6875_v26 = vcombine.low %v8259_v30, %v8266_v50  ;;  %v843_v63 = vrot.slane %v842_v53, 4  ;;  %v847_v43 = vrot.slane %v845_v21, 5  ;;  %v7435_v30 = vld [vmem:[%s11628_s1 + $0x10] sm:$0xff]  }
  0x79   :  { %1109 = vrot.lane.b32.xlu1 %v7426_v59, %s7532_s20  ;;  %1147 = vrot.lane.b32.xlu0 %v6866_v3, %s7534_s19  ;;  %v1509_v36 = vsel %vm11645_vm3, %v7433_v31, 0  ;;  %v7431_v59 = vld [vmem:[%s11627_s0 + $0x100] ss:$8 sps:$4 sm:$0xff]   ;;  %v6827_v0 = vcombine.low %v8158_v37, %v8166_v40  ;;  %v820_v2 = vsel %vm7677_vm2, %v815_v15, %v819_v52  ;;  %v834_v3 = vsel %vm7677_vm2, %v829_v57, %v833_v46 }
  0x7a   :  { %7376 = vmatprep.subr.msk.bf16.mxu0 %vm11645_vm3, %v7433_v31  ;;  %v857_v8 = vrot.slane %v856_v58, 4  ;;  %v861_v9 = vrot.slane %v859_v41, 5  ;;  %v6890_v11 = vcombine.low %v820_v2, %v834_v3  ;;  %v848_v61 = vsel %vm7677_vm2, %v843_v63, %v847_v43 }
  0x7b   :  { %7289 = vmatpush3.bf16.msra.mxu0 %v1509_v36  ;;  %v1098_v50 = vpop.permute.xlu1 %1097  ;;  %vm11647_vm4 = vcmask 64512   ;;  %vm1328_vm5 = vcmask 130048   ;;  %vm11648_vm6 = vcmask 195584   ;;  %vm11644_vm7 = vcmask 261120  }
  0x7c   :  { %v1040_v1 = vpop.permute.xlu0 %1039  ;;  %7290 = vmatprep.subr.bf16.mxu0 %v7434_v17  ;;  %v862_v44 = vsel %vm7677_vm2, %v857_v8, %v861_v9  ;;  %v1306_v34 = vsel %vm11647_vm4, %v6820_v55, %v8283_v62  ;;  %vm11643_vm8 = vcmask 326656   ;;  %vm11642_vm9 = vcmask 392192  }
  0x7d   :  { %1149 = vrot.lane.b32.xlu1 %v6867_v49, %s7534_s19  ;;  %1203 = vrot.lane.b32.xlu0 %v6874_v45, %s7535_s13  ;;  %v6891_v23 = vcombine.low %v848_v61, %v862_v44  ;;  %v1309_v45 = vsel %vm11647_vm4, %v6821_v28, %v946_v51  ;;  %vm11641_vm10 = vcmask 457728   ;;  %vm11640_vm11 = vcmask 523264  }
  0x7e   :  { %vm11639_vm12 = vcmask 588800   ;;  %vm1766_vm13 = vcmask 57344   ;;  %vm1777_vm14 = vsmask.f32 256  ;;  %vm1827_vm0 = vsmask.f32 7938 }
  0x7f   :  { %7291 = vmatpush3.bf16.msra.mxu0 %v7434_v17  ;;  %vm8430_vm15 = vmand %vm1766_vm13, %vm1777_vm14 }
  0x80   :  { %7292 = vmatprep.subr.bf16.mxu0 %v7435_v30  ;;  %v1096_v18 = vpop.permute.xlu0 %1095  ;;  %vm8442_vm1 = vmand %vm1766_vm13, %vm1827_vm0 }
  0x81   :  { %1205 = vrot.lane.b32.xlu1 %v6875_v26, %s7535_s13  ;;  %1259 = vrot.lane.b32.xlu0 %v7431_v59, %s7536_s22 }
  0x83   :  { %7293 = vmatpush3.bf16.msra.mxu0 %v7435_v30 }
  0x84   :  { %7294 = vmatprep.subr.bf16.mxu0 %v7436_v16 }
  0x85   :  { %1261 = vrot.lane.b32.xlu1 %v7432_v10, %s7536_s22  ;;  %1299 = vrot.lane.b32.xlu0 %v6890_v11, %s7537_s24 }
  0x86   :  { %v984_v32 = vpop.permute.xlu1 %983 }
  0x87   :  { %7295 = vmatpush3.bf16.msra.mxu0 %v7436_v16  ;;  %v1330_v49 = vsel %vm1328_vm5, %v1306_v34, %v984_v32 }
  0x88   :  { %7296 = vmatprep.subr.bf16.mxu0 %v7438_v33  ;;  %v1347_v53 = vsel %vm11648_vm6, %v1330_v49, %v1040_v1 }
  0x89   :  { %1301 = vrot.lane.b32.xlu1 %v6891_v23, %s7537_s24  ;;  %v1364_v55 = vsel %vm11644_vm7, %v1347_v53, %v1096_v18 }
  0x8a   :  { %v1136_v38 = vpop.permute.xlu0 %1135 }
  0x8b   :  { %v986_v39 = vpop.permute.xlu1 %985  ;;  %7297 = vmatpush3.bf16.msra.mxu0 %v7438_v33  ;;  %v1381_v42 = vsel %vm11643_vm8, %v1364_v55, %v1136_v38 }
  0x8c   :  { %v1332_v31 = vsel %vm1328_vm5, %v1309_v45, %v986_v39 }
  0x8d   :  { %v1349_v19 = vsel %vm11648_vm6, %v1332_v31, %v1042_v54 }
  0x8e   :  { %v1192_v15 = vpop.permute.xlu0 %1191  ;;  %v1366_v48 = vsel %vm11644_vm7, %v1349_v19, %v1098_v50 }
  0x8f   :  { %v1138_v52 = vpop.permute.xlu1 %1137  ;;  %v1398_v28 = vsel %vm11642_vm9, %v1381_v42, %v1192_v15 }
  0x90   :  { %v1383_v57 = vsel %vm11643_vm8, %v1366_v48, %v1138_v52 }
  0x92   :  { %v1248_v24 = vpop.permute.xlu0 %1247 }
  0x93   :  { %v1194_v62 = vpop.permute.xlu1 %1193  ;;  %v1415_v51 = vsel %vm11641_vm10, %v1398_v28, %v1248_v24 }
  0x94   :  { %v1400_v46 = vsel %vm11642_vm9, %v1383_v57, %v1194_v62 }
  0x96   :  { %v1288_v21 = vpop.permute.xlu0 %1287 }
  0x97   :  { %v1250_v41 = vpop.permute.xlu1 %1249  ;;  %v1432_v54 = vsel %vm11640_vm11, %v1415_v51, %v1288_v21 }
  0x98   :  { %7298 = vmatprep.mubr.msk.bf16.mxu0 %vm11639_vm12, %v1432_v54  ;;  %v1417_v58 = vsel %vm11641_vm10, %v1400_v46, %v1250_v41 }
  0x9a   :  { %v1290_v17 = vpop.permute.xlu0 %1289 }
  0x9b   :  { %v948_v36 = vpop.permute.xlu1 %947  ;;  %v1434_v26 = vsel %vm11640_vm11, %v1417_v58, %v1290_v17 }
  0x9c   :  { %7299 = vmatmul.mubr.msk.bf16.vlgmr.msra.gmra.mxu0 %vm11639_vm12, %v1434_v26  ;;  %v1312_v10 = vsel %vm11647_vm4, %v6822_v6, %v948_v36 }
  0x9f   :  { %v950_v59 = vpop.permute.xlu1 %949  ;;  %v988_v63 = vpop.permute.xlu0 %987 }
  0xa0   :  { %v1334_v11 = vsel %vm1328_vm5, %v1312_v10, %v988_v63  ;;  %v1315_v23 = vsel %vm11647_vm4, %v6823_v60, %v950_v59 }
  0xa3   :  { %v990_v43 = vpop.permute.xlu1 %989  ;;  %v1044_v1 = vpop.permute.xlu0 %1043 }
  0xa4   :  { %v1351_v61 = vsel %vm11648_vm6, %v1334_v11, %v1044_v1  ;;  %v1336_v33 = vsel %vm1328_vm5, %v1315_v23, %v990_v43  ;;  %v1829_v23 = vld [vmem:[#allocation2 + $0xc] sm:$0x1] }
  0xa7   :  { %v1046_v2 = vpop.permute.xlu1 %1045  ;;  %v1100_v3 = vpop.permute.xlu0 %1099 }
  0xa8   :  { %v1368_v18 = vsel %vm11644_vm7, %v1351_v61, %v1100_v3  ;;  %v1353_v25 = vsel %vm11648_vm6, %v1336_v33, %v1046_v2 }
  0xab   :  { %v1102_v8 = vpop.permute.xlu1 %1101  ;;  %v1140_v9 = vpop.permute.xlu0 %1139 }
  0xac   :  { %v1385_v32 = vsel %vm11643_vm8, %v1368_v18, %v1140_v9  ;;  %v1370_v34 = vsel %vm11644_vm7, %v1353_v25, %v1102_v8  ;;  %v1785_v9 = vld [vmem:[#allocation2 + $0x18] sm:$0x1]  ;;  %v1779_v18 = vld [vmem:[#allocation2 + $0x8] sm:$0x1]  ;;  %v1830_v25 = vsel %vm8442_vm1, 0, %v1829_v23 }
  0xad   :  { %v1786_v61 = vsel %vm8430_vm15, 0, %v1785_v9  ;;  %1831 = vst [vmem:[#allocation2 + $0xc] sm:$0x1] %v1830_v25 }
  0xae   :  { %1787 = vst [vmem:[#allocation2 + $0x18] sm:$0x1] %v1786_v61 }
  0xaf   :  { %v1142_v30 = vpop.permute.xlu1 %1141  ;;  %v1196_v50 = vpop.permute.xlu0 %1195 }
  0xb0   :  { %v1402_v20 = vsel %vm11642_vm9, %v1385_v32, %v1196_v50  ;;  %v1387_v35 = vsel %vm11643_vm8, %v1370_v34, %v1142_v30  ;;  %v1835_v50 = vld [vmem:[#allocation2 + $0x1c] sm:$0x1] }
  0xb3   :  { %v1198_v44 = vpop.permute.xlu1 %1197  ;;  %v1252_v16 = vpop.permute.xlu0 %1251 }
  0xb4   :  { %v1419_v6 = vsel %vm11641_vm10, %v1402_v20, %v1252_v16  ;;  %v1404_v47 = vsel %vm11642_vm9, %v1387_v35, %v1198_v44  ;;  %v1836_v16 = vsel %vm8442_vm1, 0, %v1835_v50  ;;  %v1780_v20 = vsel %vm8430_vm15, 0, %v1779_v18  ;;  %v1782_v35 = vld [vmem:[#allocation2 + $0x10] sm:$0x1]  ;;  %v1800_v50 = vld [vmem:[#allocation2 + $0x40] sm:$0x1] }
  0xb5   :  { %1837 = vst [vmem:[#allocation2 + $0x1c] sm:$0x1] %v1836_v16  ;;  %1781 = vst [vmem:[#allocation2 + $0x8] sm:$0x1] %v1780_v20  ;;  %v1794_v16 = vld [vmem:[#allocation2 + $0x30] sm:$0x1] }
  0xb6   :  { %v1844_v18 = vld [vmem:[#allocation2 + $0x34] sm:$0x1]  ;;  %v1795_v23 = vsel %vm8430_vm15, 0, %v1794_v16  ;;  %v1859_v20 = vld [vmem:[#allocation2 + $0x6c] sm:$0x1] }
  0xb7   :  { %v1254_v38 = vpop.permute.xlu1 %1253  ;;  %v1292_v39 = vpop.permute.xlu0 %1291  ;;  %1796 = vst [vmem:[#allocation2 + $0x30] sm:$0x1] %v1795_v23 }
  0xb8   :  { %v1436_v49 = vsel %vm11640_vm11, %v1419_v6, %v1292_v39  ;;  %v1421_v60 = vsel %vm11641_vm10, %v1404_v47, %v1254_v38  ;;  %v1788_v6 = vld [vmem:[#allocation2 + $0x20] sm:$0x1]  ;;  %v1838_v38 = vld [vmem:[#allocation2 + $0x24] sm:$0x1]  ;;  %v1832_v47 = vld [vmem:[#allocation2 + $0x14] sm:$0x1] }
  0xb9   :  { %7302 = vmatprep.mubr.msk.bf16.mxu0 %vm11639_vm12, %v1436_v49  ;;  %v1789_v34 = vsel %vm8430_vm15, 0, %v1788_v6  ;;  %v1839_v49 = vsel %vm8442_vm1, 0, %v1838_v38  ;;  %v1860_v6 = vsel %vm8442_vm1, 0, %v1859_v20  ;;  %v1803_v38 = vld [vmem:[#allocation2 + $0x58] sm:$0x1] }
  0xba   :  { %1790 = vst [vmem:[#allocation2 + $0x20] sm:$0x1] %v1789_v34  ;;  %1840 = vst [vmem:[#allocation2 + $0x24] sm:$0x1] %v1839_v49  ;;  %v1853_v34 = vld [vmem:[#allocation2 + $0x5c] sm:$0x1] }
  0xbb   :  { %v952_v45 = vpop.permute.xlu1 %951  ;;  %v1294_v15 = vpop.permute.xlu0 %1293  ;;  %1861 = vst [vmem:[#allocation2 + $0x6c] sm:$0x1] %v1860_v6  ;;  %v1804_v49 = vsel %vm8430_vm15, 0, %v1803_v38 }
  0xbc   :  { %v1438_v31 = vsel %vm11640_vm11, %v1421_v60, %v1294_v15  ;;  %v1318_v21 = vsel %vm11647_vm4, %v6824_v7, %v952_v45  ;;  %v1616_v60 = vld [vmem:[%s11629_s3] sm:$0xf]  ;;  %1805 = vst [vmem:[#allocation2 + $0x58] sm:$0x1] %v1804_v49  ;;  %v2102_v20 = vld [vmem:[#allocation2 + $0x1c] sm:$0x1] }
  0xbd   :  { %7303 = vmatmul.mubr.msk.bf16.gmra.mxu0 %vm11639_vm12, %v1438_v31  ;;  %v1783_v31 = vsel %vm8430_vm15, 0, %v1782_v35  ;;  %7377 = vmatprep.subr.msk.bf16.mxu1 %vm11645_vm3, %v1616_v60  ;;  %v1854_v35 = vsel %vm8442_vm1, 0, %v1853_v34  ;;  %s7539_s3 = smov 96  }
  0xbe   :  { %1784 = vst [vmem:[#allocation2 + $0x10] sm:$0x1] %v1783_v31  ;;  %1855 = vst [vmem:[#allocation2 + $0x5c] sm:$0x1] %v1854_v35  ;;  %v1806_v31 = vld [vmem:[#allocation2 + $0x60] sm:$0x1] }
  0xbf   :  { %v954_v52 = vpop.permute.xlu1 %953  ;;  %v992_v53 = vpop.permute.xlu0 %991 }
  0xc0   :  { %v1338_v41 = vsel %vm1328_vm5, %v1318_v21, %v992_v53  ;;  %v1321_v17 = vsel %vm11647_vm4, %v6825_v14, %v954_v52  ;;  %v1833_v52 = vsel %vm8442_vm1, 0, %v1832_v47  ;;  %v1649_v53 = vsel %vm11645_vm3, %v1616_v60, 0  ;;  %v1812_v47 = vld [vmem:[#allocation2 + $0x70] sm:$0x1]  ;;  %v1862_v60 = vld [vmem:[#allocation2 + $0x74] sm:$0x1] }
  0xc1   :  { %1834 = vst [vmem:[#allocation2 + $0x14] sm:$0x1] %v1833_v52  ;;  %7315 = vmatpush3.bf16.msra.mxu1 %v1649_v53  ;;  %v1856_v52 = vld [vmem:[#allocation2 + $0x64] sm:$0x1]  ;;  %v1807_v53 = vsel %vm8430_vm15, 0, %v1806_v31 }
  0xc2   :  { %1808 = vst [vmem:[#allocation2 + $0x60] sm:$0x1] %v1807_v53  ;;  %v2090_v31 = vld [vmem:[#allocation2 + $0xc] sm:$0x1] }
  0xc3   :  { %v994_v19 = vpop.permute.xlu1 %993  ;;  %v1048_v24 = vpop.permute.xlu0 %1047 }
  0xc4   :  { %v1355_v54 = vsel %vm11648_vm6, %v1338_v41, %v1048_v24  ;;  %v1340_v26 = vsel %vm1328_vm5, %v1321_v17, %v994_v19  ;;  %v11692_v19 = vmov 0  ;;  %v11695_v24 = vmov 0 }
  0xc7   :  { %v1050_v55 = vpop.permute.xlu1 %1049  ;;  %v1104_v62 = vpop.permute.xlu0 %1103 }
  0xc8   :  { %v1372_v58 = vsel %vm11644_vm7, %v1355_v54, %v1104_v62  ;;  %v1357_v5 = vsel %vm11648_vm6, %v1340_v26, %v1050_v55 }
  0xcb   :  { %v1106_v42 = vpop.permute.xlu1 %1105  ;;  %v1144_v48 = vpop.permute.xlu0 %1143 }
  0xcc   :  { %v1389_v36 = vsel %vm11643_vm8, %v1372_v58, %v1144_v48  ;;  %v1374_v43 = vsel %vm11644_vm7, %v1357_v5, %v1106_v42  ;;  %v11698_v42 = vmov 0  ;;  %v11649_v48 = vmov 0  }
  0xcd   :  { %1767 = vst.msk [vmem:[#allocation2 + $0x4] sm:$0x1] %vm1766_vm13, %v11649_v48  ;;  %1769 = vst.msk [vmem:[#allocation2 + $0x54] sm:$0x1] %vm1766_vm13, %v11649_v48  ;;  %6335 = vmatprep.subr.bf16.mxu0 %v11649_v48 }
  0xce   :  { %1772 = vst.msk [vmem:[#allocation2 + $0x4c] sm:$0x1] %vm1766_vm13, %v11649_v48  ;;  %1774 = vst.msk [vmem:[#allocation2 + $0x9c] sm:$0x1] %vm1766_vm13, %v11649_v48  ;;  %vm11704_vm13 = vcmask 457728  }
  0xcf   :  { %v1146_v28 = vpop.permute.xlu1 %1145  ;;  %v1200_v51 = vpop.permute.xlu0 %1199 }
  0xd0   :  { %v1406_v4 = vsel %vm11642_vm9, %v1389_v36, %v1200_v51  ;;  %v1391_v27 = vsel %vm11643_vm8, %v1374_v43, %v1146_v28 }
  0xd3   :  { %v1202_v57 = vpop.permute.xlu1 %1201  ;;  %v1256_v46 = vpop.permute.xlu0 %1255 }
  0xd4   :  { %v1423_v7 = vsel %vm11641_vm10, %v1406_v4, %v1256_v46  ;;  %v1408_v29 = vsel %vm11642_vm9, %v1391_v27, %v1202_v57  ;;  %vm4212_vm9 = vcmask 122880   ;;  %v1847_v27 = vld [vmem:[#allocation2 + $0x3c] sm:$0x1] }
  0xd5   :  { %vm8473_vm8 = vmand %vm4212_vm9, %vm1777_vm14  ;;  %4213 = vst.msk [vmem:[#allocation3 + $0x4] sm:$0x1] %vm4212_vm9, %v11649_v48 }
  0xd6   :  { %v11693_v19 = vsel %vm8473_vm8, 4294967295, %v11692_v19  ;;  %vm8479_vm7 = vmand %vm4212_vm9, %vm1827_vm0  ;;  %4215 = vst.msk [vmem:[#allocation3 + $0x54] sm:$0x1] %vm4212_vm9, %v11649_v48 }
  0xd7   :  { %v1258_v59 = vpop.permute.xlu1 %1257  ;;  %v1296_v63 = vpop.permute.xlu0 %1295  ;;  %11694 = vst [vmem:[#allocation4_spill] sm:$0xff] %v11693_v19  ;;  %v11696_v24 = vsel %vm8479_vm7, 4294967295, %v11695_v24  ;;  %4218 = vst.msk [vmem:[#allocation3 + $0x4c] sm:$0x1] %vm4212_vm9, %v11649_v48 }
  0xd8   :  { %v1440_v1 = vsel %vm11640_vm11, %v1423_v7, %v1296_v63  ;;  %v1425_v14 = vsel %vm11641_vm10, %v1408_v29, %v1258_v59  ;;  %vm4210_vm10 = vcmask 125952   ;;  %11697 = vst [vmem:[#allocation5_spill] sm:$0xff] %v11696_v24  ;;  %4220 = vst.msk [vmem:[#allocation3 + $0x9c] sm:$0x1] %vm4212_vm9, %v11649_v48  ;;  %vm11702_vm9 = vcmask 326656  }
  0xd9   :  { %7306 = vmatprep.mubr.msk.bf16.mxu0 %vm11639_vm12, %v1440_v1  ;;  %vm8485_vm3 = vmand %vm4210_vm10, %vm1827_vm0  ;;  %4211 = vst.msk [vmem:[#allocation3] sm:$0xf] %vm4210_vm10, %v11649_v48  ;;  %v1797_v1 = vld [vmem:[#allocation2 + $0x38] sm:$0x1] }
  0xda   :  { %v11699_v42 = vsel %vm8485_vm3, 4294967295, %v11698_v42  ;;  %4214 = vst.msk [vmem:[#allocation3 + $0x50] sm:$0xf] %vm4210_vm10, %v11649_v48  ;;  %4217 = vst.msk [vmem:[#allocation3 + $0x48] sm:$0xf] %vm4210_vm10, %v11649_v48  ;;  %vm11708_vm3 = vcmask 588800  }
  0xdb   :  { %v8424_v2 = vpop.permute.xlu1 %955  ;;  %v1298_v3 = vpop.permute.xlu0 %1297  ;;  %11700 = vst [vmem:[#allocation6_spill] sm:$0xff] %v11699_v42  ;;  %4219 = vst.msk [vmem:[#allocation3 + $0x98] sm:$0xf] %vm4210_vm10, %v11649_v48  ;;  %vm11701_vm10 = vcmask 261120   ;;  %v1798_v29 = vsel %vm8430_vm15, 0, %v1797_v1 }
  0xdc   :  { %v1442_v8 = vsel %vm11640_vm11, %v1425_v14, %v1298_v3  ;;  %v1324_v21 = vsel %vm11647_vm4, %v6826_v22, %v8424_v2  ;;  %vm11705_vm14 = vmmov %vm11701_vm10  ;;  %v1848_v14 = vsel %vm8442_vm1, 0, %v1847_v27  ;;  %1799 = vst [vmem:[#allocation2 + $0x38] sm:$0x1] %v1798_v29  ;;  %v1791_v2 = vld [vmem:[#allocation2 + $0x28] sm:$0x1] }
  0xdd   :  { %7307 = vmatmul.mubr.msk.bf16.gmra.mxu0 %vm11639_vm12, %v1442_v8  ;;  %vm1764_vm12 = vcmask 60416   ;;  %1849 = vst [vmem:[#allocation2 + $0x3c] sm:$0x1] %v1848_v14  ;;  %v1841_v3 = vld [vmem:[#allocation2 + $0x2c] sm:$0x1]  ;;  %v1792_v8 = vsel %vm8430_vm15, 0, %v1791_v2 }
  0xde   :  { %vm8454_vm11 = vmand %vm1764_vm12, %vm1827_vm0  ;;  %1765 = vst.msk [vmem:[#allocation2] sm:$0xf] %vm1764_vm12, %v11649_v48  ;;  %vm11706_vm0 = vcmask 523264   ;;  %v1842_v9 = vsel %vm8442_vm1, 0, %v1841_v3 }
  0xdf   :  { %v8434_v10 = vpop.permute.xlu1 %957  ;;  %v8436_v11 = vpop.permute.xlu0 %995  ;;  %1768 = vst.msk [vmem:[#allocation2 + $0x50] sm:$0xf] %vm1764_vm12, %v11649_v48  ;;  %1771 = vst.msk [vmem:[#allocation2 + $0x48] sm:$0xf] %vm1764_vm12, %v11649_v48 }
  0xe0   :  { %1773 = vst.msk [vmem:[#allocation2 + $0x98] sm:$0xf] %vm1764_vm12, %v11649_v48  ;;  %v1342_v41 = vsel %vm1328_vm5, %v1324_v21, %v8436_v11  ;;  %v1327_v17 = vsel %vm11647_vm4, %v6827_v0, %v8434_v10  ;;  %vm11703_vm12 = vcmask 392192   ;;  %1793 = vst [vmem:[#allocation2 + $0x28] sm:$0x1] %v1792_v8  ;;  %v1801_v11 = vsel %vm8430_vm15, 0, %v1800_v50 }
  0xe1   :  { %vm11709_vm4 = vmmov %vm11703_vm12  ;;  %1843 = vst [vmem:[#allocation2 + $0x2c] sm:$0x1] %v1842_v9  ;;  %v1850_v10 = vld [vmem:[#allocation2 + $0x44] sm:$0x1] }
  0xe2   :  { %v1851_v61 = vsel %vm8442_vm1, 0, %v1850_v10  ;;  %1802 = vst [vmem:[#allocation2 + $0x40] sm:$0x1] %v1801_v11  ;;  %v8613_v11 = vld [vmem:[#allocation2 + $0x4] sm:$0x1] }
  0xe3   :  { %v998_v32 = vpop.permute.xlu1 %997  ;;  %v1052_v33 = vpop.permute.xlu0 %1051  ;;  %1852 = vst [vmem:[#allocation2 + $0x44] sm:$0x1] %v1851_v61 }
  0xe4   :  { %v1359_v54 = vsel %vm11648_vm6, %v1342_v41, %v1052_v33  ;;  %v1344_v12 = vsel %vm1328_vm5, %v1327_v17, %v998_v32  ;;  %v1845_v32 = vsel %vm8442_vm1, 0, %v1844_v18  ;;  %v1809_v33 = vld [vmem:[#allocation2 + $0x68] sm:$0x1]  ;;  %v1815_v41 = vld [vmem:[#allocation2 + $0x78] sm:$0x1] }
  0xe5   :  { %1846 = vst [vmem:[#allocation2 + $0x34] sm:$0x1] %v1845_v32  ;;  %v1810_v25 = vsel %vm8430_vm15, 0, %v1809_v33  ;;  %v1874_v17 = vld [vmem:[#allocation2 + $0x94] sm:$0x1]  ;;  %v2225_v32 = vshll.u32 %v8613_v11, 16 }
  0xe6   :  { %1811 = vst [vmem:[#allocation2 + $0x68] sm:$0x1] %v1810_v25  ;;  %v2099_v33 = vld [vmem:[#allocation2 + $0x18] sm:$0xf] }
  0xe7   :  { %v1054_v45 = vpop.permute.xlu1 %1053  ;;  %v1108_v15 = vpop.permute.xlu0 %1107  ;;  %v2111_v24 = vld [vmem:[#allocation2 + $0x28] sm:$0xf] }
  0xe8   :  { %v1376_v58 = vsel %vm11701_vm10, %v1359_v54, %v1108_v15  ;;  %v1361_v22 = vsel %vm11648_vm6, %v1344_v12, %v1054_v45  ;;  %vm11707_vm10 = vmmov %vm11702_vm9  ;;  %v1813_v45 = vsel %vm8430_vm15, 0, %v1812_v47  ;;  %v1863_v15 = vsel %vm8442_vm1, 0, %v1862_v60 }
  0xe9   :  { %vm11712_vm6 = vmmov %vm11708_vm3  ;;  %1814 = vst [vmem:[#allocation2 + $0x70] sm:$0x1] %v1813_v45  ;;  %v1816_v54 = vsel %vm8430_vm15, 0, %v1815_v41  ;;  %v1875_v12 = vsel %vm8442_vm1, 0, %v1874_v17  ;;  %v8619_v45 = vld [vmem:[#allocation2] sm:$0xe] }
  0xea   :  { %1864 = vst [vmem:[#allocation2 + $0x74] sm:$0x1] %v1863_v15  ;;  %1817 = vst [vmem:[#allocation2 + $0x78] sm:$0x1] %v1816_v54  ;;  %v2087_v15 = vld [vmem:[#allocation2 + $0x8] sm:$0xf] }
  0xeb   :  { %v1110_v55 = vpop.permute.xlu1 %1109  ;;  %v1148_v62 = vpop.permute.xlu0 %1147  ;;  %1876 = vst [vmem:[#allocation2 + $0x94] sm:$0x1] %v1875_v12  ;;  %v2105_v54 = vld [vmem:[#allocation2 + $0x20] sm:$0xf]  ;;  %v6931_v12 = vrot.slane %v8619_v45, 9 }
  0xec   :  { %v1393_v36 = vsel %vm11702_vm9, %v1376_v58, %v1148_v62  ;;  %v1378_v7 = vsel %vm11705_vm14, %v1361_v22, %v1110_v55  ;;  %vm11710_vm9 = vmmov %vm11704_vm13  ;;  %v1857_v55 = vsel %vm8442_vm1, 0, %v1856_v52  ;;  %v1821_v62 = vld [vmem:[#allocation2 + $0x88] sm:$0x1]  ;;  %v1824_v58 = vld [vmem:[#allocation2 + $0x90] sm:$0x1] }
  0xed   :  { %1858 = vst [vmem:[#allocation2 + $0x64] sm:$0x1] %v1857_v55  ;;  %v1818_v22 = vld [vmem:[#allocation2 + $0x80] sm:$0x1] }
  0xef   :  { %v1150_v28 = vpop.permute.xlu1 %1149  ;;  %v1204_v51 = vpop.permute.xlu0 %1203 }
  0xf0   :  { %v1410_v13 = vsel %vm11703_vm12, %v1393_v36, %v1204_v51  ;;  %v1395_v37 = vsel %vm11707_vm10, %v1378_v7, %v1150_v28  ;;  %vm11711_vm12 = vmmov %vm11706_vm0  ;;  %v1871_v28 = vld [vmem:[#allocation2 + $0x8c] sm:$0x1]  ;;  %v1822_v51 = vsel %vm8430_vm15, 0, %v1821_v62  ;;  %v1825_v36 = vsel %vm8430_vm15, 0, %v1824_v58  ;;  %v8600_v7 = vld [vmem:[%s11630_s2] ss:$0 sm:$0xff] }
  0xf1   :  { %v1872_v21 = vsel %vm8442_vm1, 0, %v1871_v28  ;;  %1823 = vst [vmem:[#allocation2 + $0x88] sm:$0x1] %v1822_v51  ;;  %1826 = vst [vmem:[#allocation2 + $0x90] sm:$0x1] %v1825_v36 }
  0xf2   :  { %1873 = vst [vmem:[#allocation2 + $0x8c] sm:$0x1] %v1872_v21 }
  0xf3   :  { %v1206_v57 = vpop.permute.xlu1 %1205  ;;  %v1260_v46 = vpop.permute.xlu0 %1259 }
  0xf4   :  { %v1427_v26 = vsel %vm11704_vm13, %v1410_v13, %v1260_v46  ;;  %v1412_v40 = vsel %vm11709_vm4, %v1395_v37, %v1206_v57  ;;  %v1865_v57 = vld [vmem:[#allocation2 + $0x7c] sm:$0x1]  ;;  %v2183_v13 = vld [vmem:[#allocation2] sm:$0xf]  ;;  %vm2488_vm4 = vcmask 1046532  }
  0xf5   :  { %v1866_v46 = vsel %vm8442_vm1, 0, %v1865_v57  ;;  %v2219_v37 = vshll.u32 %v2183_v13, 16  ;;  %v2108_v57 = vld [vmem:[#allocation2 + $0x24] sm:$0x1] }
  0xf6   :  { %1867 = vst [vmem:[#allocation2 + $0x7c] sm:$0x1] %v1866_v46  ;;  %v8625_v46 = vld [vmem:[#allocation2 + $0x48] sm:$0xe] }
  0xf7   :  { %v1262_v4 = vpop.permute.xlu1 %1261  ;;  %v1300_v5 = vpop.permute.xlu0 %1299  ;;  %v8607_v27 = vrot.slane %v2219_v37, 5 }
  0xf8   :  { %v1444_v59 = vsel %vm11706_vm0, %v1427_v26, %v1300_v5  ;;  %v1429_v0 = vsel %vm11710_vm9, %v1412_v40, %v1262_v4  ;;  %v1868_v26 = vld [vmem:[#allocation2 + $0x84] sm:$0x1]  ;;  %v1819_v4 = vsel %vm8430_vm15, 0, %v1818_v22 }
  0xf9   :  { %7310 = vmatprep.mubr.msk.bf16.mxu0 %vm11708_vm3, %v1444_v59  ;;  %v1869_v5 = vsel %vm8442_vm1, 0, %v1868_v26  ;;  %v2216_v59 = vshrl.u32 %v2183_v13, 16  ;;  %1820 = vst [vmem:[#allocation2 + $0x80] sm:$0x1] %v1819_v4  ;;  %vm2487_vm3 = vcmask 1042432  }
  0xfa   :  { %1870 = vst [vmem:[#allocation2 + $0x84] sm:$0x1] %v1869_v5  ;;  %v8629_v13 = vld [vmem:[#allocation2 + $0x54] sm:$0x1]  ;;  %v2093_v4 = vld [vmem:[#allocation2 + $0x10] sm:$0xf]  ;;  %vm8660_vm13 = vmor %vm2487_vm3, %vm2488_vm4 }
  0xfb   :  { %v1302_v63 = vpop.permute.xlu1 %1301  ;;  %v8605_v1 = vrot.slane %v2216_v59, 4  ;;  %v2946_v5 = vld [vmem:[#allocation2 + $0x4c] sm:$0x1]  ;;  %v2337_v59 = vshll.u32 %v8629_v13, 16 }
  0xfc   :  { %v1446_v43 = vsel %vm11711_vm12, %v1429_v0, %v1302_v63  ;;  %v8603_v63 = vld [vmem:[#allocation2 + $0x48] sm:$0xf]  ;;  %vm11740_vm12 = vcmask 1043456  }
  0xfd   :  { %7311 = vmatmul.mubr.msk.bf16.gmra.mxu0 %vm11712_vm6, %v1446_v43  ;;  %v3054_v2 = vshrl.u32 %v8603_v63, 16  ;;  %v3057_v3 = vshll.u32 %v8603_v63, 16  ;;  %v2222_v61 = vor.u32 %v8607_v27, %v8605_v1  ;;  %vm11713_vm6 = vcmask 64512   ;;  %v2447_v27 = vld [vmem:[#allocation2 + $0x50] sm:$0xe] }
  0xfe   :  { %vm11714_vm1 = vmmov %vm11713_vm6 }
  0xff   :  { %v3056_v38 = vrot.slane %v3054_v2, 4  ;;  %v3059_v34 = vrot.slane %v3057_v3, 5  ;;  %v8640_v2 = vrot.slane %v2225_v32, 5  ;;  %v6970_v3 = vrot.slane %v8625_v46, 9  ;;  %vm11720_vm14 = vmmov %vm11714_vm1 }
 0x100   :  { %vm11721_vm0 = vmmov %vm11714_vm1 }
 0x101   :  { %v3060_v37 = vor.u32 %v3059_v34, %v3056_v38  ;;  %vm11731_vm10 = vmmov %vm11721_vm0 }
 0x102   :  { %vm11732_vm9 = vmmov %vm11721_vm0 }
 0x103   :  { %vm11744_vm3 = vmmov %vm11721_vm0 }
 0x104   :  { %vm11746_vm4 = vmmov %vm11721_vm0 }
 0x15c   :  { %v7300_v40 = vpop.f32.mrf.mxu0 }
 0x15d   :  { %v1554_v0 = vadd.f32 %v7300_v40, %v8600_v7 }
 0x15e   :  { %v1545_v43 = vpop.f32.mrf.mxu0 }
 0x15f   :  { %v7223_v44 = vpack.c.bf16 %v1554_v0, %v1554_v0  ;;  %v1546_v29 = vadd.f32 %v8600_v7, %v1545_v43 }
 0x160   :  { %v7301_v14 = vpop.f32.mrf.mxu0 }
 0x161   :  { %v1942_v8 = vshrl.u32 %v7223_v44, 16  ;;  %v7221_v9 = vpack.c.bf16 %v1546_v29, %v1546_v29  ;;  %v1557_v50 = vadd.f32 %v7301_v14, %v8600_v7  ;;  %v1945_v18 = vshll.u32 %v7223_v44, 16  ;;  %v2096_v44 = vld [vmem:[#allocation2 + $0x14] sm:$0x1] }
 0x162   :  { %v1548_v10 = vpop.f32.mrf.mxu0  ;;  %v8638_v14 = vrot.slane %v2222_v61, 4  ;;  %v2524_v61 = vrot.slane %v8629_v13, 5 }
 0x163   :  { %v1944_v16 = vrot.slane %v1942_v8, 7  ;;  %v1926_v23 = vshrl.u32 %v7221_v9, 16  ;;  %v7224_v25 = vpack.c.bf16 %v1557_v50, %v1557_v50  ;;  %v1549_v6 = vadd.f32 %v8600_v7, %v1548_v10 }
 0x164   :  { %v1929_v60 = vshll.u32 %v7221_v9, 16  ;;  %v1609_v52 = vpack.c.bf16 %v1557_v50, %v1554_v0 }
 0x165   :  { %v1947_v49 = vor.u32 %v1945_v18, %v1944_v16  ;;  %v1948_v35 = vrot.slane %v1944_v16, 4  ;;  %v1928_v47 = vrot.slane %v1926_v23, 7  ;;  %v1950_v53 = vshrl.u32 %v7224_v25, 16 }
 0x166   :  { %v7222_v55 = vpack.c.bf16 %v1549_v6, %v1549_v6  ;;  %v1608_v62 = vpack.c.bf16 %v1549_v6, %v1546_v29  ;;  %v1953_v17 = vshll.u32 %v7224_v25, 16  ;;  %v2492_v29 = vrot.slane %v8613_v11, 5 }
 0x167   :  { %v2100_v28 = vsel %vm8454_vm11, %v1947_v49, %v2099_v33  ;;  %v2103_v51 = vsel %vm8430_vm15, %v1948_v35, %v2102_v20  ;;  %v1931_v21 = vor.u32 %v1929_v60, %v1928_v47  ;;  %v1932_v41 = vrot.slane %v1928_v47, 4 }
 0x168   :  { %2101 = vst [vmem:[#allocation2 + $0x18] sm:$0xf] %v2100_v28  ;;  %2104 = vst [vmem:[#allocation2 + $0x1c] sm:$0x1] %v2103_v51  ;;  %v1952_v58 = vrot.slane %v1950_v53, 7  ;;  %v1934_v36 = vshrl.u32 %v7222_v55, 16  ;;  %7316 = vmatprep.mubr.msk.bf16.mxu1 %vm11713_vm6, %v1608_v62 }
 0x169   :  { %v2088_v22 = vsel %vm8454_vm11, %v1931_v21, %v2087_v15  ;;  %v2091_v26 = vsel %vm8430_vm15, %v1932_v41, %v2090_v31  ;;  %7317 = vmatmul.mubr.msk.bf16.vlgmr.msra.gmra.mxu1 %vm11714_vm1, %v1609_v52  ;;  %v1937_v1 = vshll.u32 %v7222_v55, 16  ;;  %v3257_v16 = vrot.slane %v2946_v5, 5 }
 0x16a   :  { %2089 = vst [vmem:[#allocation2 + $0x8] sm:$0xf] %v2088_v22  ;;  %2092 = vst [vmem:[#allocation2 + $0xc] sm:$0x1] %v2091_v26  ;;  %v1955_v40 = vor.u32 %v1953_v17, %v1952_v58  ;;  %v1956_v0 = vrot.slane %v1952_v58, 4  ;;  %v1936_v43 = vrot.slane %v1934_v36, 7  ;;  %v2493_v31 = vsel %vm8660_vm13, %v6931_v12, %v2492_v29 }
 0x16b   :  { %v8647_v18 = vrot.slane %v2337_v59, 5  ;;  %v6939_v11 = vrot.slane %v2447_v27, 9  ;;  %v8654_v33 = vrot.slane %v3060_v37, 4  ;;  %v3063_v20 = vshll.u32 %v2946_v5, 16 }
 0x16c   :  { %v2106_v8 = vsel %vm8454_vm11, %v1955_v40, %v2105_v54  ;;  %v2109_v9 = vsel %vm8430_vm15, %v1956_v0, %v2108_v57  ;;  %v1939_v50 = vor.u32 %v1937_v1, %v1936_v43  ;;  %v1940_v10 = vrot.slane %v1936_v43, 4 }
 0x16d   :  { %2107 = vst [vmem:[#allocation2 + $0x20] sm:$0xf] %v2106_v8  ;;  %2110 = vst [vmem:[#allocation2 + $0x24] sm:$0x1] %v2109_v9  ;;  %v8676_v21 = vrot.slane %v3063_v20, 5  ;;  %v8688_v22 = vsel %vm8660_vm13, %v6970_v3, %v3257_v16  ;;  %v8692_v26 = vsel %vm8660_vm13, %v6939_v11, %v2524_v61  ;;  %vm11763_vm6 = vcmask 195584  }
 0x16e   :  { %11715 = vst [vmem:[#allocation7_spill] sm:$0xff] %v8647_v18  ;;  %v2094_v23 = vsel %vm8454_vm11, %v1939_v50, %v2093_v4  ;;  %v2097_v32 = vsel %vm8430_vm15, %v1940_v10, %v2096_v44  ;;  %11716 = vst [vmem:[#allocation8_spill] sm:$0xff] %v8654_v33  ;;  %vm11764_vm1 = vcmask 261120  }
 0x16f   :  { %2095 = vst [vmem:[#allocation2 + $0x10] sm:$0xf] %v2094_v23  ;;  %2098 = vst [vmem:[#allocation2 + $0x14] sm:$0x1] %v2097_v32  ;;  %v2556_v25 = vld [vmem:[#allocation2 + $0x18] sm:$0xf] }
 0x170   :  { %v8656_v6 = vld [vmem:[#allocation2 + $0x1c] sm:$0x1]  ;;  %v2812_v38 = vld [vmem:[#allocation2 + $0x18] sm:$0xe]  ;;  %v2615_v34 = vshrl.u32 %v2556_v25, 16  ;;  %v2618_v49 = vshll.u32 %v2556_v25, 16 }
 0x171   :  { %v6949_v47 = vrot.slane %v2812_v38, 9  ;;  %v2868_v60 = vrot.slane %v8656_v6, 5  ;;  %v8665_v45 = vld [vmem:[#allocation2 + $0xc] sm:$0x1]  ;;  %v2440_v15 = vld [vmem:[#allocation2 + $0x8] sm:$0xe] }
 0x172   :  { %v2554_v52 = vld [vmem:[#allocation2 + $0x8] sm:$0xf]  ;;  %v8673_v55 = vrot.slane %v2615_v34, 4  ;;  %v6932_v62 = vrot.slane %v2440_v15, 9  ;;  %v2496_v28 = vrot.slane %v8665_v45, 5  ;;  %11719 = vst [vmem:[#allocation9_spill] sm:$0xff] %v8676_v21 }
 0x173   :  { %v2442_v51 = vld [vmem:[#allocation2 + $0x18] sm:$0xe]  ;;  %v8678_v41 = vrot.slane %v2618_v49, 5  ;;  %v2587_v54 = vshrl.u32 %v2554_v52, 16  ;;  %v2590_v57 = vshll.u32 %v2554_v52, 16  ;;  %v2869_v13 = vsel %vm8660_vm13, %v6949_v47, %v2868_v60 }
 0x174   :  { %v6934_v46 = vrot.slane %v2442_v51, 9  ;;  %v2557_v58 = vld [vmem:[#allocation2 + $0x20] sm:$0xf]  ;;  %v2497_v17 = vsel %vm8660_vm13, %v6932_v62, %v2496_v28  ;;  %v8682_v36 = vld [vmem:[#allocation2 + $0x24] sm:$0x1] }
 0x175   :  { %v2813_v12 = vld [vmem:[#allocation2 + $0x20] sm:$0xe]  ;;  %v7004_v4 = vcombine.low %v2556_v25, %v2557_v58  ;;  %v2629_v5 = vshrl.u32 %v2557_v58, 16  ;;  %v2632_v59 = vshll.u32 %v2557_v58, 16  ;;  %v6995_v37 = vcombine.low %v2493_v31, %v2497_v17  ;;  %v8694_v40 = vld [vmem:[#allocation2 + $0x1c] sm:$0x1] }
 0x176   :  { %v6950_v0 = vrot.slane %v2813_v12, 9  ;;  %v2872_v43 = vrot.slane %v8682_v36, 5  ;;  %v2555_v1 = vld [vmem:[#allocation2 + $0x10] sm:$0xf]  ;;  %v8697_v27 = vrot.slane %v2587_v54, 4  ;;  %v8699_v44 = vrot.slane %v2590_v57, 5 }
 0x177   :  { %v8701_v29 = vld [vmem:[#allocation2 + $0x18] sm:$0xf]  ;;  %3453 = vrot.lane.b32.xlu1 %v7004_v4, %s7531_s26  ;;  %v8704_v3 = vrot.slane %v2629_v5, 4  ;;  %v8706_v8 = vrot.slane %v2632_v59, 5  ;;  %3395 = vrot.lane.b32.xlu0 %v6995_v37, %s7533_s12  ;;  %v2601_v9 = vshrl.u32 %v2555_v1, 16  ;;  %v2604_v50 = vshll.u32 %v2555_v1, 16 }
 0x178   :  { %v8709_v10 = vld [vmem:[#allocation2 + $0x14] sm:$0x1]  ;;  %v2873_v16 = vsel %vm8660_vm13, %v6950_v0, %v2872_v43  ;;  %v7003_v11 = vcombine.low %v2554_v52, %v2555_v1  ;;  %v2441_v61 = vld [vmem:[#allocation2 + $0x10] sm:$0xe]  ;;  %v2504_v32 = vrot.slane %v8694_v40, 5  ;;  %v2970_v58 = vshrl.u32 %v8701_v29, 16 }
 0x179   :  { %v2500_v23 = vrot.slane %v8709_v10, 5  ;;  %v2923_v20 = vld [vmem:[#allocation2 + $0x10] sm:$0xf]  ;;  %v8715_v25 = vld [vmem:[#allocation2 + $0xc] sm:$0x1]  ;;  %v7020_v38 = vcombine.low %v2869_v13, %v2873_v16  ;;  %v8717_v34 = vrot.slane %v2601_v9, 4 }
 0x17a   :  { %v8719_v49 = vrot.slane %v2604_v50, 5  ;;  %v6933_v47 = vrot.slane %v2441_v61, 9  ;;  %v2810_v60 = vld [vmem:[#allocation2 + $0x8] sm:$0xe]  ;;  %v2956_v15 = vshrl.u32 %v2923_v20, 16  ;;  %v2959_v31 = vshll.u32 %v2923_v20, 16 }
 0x17b   :  { %v8721_v62 = vld [vmem:[#allocation2 + $0x14] sm:$0x1]  ;;  %v2811_v52 = vld [vmem:[#allocation2 + $0x10] sm:$0xe]  ;;  %3533 = vrot.lane.b32.xlu1 %v7020_v38, %s7534_s19  ;;  %3451 = vrot.lane.b32.xlu0 %v7003_v11, %s7531_s26  ;;  %v2505_v57 = vsel %vm8660_vm13, %v6934_v46, %v2504_v32  ;;  %v2973_v17 = vshll.u32 %v8701_v29, 16  ;;  %v7027_v5 = vcombine.low %v2923_v20, %v8701_v29  ;;  %v6947_v59 = vrot.slane %v2810_v60, 9 }
 0x17c   :  { %v2501_v54 = vsel %vm8660_vm13, %v6933_v47, %v2500_v23  ;;  %v8737_v12 = vld [vmem:[#allocation2 + $0x14] sm:$0x1]  ;;  %v8739_v4 = vrot.slane %v2956_v15, 4  ;;  %v8742_v37 = vld [vmem:[#allocation2 + $0x1c] sm:$0x1]  ;;  %v8744_v1 = vrot.slane %v2959_v31, 5 }
 0x17d   :  { %v6996_v13 = vcombine.low %v2501_v54, %v2505_v57  ;;  %v3179_v0 = vld [vmem:[#allocation2 + $0x10] sm:$0xe]  ;;  %v7304_v43 = vpop.f32.mrf.mxu0  ;;  %v2860_v46 = vrot.slane %v8715_v25, 5  ;;  %v6948_v9 = vrot.slane %v2811_v52, 9  ;;  %v2864_v50 = vrot.slane %v8721_v62, 5 }
 0x17e   :  { %v3180_v16 = vld [vmem:[#allocation2 + $0x18] sm:$0xe]  ;;  %v8749_v11 = vadd.f32 %v7304_v43, %v8600_v7  ;;  %v6963_v61 = vrot.slane %v3179_v0, 9  ;;  %v3229_v23 = vrot.slane %v8737_v12, 5  ;;  %v2184_v32 = vld [vmem:[#allocation2 + $0x8] sm:$0xf] }
 0x17f   :  { %v6964_v29 = vrot.slane %v3180_v16, 9  ;;  %3397 = vrot.lane.b32.xlu1 %v6996_v13, %s7533_s12  ;;  %v1561_v20 = vpop.f32.mrf.mxu0  ;;  %v8753_v38 = vrot.slane %v2970_v58, 4  ;;  %3587 = vrot.lane.b32.xlu0 %v7027_v5, %s7535_s13  ;;  %v2865_v47 = vsel %vm8660_vm13, %v6948_v9, %v2864_v50  ;;  %v3233_v60 = vrot.slane %v8742_v37, 5  ;;  %v8767_v9 = vld [vmem:[#allocation2 + $0x20] sm:$0xf] }
 0x180   :  { %v2230_v15 = vshrl.u32 %v2184_v32, 16  ;;  %v7227_v31 = vpack.c.bf16 %v8749_v11, %v8749_v11  ;;  %v1562_v52 = vadd.f32 %v8600_v7, %v1561_v20  ;;  %v2861_v54 = vsel %vm8660_vm13, %v6947_v59, %v2860_v46  ;;  %v2126_v28 = vld [vmem:[#allocation2 + $0x3c] sm:$0x1]  ;;  %v3181_v19 = vld [vmem:[#allocation2 + $0x20] sm:$0xe] }
 0x181   :  { %v3230_v57 = vsel %vm8660_vm13, %v6963_v61, %v3229_v23  ;;  %v7305_v58 = vpop.f32.mrf.mxu0  ;;  %v7019_v13 = vcombine.low %v2861_v54, %v2865_v47  ;;  %v2233_v0 = vshll.u32 %v2184_v32, 16  ;;  %v2239_v43 = vshll.u32 %v8665_v45, 16  ;;  %v2123_v54 = vld [vmem:[#allocation2 + $0x38] sm:$0xf] }
 0x182   :  { %v2232_v5 = vrot.slane %v2230_v15, 4  ;;  %v1974_v50 = vshrl.u32 %v7227_v31, 16  ;;  %v7225_v16 = vpack.c.bf16 %v1562_v52, %v1562_v52  ;;  %v1573_v48 = vadd.f32 %v7305_v58, %v8600_v7 }
 0x183   :  { %v3234_v20 = vsel %vm8660_vm13, %v6964_v29, %v3233_v60  ;;  %v1977_v51 = vshll.u32 %v7227_v31, 16  ;;  %v8772_v59 = vrot.slane %v2973_v17, 5  ;;  %v1564_v46 = vpop.f32.mrf.mxu0  ;;  %3531 = vrot.lane.b32.xlu0 %v7019_v13, %s7534_s19  ;;  %v2235_v23 = vrot.slane %v2233_v0, 5 }
 0x184   :  { %v7043_v61 = vcombine.low %v3230_v57, %v3234_v20  ;;  %v1976_v32 = vrot.slane %v1974_v50, 7  ;;  %v1958_v47 = vshrl.u32 %v7225_v16, 16  ;;  %v2241_v45 = vrot.slane %v2239_v43, 5  ;;  %v2114_v57 = vld [vmem:[#allocation2 + $0x2c] sm:$0x1] }
 0x185   :  { %v2984_v15 = vshrl.u32 %v8767_v9, 16  ;;  %v1961_v53 = vshll.u32 %v7225_v16, 16  ;;  %v7228_v58 = vpack.c.bf16 %v1573_v48, %v1573_v48  ;;  %v1565_v42 = vadd.f32 %v8600_v7, %v1564_v46 }
 0x186   :  { %v2236_v29 = vor.u32 %v2235_v23, %v2232_v5  ;;  %v1979_v60 = vor.u32 %v1977_v51, %v1976_v32  ;;  %v1980_v17 = vrot.slane %v1976_v32, 4  ;;  %v1960_v31 = vrot.slane %v1958_v47, 7  ;;  %v8784_v23 = vld [vmem:[#allocation2 + $0x24] sm:$0x1]  ;;  %v2443_v32 = vld [vmem:[#allocation2 + $0x20] sm:$0xe] }
 0x187   :  { %v1611_v13 = vpack.c.bf16 %v1573_v48, %v8749_v11  ;;  %v1982_v0 = vshrl.u32 %v7228_v58, 16  ;;  %v1610_v50 = vpack.c.bf16 %v1565_v42, %v1562_v52  ;;  %v7226_v20 = vpack.c.bf16 %v1565_v42, %v1565_v42  ;;  %3667 = vrot.lane.b32.xlu0 %v7043_v61, %s7537_s24  ;;  %v8786_v48 = vld [vmem:[#allocation2 + $0x24] sm:$0x1] }
 0x188   :  { %v2987_v43 = vshll.u32 %v8767_v9, 16  ;;  %v2124_v16 = vsel %vm8454_vm11, %v1979_v60, %v2123_v54  ;;  %v2127_v51 = vsel %vm8430_vm15, %v1980_v17, %v2126_v28  ;;  %v1963_v5 = vor.u32 %v1961_v53, %v1960_v31  ;;  %v2129_v28 = vld [vmem:[#allocation2 + $0x40] sm:$0xf]  ;;  %v2132_v54 = vld [vmem:[#allocation2 + $0x44] sm:$0x1] }
 0x189   :  { %v1964_v46 = vrot.slane %v1960_v31, 4  ;;  %2125 = vst [vmem:[#allocation2 + $0x38] sm:$0xf] %v2124_v16  ;;  %2128 = vst [vmem:[#allocation2 + $0x3c] sm:$0x1] %v2127_v51  ;;  %v1984_v42 = vrot.slane %v1982_v0, 7  ;;  %7320 = vmatprep.mubr.msk.bf16.mxu1 %vm11720_vm14, %v1610_v50 }
 0x18a   :  { %v1985_v11 = vshll.u32 %v7228_v58, 16  ;;  %v1966_v52 = vshrl.u32 %v7226_v20, 16  ;;  %v2237_v61 = vrot.slane %v2236_v29, 4  ;;  %v2112_v47 = vsel %vm8454_vm11, %v1963_v5, %v2111_v24  ;;  %7321 = vmatmul.mubr.msk.bf16.gmra.mxu1 %vm11721_vm0, %v1611_v13  ;;  %v2117_v50 = vld [vmem:[#allocation2 + $0x30] sm:$0xf]  ;;  %vm11766_vm14 = vmmov %vm11721_vm0 }
 0x18b   :  { %v2115_v53 = vsel %vm8430_vm15, %v1964_v46, %v2114_v57  ;;  %v1969_v60 = vshll.u32 %v7226_v20, 16  ;;  %v6965_v17 = vrot.slane %v3181_v19, 9  ;;  %2113 = vst [vmem:[#allocation2 + $0x28] sm:$0xf] %v2112_v47  ;;  %v1988_v31 = vrot.slane %v1984_v42, 4 }
 0x18c   :  { %2116 = vst [vmem:[#allocation2 + $0x2c] sm:$0x1] %v2115_v53  ;;  %v1987_v58 = vor.u32 %v1985_v11, %v1984_v42  ;;  %v1968_v0 = vrot.slane %v1966_v52, 7  ;;  %v2242_v29 = vsel %vm7677_vm2, %v2237_v61, %v2241_v45  ;;  %v2120_v16 = vld [vmem:[#allocation2 + $0x34] sm:$0x1]  ;;  %v11722_v24 = vsel %vm7677_vm2, %v8638_v14, %v8640_v2 }
 0x18d   :  { %v6987_v57 = vcombine.low %v11722_v24, %v2242_v29  ;;  %v3237_v20 = vrot.slane %v8784_v23, 5  ;;  %v6935_v13 = vrot.slane %v2443_v32, 9  ;;  %v2508_v19 = vrot.slane %v8786_v48, 5  ;;  %v8807_v42 = vld [vmem:[#allocation2 + $0x10] sm:$0xf] }
 0x18e   :  { %v2130_v51 = vsel %vm8454_vm11, %v1987_v58, %v2129_v28  ;;  %v2133_v5 = vsel %vm8430_vm15, %v1988_v31, %v2132_v54  ;;  %v1971_v46 = vor.u32 %v1969_v60, %v1968_v0  ;;  %v1972_v45 = vrot.slane %v1968_v0, 4 }
 0x18f   :  { %2131 = vst [vmem:[#allocation2 + $0x40] sm:$0xf] %v2130_v51  ;;  %2134 = vst [vmem:[#allocation2 + $0x44] sm:$0x1] %v2133_v5  ;;  %3355 = vrot.lane.b32.xlu0 %v6987_v57, %s7530_s23  ;;  %v8810_v14 = vrot.slane %v2984_v15, 4  ;;  %v8812_v2 = vrot.slane %v2987_v43, 5  ;;  %v11723_v11 = vor.u32 %v8678_v41, %v8673_v55  ;;  %v2635_v53 = vor.u32 %v8706_v8, %v8704_v3 }
 0x190   :  { %v2624_v61 = vshll.u32 %v8656_v6, 16  ;;  %v2118_v32 = vsel %vm8454_vm11, %v1971_v46, %v2117_v50  ;;  %v2121_v47 = vsel %vm8430_vm15, %v1972_v45, %v2120_v16  ;;  %v2638_v15 = vshll.u32 %v8682_v36, 16  ;;  %v2560_v41 = vld [vmem:[#allocation2 + $0x38] sm:$0xf] }
 0x191   :  { %v8817_v52 = vrot.slane %v11723_v11, 4  ;;  %2119 = vst [vmem:[#allocation2 + $0x30] sm:$0xf] %v2118_v32  ;;  %2122 = vst [vmem:[#allocation2 + $0x34] sm:$0x1] %v2121_v47  ;;  %v3238_v55 = vsel %vm8660_vm13, %v6965_v17, %v3237_v20  ;;  %v8831_v6 = vsel %vm8660_vm13, %v6935_v13, %v2508_v19  ;;  %v2671_v54 = vshrl.u32 %v2560_v41, 16 }
 0x192   :  { %v8833_v43 = vrot.slane %v2624_v61, 5  ;;  %v2674_v60 = vshll.u32 %v2560_v41, 16  ;;  %v8836_v58 = vrot.slane %v2635_v53, 4  ;;  %v8838_v3 = vrot.slane %v2638_v15, 5  ;;  %v2926_v36 = vld [vmem:[#allocation2 + $0x28] sm:$0xf] }
 0x193   :  { %v8840_v8 = vld [vmem:[#allocation2 + $0x2c] sm:$0x1]  ;;  %v3182_v31 = vld [vmem:[#allocation2 + $0x28] sm:$0xe]  ;;  %v7028_v16 = vcombine.low %v8767_v9, %v2926_v36  ;;  %v2998_v24 = vshrl.u32 %v2926_v36, 16  ;;  %v3001_v19 = vshll.u32 %v2926_v36, 16 }
 0x194   :  { %v6966_v57 = vrot.slane %v3182_v31, 9  ;;  %v8853_v20 = vld [vmem:[#allocation2 + $0x2c] sm:$0x1]  ;;  %v3241_v51 = vrot.slane %v8840_v8, 5  ;;  %v2444_v5 = vld [vmem:[#allocation2 + $0x28] sm:$0xe] }
 0x195   :  { %v2512_v46 = vrot.slane %v8853_v20, 5  ;;  %3589 = vrot.lane.b32.xlu1 %v7028_v16, %s7535_s13  ;;  %v8862_v11 = vrot.slane %v2998_v24, 4  ;;  %v8864_v61 = vrot.slane %v2671_v54, 4  ;;  %v8866_v32 = vrot.slane %v2674_v60, 5  ;;  %v2558_v29 = vld [vmem:[#allocation2 + $0x28] sm:$0xf] }
 0x196   :  { %v2561_v9 = vld [vmem:[#allocation2 + $0x40] sm:$0xf]  ;;  %v6936_v47 = vrot.slane %v2444_v5, 9  ;;  %v3242_v53 = vsel %vm8660_vm13, %v6966_v57, %v3241_v51  ;;  %v8872_v54 = vrot.slane %v3001_v19, 5  ;;  %v2643_v51 = vshrl.u32 %v2558_v29, 16 }
 0x197   :  { %v2685_v15 = vshrl.u32 %v2561_v9, 16  ;;  %v2688_v36 = vshll.u32 %v2561_v9, 16  ;;  %v7006_v31 = vcombine.low %v2560_v41, %v2561_v9  ;;  %v2929_v13 = vld [vmem:[#allocation2 + $0x40] sm:$0xf]  ;;  %v7044_v50 = vcombine.low %v3238_v55, %v3242_v53  ;;  %v2928_v9 = vld [vmem:[#allocation2 + $0x38] sm:$0xf] }
 0x198   :  { %v2513_v16 = vsel %vm8660_vm13, %v6936_v47, %v2512_v46  ;;  %v3040_v24 = vshrl.u32 %v2929_v13, 16  ;;  %v3043_v45 = vshll.u32 %v2929_v13, 16  ;;  %v2559_v0 = vld [vmem:[#allocation2 + $0x30] sm:$0xf]  ;;  %v2641_v41 = vsel %vm7677_vm2, %v8836_v58, %v8838_v3 }
 0x199   :  { %v8874_v60 = vrot.slane %v2685_v15, 4  ;;  %v8876_v5 = vrot.slane %v2688_v36, 5  ;;  %v8882_v57 = vld [vmem:[#allocation2 + $0x30] sm:$0xf]  ;;  %3669 = vrot.lane.b32.xlu0 %v7044_v50, %s7537_s24  ;;  %3457 = vrot.lane.b32.xlu1 %v7006_v31, %s7531_s26  ;;  %v6997_v55 = vcombine.low %v8831_v6, %v2513_v16  ;;  %v7030_v19 = vcombine.low %v2929_v13, %v8603_v63 }
 0x19a   :  { %v2646_v46 = vshll.u32 %v2558_v29, 16  ;;  %v8888_v47 = vrot.slane %v3040_v24, 4  ;;  %v8890_v53 = vrot.slane %v3043_v45, 5  ;;  %v2657_v15 = vshrl.u32 %v2559_v0, 16 }
 0x19b   :  { %11724 = vst [vmem:[#allocation10_spill] sm:$0xff] %v8876_v5  ;;  %v2660_v36 = vshll.u32 %v2559_v0, 16  ;;  %v2645_v58 = vrot.slane %v2643_v51, 4  ;;  %v3012_v28 = vshrl.u32 %v8882_v57, 16  ;;  %v3015_v50 = vshll.u32 %v8882_v57, 16 }
 0x19c   :  { %11725 = vst [vmem:[#allocation11_spill] sm:$0xff] %v8888_v47  ;;  %11726 = vst [vmem:[#allocation12_spill] sm:$0xff] %v8890_v53  ;;  %v2648_v3 = vrot.slane %v2646_v46, 5  ;;  %v2659_v31 = vrot.slane %v2657_v15, 4  ;;  %v3026_v6 = vshrl.u32 %v2928_v9, 16  ;;  %v3029_v16 = vshll.u32 %v2928_v9, 16 }
 0x19d   :  { %v2662_v17 = vrot.slane %v2660_v36, 5  ;;  %3399 = vrot.lane.b32.xlu0 %v6997_v55, %s7533_s12  ;;  %3593 = vrot.lane.b32.xlu1 %v7030_v19, %s7535_s13  ;;  %v7308_v63 = vpop.f32.mrf.mxu0  ;;  %v7005_v45 = vcombine.low %v2558_v29, %v2559_v0  ;;  %v8896_v24 = vrot.slane %v3012_v28, 4  ;;  %v8898_v18 = vrot.slane %v3015_v50, 5  ;;  %v8907_v36 = vld [vmem:[#allocation2 + $0x18] sm:$0xf] }
 0x19e   :  { %v2649_v13 = vor.u32 %v2648_v3, %v2645_v58  ;;  %v8901_v51 = vadd.f32 %v7308_v63, %v8600_v7  ;;  %v8903_v21 = vrot.slane %v3026_v6, 4  ;;  %v8905_v15 = vrot.slane %v3029_v16, 5 }
 0x19f   :  { %v2663_v46 = vor.u32 %v2662_v17, %v2659_v31  ;;  %v1577_v55 = vpop.f32.mrf.mxu0  ;;  %v11727_v0 = vsel %vm7677_vm2, %v8817_v52, %v8833_v43  ;;  %v7029_v29 = vcombine.low %v8882_v57, %v2928_v9  ;;  %v11728_v19 = vshrl.u32 %v8807_v42, 16 }
 0x1a0   :  { %v7012_v28 = vcombine.low %v11727_v0, %v2641_v41  ;;  %v2247_v17 = vshll.u32 %v8807_v42, 16  ;;  %v7231_v3 = vpack.c.bf16 %v8901_v51, %v8901_v51  ;;  %v1578_v50 = vadd.f32 %v8600_v7, %v1577_v55 }
 0x1a1   :  { %v2246_v58 = vrot.slane %v11728_v19, 4  ;;  %v8921_v31 = vrot.slane %v2649_v13, 4  ;;  %v8925_v16 = vrot.slane %v2663_v46, 4  ;;  %3455 = vrot.lane.b32.xlu0 %v7005_v45, %s7531_s26  ;;  %v7309_v52 = vpop.f32.mrf.mxu0  ;;  %v2253_v42 = vshll.u32 %v8709_v10, 16 }
 0x1a2   :  { %3493 = vrot.lane.b32.xlu1 %v7012_v28, %s7532_s20  ;;  %v2249_v43 = vrot.slane %v2247_v17, 5  ;;  %v2258_v41 = vshrl.u32 %v8907_v36, 16  ;;  %v2006_v57 = vshrl.u32 %v7231_v3, 16  ;;  %v7229_v9 = vpack.c.bf16 %v1578_v50, %v1578_v50 }
 0x1a3   :  { %11729 = vst [vmem:[#allocation13_spill] sm:$0xff] %v8921_v31  ;;  %11730 = vst [vmem:[#allocation14_spill] sm:$0xff] %v8925_v16  ;;  %v1589_v63 = vadd.f32 %v7309_v52, %v8600_v7  ;;  %v2009_v55 = vshll.u32 %v7231_v3, 16  ;;  %v1580_v46 = vpop.f32.mrf.mxu0  ;;  %v8934_v19 = vrot.slane %v2253_v42, 5  ;;  %v2147_v16 = vld [vmem:[#allocation2 + $0x68] sm:$0xf] }
 0x1a4   :  { %v2250_v0 = vor.u32 %v2249_v43, %v2246_v58  ;;  %v2260_v45 = vrot.slane %v2258_v41, 4  ;;  %v2008_v28 = vrot.slane %v2006_v57, 7  ;;  %v1990_v6 = vshrl.u32 %v7229_v9, 16  ;;  %v2150_v31 = vld [vmem:[#allocation2 + $0x6c] sm:$0x1] }
 0x1a5   :  { %v1993_v17 = vshll.u32 %v7229_v9, 16  ;;  %v1613_v10 = vpack.c.bf16 %v1589_v63, %v8901_v51  ;;  %v7232_v33 = vpack.c.bf16 %v1589_v63, %v1589_v63  ;;  %v1581_v53 = vadd.f32 %v8600_v7, %v1580_v46  ;;  %3591 = vrot.lane.b32.xlu0 %v7029_v29, %s7535_s13  ;;  %v2135_v57 = vld [vmem:[#allocation2 + $0x58] sm:$0xf]  ;;  %v2138_v9 = vld [vmem:[#allocation2 + $0x5c] sm:$0x1] }
 0x1a6   :  { %v8939_v52 = vrot.slane %v2250_v0, 4  ;;  %v2261_v3 = vshll.u32 %v8907_v36, 16  ;;  %v2011_v58 = vor.u32 %v2009_v55, %v2008_v28  ;;  %v2012_v43 = vrot.slane %v2008_v28, 4  ;;  %v2153_v36 = vld [vmem:[#allocation2 + $0x70] sm:$0xf] }
 0x1a7   :  { %v1992_v42 = vrot.slane %v1990_v6, 7  ;;  %v2267_v41 = vshll.u32 %v8694_v40, 16  ;;  %v2014_v13 = vshrl.u32 %v7232_v33, 16  ;;  %v2017_v51 = vshll.u32 %v7232_v33, 16  ;;  %v2156_v55 = vld [vmem:[#allocation2 + $0x74] sm:$0x1] }
 0x1a8   :  { %v1612_v47 = vpack.c.bf16 %v1581_v53, %v1578_v50  ;;  %v7230_v5 = vpack.c.bf16 %v1581_v53, %v1581_v53  ;;  %v2148_v7 = vsel %vm8454_vm11, %v2011_v58, %v2147_v16  ;;  %v2151_v29 = vsel %vm8430_vm15, %v2012_v43, %v2150_v31  ;;  %v2141_v31 = vld [vmem:[#allocation2 + $0x60] sm:$0xf]  ;;  %v2144_v16 = vld [vmem:[#allocation2 + $0x64] sm:$0x1]  ;;  %v2816_v43 = vld [vmem:[#allocation2 + $0x38] sm:$0xe] }
 0x1a9   :  { %v1995_v63 = vor.u32 %v1993_v17, %v1992_v42  ;;  %v1996_v46 = vrot.slane %v1992_v42, 4  ;;  %2149 = vst [vmem:[#allocation2 + $0x68] sm:$0xf] %v2148_v7  ;;  %2152 = vst [vmem:[#allocation2 + $0x6c] sm:$0x1] %v2151_v29  ;;  %v2016_v6 = vrot.slane %v2014_v13, 7  ;;  %v2256_v33 = vsel %vm7677_vm2, %v8939_v52, %v8934_v19 }
 0x1aa   :  { %v1998_v40 = vshrl.u32 %v7230_v5, 16  ;;  %v2001_v0 = vshll.u32 %v7230_v5, 16  ;;  %7324 = vmatprep.mubr.msk.bf16.mxu1 %vm11731_vm10, %v1612_v47  ;;  %v2263_v28 = vrot.slane %v2261_v3, 5  ;;  %v2269_v13 = vrot.slane %v2267_v41, 5  ;;  %v8956_v17 = vld [vmem:[#allocation2 + $0x3c] sm:$0x1] }
 0x1ab   :  { %v2136_v53 = vsel %vm8454_vm11, %v1995_v63, %v2135_v57  ;;  %v2139_v50 = vsel %vm8430_vm15, %v1996_v46, %v2138_v9  ;;  %7325 = vmatmul.mubr.msk.bf16.gmra.mxu1 %vm11732_vm9, %v1613_v10  ;;  %v2019_v5 = vor.u32 %v2017_v51, %v2016_v6  ;;  %v2020_v19 = vrot.slane %v2016_v6, 4  ;;  %v2817_v10 = vld [vmem:[#allocation2 + $0x40] sm:$0xe]  ;;  %v8978_v6 = vld [vmem:[#allocation2 + $0x34] sm:$0x1]  ;;  %vm11774_vm9 = vmmov %vm11763_vm6 }
 0x1ac   :  { %2137 = vst [vmem:[#allocation2 + $0x58] sm:$0xf] %v2136_v53  ;;  %2140 = vst [vmem:[#allocation2 + $0x5c] sm:$0x1] %v2139_v50  ;;  %v2000_v52 = vrot.slane %v1998_v40, 7  ;;  %v11733_v47 = vor.u32 %v8699_v44, %v8697_v27  ;;  %v2264_v42 = vor.u32 %v2263_v28, %v2260_v45  ;;  %v2596_v57 = vshll.u32 %v8715_v25, 16 }
 0x1ad   :  { %v11734_v3 = vor.u32 %v8719_v49, %v8717_v34  ;;  %v2610_v9 = vshll.u32 %v8721_v62, 16  ;;  %v2154_v51 = vsel %vm8454_vm11, %v2019_v5, %v2153_v36  ;;  %v2157_v7 = vsel %vm8430_vm15, %v2020_v19, %v2156_v55  ;;  %v8971_v44 = vld [vmem:[#allocation2 + $0x44] sm:$0x1]  ;;  %v2445_v50 = vld [vmem:[#allocation2 + $0x30] sm:$0xe] }
 0x1ae   :  { %v2594_v58 = vrot.slane %v11733_v47, 4  ;;  %v2003_v29 = vor.u32 %v2001_v0, %v2000_v52  ;;  %v2004_v27 = vrot.slane %v2000_v52, 4  ;;  %2155 = vst [vmem:[#allocation2 + $0x70] sm:$0xf] %v2154_v51  ;;  %2158 = vst [vmem:[#allocation2 + $0x74] sm:$0x1] %v2157_v7 }
 0x1af   :  { %v2608_v41 = vrot.slane %v11734_v3, 4  ;;  %v2265_v25 = vrot.slane %v2264_v42, 4  ;;  %v2598_v45 = vrot.slane %v2596_v57, 5  ;;  %v2612_v63 = vrot.slane %v2610_v9, 5  ;;  %v8995_v47 = vld [vmem:[#allocation2 + $0x3c] sm:$0x1] }
 0x1b0   :  { %v6953_v34 = vrot.slane %v2816_v43, 9  ;;  %v2142_v49 = vsel %vm8454_vm11, %v2003_v29, %v2141_v31  ;;  %v2145_v62 = vsel %vm8430_vm15, %v2004_v27, %v2144_v16  ;;  %v2884_v46 = vrot.slane %v8956_v17, 5  ;;  %v2446_v31 = vld [vmem:[#allocation2 + $0x38] sm:$0xe]  ;;  %v2574_v29 = vld [vmem:[#allocation2 + $0x2c] sm:$0x1] }
 0x1b1   :  { %v6954_v36 = vrot.slane %v2817_v10, 9  ;;  %2143 = vst [vmem:[#allocation2 + $0x60] sm:$0xf] %v2142_v49  ;;  %2146 = vst [vmem:[#allocation2 + $0x64] sm:$0x1] %v2145_v62  ;;  %v2270_v55 = vsel %vm7677_vm2, %v2265_v25, %v2269_v13  ;;  %v2599_v40 = vsel %vm7677_vm2, %v2594_v58, %v2598_v45  ;;  %v2613_v0 = vsel %vm7677_vm2, %v2608_v41, %v2612_v63  ;;  %v11752_v30 = vld [vmem:[#allocation14_spill] sm:$0xff] }
 0x1b2   :  { %v2888_v53 = vrot.slane %v8971_v44, 5  ;;  %v11735_v16 = vor.u32 %v8898_v18, %v8896_v24  ;;  %v6988_v5 = vcombine.low %v2256_v33, %v2270_v55  ;;  %v7011_v19 = vcombine.low %v2599_v40, %v2613_v0  ;;  %v3185_v58 = vld [vmem:[#allocation2 + $0x40] sm:$0xe]  ;;  %v9004_v33 = vld [vmem:[#allocation2 + $0x44] sm:$0x1] }
 0x1b3   :  { %v11736_v13 = vor.u32 %v8744_v1, %v8739_v4  ;;  %v2965_v42 = vshll.u32 %v8737_v12, 16  ;;  %v11737_v57 = vor.u32 %v8772_v59, %v8753_v38  ;;  %v2979_v24 = vshll.u32 %v8742_v37, 16  ;;  %v2814_v49 = vld [vmem:[#allocation2 + $0x28] sm:$0xe] }
 0x1b4   :  { %v8990_v28 = vrot.slane %v11735_v16, 4  ;;  %v2889_v43 = vsel %vm8660_vm13, %v6954_v36, %v2888_v53  ;;  %3357 = vrot.lane.b32.xlu1 %v6988_v5, %s7530_s23  ;;  %3491 = vrot.lane.b32.xlu0 %v7011_v19, %s7532_s20  ;;  %v2885_v4 = vsel %vm8660_vm13, %v6953_v34, %v2884_v46  ;;  %v6937_v1 = vrot.slane %v2445_v50, 9  ;;  %v2187_v53 = vld [vmem:[#allocation2 + $0x20] sm:$0xf]  ;;  %v2188_v16 = vld [vmem:[#allocation2 + $0x28] sm:$0xf] }
 0x1b5   :  { %v2963_v52 = vrot.slane %v11736_v13, 4  ;;  %v2977_v18 = vrot.slane %v11737_v57, 4  ;;  %v2516_v3 = vrot.slane %v8978_v6, 5  ;;  %v6938_v41 = vrot.slane %v2446_v31, 9  ;;  %v2943_v57 = vld [vmem:[#allocation2 + $0x34] sm:$0x1] }
 0x1b6   :  { %v2967_v12 = vrot.slane %v2965_v42, 5  ;;  %v2981_v9 = vrot.slane %v2979_v24, 5  ;;  %v2520_v38 = vrot.slane %v8995_v47, 5  ;;  %v6969_v59 = vrot.slane %v3185_v58, 9 }
 0x1b7   :  { %v7022_v10 = vcombine.low %v2885_v4, %v2889_v43  ;;  %v2517_v37 = vsel %vm8660_vm13, %v6937_v1, %v2516_v3  ;;  %v3253_v51 = vrot.slane %v9004_v33, 5  ;;  %v2993_v7 = vshll.u32 %v8784_v23, 16  ;;  %v2944_v1 = vld [vmem:[#allocation2 + $0x3c] sm:$0x1]  ;;  %v3183_v3 = vld [vmem:[#allocation2 + $0x30] sm:$0xe] }
 0x1b8   :  { %v2968_v27 = vsel %vm7677_vm2, %v2963_v52, %v2967_v12  ;;  %v2982_v25 = vsel %vm7677_vm2, %v2977_v18, %v2981_v9  ;;  %v11738_v45 = vor.u32 %v8812_v2, %v8810_v14  ;;  %v3004_v34 = vor.u32 %v8872_v54, %v8862_v11  ;;  %v2575_v14 = vld [vmem:[#allocation2 + $0x34] sm:$0x1]  ;;  %v2815_v2 = vld [vmem:[#allocation2 + $0x30] sm:$0xe] }
 0x1b9   :  { %v11739_v62 = vor.u32 %v8905_v15, %v8903_v21  ;;  %3537 = vrot.lane.b32.xlu1 %v7022_v10, %s7534_s19  ;;  %v7035_v23 = vcombine.low %v2968_v27, %v2982_v25  ;;  %v2521_v36 = vsel %vm8660_vm13, %v6938_v41, %v2520_v38  ;;  %v3254_v55 = vsel %vm8660_vm13, %v6969_v59, %v3253_v51  ;;  %v3184_v59 = vld [vmem:[#allocation2 + $0x38] sm:$0xe] }
 0x1ba   :  { %v2991_v63 = vrot.slane %v11738_v45, 4  ;;  %v2995_v40 = vrot.slane %v2993_v7, 5  ;;  %v3005_v0 = vrot.slane %v3004_v34, 4  ;;  %v3007_v11 = vshll.u32 %v8840_v8, 16 }
 0x1bb   :  { %v9028_v46 = vrot.slane %v11739_v62, 4  ;;  %v2652_v54 = vshll.u32 %v2574_v29, 16  ;;  %3627 = vrot.lane.b32.xlu0 %v7035_v23, %s7536_s22  ;;  %v6998_v21 = vcombine.low %v2517_v37, %v2521_v36  ;;  %v7046_v15 = vcombine.low %v3254_v55, %v8688_v22 }
 0x1bc   :  { %v6951_v50 = vrot.slane %v2814_v49, 9  ;;  %v2876_v31 = vrot.slane %v2574_v29, 5  ;;  %v2996_v5 = vsel %vm7677_vm2, %v2991_v63, %v2995_v40  ;;  %v3009_v19 = vrot.slane %v3007_v11, 5  ;;  %v9053_v63 = vld [vmem:[#allocation2 + $0x68] sm:$0xf] }
 0x1bd   :  { %v6952_v13 = vrot.slane %v2815_v2, 9  ;;  %v2880_v52 = vrot.slane %v2575_v14, 5  ;;  %3401 = vrot.lane.b32.xlu1 %v6998_v21, %s7533_s12  ;;  %v9041_v58 = vrot.slane %v2652_v54, 5  ;;  %v2666_v8 = vshll.u32 %v2575_v14, 16  ;;  %v7312_v36 = vpop.f32.mrf.mxu0 }
 0x1be   :  { %v2272_v43 = vshrl.u32 %v2187_v53, 16  ;;  %v2275_v42 = vshll.u32 %v2187_v53, 16  ;;  %v3010_v22 = vsel %vm7677_vm2, %v3005_v0, %v3009_v19  ;;  %v2877_v18 = vsel %vm8660_vm13, %v6951_v50, %v2876_v31  ;;  %v2208_v53 = vld [vmem:[#allocation2 + $0x5c] sm:$0x1] }
 0x1bf   :  { %v2881_v24 = vsel %vm8660_vm13, %v6952_v13, %v2880_v52  ;;  %v2286_v4 = vshrl.u32 %v2188_v16, 16  ;;  %3673 = vrot.lane.b32.xlu0 %v7046_v15, %s7537_s24  ;;  %v7036_v41 = vcombine.low %v2996_v5, %v3010_v22  ;;  %v2281_v38 = vshll.u32 %v8786_v48, 16  ;;  %v9057_v48 = vld [vmem:[#allocation2 + $0x70] sm:$0xf] }
 0x1c0   :  { %v2274_v12 = vrot.slane %v2272_v43, 4  ;;  %v2277_v9 = vrot.slane %v2275_v42, 5  ;;  %v7021_v10 = vcombine.low %v2877_v18, %v2881_v24  ;;  %v2289_v51 = vshll.u32 %v2188_v16, 16  ;;  %v2448_v16 = vld [vmem:[#allocation2 + $0x58] sm:$0xe] }
 0x1c1   :  { %v2288_v37 = vrot.slane %v2286_v4, 4  ;;  %v2295_v7 = vshll.u32 %v8853_v20, 16  ;;  %3629 = vrot.lane.b32.xlu1 %v7036_v41, %s7536_s22  ;;  %v3021_v27 = vshll.u32 %v2943_v57, 16  ;;  %v3035_v25 = vshll.u32 %v2944_v1, 16 }
 0x1c2   :  { %v2278_v29 = vor.u32 %v2277_v9, %v2274_v12  ;;  %v6967_v45 = vrot.slane %v3183_v3, 9  ;;  %v9055_v34 = vrot.slane %v2666_v8, 5  ;;  %v2291_v49 = vrot.slane %v2289_v51, 5  ;;  %v1593_v8 = vpop.f32.mrf.mxu0 }
 0x1c3   :  { %v3245_v62 = vrot.slane %v2943_v57, 5  ;;  %v6968_v23 = vrot.slane %v3184_v59, 9  ;;  %3535 = vrot.lane.b32.xlu0 %v7021_v10, %s7534_s19  ;;  %v2283_v20 = vrot.slane %v2281_v38, 5  ;;  %v2297_v14 = vrot.slane %v2295_v7, 5  ;;  %v9077_v57 = vld [vmem:[%s11630_s2] ss:$0 sm:$0xff] }
 0x1c4   :  { %v2279_v55 = vrot.slane %v2278_v29, 4  ;;  %v3249_v2 = vrot.slane %v2944_v1, 5  ;;  %v2292_v40 = vor.u32 %v2291_v49, %v2288_v37  ;;  %v2727_v11 = vshrl.u32 %v9053_v63, 16  ;;  %v7461_v59 = vld [vmem:[%s11631_s5 + $0x20] ss:$0 sps:$4 sm:$0xff]   ;;  %v7313_v29 = vpop.f32.mrf.mxu0 }
 0x1c5   :  { %v3246_v0 = vsel %vm8660_vm13, %v6967_v45, %v3245_v62  ;;  %v2730_v54 = vshll.u32 %v9053_v63, 16  ;;  %v9064_v21 = vrot.slane %v3021_v27, 5  ;;  %v9066_v15 = vrot.slane %v3035_v25, 5  ;;  %v9109_v62 = vld [vmem:[#allocation2 + $0x58] sm:$0xf]  ;;  %7378 = vmatprep.subr.msk.bf16.mxu1 %vm11740_vm12, %v7461_v59 }
 0x1c6   :  { %v3250_v50 = vsel %vm8660_vm13, %v6968_v23, %v3249_v2  ;;  %v2741_v31 = vshrl.u32 %v9057_v48, 16  ;;  %v2293_v5 = vrot.slane %v2292_v40, 4  ;;  %v2729_v13 = vrot.slane %v2727_v11, 4  ;;  %v2171_v23 = vld [vmem:[#allocation2 + $0x88] sm:$0xf] }
 0x1c7   :  { %v7045_v19 = vcombine.low %v3246_v0, %v3250_v50  ;;  %v2732_v52 = vrot.slane %v2730_v54, 5  ;;  %v2284_v43 = vsel %vm7677_vm2, %v2279_v55, %v2283_v20  ;;  %v2744_v42 = vshll.u32 %v9057_v48, 16  ;;  %v11741_v20 = vld [vmem:[#allocation10_spill] sm:$0xff] }
 0x1c8   :  { %v9080_v22 = vadd.f32 %v9077_v57, %v7312_v36  ;;  %v2351_v18 = vshll.u32 %v2208_v53, 16  ;;  %v2298_v24 = vsel %vm7677_vm2, %v2293_v5, %v2297_v14  ;;  %v6940_v1 = vrot.slane %v2448_v16, 9  ;;  %v2174_v36 = vld [vmem:[#allocation2 + $0x8c] sm:$0x1]  ;;  %v2563_v5 = vld [vmem:[#allocation2 + $0x60] sm:$0xf] }
 0x1c9   :  { %3671 = vrot.lane.b32.xlu0 %v7045_v19, %s7537_s24  ;;  %v2733_v4 = vor.u32 %v2732_v52, %v2729_v13  ;;  %v2528_v3 = vrot.slane %v2208_v53, 5  ;;  %v6989_v41 = vcombine.low %v2284_v43, %v2298_v24  ;;  %v9085_v12 = vrot.slane %v2741_v31, 4  ;;  %v2162_v43 = vld [vmem:[#allocation2 + $0x7c] sm:$0x1] }
 0x1ca   :  { %v9087_v9 = vrot.slane %v2744_v42, 5  ;;  %v7235_v38 = vpack.c.bf16 %v9080_v22, %v9080_v22  ;;  %v9094_v10 = vrot.slane %v2351_v18, 5  ;;  %v9099_v51 = vadd.f32 %v9077_v57, %v1593_v8  ;;  %v2159_v8 = vld [vmem:[#allocation2 + $0x78] sm:$0xf] }
 0x1cb   :  { %v2529_v37 = vsel %vm8660_vm13, %v6940_v1, %v2528_v3  ;;  %v2677_v7 = vor.u32 %v8866_v32, %v8864_v61  ;;  %3359 = vrot.lane.b32.xlu1 %v6989_v41, %s7530_s23  ;;  %v9104_v27 = vrot.slane %v2733_v4, 4  ;;  %v7008_v25 = vcombine.low %v9053_v63, %v9057_v48  ;;  %v1596_v41 = vpop.f32.mrf.mxu0 }
 0x1cc   :  { %v2038_v45 = vshrl.u32 %v7235_v38, 16  ;;  %v6999_v49 = vcombine.low %v8692_v26, %v2529_v37  ;;  %v7233_v61 = vpack.c.bf16 %v9099_v51, %v9099_v51  ;;  %v2680_v55 = vshll.u32 %v8956_v17, 16 }
 0x1cd   :  { %v2678_v32 = vrot.slane %v2677_v7, 4  ;;  %v2691_v14 = vor.u32 %v11741_v20, %v8874_v60  ;;  %v2041_v63 = vshll.u32 %v7235_v38, 16  ;;  %v2694_v26 = vshll.u32 %v8971_v44, 16 }
 0x1ce   :  { %v2040_v2 = vrot.slane %v2038_v45, 7  ;;  %3403 = vrot.lane.b32.xlu0 %v6999_v49, %s7533_s12  ;;  %v9120_v48 = vadd.f32 %v9077_v57, %v7313_v29  ;;  %v2747_v40 = vor.u32 %v9087_v9, %v9085_v12  ;;  %v2022_v0 = vshrl.u32 %v7233_v61, 16  ;;  %v2177_v45 = vld [vmem:[#allocation2 + $0x90] sm:$0xf]  ;;  %v2180_v49 = vld [vmem:[#allocation2 + $0x94] sm:$0x1] }
 0x1cf   :  { %v2682_v11 = vrot.slane %v2680_v55, 5  ;;  %v2692_v54 = vrot.slane %v2691_v14, 4  ;;  %3461 = vrot.lane.b32.xlu1 %v7008_v25, %s7531_s26  ;;  %v2025_v60 = vshll.u32 %v7233_v61, 16  ;;  %v2696_v50 = vrot.slane %v2694_v26, 5 }
 0x1d0   :  { %v2043_v17 = vor.u32 %v2041_v63, %v2040_v2  ;;  %v2044_v53 = vrot.slane %v2040_v2, 4  ;;  %v2024_v31 = vrot.slane %v2022_v0, 7  ;;  %v7236_v44 = vpack.c.bf16 %v9120_v48, %v9120_v48  ;;  %v11742_v2 = vld [vmem:[#allocation11_spill] sm:$0xff]  ;;  %v11743_v63 = vld [vmem:[#allocation12_spill] sm:$0xff] }
 0x1d1   :  { %v2683_v16 = vsel %vm7677_vm2, %v2678_v32, %v2682_v11  ;;  %v2699_v19 = vshrl.u32 %v9109_v62, 16  ;;  %v2697_v42 = vsel %vm7677_vm2, %v2692_v54, %v2696_v50  ;;  %v2702_v18 = vshll.u32 %v9109_v62, 16  ;;  %v2931_v0 = vld [vmem:[#allocation2 + $0x60] sm:$0xf] }
 0x1d2   :  { %v2172_v13 = vsel %vm8454_vm11, %v2043_v17, %v2171_v23  ;;  %v2175_v52 = vsel %vm8430_vm15, %v2044_v53, %v2174_v36  ;;  %v2027_v24 = vor.u32 %v2025_v60, %v2024_v31  ;;  %v2028_v4 = vrot.slane %v2024_v31, 4  ;;  %v2932_v31 = vld [vmem:[#allocation2 + $0x68] sm:$0xf] }
 0x1d3   :  { %2173 = vst [vmem:[#allocation2 + $0x88] sm:$0xf] %v2172_v13  ;;  %2176 = vst [vmem:[#allocation2 + $0x8c] sm:$0x1] %v2175_v52  ;;  %v7014_v1 = vcombine.low %v2683_v16, %v2697_v42  ;;  %v2046_v3 = vshrl.u32 %v7236_v44, 16  ;;  %v2049_v12 = vshll.u32 %v7236_v44, 16  ;;  %v7007_v61 = vcombine.low %v9109_v62, %v2563_v5 }
 0x1d4   :  { %v2701_v9 = vrot.slane %v2699_v19, 4  ;;  %v2704_v38 = vrot.slane %v2702_v18, 5  ;;  %v2713_v59 = vshrl.u32 %v2563_v5, 16  ;;  %v2160_v37 = vsel %vm8454_vm11, %v2027_v24, %v2159_v8  ;;  %v9162_v13 = vld [vmem:[#allocation2 + $0x30] sm:$0xf] }
 0x1d5   :  { %v2163_v7 = vsel %vm8430_vm15, %v2028_v4, %v2162_v43  ;;  %3497 = vrot.lane.b32.xlu1 %v7014_v1, %s7532_s20  ;;  %v2048_v29 = vrot.slane %v2046_v3, 7  ;;  %v2716_v25 = vshll.u32 %v2563_v5, 16  ;;  %2161 = vst [vmem:[#allocation2 + $0x78] sm:$0xf] %v2160_v37  ;;  %v1597_v32 = vadd.f32 %v9077_v57, %v1596_v41  ;;  %3459 = vrot.lane.b32.xlu0 %v7007_v61, %s7531_s26  ;;  %v9167_v18 = vld [vmem:[#allocation2 + $0x38] sm:$0xf] }
 0x1d6   :  { %2164 = vst [vmem:[#allocation2 + $0x7c] sm:$0x1] %v2163_v7  ;;  %v2705_v23 = vor.u32 %v2704_v38, %v2701_v9  ;;  %v2715_v36 = vrot.slane %v2713_v59, 4  ;;  %v3046_v26 = vor.u32 %v11743_v63, %v11742_v2  ;;  %v1615_v11 = vpack.c.bf16 %v9120_v48, %v9080_v22  ;;  %11745 = vst [vmem:[#allocation10_spill] sm:$0xff] %v9162_v13  ;;  %v2168_v24 = vld [vmem:[#allocation2 + $0x84] sm:$0x1] }
 0x1d7   :  { %v2051_v55 = vor.u32 %v2049_v12, %v2048_v29  ;;  %v2052_v20 = vrot.slane %v2048_v29, 4  ;;  %v2718_v14 = vrot.slane %v2716_v25, 5  ;;  %v1614_v54 = vpack.c.bf16 %v1597_v32, %v9099_v51  ;;  %11747 = vst [vmem:[#allocation11_spill] sm:$0xff] %v9167_v18  ;;  %v11748_v4 = vld [vmem:[#allocation8_spill] sm:$0xff]  ;;  %v11749_v1 = vld [vmem:[#allocation9_spill] sm:$0xff] }
 0x1d8   :  { %v7234_v17 = vpack.c.bf16 %v1597_v32, %v1597_v32  ;;  %v3049_v53 = vshll.u32 %v9004_v33, 16  ;;  %v3047_v50 = vrot.slane %v3046_v26, 4  ;;  %v9155_v16 = vrot.slane %v2747_v40, 4  ;;  %v2165_v40 = vld [vmem:[#allocation2 + $0x80] sm:$0xf] }
 0x1d9   :  { %v2178_v57 = vsel %vm8454_vm11, %v2051_v55, %v2177_v45  ;;  %v2181_v62 = vsel %vm8430_vm15, %v2052_v20, %v2180_v49  ;;  %v2719_v60 = vor.u32 %v2718_v14, %v2715_v36  ;;  %v3068_v44 = vshrl.u32 %v2931_v0, 16  ;;  %7328 = vmatprep.mubr.msk.bf16.mxu1 %vm11744_vm3, %v1614_v54  ;;  %v2580_v36 = vld [vmem:[#allocation2 + $0x6c] sm:$0x1]  ;;  %v2820_v14 = vld [vmem:[#allocation2 + $0x68] sm:$0xe]  ;;  %vm11776_vm3 = vmmov %vm11764_vm1 }
 0x1da   :  { %2179 = vst [vmem:[#allocation2 + $0x90] sm:$0xf] %v2178_v57  ;;  %2182 = vst [vmem:[#allocation2 + $0x94] sm:$0x1] %v2181_v62  ;;  %v2030_v22 = vshrl.u32 %v7234_v17, 16  ;;  %v3051_v48 = vrot.slane %v3049_v53, 5  ;;  %7329 = vmatmul.mubr.msk.bf16.gmra.mxu1 %vm11746_vm4, %v1615_v11  ;;  %v7031_v42 = vcombine.low %v2931_v0, %v2932_v31  ;;  %v11750_v3 = vsel %vm7677_vm2, %v11748_v4, %v11749_v1 }
 0x1db   :  { %v9158_v51 = vrot.slane %v2705_v23, 4  ;;  %v9160_v33 = vrot.slane %v2719_v60, 4  ;;  %v2033_v5 = vshll.u32 %v7234_v17, 16  ;;  %v3071_v19 = vshll.u32 %v2931_v0, 16  ;;  %v2821_v0 = vld [vmem:[#allocation2 + $0x70] sm:$0xe] }
 0x1dc   :  { %v2032_v52 = vrot.slane %v2030_v22, 7  ;;  %v3052_v8 = vsel %vm7677_vm2, %v3047_v50, %v3051_v48  ;;  %v3082_v43 = vshrl.u32 %v2932_v31, 16  ;;  %v9174_v12 = vrot.slane %v3068_v44, 4  ;;  %3595 = vrot.lane.b32.xlu0 %v7031_v42, %s7535_s13  ;;  %v11751_v11 = vld [vmem:[#allocation13_spill] sm:$0xff]  ;;  %v2581_v17 = vld [vmem:[#allocation2 + $0x74] sm:$0x1] }
 0x1dd   :  { %v7038_v41 = vcombine.low %v3052_v8, %v11750_v3  ;;  %v9176_v9 = vrot.slane %v3071_v19, 5  ;;  %v3085_v38 = vshll.u32 %v2932_v31, 16  ;;  %v2300_v7 = vshrl.u32 %v9162_v13, 16  ;;  %v9202_v31 = vld [vmem:[#allocation2 + $0x64] sm:$0x1] }
 0x1de   :  { %v2035_v59 = vor.u32 %v2033_v5, %v2032_v52  ;;  %v2036_v37 = vrot.slane %v2032_v52, 4  ;;  %v2303_v29 = vshll.u32 %v9162_v13, 16  ;;  %v2309_v25 = vshll.u32 %v8978_v6, 16  ;;  %v9204_v22 = vld [vmem:[#allocation2 + $0x6c] sm:$0x1] }
 0x1df   :  { %3633 = vrot.lane.b32.xlu1 %v7038_v41, %s7536_s22  ;;  %v2314_v45 = vshrl.u32 %v9167_v18, 16  ;;  %v2317_v49 = vshll.u32 %v9167_v18, 16  ;;  %v2323_v23 = vshll.u32 %v8995_v47, 16  ;;  %v2302_v55 = vrot.slane %v2300_v7, 4  ;;  %v2449_v48 = vld [vmem:[#allocation2 + $0x60] sm:$0xe] }
 0x1e0   :  { %v2166_v61 = vsel %vm8454_vm11, %v2035_v59, %v2165_v40  ;;  %v2169_v32 = vsel %vm8430_vm15, %v2036_v37, %v2168_v24  ;;  %v2305_v20 = vrot.slane %v2303_v29, 5  ;;  %v9190_v2 = vrot.slane %v3082_v43, 4  ;;  %v2450_v52 = vld [vmem:[#allocation2 + $0x68] sm:$0xe]  ;;  %v9211_v42 = vld [vmem:[#allocation2 + $0x5c] sm:$0x1]  ;;  %vm11761_vm11 = vmmov %vm11721_vm0 }
 0x1e1   :  { %2167 = vst [vmem:[#allocation2 + $0x80] sm:$0xf] %v2166_v61  ;;  %2170 = vst [vmem:[#allocation2 + $0x84] sm:$0x1] %v2169_v32  ;;  %v9192_v6 = vrot.slane %v3085_v38, 5  ;;  %v2316_v63 = vrot.slane %v2314_v45, 4  ;;  %v2655_v39 = vsel %vm7677_vm2, %v11751_v11, %v9041_v58  ;;  %v2669_v54 = vsel %vm7677_vm2, %v11752_v30, %v9055_v34 }
 0x1e2   :  { %v2319_v26 = vrot.slane %v2317_v49, 5  ;;  %v2306_v47 = vor.u32 %v2305_v20, %v2302_v55  ;;  %v2736_v53 = vshll.u32 %v2580_v36, 16  ;;  %v2311_v57 = vrot.slane %v2309_v25, 5  ;;  %v2818_v41 = vld [vmem:[#allocation2 + $0x58] sm:$0xe]  ;;  %vm11762_vm15 = vmmov %vm11740_vm12 }
 0x1e3   :  { %v7013_v60 = vcombine.low %v2655_v39, %v2669_v54  ;;  %v6957_v50 = vrot.slane %v2820_v14, 9  ;;  %v2325_v5 = vrot.slane %v2323_v23, 5  ;;  %v2900_v19 = vrot.slane %v2580_v36, 5  ;;  %v2819_v38 = vld [vmem:[#allocation2 + $0x60] sm:$0xe] }
 0x1e4   :  { %v2320_v62 = vor.u32 %v2319_v26, %v2316_v63  ;;  %v2307_v44 = vrot.slane %v2306_v47, 4  ;;  %v6958_v58 = vrot.slane %v2821_v0, 9  ;;  %v2750_v34 = vshll.u32 %v2581_v17, 16  ;;  %v9226_v7 = vld [vmem:[#allocation2 + $0x64] sm:$0x1] }
 0x1e5   :  { %3495 = vrot.lane.b32.xlu0 %v7013_v60, %s7532_s20  ;;  %v2904_v8 = vrot.slane %v2581_v17, 5  ;;  %v3024_v43 = vsel %vm7677_vm2, %v8990_v28, %v9064_v21  ;;  %v9215_v4 = vrot.slane %v2736_v53, 5  ;;  %v3038_v1 = vsel %vm7677_vm2, %v9028_v46, %v9066_v15  ;;  %v9228_v29 = vld [vmem:[#allocation2 + $0x70] sm:$0xf]  ;;  %v9233_v49 = vld [vmem:[#allocation2 + $0x64] sm:$0x1] }
 0x1e6   :  { %v2321_v40 = vrot.slane %v2320_v62, 4  ;;  %v2312_v24 = vsel %vm7677_vm2, %v2307_v44, %v2311_v57  ;;  %v6941_v3 = vrot.slane %v2449_v48, 9  ;;  %v2901_v28 = vsel %vm8660_vm13, %v6957_v50, %v2900_v19  ;;  %v9239_v55 = vld [vmem:[#allocation2 + $0x78] sm:$0xf]  ;;  %v9241_v20 = vld [vmem:[#allocation2 + $0x6c] sm:$0x1] }
 0x1e7   :  { %v7037_v21 = vcombine.low %v3024_v43, %v3038_v1  ;;  %v2532_v37 = vrot.slane %v9202_v31, 5  ;;  %v2905_v46 = vsel %vm8660_vm13, %v6958_v58, %v2904_v8  ;;  %v6942_v15 = vrot.slane %v2450_v52, 9  ;;  %v9243_v14 = vld [vmem:[#allocation2 + $0x50] sm:$0xf]  ;;  %v3187_v11 = vld [vmem:[#allocation2 + $0x60] sm:$0xe] }
 0x1e8   :  { %v2326_v59 = vsel %vm7677_vm2, %v2321_v40, %v2325_v5  ;;  %v2536_v45 = vrot.slane %v9204_v22, 5  ;;  %v6955_v36 = vrot.slane %v2818_v41, 9  ;;  %v2892_v61 = vrot.slane %v9211_v42, 5  ;;  %11753 = vst [vmem:[#allocation12_spill] sm:$0xff] %v9243_v14  ;;  %v3188_v53 = vld [vmem:[#allocation2 + $0x68] sm:$0xe] }
 0x1e9   :  { %v6990_v25 = vcombine.low %v2312_v24, %v2326_v59  ;;  %3631 = vrot.lane.b32.xlu0 %v7037_v21, %s7536_s22  ;;  %v2533_v23 = vsel %vm8660_vm13, %v6941_v3, %v2532_v37  ;;  %v6956_v32 = vrot.slane %v2819_v38, 9  ;;  %v2896_v26 = vrot.slane %v9226_v7, 5  ;;  %v9255_v57 = vld [vmem:[#allocation2 + $0x58] sm:$0xf]  ;;  %v9264_v44 = vld [vmem:[#allocation2 + $0x74] sm:$0x1]  ;;  %v9277_v41 = vpop.permute.xlu0 %3395 }
 0x1ea   :  { %v2537_v63 = vsel %vm8660_vm13, %v6942_v15, %v2536_v45  ;;  %v3096_v0 = vshrl.u32 %v9228_v29, 16  ;;  %v3099_v47 = vshll.u32 %v9228_v29, 16  ;;  %v9251_v39 = vrot.slane %v2750_v34, 5  ;;  %v3189_v5 = vld [vmem:[#allocation2 + $0x70] sm:$0xe] }
 0x1eb   :  { %3361 = vrot.lane.b32.xlu1 %v6990_v25, %s7530_s23  ;;  %v7024_v30 = vcombine.low %v2901_v28, %v2905_v46  ;;  %v7000_v54 = vcombine.low %v2533_v23, %v2537_v63  ;;  %v2893_v17 = vsel %vm8660_vm13, %v6955_v36, %v2892_v61  ;;  %v2897_v62 = vsel %vm8660_vm13, %v6956_v32, %v2896_v26  ;;  %v9269_v34 = vld [vmem:[#allocation2 + $0x88] sm:$0xf]  ;;  %v9275_v3 = vld [vmem:[#allocation2 + $0x7c] sm:$0x1]  ;;  %v3190_v37 = vld [vmem:[#allocation2 + $0x78] sm:$0xe] }
 0x1ec   :  { %v9259_v60 = vrot.slane %v3096_v0, 4  ;;  %v7032_v50 = vcombine.low %v9228_v29, %v9239_v55  ;;  %v3110_v48 = vshrl.u32 %v9239_v55, 16  ;;  %v7023_v19 = vcombine.low %v2893_v17, %v2897_v62  ;;  %v9288_v32 = vld [vmem:[#allocation2 + $0x90] sm:$0xf] }
 0x1ed   :  { %v9266_v58 = vrot.slane %v3099_v47, 5  ;;  %v6971_v52 = vrot.slane %v3187_v11, 9  ;;  %v3261_v40 = vrot.slane %v9233_v49, 5  ;;  %v3113_v8 = vshll.u32 %v9239_v55, 16  ;;  %v2451_v62 = vld [vmem:[#allocation2 + $0x70] sm:$0xe] }
 0x1ee   :  { %v6972_v43 = vrot.slane %v3188_v53, 9  ;;  %v3265_v24 = vrot.slane %v9241_v20, 5  ;;  %v2328_v1 = vshrl.u32 %v9243_v14, 16  ;;  %3539 = vrot.lane.b32.xlu0 %v7023_v19, %s7534_s19  ;;  %v2331_v59 = vshll.u32 %v9243_v14, 16  ;;  %v9299_v53 = vld [vmem:[#allocation2 + $0x74] sm:$0x1] }
 0x1ef   :  { %3541 = vrot.lane.b32.xlu1 %v7024_v30, %s7534_s19  ;;  %v3262_v38 = vsel %vm8660_vm13, %v6971_v52, %v3261_v40  ;;  %v2342_v28 = vshrl.u32 %v9255_v57, 16  ;;  %v2345_v21 = vshll.u32 %v9255_v57, 16  ;;  %v6973_v46 = vrot.slane %v3189_v5, 9  ;;  %v9308_v52 = vld [vmem:[#allocation2 + $0x7c] sm:$0x1] }
 0x1f0   :  { %v3266_v29 = vsel %vm8660_vm13, %v6972_v43, %v3265_v24  ;;  %v2330_v25 = vrot.slane %v2328_v1, 4  ;;  %v3269_v15 = vrot.slane %v9264_v44, 5  ;;  %v2333_v23 = vrot.slane %v2331_v59, 5  ;;  %v2452_v40 = vld [vmem:[#allocation2 + $0x78] sm:$0xe] }
 0x1f1   :  { %v7047_v45 = vcombine.low %v3262_v38, %v3266_v29  ;;  %v2344_v36 = vrot.slane %v2342_v28, 4  ;;  %v2347_v61 = vrot.slane %v2345_v21, 5  ;;  %v9291_v55 = vrot.slane %v3110_v48, 4  ;;  %v9313_v59 = vld [vmem:[#allocation2 + $0x90] sm:$0xf] }
 0x1f2   :  { %v6974_v63 = vrot.slane %v3190_v37, 9  ;;  %v3273_v26 = vrot.slane %v9275_v3, 5  ;;  %v2783_v0 = vshrl.u32 %v9269_v34, 16  ;;  %v9295_v47 = vrot.slane %v3113_v8, 5  ;;  %v9310_v8 = vpop.permute.xlu0 %3451  ;;  %v2825_v18 = vld [vmem:[#allocation2 + $0x90] sm:$0xe] }
 0x1f3   :  { %3405 = vrot.lane.b32.xlu1 %v7000_v54, %s7533_s12  ;;  %3675 = vrot.lane.b32.xlu0 %v7047_v45, %s7537_s24  ;;  %v2334_v11 = vor.u32 %v2333_v23, %v2330_v25  ;;  %v2348_v30 = vor.u32 %v2347_v61, %v2344_v36  ;;  %v2786_v17 = vshll.u32 %v9269_v34, 16  ;;  %v3270_v54 = vsel %vm8660_vm13, %v6973_v46, %v3269_v15  ;;  %v9321_v25 = vld [vmem:[#allocation2 + $0x98] sm:$0xf] }
 0x1f4   :  { %v3274_v48 = vsel %vm8660_vm13, %v6974_v63, %v3273_v26  ;;  %v9305_v5 = vrot.slane %v2783_v0, 4  ;;  %v2797_v19 = vshrl.u32 %v9288_v32, 16  ;;  %v2800_v38 = vshll.u32 %v9288_v32, 16  ;;  %v11754_v46 = vld [vmem:[#allocation7_spill] sm:$0xff]  ;;  %v2567_v26 = vld [vmem:[#allocation2 + $0x80] sm:$0xf] }
 0x1f5   :  { %v2335_v43 = vrot.slane %v2334_v11, 4  ;;  %v2349_v24 = vrot.slane %v2348_v30, 4  ;;  %v7048_v1 = vcombine.low %v3270_v54, %v3274_v48  ;;  %v9316_v28 = vrot.slane %v2786_v17, 5  ;;  %v2566_v36 = vld [vmem:[#allocation2 + $0x78] sm:$0xf] }
 0x1f6   :  { %v7010_v21 = vcombine.low %v9269_v34, %v9288_v32  ;;  %v6943_v37 = vrot.slane %v2451_v62, 9  ;;  %v2540_v29 = vrot.slane %v9299_v53, 5  ;;  %v2544_v23 = vrot.slane %v9308_v52, 5 }
 0x1f7   :  { %3597 = vrot.lane.b32.xlu1 %v7032_v50, %s7535_s13  ;;  %v2340_v15 = vsel %vm7677_vm2, %v2335_v43, %v11754_v46  ;;  %v2354_v45 = vsel %vm7677_vm2, %v2349_v24, %v9094_v10  ;;  %3677 = vrot.lane.b32.xlu0 %v7048_v1, %s7537_s24  ;;  %v6944_v50 = vrot.slane %v2452_v40, 9  ;;  %v9331_v61 = vrot.slane %v2797_v19, 4  ;;  %v2935_v19 = vld [vmem:[#allocation2 + $0x80] sm:$0xf]  ;;  %v9346_v40 = vpop.permute.xlu0 %3587 }
 0x1f8   :  { %v6991_v34 = vcombine.low %v2340_v15, %v2354_v45  ;;  %v3152_v32 = vshrl.u32 %v9313_v59, 16  ;;  %v3155_v63 = vshll.u32 %v9313_v59, 16  ;;  %v9335_v0 = vrot.slane %v2800_v38, 5  ;;  %11755 = vst [vmem:[#allocation8_spill] sm:$0xff] %v9346_v40 }
 0x1f9   :  { %v2541_v11 = vsel %vm8660_vm13, %v6943_v37, %v2540_v29  ;;  %v2545_v10 = vsel %vm8660_vm13, %v6944_v50, %v2544_v23  ;;  %v3166_v30 = vshrl.u32 %v9321_v25, 16  ;;  %v7034_v54 = vcombine.low %v9313_v59, %v9321_v25  ;;  %v2936_v37 = vld [vmem:[#allocation2 + $0x88] sm:$0xf]  ;;  %v9357_v59 = vld [vmem:[#allocation2 + $0x60] sm:$0xf] }
 0x1fa   :  { %v7001_v17 = vcombine.low %v2541_v11, %v2545_v10  ;;  %v2755_v48 = vshrl.u32 %v2566_v36, 16  ;;  %v9348_v43 = vrot.slane %v3152_v32, 4  ;;  %v9350_v24 = vrot.slane %v3155_v63, 5  ;;  %11756 = vst [vmem:[#allocation9_spill] sm:$0xff] %v9357_v59  ;;  %v9374_v10 = vld [vmem:[#allocation2 + $0x68] sm:$0xf] }
 0x1fb   :  { %3363 = vrot.lane.b32.xlu1 %v6991_v34, %s7530_s23  ;;  %v2758_v1 = vshll.u32 %v2566_v36, 16  ;;  %v2769_v38 = vshrl.u32 %v2567_v26, 16  ;;  %v9353_v29 = vrot.slane %v3166_v30, 4  ;;  %v2772_v15 = vshll.u32 %v2567_v26, 16  ;;  %11757 = vst [vmem:[#allocation13_spill] sm:$0xff] %v9374_v10 }
 0x1fc   :  { %3407 = vrot.lane.b32.xlu0 %v7001_v17, %s7533_s12  ;;  %v9355_v46 = vrot.slane %v2755_v48, 4  ;;  %v7009_v45 = vcombine.low %v2566_v36, %v2567_v26  ;;  %v2739_v23 = vsel %vm7677_vm2, %v9104_v27, %v9215_v4  ;;  %v2753_v34 = vsel %vm7677_vm2, %v9155_v16, %v9251_v39  ;;  %v9379_v48 = vld [vmem:[#allocation2 + $0x8c] sm:$0x1] }
 0x1fd   :  { %v9359_v50 = vrot.slane %v2758_v1, 5  ;;  %v3124_v32 = vshrl.u32 %v2935_v19, 16  ;;  %v9370_v63 = vrot.slane %v2769_v38, 4  ;;  %v9372_v36 = vrot.slane %v2772_v15, 5  ;;  %v9386_v38 = vpop.permute.xlu1 %3453  ;;  %v2824_v15 = vld [vmem:[#allocation2 + $0x88] sm:$0xe] }
 0x1fe   :  { %v3127_v26 = vshll.u32 %v2935_v19, 16  ;;  %v3138_v11 = vshrl.u32 %v2936_v37, 16  ;;  %v7016_v30 = vcombine.low %v2739_v23, %v2753_v34  ;;  %v3141_v27 = vshll.u32 %v2936_v37, 16  ;;  %11758 = vst [vmem:[#allocation14_spill] sm:$0xff] %v9386_v38  ;;  %v9388_v23 = vpop.permute.xlu0 %3531 }
 0x1ff   :  { %3465 = vrot.lane.b32.xlu1 %v7010_v21, %s7531_s26  ;;  %v9376_v17 = vrot.slane %v3124_v32, 4  ;;  %v2356_v4 = vshrl.u32 %v9357_v59, 16  ;;  %v7033_v39 = vcombine.low %v2935_v19, %v2936_v37  ;;  %v2359_v21 = vshll.u32 %v9357_v59, 16  ;;  %11759 = vst [vmem:[#allocation7_spill] sm:$0xff] %v9388_v23 }
 0x200   :  { %3463 = vrot.lane.b32.xlu0 %v7009_v45, %s7531_s26  ;;  %v9382_v16 = vrot.slane %v3127_v26, 5  ;;  %v2365_v1 = vshll.u32 %v9202_v31, 16  ;;  %v9390_v34 = vrot.slane %v3138_v11, 4  ;;  %v2370_v62 = vshrl.u32 %v9374_v10, 16  ;;  %v9394_v45 = vld [vmem:[#allocation2 + $0x94] sm:$0x1] }
 0x201   :  { %v2358_v32 = vrot.slane %v2356_v4, 4  ;;  %v2373_v13 = vshll.u32 %v9374_v10, 16  ;;  %v9397_v19 = vrot.slane %v3141_v27, 5  ;;  %v2361_v37 = vrot.slane %v2359_v21, 5 }
 0x202   :  { %v2379_v31 = vshll.u32 %v9204_v22, 16  ;;  %v2708_v26 = vshll.u32 %v9211_v42, 16  ;;  %v2372_v38 = vrot.slane %v2370_v62, 4  ;;  %v2722_v4 = vshll.u32 %v9226_v7, 16 }
 0x203   :  { %3601 = vrot.lane.b32.xlu1 %v7034_v54, %s7535_s13  ;;  %v2375_v11 = vrot.slane %v2373_v13, 5  ;;  %v6961_v40 = vrot.slane %v2824_v15, 9  ;;  %v2362_v59 = vor.u32 %v2361_v37, %v2358_v32  ;;  %v2367_v10 = vrot.slane %v2365_v1, 5  ;;  %v2454_v1 = vld [vmem:[#allocation2 + $0x88] sm:$0xe]  ;;  %v9413_v15 = vpop.permute.xlu0 %3667 }
 0x204   :  { %3599 = vrot.lane.b32.xlu0 %v7033_v39, %s7535_s13  ;;  %v2710_v23 = vrot.slane %v2708_v26, 5  ;;  %v2916_v54 = vrot.slane %v9379_v48, 5  ;;  %v2724_v14 = vrot.slane %v2722_v4, 5  ;;  %v6962_v21 = vrot.slane %v2825_v18, 9  ;;  %v9411_v39 = vpop.permute.xlu1 %3533  ;;  %v9421_v32 = vld [vmem:[#allocation2 + $0x84] sm:$0x1] }
 0x205   :  { %v2376_v27 = vor.u32 %v2375_v11, %v2372_v38  ;;  %v2920_v22 = vrot.slane %v9394_v45, 5  ;;  %v2363_v42 = vrot.slane %v2362_v59, 4  ;;  %v2381_v62 = vrot.slane %v2379_v31, 5  ;;  %v9427_v31 = vld [vmem:[#allocation2 + $0x8c] sm:$0x1] }
 0x206   :  { %v2711_v13 = vsel %vm7677_vm2, %v9158_v51, %v2710_v23  ;;  %v3074_v7 = vor.u32 %v9176_v9, %v9174_v12  ;;  %v2725_v18 = vsel %vm7677_vm2, %v9160_v33, %v2724_v14  ;;  %v2917_v59 = vsel %vm8660_vm13, %v6961_v40, %v2916_v54  ;;  %v2453_v51 = vld [vmem:[#allocation2 + $0x80] sm:$0xe]  ;;  %v2582_v26 = vld [vmem:[#allocation2 + $0x7c] sm:$0x1]  ;;  %v2822_v11 = vld [vmem:[#allocation2 + $0x78] sm:$0xe] }
 0x207   :  { %3501 = vrot.lane.b32.xlu1 %v7016_v30, %s7532_s20  ;;  %v2377_v38 = vrot.slane %v2376_v27, 4  ;;  %v3077_v30 = vshll.u32 %v9233_v49, 16  ;;  %v2368_v12 = vsel %vm7677_vm2, %v2363_v42, %v2367_v10  ;;  %v7015_v9 = vcombine.low %v2711_v13, %v2725_v18  ;;  %v2823_v4 = vld [vmem:[#allocation2 + $0x80] sm:$0xe] }
 0x208   :  { %v2921_v23 = vsel %vm8660_vm13, %v6962_v21, %v2920_v22  ;;  %v3075_v37 = vrot.slane %v3074_v7, 4  ;;  %v3088_v49 = vor.u32 %v9192_v6, %v9190_v2  ;;  %v3091_v40 = vshll.u32 %v9241_v20, 16  ;;  %v2583_v22 = vld [vmem:[#allocation2 + $0x84] sm:$0x1]  ;;  %v9442_v18 = vpop.permute.xlu1 %3397 }
 0x209   :  { %v2382_v33 = vsel %vm7677_vm2, %v2377_v38, %v2381_v62  ;;  %v3079_v14 = vrot.slane %v3077_v30, 5  ;;  %3499 = vrot.lane.b32.xlu0 %v7015_v9, %s7532_s20  ;;  %v6945_v54 = vrot.slane %v2453_v51, 9  ;;  %v2548_v27 = vrot.slane %v9421_v32, 5  ;;  %v9444_v30 = vpop.permute.xlu0 %3355 }
 0x20a   :  { %v6992_v10 = vcombine.low %v2368_v12, %v2382_v33  ;;  %v6946_v21 = vrot.slane %v2454_v1, 9  ;;  %v3089_v62 = vrot.slane %v3088_v49, 4  ;;  %v3093_v13 = vrot.slane %v3091_v40, 5 }
 0x20b   :  { %v3080_v42 = vsel %vm7677_vm2, %v3075_v37, %v3079_v14  ;;  %v2552_v7 = vrot.slane %v9427_v31, 5  ;;  %v2549_v2 = vsel %vm8660_vm13, %v6945_v54, %v2548_v27  ;;  %v6959_v6 = vrot.slane %v2822_v11, 9  ;;  %v9460_v54 = vld [vmem:[#allocation2 + $0x70] sm:$0xf] }
 0x20c   :  { %3365 = vrot.lane.b32.xlu1 %v6992_v10, %s7530_s23  ;;  %v2908_v20 = vrot.slane %v2582_v26, 5  ;;  %v6960_v38 = vrot.slane %v2823_v4, 9  ;;  %v3094_v1 = vsel %vm7677_vm2, %v3089_v62, %v3093_v13  ;;  %v2912_v12 = vrot.slane %v2583_v22, 5 }
 0x20d   :  { %v2553_v51 = vsel %vm8660_vm13, %v6946_v21, %v2552_v7  ;;  %v3102_v9 = vor.u32 %v9266_v58, %v9259_v60  ;;  %v7026_v37 = vcombine.low %v2917_v59, %v2921_v23  ;;  %v7039_v33 = vcombine.low %v3080_v42, %v3094_v1  ;;  %v9466_v23 = vpop.permute.xlu1 %3589  ;;  %v9468_v27 = vpop.permute.xlu0 %3669  ;;  %v9472_v7 = vld [vmem:[#allocation2 + $0x78] sm:$0xf] }
 0x20e   :  { %v7002_v14 = vcombine.low %v2549_v2, %v2553_v51  ;;  %v3105_v49 = vshll.u32 %v9264_v44, 16  ;;  %v2909_v40 = vsel %vm8660_vm13, %v6959_v6, %v2908_v20  ;;  %v2913_v11 = vsel %vm8660_vm13, %v6960_v38, %v2912_v12  ;;  %v2951_v38 = vld [vmem:[#allocation2 + $0x84] sm:$0x1] }
 0x20f   :  { %v3116_v4 = vor.u32 %v9295_v47, %v9291_v55  ;;  %v3119_v10 = vshll.u32 %v9275_v3, 16  ;;  %3635 = vrot.lane.b32.xlu0 %v7039_v33, %s7536_s22  ;;  %v7025_v60 = vcombine.low %v2909_v40, %v2913_v11  ;;  %v3103_v58 = vrot.slane %v3102_v9, 4 }
 0x210   :  { %3545 = vrot.lane.b32.xlu1 %v7026_v37, %s7534_s19  ;;  %v2761_v44 = vor.u32 %v9359_v50, %v9355_v46  ;;  %v2764_v59 = vshll.u32 %v2582_v26, 16  ;;  %v2775_v3 = vor.u32 %v9372_v36, %v9370_v63  ;;  %v2778_v47 = vshll.u32 %v2583_v22, 16  ;;  %v2952_v37 = vld [vmem:[#allocation2 + $0x8c] sm:$0x1] }
 0x211   :  { %v3117_v21 = vrot.slane %v3116_v4, 4  ;;  %v3121_v55 = vrot.slane %v3119_v10, 5  ;;  %v3107_v42 = vrot.slane %v3105_v49, 5  ;;  %v2384_v2 = vshrl.u32 %v9460_v54, 16  ;;  %v9492_v11 = vpop.permute.xlu1 %3457 }
 0x212   :  { %v2762_v62 = vrot.slane %v2761_v44, 4  ;;  %v2766_v13 = vrot.slane %v2764_v59, 5  ;;  %v2776_v50 = vrot.slane %v2775_v3, 4  ;;  %v2780_v26 = vrot.slane %v2778_v47, 5 }
 0x213   :  { %v3122_v46 = vsel %vm7677_vm2, %v3117_v21, %v3121_v55  ;;  %v2387_v6 = vshll.u32 %v9460_v54, 16  ;;  %3543 = vrot.lane.b32.xlu0 %v7025_v60, %s7534_s19  ;;  %v3108_v63 = vsel %vm7677_vm2, %v3103_v58, %v3107_v42  ;;  %v2386_v22 = vrot.slane %v2384_v2, 4  ;;  %v3191_v2 = vld [vmem:[#allocation2 + $0x80] sm:$0xe] }
 0x214   :  { %3409 = vrot.lane.b32.xlu1 %v7002_v14, %s7533_s12  ;;  %v2767_v36 = vsel %vm7677_vm2, %v2762_v62, %v2766_v13  ;;  %v2393_v20 = vshll.u32 %v9299_v53, 16  ;;  %v2781_v1 = vsel %vm7677_vm2, %v2776_v50, %v2780_v26  ;;  %v2398_v12 = vshrl.u32 %v9472_v7, 16  ;;  %v9494_v53 = vpop.permute.xlu0 %3399  ;;  %v3192_v26 = vld [vmem:[#allocation2 + $0x88] sm:$0xe] }
 0x215   :  { %v2389_v51 = vrot.slane %v2387_v6, 5  ;;  %v2401_v9 = vshll.u32 %v9472_v7, 16  ;;  %v7040_v33 = vcombine.low %v3108_v63, %v3122_v46  ;;  %v7017_v14 = vcombine.low %v2767_v36, %v2781_v1  ;;  %v9512_v36 = vld [vmem:[#allocation2 + $0x80] sm:$0xf] }
 0x216   :  { %v2407_v49 = vshll.u32 %v9308_v52, 16  ;;  %v3130_v40 = vor.u32 %v9382_v16, %v9376_v17  ;;  %v2400_v10 = vrot.slane %v2398_v12, 4  ;;  %v3133_v58 = vshll.u32 %v2951_v38, 16 }
 0x217   :  { %v2390_v4 = vor.u32 %v2389_v51, %v2386_v22  ;;  %v2403_v60 = vrot.slane %v2401_v9, 5  ;;  %3503 = vrot.lane.b32.xlu0 %v7017_v14, %s7532_s20  ;;  %v2395_v44 = vrot.slane %v2393_v20, 5  ;;  %v3144_v52 = vor.u32 %v9397_v19, %v9390_v34  ;;  %v9520_v51 = vld [vmem:[#allocation2 + $0x88] sm:$0xf] }
 0x218   :  { %3637 = vrot.lane.b32.xlu1 %v7040_v33, %s7536_s22  ;;  %v3131_v59 = vrot.slane %v3130_v40, 4  ;;  %v3147_v21 = vshll.u32 %v2952_v37, 16  ;;  %v3135_v16 = vrot.slane %v3133_v58, 5  ;;  %v2789_v3 = vor.u32 %v9316_v28, %v9305_v5 }
 0x219   :  { %v2391_v55 = vrot.slane %v2390_v4, 4  ;;  %v2404_v17 = vor.u32 %v2403_v60, %v2400_v10  ;;  %v2409_v47 = vrot.slane %v2407_v49, 5  ;;  %v3145_v42 = vrot.slane %v3144_v52, 4  ;;  %v7511_v60 = vld [vmem:[#allocation2] sm:$0xf] }
 0x21a   :  { %v3149_v62 = vrot.slane %v3147_v21, 5  ;;  %v2803_v13 = vor.u32 %v9335_v0, %v9331_v61  ;;  %v3136_v34 = vsel %vm7677_vm2, %v3131_v59, %v3135_v16  ;;  %v2792_v19 = vshll.u32 %v9379_v48, 16  ;;  %v9514_v61 = vpop.permute.xlu1 %3593  ;;  %v9516_v0 = vpop.permute.xlu0 %3455 }
 0x21b   :  { %v2396_v46 = vsel %vm7677_vm2, %v2391_v55, %v2395_v44  ;;  %v2405_v50 = vrot.slane %v2404_v17, 4  ;;  %v2790_v28 = vrot.slane %v2789_v3, 4  ;;  %v2806_v63 = vshll.u32 %v9394_v45, 16  ;;  %v9538_v17 = vld [vmem:[#allocation2 + $0x94] sm:$0x1] }
 0x21c   :  { %v3150_v5 = vsel %vm7677_vm2, %v3145_v42, %v3149_v62  ;;  %v2804_v6 = vrot.slane %v2803_v13, 4  ;;  %v6975_v1 = vrot.slane %v3191_v2, 9  ;;  %v3277_v48 = vrot.slane %v2951_v38, 5 }
 0x21d   :  { %v2410_v22 = vsel %vm7677_vm2, %v2405_v50, %v2409_v47  ;;  %v7041_v20 = vcombine.low %v3136_v34, %v3150_v5  ;;  %v11760_v12 = vshll.u32 %v9321_v25, 16  ;;  %v2808_v14 = vrot.slane %v2806_v63, 5  ;;  %v7512_v25 = vld [vmem:[#allocation2 + $0x8] sm:$0xf] }
 0x21e   :  { %v6993_v33 = vcombine.low %v2396_v46, %v2410_v22  ;;  %v6976_v45 = vrot.slane %v3192_v26, 9  ;;  %v2794_v49 = vrot.slane %v2792_v19, 5  ;;  %v3278_v40 = vsel %vm8660_vm13, %v6975_v1, %v3277_v48  ;;  %v9542_v62 = vpop.permute.xlu1 %3493  ;;  %v9544_v13 = vpop.permute.xlu0 %3591  ;;  %v2954_v19 = vld [vmem:[#allocation2 + $0x9c] sm:$0x1]  ;;  %v3194_v48 = vld [vmem:[#allocation2 + $0x98] sm:$0xe] }
 0x21f   :  { %v3171_v9 = vrot.slane %v11760_v12, 5  ;;  %3639 = vrot.lane.b32.xlu0 %v7041_v20, %s7536_s22  ;;  %v3281_v4 = vrot.slane %v2952_v37, 5  ;;  %v2412_v10 = vshrl.u32 %v9512_v36, 16  ;;  %v2809_v38 = vsel %vm7677_vm2, %v2804_v6, %v2808_v14  ;;  %v3193_v6 = vld [vmem:[#allocation2 + $0x90] sm:$0xe] }
 0x220   :  { %3367 = vrot.lane.b32.xlu1 %v6993_v33, %s7530_s23  ;;  %v6979_v58 = vcombine.low %v7511_v60, %v7512_v25  ;;  %v2415_v44 = vshll.u32 %v9512_v36, 16  ;;  %v2426_v59 = vshrl.u32 %v9520_v51, 16  ;;  %v2795_v52 = vsel %vm7677_vm2, %v2790_v28, %v2794_v49  ;;  %v7514_v25 = vld [vmem:[#allocation2 + $0x10] sm:$0xf] }
 0x221   :  { %v3282_v37 = vsel %vm8660_vm13, %v6976_v45, %v3281_v4  ;;  %v2414_v21 = vrot.slane %v2412_v10, 4  ;;  %v2421_v55 = vshll.u32 %v9421_v32, 16  ;;  %v7018_v16 = vcombine.low %v2795_v52, %v2809_v38 }
 0x222   :  { %v7049_v3 = vcombine.low %v3278_v40, %v3282_v37  ;;  %v3685_v47 = vsel %vm11761_vm11, %v6979_v58, %v9444_v30  ;;  %v2417_v42 = vrot.slane %v2415_v44, 5  ;;  %v2428_v2 = vrot.slane %v2426_v59, 4  ;;  %v7515_v58 = vld [vmem:[#allocation2 + $0x18] sm:$0xf]  ;;  %v7464_v59 = vld [vmem:[%s11631_s5 + $0x10] sm:$0xff]  }
 0x223   :  { %v2429_v46 = vshll.u32 %v9520_v51, 16  ;;  %v2435_v50 = vshll.u32 %v9427_v31, 16  ;;  %v3158_v32 = vor.u32 %v9350_v24, %v9348_v43  ;;  %v3161_v30 = vshll.u32 %v9538_v17, 16  ;;  %v7462_v43 = vld [vmem:[%s11631_s5 + $0x18] sm:$0xff]  }
 0x224   :  { %3505 = vrot.lane.b32.xlu1 %v7018_v16, %s7532_s20  ;;  %3679 = vrot.lane.b32.xlu0 %v7049_v3, %s7537_s24  ;;  %v2418_v34 = vor.u32 %v2417_v42, %v2414_v21  ;;  %v3172_v26 = vor.u32 %v3171_v9, %v9353_v29  ;;  %v3175_v28 = vshll.u32 %v2954_v19, 16  ;;  %v3708_v63 = vsel %vm1328_vm5, %v3685_v47, %v9277_v41  ;;  %v7513_v29 = vld [vmem:[%s11631_s5 + $0x20] ss:$0 sps:$4 sm:$0xff]   ;;  %v11767_v42 = vld [vmem:[#allocation7_spill] sm:$0xff] }
 0x225   :  { %v2431_v5 = vrot.slane %v2429_v46, 5  ;;  %v2423_v24 = vrot.slane %v2421_v55, 5  ;;  %v2437_v20 = vrot.slane %v2435_v50, 5  ;;  %v3159_v1 = vrot.slane %v3158_v32, 4  ;;  %v11770_v50 = vld [vmem:[#allocation9_spill] sm:$0xff] }
 0x226   :  { %v2419_v31 = vrot.slane %v2418_v34, 4  ;;  %v3163_v12 = vrot.slane %v3161_v30, 5  ;;  %v3173_v33 = vrot.slane %v3172_v26, 4  ;;  %v6977_v14 = vrot.slane %v3193_v6, 9  ;;  %v3358_v41 = vpop.permute.xlu1 %3357  ;;  %v3492_v45 = vpop.permute.xlu0 %3491  ;;  %v11771_v30 = vld [vmem:[#allocation8_spill] sm:$0xff] }
 0x227   :  { %v2432_v22 = vor.u32 %v2431_v5, %v2428_v2  ;;  %v3872_v9 = vsel %vm11762_vm15, %v7513_v29, 0  ;;  %v3177_v4 = vrot.slane %v3175_v28, 5  ;;  %v3285_v10 = vrot.slane %v9538_v17, 5  ;;  %v11765_v17 = vld [vmem:[#allocation12_spill] sm:$0xff]  ;;  %v11773_v28 = vld [vmem:[#allocation14_spill] sm:$0xff] }
 0x228   :  { %v2424_v49 = vsel %vm7677_vm2, %v2419_v31, %v2423_v24  ;;  %7333 = vmatpush3.bf16.msra.mxu1 %v3872_v9  ;;  %v6978_v38 = vrot.slane %v3194_v48, 9  ;;  %v3289_v60 = vrot.slane %v2954_v19, 5  ;;  %v6980_v44 = vcombine.low %v7514_v25, %v7515_v58  ;;  %v7517_v25 = vld [vmem:[#allocation2 + $0x28] sm:$0xf] }
 0x229   :  { %v2433_v40 = vrot.slane %v2432_v22, 4  ;;  %7334 = vmatprep.subr.bf16.mxu1 %v7462_v43  ;;  %v3724_v52 = vsel %vm11763_vm6, %v3708_v63, %v9310_v8  ;;  %v3164_v21 = vsel %vm7677_vm2, %v3159_v1, %v3163_v12  ;;  %v6983_v16 = vcombine.low %v11765_v17, %v9255_v57  ;;  %v11769_v8 = vld [vmem:[#allocation13_spill] sm:$0xff] }
 0x22a   :  { %v3740_v55 = vsel %vm11764_vm1, %v3724_v52, %v3492_v45  ;;  %v3688_v47 = vsel %vm11766_vm14, %v6980_v44, %v3358_v41  ;;  %vm11768_vm0 = vcmask 326656   ;;  %v6984_v32 = vcombine.low %v11770_v50, %v11769_v8  ;;  %v7465_v63 = vld [vmem:[%s11631_s5 + $0x8] sm:$0xff]  }
 0x22b   :  { %v2438_v37 = vsel %vm7677_vm2, %v2433_v40, %v2437_v20  ;;  %v3756_v2 = vsel %vm11768_vm0, %v3740_v55, %v11767_v42  ;;  %v9581_v46 = vpop.permute.xlu1 %3537  ;;  %v3178_v34 = vsel %vm7677_vm2, %v3173_v33, %v3177_v4  ;;  %v3710_v19 = vsel %vm1328_vm5, %v3688_v47, %v9442_v18  ;;  %vm11779_vm15 = vmmov %vm11768_vm0 }
 0x22c   :  { %v6994_v3 = vcombine.low %v2424_v49, %v2438_v37  ;;  %7335 = vmatpush3.bf16.msra.mxu1 %v7462_v43  ;;  %vm11772_vm10 = vcmask 392192   ;;  %v6985_v5 = vcombine.low %v9460_v54, %v9472_v7  ;;  %v3726_v6 = vsel %vm11774_vm9, %v3710_v19, %v11773_v28 }
 0x22d   :  { %v3772_v26 = vsel %vm11772_vm10, %v3756_v2, %v11771_v30  ;;  %7336 = vmatprep.subr.bf16.mxu1 %v7464_v59  ;;  %v3628_v31 = vpop.permute.xlu0 %3627  ;;  %v6986_v18 = vcombine.low %v9512_v36, %v9520_v51  ;;  %vm11775_vm12 = vcmask 457728   ;;  %v3742_v24 = vsel %vm11776_vm3, %v3726_v6, %v9542_v62  ;;  %v7466_v62 = vld [vmem:[%s11631_s5] sm:$0xff]   ;;  %vm11780_vm6 = vmmov %vm11772_vm10  ;;  %v11789_v2 = vld [vmem:[#allocation11_spill] sm:$0xff]  ;;  %v9699_v36 = vpop.f32.mrf.mxu1 }
 0x22e   :  { %3369 = vrot.lane.b32.xlu1 %v6994_v3, %s7530_s23  ;;  %v3788_v43 = vsel %vm11775_vm12, %v3772_v26, %v3628_v31  ;;  %v7042_v22 = vcombine.low %v3164_v21, %v3178_v34  ;;  %vm11777_vm4 = vcmask 523264   ;;  %v3286_v48 = vsel %vm8660_vm13, %v6977_v14, %v3285_v10  ;;  %vm11781_vm1 = vmmov %vm11775_vm12  ;;  %v11790_v34 = vld [vmem:[#allocation10_spill] sm:$0xff]  ;;  %11832 = vst [vmem:[#allocation12_spill] sm:$0xff] %v9699_v36 }
 0x22f   :  { %v3402_v20 = vpop.permute.xlu1 %3401  ;;  %v3804_v1 = vsel %vm11777_vm4, %v3788_v43, %v9413_v15  ;;  %v3290_v12 = vsel %vm8660_vm13, %v6978_v38, %v3289_v60  ;;  %vm11778_vm11 = vcmask 588800   ;;  %v3758_v33 = vsel %vm11779_vm15, %v3742_v24, %v9411_v39  ;;  %vm11782_vm14 = vmmov %vm11777_vm4  ;;  %v9701_v51 = vpop.f32.mrf.mxu1 }
 0x230   :  { %7337 = vmatpush3.bf16.msra.mxu1 %v7464_v59  ;;  %7342 = vmatprep.mubr.msk.bf16.mxu1 %vm11778_vm11, %v3804_v1  ;;  %v7050_v29 = vcombine.low %v3286_v48, %v3290_v12  ;;  %v3774_v14 = vsel %vm11780_vm6, %v3758_v33, %v9466_v23  ;;  %v11783_v40 = vmov 0   ;;  %vm11784_vm0 = vmmov %vm11778_vm11  ;;  %v7516_v23 = vld [vmem:[#allocation2 + $0x20] sm:$0xf]  ;;  %vm11785_vm10 = vcmask 64512   ;;  %11833 = vst [vmem:[#allocation7_spill] sm:$0xff] %v9701_v51 }
 0x231   :  { %7338 = vmatprep.subr.bf16.mxu1 %v7465_v63  ;;  %v3674_v15 = vpop.permute.xlu0 %3673  ;;  %v6981_v58 = vcombine.low %v7516_v23, %v7517_v25  ;;  %vm11786_vm12 = vmmov %vm11776_vm3  ;;  %v6982_v19 = vcombine.low %v11790_v34, %v11789_v2 }
 0x232   :  { %3641 = vrot.lane.b32.xlu1 %v7042_v22, %s7536_s22  ;;  %vm11787_vm3 = vmmov %vm11779_vm15 }
 0x233   :  { %v3630_v9 = vpop.permute.xlu1 %3629  ;;  %vm11788_vm4 = vmmov %vm11780_vm6 }
 0x234   :  { %7339 = vmatpush3.bf16.msra.mxu1 %v7465_v63  ;;  %v3790_v41 = vsel %vm11781_vm1, %v3774_v14, %v3630_v9  ;;  %vm11791_vm11 = vmmov %vm11781_vm1 }
 0x235   :  { %7340 = vmatprep.subr.bf16.mxu1 %v7466_v62  ;;  %v3806_v45 = vsel %vm11782_vm14, %v3790_v41, %v9468_v27  ;;  %v3536_v49 = vpop.permute.xlu0 %3535  ;;  %vm11792_vm15 = vmmov %vm11785_vm10 }
 0x236   :  { %3681 = vrot.lane.b32.xlu1 %v7050_v29, %s7537_s24  ;;  %vm11793_vm6 = vmmov %vm11782_vm14 }
 0x237   :  { %vm11794_vm1 = vmmov %vm11784_vm0 }
 0x238   :  { %7341 = vmatpush3.bf16.msra.mxu1 %v7466_v62  ;;  %vm11795_vm14 = vmmov %vm11774_vm9 }
 0x239   :  { %7358 = vmatprep.subr.bf16.mxu1 %v11783_v40 }
 0x23b   :  { %7343 = vmatmul.mubr.msk.bf16.vlgmr.msra.gmra.mxu1 %vm11784_vm0, %v3806_v45  ;;  %v3672_v39 = vpop.permute.xlu0 %3671  ;;  %vm11796_vm0 = vmmov %vm11786_vm12 }
 0x23d   :  { %v3360_v4 = vpop.permute.xlu1 %3359 }
 0x23e   :  { %v3691_v59 = vsel %vm11785_vm10, %v6981_v58, %v3360_v4  ;;  %vm11797_vm10 = vmmov %vm11787_vm3 }
 0x23f   :  { %v3712_v27 = vsel %vm1328_vm5, %v3691_v59, %v9494_v53 }
 0x240   :  { %v3404_v10 = vpop.permute.xlu0 %3403  ;;  %v3728_v55 = vsel %vm11774_vm9, %v3712_v27, %v9516_v0  ;;  %vm11798_vm9 = vmmov %vm11788_vm4 }
 0x241   :  { %v3462_v38 = vpop.permute.xlu1 %3461 }
 0x247   :  { %v3460_v60 = vpop.permute.xlu0 %3459  ;;  %v3498_v44 = vpop.permute.xlu1 %3497 }
 0x24e   :  { %v3596_v52 = vpop.permute.xlu0 %3595 }
 0x251   :  { %v3634_v37 = vpop.permute.xlu1 %3633 }
 0x257   :  { %v3496_v21 = vpop.permute.xlu0 %3495 }
 0x258   :  { %v3744_v3 = vsel %vm11786_vm12, %v3728_v55, %v3496_v21  ;;  %vm11799_vm12 = vmmov %vm11791_vm11 }
 0x259   :  { %v3760_v47 = vsel %vm11787_vm3, %v3744_v3, %v3536_v49  ;;  %vm11800_vm3 = vmmov %vm11793_vm6 }
 0x25a   :  { %v3776_v42 = vsel %vm11788_vm4, %v3760_v47, %v9544_v13  ;;  %vm11801_vm4 = vmmov %vm11794_vm1 }
 0x25b   :  { %v3632_v30 = vpop.permute.xlu0 %3631 }
 0x25c   :  { %v3792_v28 = vsel %vm11791_vm11, %v3776_v42, %v3632_v30  ;;  %vm11802_vm11 = vmmov %vm11792_vm15 }
 0x25d   :  { %v3362_v26 = vpop.permute.xlu1 %3361  ;;  %v3808_v6 = vsel %vm11793_vm6, %v3792_v28, %v3672_v39  ;;  %vm11804_vm6 = vmmov %vm11796_vm0 }
 0x25e   :  { %v3694_v53 = vsel %vm11792_vm15, %v6982_v19, %v3362_v26  ;;  %7346 = vmatprep.mubr.msk.bf16.mxu1 %vm11794_vm1, %v3808_v6  ;;  %vm11803_vm15 = vmmov %vm11795_vm14 }
 0x25f   :  { %v3714_v0 = vsel %vm1328_vm5, %v3694_v53, %v3402_v20  ;;  %vm11805_vm1 = vmmov %vm11797_vm10 }
 0x260   :  { %v3730_v63 = vsel %vm11795_vm14, %v3714_v0, %v9492_v11  ;;  %v3540_v43 = vpop.permute.xlu0 %3539  ;;  %vm11806_vm14 = vmmov %vm11802_vm11 }
 0x261   :  { %v3746_v13 = vsel %vm11796_vm0, %v3730_v63, %v3498_v44  ;;  %v3542_v31 = vpop.permute.xlu1 %3541  ;;  %vm11807_vm0 = vmmov %vm11798_vm9 }
 0x262   :  { %v3762_v24 = vsel %vm11797_vm10, %v3746_v13, %v9581_v46  ;;  %vm11808_vm10 = vmmov %vm11803_vm15 }
 0x263   :  { %v3778_v22 = vsel %vm11798_vm9, %v3762_v24, %v9514_v61  ;;  %vm11809_vm9 = vmmov %vm11799_vm12 }
 0x264   :  { %v3794_v1 = vsel %vm11799_vm12, %v3778_v22, %v3634_v37  ;;  %vm11810_vm12 = vmmov %vm11800_vm3 }
 0x265   :  { %v3406_v48 = vpop.permute.xlu1 %3405  ;;  %v3810_v20 = vsel %vm11800_vm3, %v3794_v1, %v3674_v15  ;;  %v3676_v12 = vpop.permute.xlu0 %3675  ;;  %vm11811_vm3 = vmmov %vm11804_vm6 }
 0x266   :  { %7347 = vmatmul.mubr.msk.bf16.gmra.mxu1 %vm11801_vm4, %v3810_v20 }
 0x269   :  { %v3598_v62 = vpop.permute.xlu1 %3597  ;;  %v3678_v11 = vpop.permute.xlu0 %3677 }
 0x26d   :  { %v3364_v33 = vpop.permute.xlu1 %3363 }
 0x26e   :  { %v3408_v29 = vpop.permute.xlu0 %3407  ;;  %v3697_v61 = vsel %vm11802_vm11, %v6983_v16, %v3364_v33  ;;  %vm11812_vm11 = vmmov %vm11805_vm1 }
 0x26f   :  { %v3716_v49 = vsel %vm1328_vm5, %v3697_v61, %v3404_v10  ;;  %v4312_v61 = vld [vmem:[#allocation3 + $0x84] sm:$0x1] }
 0x270   :  { %v3732_v39 = vsel %vm11803_vm15, %v3716_v49, %v3460_v60  ;;  %vm11813_vm15 = vmmov %vm11807_vm0 }
 0x271   :  { %v3466_v9 = vpop.permute.xlu1 %3465 }
 0x272   :  { %v3464_v14 = vpop.permute.xlu0 %3463 }
 0x275   :  { %v3602_v41 = vpop.permute.xlu1 %3601 }
 0x276   :  { %v3600_v46 = vpop.permute.xlu0 %3599 }
 0x279   :  { %v3502_v45 = vpop.permute.xlu1 %3501 }
 0x27b   :  { %v3500_v15 = vpop.permute.xlu0 %3499 }
 0x27c   :  { %v3748_v4 = vsel %vm11804_vm6, %v3732_v39, %v3500_v15  ;;  %vm11814_vm6 = vmmov %vm11809_vm9  ;;  %v4313_v15 = vsel %vm8479_vm7, 0, %v4312_v61  ;;  %v4242_v61 = vld [vmem:[#allocation3 + $0x38] sm:$0x1] }
 0x27d   :  { %v3764_v25 = vsel %vm11805_vm1, %v3748_v4, %v3540_v43  ;;  %vm11815_vm1 = vmmov %vm11810_vm12  ;;  %4314 = vst [vmem:[#allocation3 + $0x84] sm:$0x1] %v4313_v15 }
 0x27e   :  { %v3366_v23 = vpop.permute.xlu1 %3365  ;;  %v3780_v17 = vsel %vm11807_vm0, %v3764_v25, %v3596_v52  ;;  %vm11817_vm0 = vcmask 64512   ;;  %v4227_v25 = vld [vmem:[#allocation3 + $0x10] sm:$0x1] }
 0x27f   :  { %v3700_v58 = vsel %vm11806_vm14, %v6984_v32, %v3366_v23  ;;  %vm11816_vm14 = vmmov %vm11801_vm4 }
 0x280   :  { %v3718_v57 = vsel %vm1328_vm5, %v3700_v58, %v3406_v48  ;;  %v4228_v58 = vsel %vm8473_vm8, 0, %v4227_v25  ;;  %v4243_v25 = vsel %vm8473_vm8, 0, %v4242_v61 }
 0x281   :  { %v3734_v16 = vsel %vm11808_vm10, %v3718_v57, %v3462_v38  ;;  %v3636_v44 = vpop.permute.xlu0 %3635  ;;  %v4230_v57 = vld [vmem:[#allocation3 + $0x18] sm:$0x1]  ;;  %4229 = vst [vmem:[#allocation3 + $0x10] sm:$0x1] %v4228_v58  ;;  %4244 = vst [vmem:[#allocation3 + $0x38] sm:$0x1] %v4243_v25 }
 0x282   :  { %v3546_v10 = vpop.permute.xlu1 %3545  ;;  %v3796_v60 = vsel %vm11809_vm9, %v3780_v17, %v3636_v44  ;;  %v3750_v27 = vsel %vm11811_vm3, %v3734_v16, %v3502_v45  ;;  %vm11818_vm9 = vmmov %vm11811_vm3  ;;  %v4231_v17 = vsel %vm8473_vm8, 0, %v4230_v57 }
 0x283   :  { %v3812_v59 = vsel %vm11810_vm12, %v3796_v60, %v3676_v12  ;;  %v3766_v50 = vsel %vm11812_vm11, %v3750_v27, %v3542_v31  ;;  %vm11819_vm12 = vmmov %vm11812_vm11  ;;  %4232 = vst [vmem:[#allocation3 + $0x18] sm:$0x1] %v4231_v17  ;;  %v4224_v60 = vld [vmem:[#allocation3 + $0x8] sm:$0x1] }
 0x284   :  { %7350 = vmatprep.mubr.msk.bf16.mxu1 %vm11801_vm4, %v3812_v59  ;;  %v3782_v32 = vsel %vm11813_vm15, %v3766_v50, %v3598_v62  ;;  %vm11820_vm3 = vmmov %vm11813_vm15  ;;  %v4225_v59 = vsel %vm8473_vm8, 0, %v4224_v60 }
 0x285   :  { %v3544_v8 = vpop.permute.xlu0 %3543  ;;  %vm11821_vm4 = vmmov %vm11814_vm6  ;;  %4226 = vst [vmem:[#allocation3 + $0x8] sm:$0x1] %v4225_v59 }
 0x286   :  { %v3410_v37 = vpop.permute.xlu1 %3409  ;;  %vm11822_vm11 = vmmov %vm11815_vm1 }
 0x287   :  { %vm11823_vm15 = vmmov %vm11816_vm14 }
 0x289   :  { %v3504_v55 = vpop.permute.xlu0 %3503 }
 0x28a   :  { %v3638_v21 = vpop.permute.xlu1 %3637 }
 0x28b   :  { %v3798_v52 = vsel %vm11814_vm6, %v3782_v32, %v3638_v21  ;;  %vm11824_vm6 = vmmov %vm11817_vm0 }
 0x28c   :  { %v3814_v38 = vsel %vm11815_vm1, %v3798_v52, %v3678_v11  ;;  %vm11825_vm1 = vmmov %vm11808_vm10  ;;  %v4257_v52 = vld [vmem:[#allocation3 + $0x70] sm:$0x1] }
 0x28d   :  { %7351 = vmatmul.mubr.msk.bf16.gmra.mxu1 %vm11816_vm14, %v3814_v38  ;;  %vm11826_vm14 = vmmov %vm11818_vm9  ;;  %v4260_v38 = vld [vmem:[#allocation3 + $0x78] sm:$0x1] }
 0x291   :  { %v3640_v42 = vpop.permute.xlu0 %3639 }
 0x292   :  { %v3368_v3 = vpop.permute.xlu1 %3367 }
 0x293   :  { %v3703_v47 = vsel %vm11817_vm0, %v6985_v5, %v3368_v3  ;;  %vm11827_vm0 = vmmov %vm11819_vm12  ;;  %v4258_v3 = vsel %vm8473_vm8, 0, %v4257_v52 }
 0x294   :  { %v3720_v2 = vsel %vm1328_vm5, %v3703_v47, %v3408_v29  ;;  %v4261_v47 = vsel %vm8473_vm8, 0, %v4260_v38  ;;  %4259 = vst [vmem:[#allocation3 + $0x70] sm:$0x1] %v4258_v3 }
 0x295   :  { %v3736_v34 = vsel %vm11808_vm10, %v3720_v2, %v3464_v14  ;;  %vm11828_vm10 = vmmov %vm11820_vm3  ;;  %v4309_v2 = vld [vmem:[#allocation3 + $0x7c] sm:$0x1]  ;;  %4262 = vst [vmem:[#allocation3 + $0x78] sm:$0x1] %v4261_v47 }
 0x296   :  { %v3752_v19 = vsel %vm11818_vm9, %v3736_v34, %v3504_v55  ;;  %v3680_v53 = vpop.permute.xlu0 %3679  ;;  %v3506_v6 = vpop.permute.xlu1 %3505  ;;  %vm11829_vm9 = vmmov %vm11821_vm4  ;;  %v4306_v55 = vld [vmem:[#allocation3 + $0x74] sm:$0x1]  ;;  %v4310_v34 = vsel %vm8479_vm7, 0, %v4309_v2 }
 0x297   :  { %v3768_v30 = vsel %vm11819_vm12, %v3752_v19, %v3544_v8  ;;  %vm11830_vm12 = vmmov %vm11822_vm11  ;;  %v4279_v8 = vld [vmem:[#allocation3 + $0x1c] sm:$0x1]  ;;  %v4233_v19 = vld [vmem:[#allocation3 + $0x20] sm:$0x1]  ;;  %4311 = vst [vmem:[#allocation3 + $0x7c] sm:$0x1] %v4310_v34 }
 0x298   :  { %v3784_v26 = vsel %vm11820_vm3, %v3768_v30, %v3600_v46  ;;  %vm11831_vm3 = vmmov %vm11823_vm15  ;;  %v4280_v32 = vsel %vm8479_vm7, 0, %v4279_v8  ;;  %v4245_v34 = vld [vmem:[#allocation3 + $0x40] sm:$0x1] }
 0x299   :  { %v3800_v28 = vsel %vm11821_vm4, %v3784_v26, %v3640_v42  ;;  %4281 = vst [vmem:[#allocation3 + $0x1c] sm:$0x1] %v4280_v32  ;;  %v4307_v42 = vsel %vm8479_vm7, 0, %v4306_v55  ;;  %v4234_v26 = vsel %vm8473_vm8, 0, %v4233_v19 }
 0x29a   :  { %v3816_v0 = vsel %vm11822_vm11, %v3800_v28, %v3680_v53  ;;  %4308 = vst [vmem:[#allocation3 + $0x74] sm:$0x1] %v4307_v42  ;;  %4235 = vst [vmem:[#allocation3 + $0x20] sm:$0x1] %v4234_v26  ;;  %v4246_v26 = vsel %vm8473_vm8, 0, %v4245_v34 }
 0x29b   :  { %7354 = vmatprep.mubr.msk.bf16.mxu1 %vm11823_vm15, %v3816_v0  ;;  %4247 = vst [vmem:[#allocation3 + $0x40] sm:$0x1] %v4246_v26 }
 0x2a0   :  { %v3370_v54 = vpop.permute.xlu1 %3369 }
 0x2a1   :  { %v3706_v7 = vsel %vm11824_vm6, %v6986_v18, %v3370_v54  ;;  %v9703_v18 = vpop.f32.mrf.mxu1 }
 0x2a2   :  { %v3722_v5 = vsel %vm1328_vm5, %v3706_v7, %v3410_v37  ;;  %11834 = vst [vmem:[#allocation13_spill] sm:$0xff] %v9703_v18  ;;  %v4276_v37 = vld [vmem:[#allocation3 + $0x14] sm:$0x1] }
 0x2a3   :  { %v3738_v63 = vsel %vm11825_vm1, %v3722_v5, %v3466_v9  ;;  %v9705_v20 = vpop.f32.mrf.mxu1  ;;  %v4277_v50 = vsel %vm8479_vm7, 0, %v4276_v37 }
 0x2a4   :  { %v3754_v13 = vsel %vm11826_vm14, %v3738_v63, %v3506_v6  ;;  %v3642_v31 = vpop.permute.xlu1 %3641  ;;  %11835 = vst [vmem:[#allocation9_spill] sm:$0xff] %v9705_v20  ;;  %4278 = vst [vmem:[#allocation3 + $0x14] sm:$0x1] %v4277_v50 }
 0x2a5   :  { %v3770_v43 = vsel %vm11827_vm0, %v3754_v13, %v3546_v10  ;;  %v9707_v12 = vpop.f32.mrf.mxu1  ;;  %v4236_v13 = vld [vmem:[#allocation3 + $0x28] sm:$0x1] }
 0x2a6   :  { %v3786_v24 = vsel %vm11828_vm10, %v3770_v43, %v3602_v41  ;;  %11836 = vst [vmem:[#allocation8_spill] sm:$0xff] %v9707_v12  ;;  %v4263_v41 = vld [vmem:[#allocation3 + $0x80] sm:$0x1]  ;;  %v4237_v43 = vsel %vm8473_vm8, 0, %v4236_v13  ;;  %v4254_v13 = vld [vmem:[#allocation3 + $0x68] sm:$0x1] }
 0x2a7   :  { %v3802_v22 = vsel %vm11829_vm9, %v3786_v24, %v3642_v31  ;;  %v9709_v62 = vpop.f32.mrf.mxu1  ;;  %v4264_v45 = vsel %vm8473_vm8, 0, %v4263_v41  ;;  %4238 = vst [vmem:[#allocation3 + $0x28] sm:$0x1] %v4237_v43  ;;  %v4239_v41 = vld [vmem:[#allocation3 + $0x30] sm:$0x1]  ;;  %v4255_v43 = vsel %vm8473_vm8, 0, %v4254_v13 }
 0x2a8   :  { %v3682_v1 = vpop.permute.xlu1 %3681  ;;  %11837 = vst [vmem:[#allocation14_spill] sm:$0xff] %v9709_v62  ;;  %4265 = vst [vmem:[#allocation3 + $0x80] sm:$0x1] %v4264_v45  ;;  %v4240_v15 = vsel %vm8473_vm8, 0, %v4239_v41  ;;  %v11852_v12 = vld [vmem:[#allocation6_spill] sm:$0xff] }
 0x2a9   :  { %v3818_v48 = vsel %vm11830_vm12, %v3802_v22, %v3682_v1  ;;  %v9711_v11 = vpop.f32.mrf.mxu1  ;;  %4241 = vst [vmem:[#allocation3 + $0x30] sm:$0x1] %v4240_v15  ;;  %4256 = vst [vmem:[#allocation3 + $0x68] sm:$0x1] %v4255_v43  ;;  %vm11853_vm0 = vnez %v11852_v12  ;;  %v4573_v62 = vld [vmem:[#allocation3 + $0x40] sm:$0xf] }
 0x2aa   :  { %7355 = vmatmul.mubr.msk.bf16.gmra.mxu1 %vm11831_vm3, %v3818_v48  ;;  %11838 = vst [vmem:[#allocation11_spill] sm:$0xff] %v9711_v11 }
 0x2ab   :  { %v9713_v33 = vpop.f32.mrf.mxu1 }
 0x2ac   :  { %11839 = vst [vmem:[#allocation10_spill] sm:$0xff] %v9713_v33 }
 0x2ad   :  { %v9715_v29 = vpop.f32.mrf.mxu1 }
 0x2ae   :  { %11840 = vst [vmem:[#allocation15_spill] sm:$0xff] %v9715_v29 }
 0x2af   :  { %v9717_v9 = vpop.f32.mrf.mxu1 }
 0x2b0   :  { %11841 = vst [vmem:[#allocation16_spill] sm:$0xff] %v9717_v9 }
 0x2b1   :  { %v9719_v14 = vpop.f32.mrf.mxu1 }
 0x2b2   :  { %11842 = vst [vmem:[#allocation17_spill] sm:$0xff] %v9719_v14  ;;  %v4609_v14 = vld [vmem:[#allocation3 + $0x80] sm:$0xf] }
 0x2b3   :  { %v9725_v39 = vpop.f32.mrf.mxu1 }
 0x2b4   :  { %11845 = vst [vmem:[#allocation4_spill] sm:$0xff] %v9725_v39 }
 0x2b5   :  { %v9727_v4 = vpop.f32.mrf.mxu1 }
 0x2b6   :  { %11846 = vst [vmem:[#allocation5_spill] sm:$0xff] %v9727_v4 }
 0x2b7   :  { %v9729_v23 = vpop.f32.mrf.mxu1 }
 0x2b8   :  { %11847 = vst [vmem:[#allocation18_spill] sm:$0xff] %v9729_v23 }
 0x2b9   :  { %v9735_v16 = vpop.f32.mrf.mxu1 }
 0x2ba   :  { %11848 = vst [vmem:[#allocation19_spill] sm:$0xff] %v9735_v16 }
 0x2bb   :  { %v9737_v10 = vpop.f32.mrf.mxu1 }
 0x2bc   :  { %11849 = vst [vmem:[#allocation20_spill] sm:$0xff] %v9737_v10 }
 0x2fb   :  { %v9739_v44 = vpop.f32.mrf.mxu1 }
 0x2fc   :  { %v4014_v24 = vmul.f32 %v9739_v44, %v9739_v44  ;;  %v3976_v45 = vsel %vm1328_vm5, %v9739_v44, 0.0 }
 0x2fd   :  { %v9743_v27 = vpop.f32.mrf.mxu1 }
 0x2fe   :  { %v4012_v0 = vmul.f32 %v9743_v27, %v9743_v27  ;;  %v3973_v5 = vsel %vm1328_vm5, %v9743_v27, 0.0  ;;  %v4031_v17 = vsel %vm1328_vm5, %v4014_v24, 0.0 }
 0x2ff   :  { %v9749_v21 = vpop.f32.mrf.mxu1 }
 0x300   :  { %v4028_v22 = vsel %vm1328_vm5, %v4012_v0, 0.0  ;;  %v4015_v60 = vmul.f32 %v9749_v21, %v9749_v21  ;;  %v3978_v8 = vsel %vm1328_vm5, %v9749_v21, 0.0 }
 0x301   :  { %v9759_v30 = vpop.f32.mrf.mxu1 }
 0x302   :  { %v4013_v6 = vmul.f32 %v9759_v30, %v9759_v30  ;;  %v3974_v54 = vsel %vm1328_vm5, %v9759_v30, 0.0  ;;  %v4033_v55 = vsel %vm1328_vm5, %v4015_v60, 0.0 }
 0x303   :  { %v3975_v31 = vadd.f32 %v3974_v54, %v3973_v5 }
 0x304   :  { %v4029_v63 = vsel %vm1328_vm5, %v4013_v6, 0.0 }
 0x305   :  { %v4030_v1 = vadd.f32 %v4029_v63, %v4028_v22  ;;  %v3977_v58 = vadd.f32 %v3976_v45, %v3975_v31 }
 0x307   :  { %v4032_v37 = vadd.f32 %v4031_v17, %v4030_v1  ;;  %v3979_v52 = vadd.f32 %v3978_v8, %v3977_v58 }
 0x309   :  { %v4034_v2 = vadd.f32 %v4033_v55, %v4032_v37 }
 0x326   :  { %v9763_v28 = vpop.f32.mrf.mxu1 }
 0x327   :  { %v4018_v5 = vmul.f32 %v9763_v28, %v9763_v28  ;;  %v3984_v31 = vsel %vm1328_vm5, %v9763_v28, 0.0 }
 0x328   :  { %v9765_v53 = vpop.f32.mrf.mxu1 }
 0x329   :  { %v4016_v59 = vmul.f32 %v9765_v53, %v9765_v53  ;;  %v3980_v50 = vsel %vm1328_vm5, %v9765_v53, 0.0  ;;  %v4039_v1 = vsel %vm1328_vm5, %v4018_v5, 0.0 }
 0x32a   :  { %v9773_v7 = vpop.f32.mrf.mxu1  ;;  %v3981_v42 = vadd.f32 %v3980_v50, %v3979_v52 }
 0x32b   :  { %v4035_v3 = vsel %vm1328_vm5, %v4016_v59, 0.0  ;;  %v4019_v41 = vmul.f32 %v9773_v7, %v9773_v7  ;;  %v3986_v15 = vsel %vm1328_vm5, %v9773_v7, 0.0 }
 0x32c   :  { %v9783_v48 = vpop.f32.mrf.mxu1  ;;  %v4036_v6 = vadd.f32 %v4035_v3, %v4034_v2 }
 0x32d   :  { %v4017_v32 = vmul.f32 %v9783_v48, %v9783_v48  ;;  %v3982_v47 = vsel %vm1328_vm5, %v9783_v48, 0.0  ;;  %v4041_v60 = vsel %vm1328_vm5, %v4019_v41, 0.0 }
 0x32e   :  { %v3983_v0 = vadd.f32 %v3982_v47, %v3981_v42  ;;  %v4248_v47 = vld [vmem:[#allocation3 + $0x58] sm:$0x1]  ;;  %v4251_v42 = vld [vmem:[#allocation3 + $0x60] sm:$0x1] }
 0x32f   :  { %v4037_v19 = vsel %vm1328_vm5, %v4017_v32, 0.0  ;;  %v4249_v34 = vsel %vm8473_vm8, 0, %v4248_v47 }
 0x330   :  { %v4038_v63 = vadd.f32 %v4037_v19, %v4036_v6  ;;  %v3985_v24 = vadd.f32 %v3984_v31, %v3983_v0  ;;  %v4252_v19 = vsel %vm8473_vm8, 0, %v4251_v42  ;;  %4250 = vst [vmem:[#allocation3 + $0x58] sm:$0x1] %v4249_v34  ;;  %v4273_v42 = vld [vmem:[#allocation3 + $0xc] sm:$0x1] }
 0x331   :  { %4253 = vst [vmem:[#allocation3 + $0x60] sm:$0x1] %v4252_v19  ;;  %v4274_v19 = vsel %vm8479_vm7, 0, %v4273_v42  ;;  %v4291_v42 = vld [vmem:[#allocation3 + $0x3c] sm:$0x1] }
 0x332   :  { %v4040_v45 = vadd.f32 %v4039_v1, %v4038_v63  ;;  %v3987_v17 = vadd.f32 %v3986_v15, %v3985_v24  ;;  %4275 = vst [vmem:[#allocation3 + $0xc] sm:$0x1] %v4274_v19 }
 0x334   :  { %v4042_v50 = vadd.f32 %v4041_v60, %v4040_v45 }
 0x34d   :  { %v9791_v57 = vpop.f32.mrf.mxu1 }
 0x34e   :  { %v4022_v3 = vmul.f32 %v9791_v57, %v9791_v57  ;;  %v3992_v26 = vsel %vm1328_vm5, %v9791_v57, 0.0 }
 0x34f   :  { %v9804_v38 = vpop.f32.mrf.mxu1 }
 0x350   :  { %v4020_v61 = vmul.f32 %v9804_v38, %v9804_v38  ;;  %v3988_v25 = vsel %vm1328_vm5, %v9804_v38, 0.0  ;;  %v4047_v5 = vsel %vm1328_vm5, %v4022_v3, 0.0 }
 0x351   :  { %v9813_v54 = vpop.f32.mrf.mxu1  ;;  %v3989_v8 = vadd.f32 %v3988_v25, %v3987_v17 }
 0x352   :  { %v4043_v59 = vsel %vm1328_vm5, %v4020_v61, 0.0  ;;  %v4023_v63 = vmul.f32 %v9813_v54, %v9813_v54  ;;  %v3994_v43 = vsel %vm1328_vm5, %v9813_v54, 0.0 }
 0x353   :  { %v9821_v22 = vpop.f32.mrf.mxu1  ;;  %v4044_v52 = vadd.f32 %v4043_v59, %v4042_v50 }
 0x354   :  { %v4021_v58 = vmul.f32 %v9821_v22, %v9821_v22  ;;  %v3990_v37 = vsel %vm1328_vm5, %v9821_v22, 0.0  ;;  %v4049_v45 = vsel %vm1328_vm5, %v4023_v63, 0.0 }
 0x355   :  { %v3991_v55 = vadd.f32 %v3990_v37, %v3989_v8 }
 0x356   :  { %v4045_v32 = vsel %vm1328_vm5, %v4021_v58, 0.0 }
 0x357   :  { %v4046_v2 = vadd.f32 %v4045_v32, %v4044_v52  ;;  %v3993_v6 = vadd.f32 %v3992_v26, %v3991_v55 }
 0x359   :  { %v4048_v13 = vadd.f32 %v4047_v5, %v4046_v2  ;;  %v3995_v41 = vadd.f32 %v3994_v43, %v3993_v6  ;;  %v4266_v43 = vld [vmem:[#allocation3 + $0x88] sm:$0x1] }
 0x35b   :  { %v4050_v58 = vadd.f32 %v4049_v45, %v4048_v13 }
 0x36a   :  { %v9847_v0 = vpop.f32.mrf.mxu1 }
 0x36b   :  { %v4026_v60 = vmul.f32 %v9847_v0, %v9847_v0  ;;  %v4000_v32 = vsel %vm1328_vm5, %v9847_v0, 0.0 }
 0x36c   :  { %v9852_v31 = vpop.f32.mrf.mxu1 }
 0x36d   :  { %v3996_v24 = vsel %vm1328_vm5, %v9852_v31, 0.0  ;;  %v4024_v1 = vmul.f32 %v9852_v31, %v9852_v31  ;;  %v4055_v2 = vsel %vm1328_vm5, %v4026_v60, 0.0 }
 0x36e   :  { %v9860_v61 = vpop.f32.mrf.mxu1  ;;  %v3997_v25 = vadd.f32 %v3996_v24, %v3995_v41  ;;  %v4267_v24 = vsel %vm8473_vm8, 0, %v4266_v43 }
 0x36f   :  { %v4051_v15 = vsel %vm1328_vm5, %v4024_v1, 0.0  ;;  %v4027_v52 = vmul.f32 %v9860_v61, %v9860_v61  ;;  %v4002_v34 = vsel %vm1328_vm5, %v9860_v61, 0.0  ;;  %4268 = vst [vmem:[#allocation3 + $0x88] sm:$0x1] %v4267_v24 }
 0x370   :  { %v9864_v17 = vpop.f32.mrf.mxu1  ;;  %v4052_v8 = vadd.f32 %v4051_v15, %v4050_v58 }
 0x371   :  { %v3998_v59 = vsel %vm1328_vm5, %v9864_v17, 0.0  ;;  %v4025_v37 = vmul.f32 %v9864_v17, %v9864_v17  ;;  %v4057_v5 = vsel %vm1328_vm5, %v4027_v52, 0.0 }
 0x372   :  { %v3999_v50 = vadd.f32 %v3998_v59, %v3997_v25 }
 0x373   :  { %v4053_v55 = vsel %vm1328_vm5, %v4025_v37, 0.0  ;;  %v4285_v37 = vld [vmem:[#allocation3 + $0x2c] sm:$0x1] }
 0x374   :  { %v4001_v3 = vadd.f32 %v4000_v32, %v3999_v50  ;;  %v4054_v47 = vadd.f32 %v4053_v55, %v4052_v8  ;;  %v4288_v8 = vld [vmem:[#allocation3 + $0x34] sm:$0x1]  ;;  %v4286_v50 = vsel %vm8479_vm7, 0, %v4285_v37  ;;  %v9911_v37 = vld [vmem:[#allocation3 + $0x48] sm:$0xf] }
 0x375   :  { %v4289_v32 = vsel %vm8479_vm7, 0, %v4288_v8  ;;  %4287 = vst [vmem:[#allocation3 + $0x2c] sm:$0x1] %v4286_v50 }
 0x376   :  { %v4003_v26 = vadd.f32 %v4002_v34, %v4001_v3  ;;  %v4056_v6 = vadd.f32 %v4055_v2, %v4054_v47  ;;  %4290 = vst [vmem:[#allocation3 + $0x34] sm:$0x1] %v4289_v32  ;;  %v4282_v2 = vld [vmem:[#allocation3 + $0x24] sm:$0x1]  ;;  %v4292_v34 = vsel %vm8479_vm7, 0, %v4291_v42  ;;  %v5495_v32 = vshrl.u32 %v9911_v37, 16 }
 0x377   :  { %v4283_v19 = vsel %vm8479_vm7, 0, %v4282_v2  ;;  %4293 = vst [vmem:[#allocation3 + $0x3c] sm:$0x1] %v4292_v34 }
 0x378   :  { %v4004_v63 = vrot.slane %v4003_v26, 4  ;;  %v4058_v13 = vadd.f32 %v4057_v5, %v4056_v6  ;;  %4284 = vst [vmem:[#allocation3 + $0x24] sm:$0x1] %v4283_v19  ;;  %v9923_v42 = vrot.slane %v5495_v32, 4 }
 0x37a   :  { %v4005_v1 = vadd.f32 %v4004_v63, %v4003_v26  ;;  %v4059_v41 = vrot.slane %v4058_v13, 4  ;;  %v4294_v63 = vld [vmem:[#allocation3 + $0x44] sm:$0x1]  ;;  %11850 = vst [vmem:[#allocation21_spill] sm:$0xff] %v9923_v42 }
 0x37c   :  { %v4006_v45 = vrot.slane %v4005_v1, 2  ;;  %v4060_v15 = vadd.f32 %v4059_v41, %v4058_v13 }
 0x37e   :  { %v4007_v25 = vadd.f32 %v4006_v45, %v4005_v1  ;;  %v4061_v58 = vrot.slane %v4060_v15, 2  ;;  %v4295_v45 = vsel %vm8479_vm7, 0, %v4294_v63 }
 0x37f   :  { %4296 = vst [vmem:[#allocation3 + $0x44] sm:$0x1] %v4295_v45 }
 0x380   :  { %v4008_v60 = vrot.slane %v4007_v25, 1  ;;  %v4062_v59 = vadd.f32 %v4061_v58, %v4060_v15 }
 0x382   :  { %v4009_v52 = vadd.f32 %v4008_v60, %v4007_v25  ;;  %v4063_v55 = vrot.slane %v4062_v59, 1  ;;  %v4297_v25 = vld [vmem:[#allocation3 + $0x5c] sm:$0x1]  ;;  %v4300_v60 = vld [vmem:[#allocation3 + $0x64] sm:$0x1] }
 0x383   :  { %v4298_v58 = vsel %vm8479_vm7, 0, %v4297_v25  ;;  %v4301_v8 = vsel %vm8479_vm7, 0, %v4300_v60  ;;  %v4269_v25 = vld [vmem:[#allocation3 + $0x90] sm:$0x1] }
 0x384   :  { %v9889_v3 = vmul.f32 0.0078125, %v4009_v52  ;;  %v4064_v47 = vadd.f32 %v4063_v55, %v4062_v59  ;;  %4299 = vst [vmem:[#allocation3 + $0x5c] sm:$0x1] %v4298_v58  ;;  %v4303_v59 = vld [vmem:[#allocation3 + $0x6c] sm:$0x1]  ;;  %v5498_v52 = vshll.u32 %v9911_v37, 16 }
 0x385   :  { %v4304_v50 = vsel %vm8479_vm7, 0, %v4303_v59  ;;  %4302 = vst [vmem:[#allocation3 + $0x64] sm:$0x1] %v4301_v8  ;;  %v9919_v55 = vld [vmem:[#allocation3 + $0x4] sm:$0x1] }
 0x386   :  { %v4065_v26 = vmul.f32 0.0078125, %v4064_v47  ;;  %v4066_v6 = vmul.f32 %v9889_v3, %v9889_v3  ;;  %4305 = vst [vmem:[#allocation3 + $0x6c] sm:$0x1] %v4304_v50  ;;  %v9921_v47 = vld [vmem:[#allocation3] sm:$0xe]  ;;  %v9925_v2 = vrot.slane %v5498_v52, 5  ;;  %v4081_v19 = vsub.f32 %v9864_v17, %v9889_v3 }
 0x387   :  { %v4068_v63 = vsub.f32 %v9743_v27, %v9889_v3  ;;  %v4080_v45 = vsub.f32 %v9852_v31, %v9889_v3  ;;  %v4071_v17 = vsub.f32 %v9749_v21, %v9889_v3  ;;  %v4072_v27 = vsub.f32 %v9765_v53, %v9889_v3  ;;  %v9965_v53 = vld [vmem:[%s11633_s7] ss:$0 sm:$0xff] }
 0x388   :  { %v4067_v5 = vsub.f32 %v4065_v26, %v4066_v6  ;;  %11851 = vst [vmem:[#allocation22_spill] sm:$0xff] %v9925_v2  ;;  %v4069_v26 = vsub.f32 %v9759_v30, %v9889_v3  ;;  %v4070_v6 = vsub.f32 %v9739_v44, %v9889_v3  ;;  %v9948_v44 = vld [vmem:[%s11632_s6] ss:$0 sm:$0xff]  ;;  %v4270_v21 = vsel %vm8473_vm8, 0, %v4269_v25 }
 0x389   :  { %4271 = vst [vmem:[#allocation3 + $0x90] sm:$0x1] %v4270_v21 }
 0x38a   :  { %v4084_v24 = vadd.f32 1e-05, %v4067_v5 }
 0x38c   :  { %7506 = vrsqrt.f32 %v4084_v24  ;;  %v4079_v24 = vsub.f32 %v9813_v54, %v9889_v3 }
 0x399   :  { %v9943_v58 = vpop.eup %7506 }
 0x39a   :  { %v4099_v31 = vmul.f32 %v9943_v58, %v4081_v19  ;;  %v4087_v60 = vmul.f32 %v9943_v58, %v4069_v26  ;;  %v4088_v59 = vmul.f32 %v9943_v58, %v4070_v6  ;;  %v4086_v8 = vmul.f32 %v9943_v58, %v4068_v63 }
 0x39b   :  { %v4097_v50 = vmul.f32 %v9943_v58, %v4079_v24  ;;  %v4098_v32 = vmul.f32 %v9943_v58, %v4080_v45  ;;  %v4089_v52 = vmul.f32 %v9943_v58, %v4071_v17  ;;  %v4090_v19 = vmul.f32 %v9943_v58, %v4072_v27 }
 0x39c   :  { %v4121_v26 = vmul.f32 %v9948_v44, %v4099_v31  ;;  %v4109_v6 = vmul.f32 %v9948_v44, %v4087_v60  ;;  %v4110_v63 = vmul.f32 %v9948_v44, %v4088_v59  ;;  %v4108_v25 = vmul.f32 %v9948_v44, %v4086_v8 }
 0x39d   :  { %v4119_v21 = vmul.f32 %v9948_v44, %v4097_v50  ;;  %v4120_v15 = vmul.f32 %v9948_v44, %v4098_v32  ;;  %v4111_v24 = vmul.f32 %v9948_v44, %v4089_v52  ;;  %v4112_v32 = vmul.f32 %v9948_v44, %v4090_v19 }
 0x39e   :  { %v4143_v17 = vadd.f32 %v9965_v53, %v4121_v26  ;;  %v4131_v27 = vadd.f32 %v9965_v53, %v4109_v6  ;;  %v4132_v31 = vadd.f32 %v9965_v53, %v4110_v63  ;;  %v4130_v60 = vadd.f32 %v9965_v53, %v4108_v25 }
 0x39f   :  { %v4141_v59 = vadd.f32 %v9965_v53, %v4119_v21  ;;  %v4142_v8 = vadd.f32 %v9965_v53, %v4120_v15  ;;  %v9987_v50 = vadd.f32 %v9965_v53, %v4111_v24  ;;  %v9991_v30 = vadd.f32 %v9965_v53, %v4112_v32 }
 0x3a0   :  { %vm4159_vm4 = vcmp.gt.f32.partialorder %v4143_v17, 0.0  ;;  %v4175_v52 = vmul.f32 0.2, %v4143_v17  ;;  %vm4147_vm11 = vcmp.gt.f32.partialorder %v4131_v27, 0.0  ;;  %vm4148_vm15 = vcmp.gt.f32.partialorder %v4132_v31, 0.0 }
 0x3a1   :  { %v4163_v26 = vmul.f32 0.2, %v4131_v27  ;;  %v4164_v41 = vmul.f32 0.2, %v4132_v31  ;;  %vm4146_vm6 = vcmp.gt.f32.partialorder %v4130_v60, 0.0  ;;  %vm4157_vm1 = vcmp.gt.f32.partialorder %v4141_v59, 0.0 }
 0x3a2   :  { %v4191_v6 = vsel %vm4159_vm4, %v4143_v17, %v4175_v52  ;;  %v4162_v63 = vmul.f32 0.2, %v4130_v60  ;;  %vm4158_vm14 = vcmp.gt.f32.partialorder %v4142_v8, 0.0  ;;  %v4173_v25 = vmul.f32 0.2, %v4141_v59 }
 0x3a3   :  { %v7250_v21 = vpack.c.bf16 %v4191_v6, %v4191_v6  ;;  %v4179_v5 = vsel %vm4147_vm11, %v4131_v27, %v4163_v26  ;;  %v4180_v15 = vsel %vm4148_vm15, %v4132_v31, %v4164_v41  ;;  %v4174_v34 = vmul.f32 0.2, %v4142_v8  ;;  %v4612_v17 = vld [vmem:[#allocation3 + $0x84] sm:$0x1]  ;;  %v4537_v41 = vld [vmem:[#allocation3 + $0x10] sm:$0xf] }
 0x3a4   :  { %v7238_v24 = vpack.c.bf16 %v4179_v5, %v4179_v5  ;;  %v7239_v1 = vpack.c.bf16 %v4180_v15, %v4180_v15  ;;  %v4178_v43 = vsel %vm4146_vm6, %v4130_v60, %v4162_v63  ;;  %v4189_v19 = vsel %vm4157_vm1, %v4141_v59, %v4173_v25  ;;  %v4543_v31 = vld [vmem:[#allocation3 + $0x18] sm:$0xf] }
 0x3a5   :  { %v4474_v13 = vshrl.u32 %v7250_v21, 16  ;;  %v7237_v45 = vpack.c.bf16 %v4178_v43, %v4178_v43  ;;  %v4190_v54 = vsel %vm4158_vm14, %v4142_v8, %v4174_v34  ;;  %v4477_v10 = vshll.u32 %v7250_v21, 16  ;;  %v4540_v43 = vld [vmem:[#allocation3 + $0x14] sm:$0x1]  ;;  %v4546_v21 = vld [vmem:[#allocation3 + $0x1c] sm:$0x1] }
 0x3a6   :  { %v4378_v52 = vshrl.u32 %v7238_v24, 16  ;;  %v4381_v29 = vshll.u32 %v7238_v24, 16  ;;  %v4386_v11 = vshrl.u32 %v7239_v1, 16  ;;  %v4389_v27 = vshll.u32 %v7239_v1, 16  ;;  %v4531_v1 = vld [vmem:[#allocation3 + $0x8] sm:$0xf] }
 0x3a7   :  { %v4476_v6 = vrot.slane %v4474_v13, 7  ;;  %v4370_v5 = vshrl.u32 %v7237_v45, 16  ;;  %v7248_v26 = vpack.c.bf16 %v4189_v19, %v4189_v19  ;;  %v4373_v63 = vshll.u32 %v7237_v45, 16  ;;  %v4597_v19 = vld [vmem:[#allocation3 + $0x70] sm:$0xf] }
 0x3a8   :  { %v4380_v60 = vrot.slane %v4378_v52, 7  ;;  %v4388_v59 = vrot.slane %v4386_v11, 7  ;;  %v7249_v34 = vpack.c.bf16 %v4190_v54, %v4190_v54  ;;  %vm4149_vm10 = vcmp.gt.f32.partialorder %v9987_v50, 0.0 }
 0x3a9   :  { %v4479_v8 = vor.u32 %v4477_v10, %v4476_v6  ;;  %v4480_v32 = vrot.slane %v4476_v6, 4  ;;  %v9993_v25 = vrot.slane %v4370_v5, 7  ;;  %v4458_v15 = vshrl.u32 %v7248_v26, 16  ;;  %v4600_v6 = vld [vmem:[#allocation3 + $0x74] sm:$0x1] }
 0x3aa   :  { %v4383_v4 = vor.u32 %v4381_v29, %v4380_v60  ;;  %v4384_v24 = vrot.slane %v4380_v60, 4  ;;  %v4391_v16 = vor.u32 %v4389_v27, %v4388_v59  ;;  %v4392_v13 = vrot.slane %v4388_v59, 4 }
 0x3ab   :  { %v4610_v33 = vsel %vm11853_vm0, %v4479_v8, %v4609_v14  ;;  %v4613_v11 = vsel %vm8473_vm8, %v4480_v32, %v4612_v17  ;;  %v4375_v45 = vor.u32 %v4373_v63, %v9993_v25  ;;  %v4461_v52 = vshll.u32 %v7248_v26, 16  ;;  %v10020_v26 = vld [vmem:[#allocation3 + $0x50] sm:$0xe]  ;;  %v4603_v8 = vld [vmem:[#allocation3 + $0x78] sm:$0xf] }
 0x3ac   :  { %4611 = vst [vmem:[#allocation3 + $0x80] sm:$0xf] %v4610_v33  ;;  %4614 = vst [vmem:[#allocation3 + $0x84] sm:$0x1] %v4613_v11  ;;  %v4538_v10 = vsel %vm11853_vm0, %v4383_v4, %v4537_v41  ;;  %v4544_v29 = vsel %vm11853_vm0, %v4391_v16, %v4543_v31  ;;  %v4541_v54 = vsel %vm8473_vm8, %v4384_v24, %v4540_v43  ;;  %v4460_v33 = vrot.slane %v4458_v15, 7 }
 0x3ad   :  { %v4547_v14 = vsel %vm8473_vm8, %v4392_v13, %v4546_v21  ;;  %4539 = vst [vmem:[#allocation3 + $0x10] sm:$0xf] %v4538_v10  ;;  %4545 = vst [vmem:[#allocation3 + $0x18] sm:$0xf] %v4544_v29  ;;  %v4532_v17 = vsel %vm11853_vm0, %v4375_v45, %v4531_v1  ;;  %v4466_v4 = vshrl.u32 %v7249_v34, 16  ;;  %v4469_v16 = vshll.u32 %v7249_v34, 16 }
 0x3ae   :  { %4542 = vst [vmem:[#allocation3 + $0x14] sm:$0x1] %v4541_v54  ;;  %4548 = vst [vmem:[#allocation3 + $0x1c] sm:$0x1] %v4547_v14  ;;  %v4165_v27 = vmul.f32 0.2, %v9987_v50  ;;  %v4463_v31 = vor.u32 %v4461_v52, %v4460_v33  ;;  %v11854_v59 = vsub.f32 %v9783_v48, %v9889_v3  ;;  %v11855_v15 = vsub.f32 %v9763_v28, %v9889_v3 }
 0x3af   :  { %4533 = vst [vmem:[#allocation3 + $0x8] sm:$0xf] %v4532_v17  ;;  %vm4150_vm9 = vcmp.gt.f32.partialorder %v9991_v30, 0.0  ;;  %v4166_v41 = vmul.f32 0.2, %v9991_v30  ;;  %v4464_v5 = vrot.slane %v4460_v33, 4  ;;  %v11856_v48 = vsub.f32 %v9773_v7, %v9889_v3 }
 0x3b0   :  { %v4468_v60 = vrot.slane %v4466_v4, 7  ;;  %v4091_v63 = vmul.f32 %v9943_v58, %v11854_v59  ;;  %v10018_v43 = vld [vmem:[#allocation3 + $0x54] sm:$0x1]  ;;  %v4606_v34 = vld [vmem:[#allocation3 + $0x7c] sm:$0x1]  ;;  %v4181_v32 = vsel %vm4149_vm10, %v9987_v50, %v4165_v27  ;;  %v4092_v24 = vmul.f32 %v9943_v58, %v11855_v15 }
 0x3b1   :  { %v4182_v21 = vsel %vm4150_vm9, %v9991_v30, %v4166_v41  ;;  %v4093_v13 = vmul.f32 %v9943_v58, %v11856_v48  ;;  %v4598_v45 = vsel %vm11853_vm0, %v4463_v31, %v4597_v19  ;;  %v4601_v50 = vsel %vm8473_vm8, %v4464_v5, %v4600_v6 }
 0x3b2   :  { %v4471_v1 = vor.u32 %v4469_v16, %v4468_v60  ;;  %v4472_v11 = vrot.slane %v4468_v60, 4  ;;  %4599 = vst [vmem:[#allocation3 + $0x70] sm:$0xf] %v4598_v45  ;;  %4602 = vst [vmem:[#allocation3 + $0x74] sm:$0x1] %v4601_v50  ;;  %v4113_v28 = vmul.f32 %v9948_v44, %v4091_v63  ;;  %v10046_v14 = vpack.c.bf16 %v4181_v32, %v4181_v32 }
 0x3b3   :  { %v10048_v19 = vpack.c.bf16 %v4182_v21, %v4182_v21  ;;  %v4114_v4 = vmul.f32 %v9948_v44, %v4092_v24  ;;  %v4115_v16 = vmul.f32 %v9948_v44, %v4093_v13  ;;  %v11857_v27 = vsub.f32 %v9791_v57, %v9889_v3 }
 0x3b4   :  { %v4604_v29 = vsel %vm11853_vm0, %v4471_v1, %v4603_v8  ;;  %v4607_v54 = vsel %vm8473_vm8, %v4472_v11, %v4606_v34  ;;  %v5364_v17 = vld [vmem:[#allocation3 + $0x10] sm:$0xf]  ;;  %v5365_v33 = vld [vmem:[#allocation3 + $0x18] sm:$0xf]  ;;  %v10052_v6 = vadd.f32 %v9965_v53, %v4113_v28  ;;  %vm6197_vm10 = vcmask 785408  }
 0x3b5   :  { %v4996_v52 = vld [vmem:[#allocation3 + $0x10] sm:$0xf]  ;;  %4605 = vst [vmem:[#allocation3 + $0x78] sm:$0xf] %v4604_v29  ;;  %4608 = vst [vmem:[#allocation3 + $0x7c] sm:$0x1] %v4607_v54  ;;  %v4096_v41 = vmul.f32 %v9943_v58, %v11857_v27  ;;  %v7178_v60 = vcombine.low %v5364_v17, %v5365_v33 }
 0x3b6   :  { %v5411_v31 = vshrl.u32 %v5365_v33, 16  ;;  %v5414_v5 = vshll.u32 %v5365_v33, 16  ;;  %v5397_v59 = vshrl.u32 %v5364_v17, 16  ;;  %v4995_v63 = vld [vmem:[#allocation3 + $0x8] sm:$0xf]  ;;  %v5400_v8 = vshll.u32 %v5364_v17, 16 }
 0x3b7   :  { %v5042_v34 = vshrl.u32 %v4996_v52, 16  ;;  %v5045_v32 = vshll.u32 %v4996_v52, 16  ;;  %v7154_v21 = vcombine.low %v4995_v63, %v4996_v52  ;;  %v5380_v15 = vld [vmem:[#allocation3 + $0x14] sm:$0x1]  ;;  %6028 = vrot.lane.b32.xlu1 %v7178_v60, %s7539_s3  ;;  %v5028_v13 = vshrl.u32 %v4995_v63, 16 }
 0x3b8   :  { %v10059_v24 = vrot.slane %v5411_v31, 4  ;;  %v10061_v48 = vrot.slane %v5414_v5, 5  ;;  %v10064_v57 = vrot.slane %v5397_v59, 4  ;;  %v5381_v1 = vld [vmem:[#allocation3 + $0x1c] sm:$0x1]  ;;  %v10066_v11 = vrot.slane %v5400_v8, 5 }
 0x3b9   :  { %v10068_v45 = vrot.slane %v5042_v34, 4  ;;  %v10070_v50 = vrot.slane %v5045_v32, 5  ;;  %5892 = vrot.lane.b32.xlu0 %v7154_v21, %s7535_s13  ;;  %v5031_v28 = vshll.u32 %v4995_v63, 16  ;;  %v5620_v29 = vld [vmem:[#allocation3 + $0x10] sm:$0xe]  ;;  %v10073_v54 = vrot.slane %v5028_v13, 4 }
 0x3ba   :  { %v5621_v17 = vld [vmem:[#allocation3 + $0x18] sm:$0xe]  ;;  %v7114_v33 = vrot.slane %v5620_v29, 9  ;;  %v5670_v52 = vrot.slane %v5380_v15, 5  ;;  %v5674_v27 = vrot.slane %v5381_v1, 5  ;;  %v4136_v8 = vadd.f32 %v9965_v53, %v4114_v4 }
 0x3bb   :  { %v10075_v31 = vrot.slane %v5031_v28, 5  ;;  %v7115_v5 = vrot.slane %v5621_v17, 9  ;;  %v5390_v60 = vld [vmem:[#allocation3 + $0x74] sm:$0x1]  ;;  %v5630_v59 = vld [vmem:[#allocation3 + $0x70] sm:$0xe]  ;;  %v11858_v34 = vsub.f32 %v9804_v38, %v9889_v3  ;;  %v11859_v1 = vsub.f32 %v9821_v22, %v9889_v3 }
 0x3bc   :  { %v5671_v63 = vsel %vm8660_vm13, %v7114_v33, %v5670_v52  ;;  %v5391_v21 = vld [vmem:[#allocation3 + $0x7c] sm:$0x1]  ;;  %v5631_v13 = vld [vmem:[#allocation3 + $0x78] sm:$0xe]  ;;  %v7124_v29 = vrot.slane %v5630_v59, 9  ;;  %v5710_v15 = vrot.slane %v5390_v60, 5  ;;  %v4137_v22 = vadd.f32 %v9965_v53, %v4115_v16 }
 0x3bd   :  { %v4094_v32 = vmul.f32 %v9943_v58, %v11858_v34  ;;  %v10088_v28 = vmul.f32 %v9943_v58, %v11859_v1  ;;  %v5675_v4 = vsel %vm8660_vm13, %v7115_v5, %v5674_v27  ;;  %v7125_v17 = vrot.slane %v5631_v13, 9  ;;  %v10093_v30 = vld [vmem:[#allocation3 + $0x18] sm:$0xf] }
 0x3be   :  { %v5714_v38 = vrot.slane %v5391_v21, 5  ;;  %v4394_v34 = vshrl.u32 %v10046_v14, 16  ;;  %v7194_v33 = vcombine.low %v5671_v63, %v5675_v4  ;;  %v5711_v52 = vsel %vm8660_vm13, %v7124_v29, %v5710_v15  ;;  %v4549_v63 = vld [vmem:[#allocation3 + $0x20] sm:$0xf]  ;;  %v4555_v29 = vld [vmem:[#allocation3 + $0x28] sm:$0xf] }
 0x3bf   :  { %v4397_v60 = vshll.u32 %v10046_v14, 16  ;;  %v5056_v27 = vshrl.u32 %v10093_v30, 16  ;;  %v4402_v5 = vshrl.u32 %v10048_v19, 16  ;;  %v5059_v13 = vshll.u32 %v10093_v30, 16 }
 0x3c0   :  { %v5715_v59 = vsel %vm8660_vm13, %v7125_v17, %v5714_v38  ;;  %v10101_v1 = vrot.slane %v4394_v34, 7  ;;  %7211 = vmatprep.mubr.msk.bf16.mxu0 %vm1328_vm5, %v7194_v33  ;;  %v4118_v14 = vmul.f32 %v9948_v44, %v4096_v41  ;;  %v4116_v16 = vmul.f32 %v9948_v44, %v4094_v32  ;;  %v10114_v38 = vld [vmem:[#allocation3 + $0x70] sm:$0xf] }
 0x3c1   :  { %v7199_v21 = vcombine.low %v5711_v52, %v5715_v59  ;;  %v10110_v4 = vrot.slane %v4402_v5, 7  ;;  %v4405_v17 = vshll.u32 %v10048_v19, 16  ;;  %vm4151_vm12 = vcmp.gt.f32.partialorder %v10052_v6, 0.0 }
 0x3c2   :  { %v4399_v15 = vor.u32 %v4397_v60, %v10101_v1  ;;  %vm4152_vm3 = vcmp.gt.f32.partialorder %v4136_v8, 0.0  ;;  %v4167_v34 = vmul.f32 0.2, %v10052_v6  ;;  %v4168_v33 = vmul.f32 0.2, %v4136_v8 }
 0x3c3   :  { %7216 = vmatprep.mubr.msk.bf16.mxu1 %vm1328_vm5, %v7199_v21  ;;  %vm4153_vm4 = vcmp.gt.f32.partialorder %v4137_v22, 0.0  ;;  %v10120_v32 = vrot.slane %v5056_v27, 4  ;;  %v4407_v52 = vor.u32 %v4405_v17, %v10110_v4  ;;  %v4169_v60 = vmul.f32 0.2, %v4137_v22 }
 0x3c4   :  { %v4550_v41 = vsel %vm11853_vm0, %v4399_v15, %v4549_v63  ;;  %v4183_v19 = vsel %vm4151_vm12, %v10052_v6, %v4167_v34  ;;  %v4184_v59 = vsel %vm4152_vm3, %v4136_v8, %v4168_v33  ;;  %v4140_v5 = vadd.f32 %v9965_v53, %v4118_v14 }
 0x3c5   :  { %11860 = vst [vmem:[#allocation6_spill] sm:$0xff] %v10120_v32  ;;  %4551 = vst [vmem:[#allocation3 + $0x20] sm:$0xf] %v4550_v41  ;;  %v5182_v21 = vshrl.u32 %v10114_v38, 16  ;;  %v4556_v10 = vsel %vm11853_vm0, %v4407_v52, %v4555_v29  ;;  %v7242_v7 = vpack.c.bf16 %v4183_v19, %v4183_v19  ;;  %v7243_v23 = vpack.c.bf16 %v4184_v59, %v4184_v59  ;;  %v4567_v19 = vld [vmem:[#allocation3 + $0x38] sm:$0xf] }
 0x3c6   :  { %v4185_v39 = vsel %vm4153_vm4, %v4137_v22, %v4169_v60  ;;  %4557 = vst [vmem:[#allocation3 + $0x28] sm:$0xf] %v4556_v10  ;;  %vm4156_vm11 = vcmp.gt.f32.partialorder %v4140_v5, 0.0  ;;  %v4172_v15 = vmul.f32 0.2, %v4140_v5  ;;  %v10129_v17 = vrot.slane %v5059_v13, 5 }
 0x3c7   :  { %v7244_v63 = vpack.c.bf16 %v4185_v39, %v4185_v39  ;;  %v4410_v8 = vshrl.u32 %v7242_v7, 16  ;;  %v4418_v14 = vshrl.u32 %v7243_v23, 16  ;;  %v10132_v41 = vrot.slane %v5182_v21, 4  ;;  %v4561_v10 = vld [vmem:[#allocation3 + $0x30] sm:$0xf] }
 0x3c8   :  { %11861 = vst [vmem:[#allocation23_spill] sm:$0xff] %v10129_v17  ;;  %v4188_v33 = vsel %vm4156_vm11, %v4140_v5, %v4172_v15  ;;  %v5185_v29 = vshll.u32 %v10114_v38, 16  ;;  %v4413_v22 = vshll.u32 %v7242_v7, 16  ;;  %v4421_v39 = vshll.u32 %v7243_v23, 16  ;;  %v10145_v21 = vld [vmem:[#allocation3 + $0x70] sm:$0xf] }
 0x3c9   :  { %v4426_v34 = vshrl.u32 %v7244_v63, 16  ;;  %11862 = vst [vmem:[#allocation24_spill] sm:$0xff] %v10132_v41  ;;  %v10135_v52 = vrot.slane %v4410_v8, 7  ;;  %v10137_v60 = vrot.slane %v4418_v14, 7  ;;  %v4429_v59 = vshll.u32 %v7244_v63, 16 }
 0x3ca   :  { %v10141_v27 = vpack.c.bf16 %v4188_v33, %v4188_v33  ;;  %v4117_v5 = vmul.f32 %v9948_v44, %v10088_v28  ;;  %v10149_v14 = vrot.slane %v5185_v29, 5  ;;  %v4138_v23 = vadd.f32 %v9965_v53, %v4116_v16 }
 0x3cb   :  { %v10139_v13 = vrot.slane %v4426_v34, 7  ;;  %v4415_v8 = vor.u32 %v4413_v22, %v10135_v52  ;;  %v4423_v7 = vor.u32 %v4421_v39, %v10137_v60  ;;  %v11874_v41 = vrot.slane %v9921_v47, 9 }
 0x3cc   :  { %v4998_v15 = vld [vmem:[#allocation3 + $0x20] sm:$0xf]  ;;  %11863 = vst [vmem:[#allocation25_spill] sm:$0xff] %v10149_v14  ;;  %vm4154_vm15 = vcmp.gt.f32.partialorder %v4138_v23, 0.0  ;;  %vm6214_vm9 = vcmask 916480  }
 0x3cd   :  { %v5366_v6 = vld [vmem:[#allocation3 + $0x20] sm:$0xf]  ;;  %v5070_v34 = vshrl.u32 %v4998_v15, 16  ;;  %v5073_v9 = vshll.u32 %v4998_v15, 16  ;;  %v7155_v63 = vcombine.low %v10093_v30, %v4998_v15  ;;  %v5367_v18 = vld [vmem:[#allocation3 + $0x28] sm:$0xf]  ;;  %v4562_v36 = vsel %vm11853_vm0, %v4415_v8, %v4561_v10 }
 0x3ce   :  { %v5425_v33 = vshrl.u32 %v5366_v6, 16  ;;  %v5428_v28 = vshll.u32 %v5366_v6, 16  ;;  %v4568_v22 = vsel %vm11853_vm0, %v4423_v7, %v4567_v19  ;;  %v4999_v20 = vld [vmem:[#allocation3 + $0x28] sm:$0xf]  ;;  %v4431_v29 = vor.u32 %v4429_v59, %v10139_v13  ;;  %4563 = vst [vmem:[#allocation3 + $0x30] sm:$0xf] %v4562_v36 }
 0x3cf   :  { %5894 = vrot.lane.b32.xlu1 %v7155_v63, %s7535_s13  ;;  %v5439_v16 = vshrl.u32 %v5367_v18, 16  ;;  %4569 = vst [vmem:[#allocation3 + $0x38] sm:$0xf] %v4568_v22  ;;  %v5537_v15 = vshrl.u32 %v10145_v21, 16  ;;  %v10162_v51 = vrot.slane %v5070_v34, 4  ;;  %v5442_v10 = vshll.u32 %v5367_v18, 16 }
 0x3d0   :  { %v7179_v8 = vcombine.low %v5366_v6, %v5367_v18  ;;  %v5084_v2 = vshrl.u32 %v4999_v20, 16  ;;  %v10164_v19 = vrot.slane %v5073_v9, 5  ;;  %v10166_v7 = vrot.slane %v5425_v33, 4  ;;  %v10177_v6 = vld [vmem:[#allocation3 + $0x78] sm:$0xf] }
 0x3d1   :  { %11864 = vst [vmem:[#allocation26_spill] sm:$0xff] %v10162_v51  ;;  %v5087_v59 = vshll.u32 %v4999_v20, 16  ;;  %v4574_v63 = vsel %vm11853_vm0, %v4431_v29, %v4573_v62  ;;  %v10170_v39 = vrot.slane %v5428_v28, 5  ;;  %v10172_v30 = vrot.slane %v5439_v16, 4  ;;  %v10193_v36 = vld [vmem:[#allocation3 + $0x78] sm:$0xf] }
 0x3d2   :  { %11865 = vst [vmem:[#allocation27_spill] sm:$0xff] %v10164_v19  ;;  %11866 = vst [vmem:[#allocation28_spill] sm:$0xff] %v10166_v7  ;;  %6030 = vrot.lane.b32.xlu0 %v7179_v8, %s7539_s3  ;;  %v4450_v18 = vshrl.u32 %v10141_v27, 16  ;;  %v10179_v9 = vrot.slane %v5442_v10, 5  ;;  %v4139_v34 = vadd.f32 %v9965_v53, %v4117_v5  ;;  %v4170_v33 = vmul.f32 0.2, %v4138_v23 }
 0x3d3   :  { %11867 = vst [vmem:[#allocation29_spill] sm:$0xff] %v10170_v39  ;;  %11868 = vst [vmem:[#allocation30_spill] sm:$0xff] %v10172_v30  ;;  %v10182_v62 = vrot.slane %v5084_v2, 4  ;;  %v10184_v28 = vrot.slane %v5087_v59, 5  ;;  %v4453_v29 = vshll.u32 %v10141_v27, 16  ;;  %v10189_v8 = vrot.slane %v5537_v15, 4 }
 0x3d4   :  { %4575 = vst [vmem:[#allocation3 + $0x40] sm:$0xf] %v4574_v63  ;;  %11869 = vst [vmem:[#allocation31_spill] sm:$0xff] %v10179_v9  ;;  %v10186_v22 = vrot.slane %v4450_v18, 7  ;;  %v4171_v16 = vmul.f32 0.2, %v4139_v34  ;;  %v4186_v59 = vsel %vm4154_vm15, %v4138_v23, %v4170_v33 }
 0x3d5   :  { %11870 = vst [vmem:[#allocation32_spill] sm:$0xff] %v10182_v62  ;;  %11871 = vst [vmem:[#allocation33_spill] sm:$0xff] %v10184_v28  ;;  %v10195_v5 = vld [vmem:[#allocation3 + $0x80] sm:$0xf]  ;;  %v5368_v42 = vld [vmem:[#allocation3 + $0x30] sm:$0xf] }
 0x3d6   :  { %11872 = vst [vmem:[#allocation34_spill] sm:$0xff] %v10189_v8  ;;  %v5369_v2 = vld [vmem:[#allocation3 + $0x38] sm:$0xf]  ;;  %v5000_v14 = vld [vmem:[#allocation3 + $0x30] sm:$0xf]  ;;  %v11873_v18 = vrot.slane %v9919_v55, 5 }
 0x3d7   :  { %v11875_v15 = vrot.slane %v10018_v43, 5  ;;  %v11876_v10 = vrot.slane %v10020_v26, 9  ;;  %v5453_v8 = vshrl.u32 %v5368_v42, 16  ;;  %v5456_v28 = vshll.u32 %v5368_v42, 16  ;;  %v5001_v62 = vld [vmem:[#allocation3 + $0x38] sm:$0xf] }
 0x3d8   :  { %v10203_v27 = vsel %vm8660_vm13, %v11874_v41, %v11873_v18  ;;  %vm4155_vm6 = vcmp.gt.f32.partialorder %v4139_v34, 0.0  ;;  %v5467_v23 = vshrl.u32 %v5369_v2, 16  ;;  %v7180_v47 = vcombine.low %v5368_v42, %v5369_v2 }
 0x3d9   :  { %v10211_v63 = vsel %vm8660_vm13, %v11876_v10, %v11875_v15  ;;  %v7156_v33 = vcombine.low %v4999_v20, %v5000_v14  ;;  %v4455_v41 = vor.u32 %v4453_v29, %v10186_v22  ;;  %v5470_v18 = vshll.u32 %v5369_v2, 16 }
 0x3da   :  { %v5098_v19 = vshrl.u32 %v5000_v14, 16  ;;  %v5101_v43 = vshll.u32 %v5000_v14, 16  ;;  %v7245_v26 = vpack.c.bf16 %v4186_v59, %v4186_v59  ;;  %v10215_v17 = vrot.slane %v5453_v8, 4  ;;  %6032 = vrot.lane.b32.xlu1 %v7180_v47, %s7539_s3  ;;  %v4591_v59 = vld [vmem:[#allocation3 + $0x68] sm:$0xf] }
 0x3db   :  { %v5002_v51 = vld [vmem:[#allocation3 + $0x40] sm:$0xf]  ;;  %5896 = vrot.lane.b32.xlu0 %v7156_v33, %s7535_s13  ;;  %v5112_v10 = vshrl.u32 %v5001_v62, 16  ;;  %v10223_v42 = vrot.slane %v5456_v28, 5  ;;  %v5115_v29 = vshll.u32 %v5001_v62, 16  ;;  %v10225_v8 = vrot.slane %v5467_v23, 4 }
 0x3dc   :  { %11877 = vst [vmem:[#allocation35_spill] sm:$0xff] %v10215_v17  ;;  %v5370_v15 = vld [vmem:[#allocation3 + $0x40] sm:$0xf]  ;;  %v5126_v14 = vshrl.u32 %v5002_v51, 16  ;;  %v5129_v2 = vshll.u32 %v5002_v51, 16  ;;  %v7157_v17 = vcombine.low %v5001_v62, %v5002_v51  ;;  %v10228_v32 = vrot.slane %v5470_v18, 5 }
 0x3dd   :  { %11878 = vst [vmem:[#allocation36_spill] sm:$0xff] %v10223_v42  ;;  %11879 = vst [vmem:[#allocation37_spill] sm:$0xff] %v10225_v8  ;;  %v5481_v47 = vshrl.u32 %v5370_v15, 16  ;;  %v7181_v33 = vcombine.low %v5370_v15, %v9911_v37  ;;  %v10230_v9 = vrot.slane %v5098_v19, 4  ;;  %v10232_v55 = vrot.slane %v5101_v43, 5 }
 0x3de   :  { %11880 = vst [vmem:[#allocation38_spill] sm:$0xff] %v10228_v32  ;;  %v5484_v30 = vshll.u32 %v5370_v15, 16  ;;  %v10234_v20 = vrot.slane %v5112_v10, 4  ;;  %5898 = vrot.lane.b32.xlu1 %v7157_v17, %s7535_s13  ;;  %v4592_v28 = vsel %vm11853_vm0, %v4455_v41, %v4591_v59  ;;  %v4187_v51 = vsel %vm4155_vm6, %v4139_v34, %v4171_v16  ;;  %v4579_v43 = vld [vmem:[#allocation3 + $0x58] sm:$0xf] }
 0x3df   :  { %11881 = vst [vmem:[#allocation39_spill] sm:$0xff] %v10230_v9  ;;  %11882 = vst [vmem:[#allocation40_spill] sm:$0xff] %v10232_v55  ;;  %6034 = vrot.lane.b32.xlu0 %v7181_v33, %s7539_s3  ;;  %v4434_v62 = vshrl.u32 %v7245_v26, 16  ;;  %v10241_v37 = vrot.slane %v5115_v29, 5  ;;  %v10243_v23 = vrot.slane %v5126_v14, 4  ;;  %v10245_v19 = vrot.slane %v5129_v2, 5 }
 0x3e0   :  { %11883 = vst [vmem:[#allocation41_spill] sm:$0xff] %v10234_v20  ;;  %4593 = vst [vmem:[#allocation3 + $0x68] sm:$0xf] %v4592_v28  ;;  %v7246_v18 = vpack.c.bf16 %v4187_v51, %v4187_v51  ;;  %v4534_v10 = vld [vmem:[#allocation3 + $0xc] sm:$0x1]  ;;  %v10247_v15 = vrot.slane %v5481_v47, 4 }
 0x3e1   :  { %11884 = vst [vmem:[#allocation42_spill] sm:$0xff] %v10241_v37  ;;  %11885 = vst [vmem:[#allocation43_spill] sm:$0xff] %v10243_v23  ;;  %v10250_v33 = vrot.slane %v4434_v62, 7  ;;  %v4437_v41 = vshll.u32 %v7245_v26, 16  ;;  %v10252_v59 = vld [vmem:[#allocation3 + $0x14] sm:$0x1] }
 0x3e2   :  { %11886 = vst [vmem:[#allocation44_spill] sm:$0xff] %v10245_v19  ;;  %11887 = vst [vmem:[#allocation45_spill] sm:$0xff] %v10247_v15  ;;  %v10254_v34 = vrot.slane %v5484_v30, 5  ;;  %v4442_v16 = vshrl.u32 %v7246_v18, 16  ;;  %v11889_v29 = vshll.u32 %v10145_v21, 16  ;;  %v5196_v2 = vshrl.u32 %v10193_v36, 16 }
 0x3e3   :  { %v5252_v28 = vld [vmem:[#allocation3 + $0x10] sm:$0xe]  ;;  %v4439_v47 = vor.u32 %v4437_v41, %v10250_v33  ;;  %v4585_v51 = vld [vmem:[#allocation3 + $0x60] sm:$0xf]  ;;  %v5199_v17 = vshll.u32 %v10193_v36, 16  ;;  %v5210_v62 = vshrl.u32 %v10195_v5, 16 }
 0x3e4   :  { %11888 = vst [vmem:[#allocation46_spill] sm:$0xff] %v10254_v34  ;;  %v10258_v14 = vrot.slane %v11889_v29, 5  ;;  %v5213_v26 = vshll.u32 %v10195_v5, 16  ;;  %v4558_v15 = vld [vmem:[#allocation3 + $0x2c] sm:$0x1]  ;;  %v10265_v30 = vrot.slane %v4442_v16, 7 }
 0x3e5   :  { %v4445_v34 = vshll.u32 %v7246_v18, 16  ;;  %v11891_v19 = vshrl.u32 %v10177_v6, 16  ;;  %v10275_v23 = vld [vmem:[#allocation3 + $0x80] sm:$0xf]  ;;  %v4580_v37 = vsel %vm11853_vm0, %v4439_v47, %v4579_v43  ;;  %v11894_v20 = vshll.u32 %v10177_v6, 16 }
 0x3e6   :  { %11890 = vst [vmem:[#allocation47_spill] sm:$0xff] %v10258_v14  ;;  %v11893_v14 = vrot.slane %v9993_v25, 4  ;;  %v10283_v18 = vld [vmem:[#allocation3 + $0x8] sm:$0xe]  ;;  %v7099_v16 = vrot.slane %v5252_v28, 9  ;;  %v11897_v43 = vsub.f32 %v9847_v0, %v9889_v3  ;;  %v10298_v28 = vrot.slane %v5210_v62, 4 }
 0x3e7   :  { %v10269_v29 = vrot.slane %v11891_v19, 4  ;;  %v10281_v32 = vrot.slane %v11894_v20, 5  ;;  %v5305_v19 = vrot.slane %v10252_v59, 5  ;;  %4581 = vst [vmem:[#allocation3 + $0x58] sm:$0xf] %v4580_v37  ;;  %v10300_v8 = vrot.slane %v5213_v26, 5 }
 0x3e8   :  { %v4535_v41 = vsel %vm8473_vm8, %v11893_v14, %v4534_v10  ;;  %v10288_v10 = vrot.slane %v5196_v2, 4  ;;  %v4100_v14 = vmul.f32 %v9943_v58, %v11897_v43  ;;  %v10294_v20 = vld [vmem:[#allocation3 + $0x14] sm:$0x1]  ;;  %v4885_v47 = vld [vmem:[#allocation3 + $0x10] sm:$0xe]  ;;  %11899 = vst [vmem:[#allocation52_spill] sm:$0xff] %v10298_v28 }
 0x3e9   :  { %11892 = vst [vmem:[#allocation48_spill] sm:$0xff] %v10269_v29  ;;  %11895 = vst [vmem:[#allocation49_spill] sm:$0xff] %v10281_v32  ;;  %v4447_v29 = vor.u32 %v4445_v34, %v10265_v30  ;;  %v10296_v32 = vrot.slane %v5199_v17, 5  ;;  %v11901_v34 = vrot.slane %v10110_v4, 4  ;;  %v10309_v25 = vld [vmem:[#allocation3 + $0x68] sm:$0xf] }
 0x3ea   :  { %4536 = vst [vmem:[#allocation3 + $0xc] sm:$0x1] %v4535_v41  ;;  %11896 = vst [vmem:[#allocation50_spill] sm:$0xff] %v10288_v10  ;;  %v5005_v41 = vld [vmem:[#allocation3 + $0x68] sm:$0xf]  ;;  %v5565_v17 = vshrl.u32 %v10275_v23, 16 }
 0x3eb   :  { %11898 = vst [vmem:[#allocation51_spill] sm:$0xff] %v10296_v32  ;;  %11900 = vst [vmem:[#allocation53_spill] sm:$0xff] %v10300_v8  ;;  %v4559_v37 = vsel %vm8473_vm8, %v11901_v34, %v4558_v15  ;;  %v5168_v2 = vshrl.u32 %v5005_v41, 16  ;;  %v7159_v0 = vcombine.low %v5005_v41, %v10114_v38  ;;  %v4586_v43 = vsel %vm11853_vm0, %v4447_v29, %v4585_v51  ;;  %v4886_v32 = vld [vmem:[#allocation3 + $0x18] sm:$0xe] }
 0x3ec   :  { %4560 = vst [vmem:[#allocation3 + $0x2c] sm:$0x1] %v4559_v37  ;;  %4587 = vst [vmem:[#allocation3 + $0x60] sm:$0xf] %v4586_v43  ;;  %v7098_v4 = vrot.slane %v10283_v18, 9  ;;  %v10316_v15 = vsel %vm8660_vm13, %v7099_v16, %v5305_v19  ;;  %v4122_v38 = vmul.f32 %v9948_v44, %v4100_v14  ;;  %v5171_v29 = vshll.u32 %v5005_v41, 16 }
 0x3ed   :  { %v10319_v26 = vld [vmem:[#allocation3 + $0x1c] sm:$0x1]  ;;  %v4564_v51 = vld [vmem:[#allocation3 + $0x34] sm:$0x1]  ;;  %5902 = vrot.lane.b32.xlu1 %v7159_v0, %s7535_s13  ;;  %v5568_v34 = vshll.u32 %v10275_v23, 16  ;;  %v7084_v37 = vrot.slane %v4885_v47, 9 }
 0x3ee   :  { %v4941_v62 = vrot.slane %v10294_v20, 5  ;;  %v4570_v43 = vld [vmem:[#allocation3 + $0x3c] sm:$0x1]  ;;  %v5523_v18 = vshrl.u32 %v10309_v25, 16  ;;  %v5526_v8 = vshll.u32 %v10309_v25, 16  ;;  %v4144_v16 = vadd.f32 %v9965_v53, %v4122_v38 }
 0x3ef   :  { %v7085_v19 = vrot.slane %v4886_v32, 9  ;;  %v10327_v44 = vld [vmem:[#allocation3 + $0x28] sm:$0xe]  ;;  %v10329_v14 = vrot.slane %v5168_v2, 4  ;;  %v10333_v0 = vrot.slane %v5565_v17, 4  ;;  %v4945_v47 = vrot.slane %v10319_v26, 5 }
 0x3f0   :  { %v11904_v28 = vrot.slane %v10135_v52, 4  ;;  %v5003_v42 = vld [vmem:[#allocation3 + $0x58] sm:$0xf]  ;;  %vm4160_vm1 = vcmp.gt.f32.partialorder %v4144_v16, 0.0  ;;  %v4176_v53 = vmul.f32 0.2, %v4144_v16  ;;  %v11906_v52 = vcombine.low %v10145_v21, %v10177_v6 }
 0x3f1   :  { %11902 = vst [vmem:[#allocation54_spill] sm:$0xff] %v10329_v14  ;;  %v10331_v41 = vld [vmem:[#allocation3 + $0xc] sm:$0x1]  ;;  %11903 = vst [vmem:[#allocation55_spill] sm:$0xff] %v10333_v0  ;;  %v11905_v32 = vrot.slane %v10137_v60, 4  ;;  %v5140_v17 = vshrl.u32 %v5003_v42, 16 }
 0x3f2   :  { %v4565_v10 = vsel %vm8473_vm8, %v11904_v28, %v4564_v51  ;;  %v5301_v55 = vrot.slane %v10331_v41, 5  ;;  %v5143_v38 = vshll.u32 %v5003_v42, 16  ;;  %6038 = vrot.lane.b32.xlu1 %v11906_v52, %s7539_s3  ;;  %v10351_v28 = vsel %vm8660_vm13, %v7084_v37, %v4941_v62  ;;  %v4884_v21 = vld [vmem:[#allocation3 + $0x8] sm:$0xe] }
 0x3f3   :  { %4566 = vst [vmem:[#allocation3 + $0x34] sm:$0x1] %v4565_v10  ;;  %v4571_v2 = vsel %vm8473_vm8, %v11905_v32, %v4570_v43  ;;  %v10355_v51 = vsel %vm8660_vm13, %v7085_v19, %v4945_v47  ;;  %v10357_v10 = vld [vmem:[#allocation3 + $0x30] sm:$0xe]  ;;  %v10359_v60 = vrot.slane %v5171_v29, 5  ;;  %v10361_v43 = vrot.slane %v5523_v18, 4 }
 0x3f4   :  { %4572 = vst [vmem:[#allocation3 + $0x3c] sm:$0x1] %v4571_v2  ;;  %v4192_v32 = vsel %vm4160_vm1, %v4144_v16, %v4176_v53  ;;  %v10363_v0 = vrot.slane %v5568_v34, 5  ;;  %v5004_v6 = vld [vmem:[#allocation3 + $0x60] sm:$0xf]  ;;  %v10365_v14 = vrot.slane %v5526_v8, 5  ;;  %v10369_v62 = vsel %vm8660_vm13, %v7098_v4, %v5301_v55 }
 0x3f5   :  { %11907 = vst [vmem:[#allocation56_spill] sm:$0xff] %v10359_v60  ;;  %11908 = vst [vmem:[#allocation57_spill] sm:$0xff] %v10361_v43  ;;  %v5372_v52 = vld [vmem:[#allocation3 + $0x60] sm:$0xf]  ;;  %v7251_v37 = vpack.c.bf16 %v4192_v32, %v4192_v32  ;;  %v7102_v19 = vrot.slane %v10327_v44, 9  ;;  %v5154_v29 = vshrl.u32 %v5004_v6, 16  ;;  %v7158_v2 = vcombine.low %v5003_v42, %v5004_v6 }
 0x3f6   :  { %11909 = vst [vmem:[#allocation58_spill] sm:$0xff] %v10363_v0  ;;  %11910 = vst [vmem:[#allocation59_spill] sm:$0xff] %v10365_v14  ;;  %v4552_v47 = vld [vmem:[#allocation3 + $0x24] sm:$0x1]  ;;  %v10374_v34 = vld [vmem:[#allocation3 + $0x2c] sm:$0x1]  ;;  %v11914_v55 = vcombine.low %v10193_v36, %v10195_v5 }
 0x3f7   :  { %11911 = vst [vmem:[#allocation60_spill] sm:$0xff] %v10374_v34  ;;  %v7103_v16 = vrot.slane %v10357_v10, 9  ;;  %v10377_v53 = vld [vmem:[#allocation3 + $0xc] sm:$0x1]  ;;  %v10379_v8 = vrot.slane %v5140_v17, 4  ;;  %v10381_v0 = vrot.slane %v5143_v38, 5  ;;  %5900 = vrot.lane.b32.xlu0 %v7158_v2, %s7535_s13  ;;  %v7170_v10 = vcombine.low %v10369_v62, %v10316_v15 }
 0x3f8   :  { %5904 = vrot.lane.b32.xlu1 %v11914_v55, %s7535_s13  ;;  %v4482_v4 = vshrl.u32 %v7251_v37, 16  ;;  %v7083_v42 = vrot.slane %v4884_v21, 9  ;;  %v4889_v44 = vld [vmem:[#allocation3 + $0x30] sm:$0xe]  ;;  %v5157_v32 = vshll.u32 %v5004_v6, 16  ;;  %v5509_v18 = vshrl.u32 %v5372_v52, 16 }
 0x3f9   :  { %11912 = vst [vmem:[#allocation61_spill] sm:$0xff] %v10379_v8  ;;  %11913 = vst [vmem:[#allocation62_spill] sm:$0xff] %v10381_v0  ;;  %v5512_v14 = vshll.u32 %v5372_v52, 16  ;;  %v4615_v17 = vld [vmem:[#allocation3 + $0x88] sm:$0xf]  ;;  %v4485_v0 = vshll.u32 %v7251_v37, 16  ;;  %v7182_v15 = vcombine.low %v5372_v52, %v10309_v25 }
 0x3fa   :  { %v4890_v43 = vld [vmem:[#allocation3 + $0x38] sm:$0xe]  ;;  %v10390_v38 = vrot.slane %v4482_v4, 7  ;;  %v10392_v8 = vld [vmem:[#allocation3 + $0x34] sm:$0x1]  ;;  %v5317_v36 = vrot.slane %v10374_v34, 5 }
 0x3fb   :  { %11915 = vst [vmem:[#allocation63_spill] sm:$0xff] %v10392_v8  ;;  %v4937_v5 = vrot.slane %v10377_v53, 5  ;;  %v10396_v21 = vld [vmem:[#allocation3 + $0x1c] sm:$0x1]  ;;  %v10398_v6 = vld [vmem:[#allocation3 + $0x18] sm:$0xe]  ;;  %6036 = vrot.lane.b32.xlu0 %v7182_v15, %s7539_s3 }
 0x3fc   :  { %v4576_v2 = vld [vmem:[#allocation3 + $0x44] sm:$0x1]  ;;  %v10400_v55 = vrot.slane %v5154_v29, 4  ;;  %v5321_v62 = vrot.slane %v10392_v8, 5  ;;  %v10404_v4 = vld [vmem:[#allocation3 + $0x34] sm:$0x1]  ;;  %v4487_v34 = vor.u32 %v4485_v0, %v10390_v38 }
 0x3fd   :  { %11917 = vst [vmem:[#allocation65_spill] sm:$0xff] %v10404_v4  ;;  %v10406_v37 = vld [vmem:[#allocation3 + $0x3c] sm:$0x1]  ;;  %v11919_v60 = vrot.slane %v10101_v1, 4  ;;  %v7088_v39 = vrot.slane %v4889_v44, 9  ;;  %v4957_v7 = vrot.slane %v10404_v4, 5  ;;  %v10423_v1 = vsel %vm8660_vm13, %v7083_v42, %v4937_v5 }
 0x3fe   :  { %11916 = vst [vmem:[#allocation64_spill] sm:$0xff] %v10400_v55  ;;  %11918 = vst [vmem:[#allocation66_spill] sm:$0xff] %v10406_v37  ;;  %v7089_v29 = vrot.slane %v4890_v43, 9  ;;  %v10414_v55 = vld [vmem:[#allocation3 + $0x20] sm:$0xe]  ;;  %v10416_v52 = vrot.slane %v5157_v32, 5  ;;  %v4616_v32 = vsel %vm11853_vm0, %v4487_v34, %v4615_v17  ;;  %v10441_v5 = vsel %vm8660_vm13, %v7103_v16, %v5321_v62 }
 0x3ff   :  { %v4553_v9 = vsel %vm8473_vm8, %v11919_v60, %v4552_v47  ;;  %v4582_v25 = vld [vmem:[#allocation3 + $0x5c] sm:$0x1]  ;;  %v10418_v8 = vrot.slane %v5509_v18, 4  ;;  %v4961_v0 = vrot.slane %v10406_v37, 5  ;;  %v4888_v60 = vld [vmem:[#allocation3 + $0x28] sm:$0xe]  ;;  %v10433_v18 = vsel %vm8660_vm13, %v7102_v19, %v5317_v36  ;;  %5972 = vrot.lane.b32.xlu0 %v7170_v10, %s7540_s18 }
 0x400   :  { %4554 = vst [vmem:[#allocation3 + $0x24] sm:$0x1] %v4553_v9  ;;  %11920 = vst [vmem:[#allocation67_spill] sm:$0xff] %v10416_v52  ;;  %v4588_v47 = vld [vmem:[#allocation3 + $0x64] sm:$0x1]  ;;  %v10426_v43 = vrot.slane %v5512_v14, 5  ;;  %v10457_v16 = vsel %vm8660_vm13, %v7088_v39, %v4957_v7 }
 0x401   :  { %11921 = vst [vmem:[#allocation68_spill] sm:$0xff] %v10418_v8  ;;  %v4594_v44 = vld [vmem:[#allocation3 + $0x6c] sm:$0x1]  ;;  %v10435_v15 = vld [vmem:[#allocation3 + $0x38] sm:$0xe]  ;;  %v7100_v14 = vrot.slane %v10398_v6, 9  ;;  %v10461_v6 = vsel %vm8660_vm13, %v7089_v29, %v4961_v0 }
 0x402   :  { %11922 = vst [vmem:[#allocation69_spill] sm:$0xff] %v10426_v43  ;;  %v10437_v42 = vld [vmem:[#allocation3 + $0x2c] sm:$0x1]  ;;  %4617 = vst [vmem:[#allocation3 + $0x88] sm:$0xf] %v4616_v32  ;;  %v5309_v9 = vrot.slane %v10396_v21, 5 }
 0x403   :  { %11923 = vst [vmem:[#allocation70_spill] sm:$0xff] %v10437_v42  ;;  %v11924_v43 = vrot.slane %v10139_v13, 4  ;;  %v10449_v19 = vld [vmem:[#allocation3 + $0x3c] sm:$0x1]  ;;  %v10451_v17 = vld [vmem:[#allocation3 + $0x40] sm:$0xe] }
 0x404   :  { %11925 = vst [vmem:[#allocation71_spill] sm:$0xff] %v10449_v19  ;;  %v7101_v13 = vrot.slane %v10414_v55, 9  ;;  %v4887_v62 = vld [vmem:[#allocation3 + $0x20] sm:$0xe]  ;;  %v7087_v32 = vrot.slane %v4888_v60, 9  ;;  %v4953_v36 = vrot.slane %v10437_v42, 5 }
 0x405   :  { %v4577_v34 = vsel %vm8473_vm8, %v11924_v43, %v4576_v2  ;;  %v10464_v2 = vld [vmem:[#allocation3 + $0x68] sm:$0xe]  ;;  %v11926_v39 = vrot.slane %v10250_v33, 4  ;;  %v10473_v29 = vld [vmem:[#allocation3 + $0x58] sm:$0xe]  ;;  %v5325_v60 = vrot.slane %v10449_v19, 5  ;;  %v7172_v43 = vcombine.low %v10433_v18, %v10441_v5 }
 0x406   :  { %4578 = vst [vmem:[#allocation3 + $0x44] sm:$0x1] %v4577_v34  ;;  %v10475_v55 = vld [vmem:[#allocation3 + $0x74] sm:$0x1]  ;;  %v10477_v0 = vld [vmem:[#allocation3 + $0x70] sm:$0xe] }
 0x407   :  { %v4583_v7 = vsel %vm8473_vm8, %v11926_v39, %v4582_v25  ;;  %11927 = vst [vmem:[#allocation72_spill] sm:$0xff] %v10475_v55  ;;  %v10479_v34 = vld [vmem:[#allocation3 + $0x78] sm:$0xe]  ;;  %v11928_v33 = vrot.slane %v10265_v30, 4  ;;  %v11929_v39 = vrot.slane %v10186_v22, 4  ;;  %v10508_v22 = vsel %vm8660_vm13, %v7100_v14, %v5309_v9  ;;  %v7490_v18 = vld [vmem:[%s11634_s8 + $0x30] sm:$0xff]  }
 0x408   :  { %v7489_v10 = vld [vmem:[%s11634_s8 + $0x38] sm:$0xff]   ;;  %4584 = vst [vmem:[#allocation3 + $0x5c] sm:$0x1] %v4583_v7  ;;  %v10494_v52 = vld [vmem:[#allocation3 + $0x60] sm:$0xe]  ;;  %v10521_v9 = vsel %vm8660_vm13, %v7087_v32, %v4953_v36  ;;  %v11932_v32 = vsub.f32 %v9860_v61, %v9889_v3 }
 0x409   :  { %v4589_v25 = vsel %vm8473_vm8, %v11928_v33, %v4588_v47  ;;  %v4595_v8 = vsel %vm8473_vm8, %v11929_v39, %v4594_v44  ;;  %v10496_v37 = vld [vmem:[#allocation3 + $0x58] sm:$0xe]  ;;  %v10498_v4 = vld [vmem:[#allocation3 + $0x7c] sm:$0x1]  ;;  %v10504_v7 = vld [vmem:[#allocation3 + $0x24] sm:$0x1]  ;;  %6336 = vmatpush1.bf16.msra.mxu0 %v7489_v10  ;;  %7367 = vmatpush1.bf16.msra.mxu1 %v7489_v10 }
 0x40a   :  { %11930 = vst [vmem:[#allocation73_spill] sm:$0xff] %v10498_v4  ;;  %v10510_v47 = vld [vmem:[#allocation3 + $0x24] sm:$0x1]  ;;  %v7086_v44 = vrot.slane %v4887_v62, 9  ;;  %4590 = vst [vmem:[#allocation3 + $0x64] sm:$0x1] %v4589_v25  ;;  %6337 = vmatprep.subr.bf16.mxu0 %v11783_v40  ;;  %7359 = vmatprep.subr.bf16.mxu1 %v11783_v40  ;;  %v4101_v14 = vmul.f32 %v9943_v58, %v11932_v32 }
 0x40b   :  { %4596 = vst [vmem:[#allocation3 + $0x6c] sm:$0x1] %v4595_v8  ;;  %v10512_v33 = vld [vmem:[#allocation3 + $0x80] sm:$0xe]  ;;  %v5313_v5 = vrot.slane %v10504_v7, 5  ;;  %v4949_v39 = vrot.slane %v10510_v47, 5  ;;  %v11931_v8 = vcombine.low %v10351_v28, %v10355_v51 }
 0x40c   :  { %v10524_v62 = vld [vmem:[#allocation3 + $0x68] sm:$0xe]  ;;  %v7092_v10 = vrot.slane %v10494_v52, 9  ;;  %v7093_v25 = vrot.slane %v10464_v2, 9  ;;  %v10534_v30 = vld [vmem:[#allocation3 + $0x60] sm:$0xe] }
 0x40d   :  { %5838 = vrot.lane.b32.xlu0 %v11931_v8, %s7532_s20  ;;  %v10541_v19 = vld [vmem:[#allocation3 + $0x88] sm:$0xf]  ;;  %v10545_v42 = vsel %vm8660_vm13, %v7101_v13, %v5313_v5  ;;  %v7109_v28 = vrot.slane %v10477_v0, 9  ;;  %v5345_v51 = vrot.slane %v10475_v55, 5  ;;  %v7110_v52 = vrot.slane %v10479_v34, 9  ;;  %6338 = vmatpush1.bf16.msra.mxu0 %v7490_v18 }
 0x40e   :  { %v5579_v2 = vshrl.u32 %v10541_v19, 16  ;;  %v7184_v8 = vcombine.low %v10275_v23, %v10541_v19  ;;  %v10553_v61 = vld [vmem:[#allocation3 + $0x44] sm:$0x1]  ;;  %v10557_v3 = vsel %vm8660_vm13, %v7086_v44, %v4949_v39  ;;  %v5349_v58 = vrot.slane %v10498_v4, 5  ;;  %7368 = vmatpush1.bf16.msra.mxu1 %v7490_v18  ;;  %6339 = vmatprep.subr.bf16.mxu0 %v11783_v40  ;;  %v7491_v44 = vld [vmem:[%s11634_s8 + $0x28] sm:$0xff]  }
 0x40f   :  { %11933 = vst [vmem:[#allocation74_spill] sm:$0xff] %v10553_v61  ;;  %v5329_v13 = vrot.slane %v10553_v61, 5  ;;  %v7107_v0 = vrot.slane %v10534_v30, 9  ;;  %v7108_v34 = vrot.slane %v10524_v62, 9  ;;  %v10563_v5 = vld [vmem:[#allocation3 + $0x84] sm:$0x1]  ;;  %7360 = vmatprep.subr.bf16.mxu1 %v11783_v40 }
 0x410   :  { %v7111_v23 = vrot.slane %v10512_v33, 9  ;;  %v10571_v39 = vrot.slane %v5579_v2, 4  ;;  %6040 = vrot.lane.b32.xlu1 %v7184_v8, %s7539_s3  ;;  %v11935_v30 = vrot.slane %v10435_v15, 9  ;;  %v10580_v62 = vld [vmem:[#allocation3 + $0x5c] sm:$0x1]  ;;  %v7171_v8 = vcombine.low %v10508_v22, %v10545_v42 }
 0x411   :  { %5976 = vrot.lane.b32.xlu0 %v7172_v43, %s7540_s18  ;;  %11936 = vst [vmem:[#allocation76_spill] sm:$0xff] %v10580_v62  ;;  %v10582_v32 = vld [vmem:[#allocation3 + $0x5c] sm:$0x1]  ;;  %v10584_v36 = vld [vmem:[#allocation3 + $0x70] sm:$0xe]  ;;  %v4969_v43 = vrot.slane %v10580_v62, 5  ;;  %v10607_v42 = vsel %vm8660_vm13, %v7109_v28, %v5345_v51  ;;  %v10611_v22 = vsel %vm8660_vm13, %v7110_v52, %v5349_v58  ;;  %6340 = vmatpush1.bf16.msra.mxu0 %v7491_v44 }
 0x412   :  { %11934 = vst [vmem:[#allocation75_spill] sm:$0xff] %v10571_v39  ;;  %v5326_v33 = vsel %vm8660_vm13, %v11935_v30, %v5325_v60  ;;  %11937 = vst [vmem:[#allocation77_spill] sm:$0xff] %v10582_v32  ;;  %v7518_v2 = vld [vmem:[%s11632_s6] ss:$0 sm:$0xff]  ;;  %v10594_v60 = vld [vmem:[#allocation3 + $0x64] sm:$0x1]  ;;  %7369 = vmatpush1.bf16.msra.mxu1 %v7491_v44  ;;  %6341 = vmatprep.subr.bf16.mxu0 %v11783_v40  ;;  %v11942_v52 = vcombine.low %v10457_v16, %v10461_v6 }
 0x413   :  { %v4123_v18 = vmul.f32 %v7518_v2, %v4101_v14  ;;  %11938 = vst [vmem:[#allocation78_spill] sm:$0xff] %v10594_v60  ;;  %v10596_v30 = vld [vmem:[#allocation3 + $0x6c] sm:$0x1]  ;;  %v5333_v39 = vrot.slane %v10582_v32, 5  ;;  %v4973_v4 = vrot.slane %v10594_v60, 5  ;;  %v11940_v2 = vrot.slane %v10451_v17, 9  ;;  %7361 = vmatprep.subr.bf16.mxu1 %v11783_v40 }
 0x414   :  { %11939 = vst [vmem:[#allocation79_spill] sm:$0xff] %v10596_v30  ;;  %v4977_v55 = vrot.slane %v10596_v30, 5  ;;  %v10601_v61 = vld [vmem:[#allocation3 + $0x64] sm:$0x1]  ;;  %v10603_v14 = vld [vmem:[#allocation3 + $0x6c] sm:$0x1]  ;;  %v11941_v17 = vcombine.low %v10203_v27, %v10423_v1 }
 0x415   :  { %v5330_v15 = vsel %vm8660_vm13, %v11940_v2, %v5329_v13  ;;  %v5337_v32 = vrot.slane %v10601_v61, 5  ;;  %v5341_v62 = vrot.slane %v10603_v14, 5  ;;  %v10619_v30 = vld [vmem:[#allocation3 + $0x74] sm:$0x1]  ;;  %v10621_v60 = vld [vmem:[#allocation3 + $0x7c] sm:$0x1]  ;;  %5842 = vrot.lane.b32.xlu0 %v11942_v52, %s7532_s20  ;;  %v10642_v44 = vsel %vm8660_vm13, %v7092_v10, %v4973_v4 }
 0x416   :  { %v7519_v28 = vld [vmem:[%s11633_s7] ss:$0 sm:$0xff]  ;;  %5836 = vrot.lane.b32.xlu1 %v11941_v17, %s7532_s20  ;;  %v11943_v58 = vrot.slane %v10473_v29, 9  ;;  %v5353_v27 = vrot.slane %v10563_v5, 5  ;;  %v4896_v1 = vld [vmem:[#allocation3 + $0x78] sm:$0xe]  ;;  %v5034_v10 = vor.u32 %v10075_v31, %v10073_v54 }
 0x417   :  { %v4145_v51 = vadd.f32 %v7519_v28, %v4123_v18  ;;  %v10646_v18 = vsel %vm8660_vm13, %v7093_v25, %v4977_v55  ;;  %v4627_v2 = vld [vmem:[#allocation3] sm:$0xf]  ;;  %v11944_v6 = vrot.slane %v10496_v37, 9  ;;  %v10660_v4 = vsel %vm8660_vm13, %v7107_v0, %v5337_v32  ;;  %v7493_v0 = vld [vmem:[%s11634_s8 + $0x18] sm:$0xff]   ;;  %v7520_v52 = vld [vmem:[#allocation3 + $0x4] sm:$0x1] }
 0x418   :  { %v4970_v13 = vsel %vm8660_vm13, %v11943_v58, %v4969_v43  ;;  %v7492_v16 = vld [vmem:[%s11634_s8 + $0x20] sm:$0xff]   ;;  %v7094_v55 = vrot.slane %v10584_v36, 9  ;;  %v7173_v25 = vcombine.low %v5326_v33, %v5330_v15  ;;  %v10667_v43 = vsel %vm8660_vm13, %v7108_v34, %v5341_v62  ;;  %v10682_v34 = vld [vmem:[#allocation3 + $0x88] sm:$0xf] }
 0x419   :  { %v10656_v29 = vsel %vm8660_vm13, %v11944_v6, %v5333_v39  ;;  %v4981_v37 = vrot.slane %v10619_v30, 5  ;;  %v5048_v39 = vor.u32 %v10070_v50, %v10068_v45  ;;  %6342 = vmatpush1.bf16.msra.mxu0 %v7492_v16  ;;  %7370 = vmatpush1.bf16.msra.mxu1 %v7492_v16  ;;  %v7150_v36 = vcombine.low %v10211_v63, %v4970_v13  ;;  %v4628_v33 = vld [vmem:[#allocation3 + $0x8] sm:$0xf] }
 0x41a   :  { %v7151_v54 = vcombine.low %v10642_v44, %v10646_v18  ;;  %v10680_v31 = vsel %vm8660_vm13, %v7111_v23, %v5353_v27  ;;  %vm4161_vm14 = vcmp.gt.f32.partialorder %v4145_v51, 0.0  ;;  %6343 = vmatprep.subr.bf16.mxu0 %v11783_v40  ;;  %7362 = vmatprep.subr.bf16.mxu1 %v11783_v40  ;;  %v7174_v63 = vcombine.low %v10656_v29, %v10660_v4  ;;  %v4315_v29 = vld [vmem:[#allocation3 + $0x8c] sm:$0x1] }
 0x41b   :  { %5974 = vrot.lane.b32.xlu1 %v7171_v8, %s7540_s18  ;;  %5978 = vrot.lane.b32.xlu0 %v7173_v25, %s7540_s18  ;;  %v7095_v62 = vrot.slane %v4896_v1, 9  ;;  %v4985_v32 = vrot.slane %v10621_v60, 5  ;;  %v4177_v23 = vmul.f32 0.2, %v4145_v51  ;;  %v7175_v15 = vcombine.low %v10667_v43, %v10607_v42  ;;  %v7494_v1 = vld [vmem:[%s11634_s8 + $0x10] sm:$0xff]  }
 0x41c   :  { %v4660_v28 = vshrl.u32 %v4627_v2, 16  ;;  %v4663_v17 = vshll.u32 %v4627_v2, 16  ;;  %v4669_v58 = vshll.u32 %v7520_v52, 16  ;;  %v11945_v13 = vshll.u32 %v10541_v19, 16 }
 0x41d   :  { %v7176_v8 = vcombine.low %v10611_v22, %v10680_v31  ;;  %v10701_v18 = vsel %vm8660_vm13, %v7094_v55, %v4981_v37  ;;  %v4193_v27 = vsel %vm4161_vm14, %v4145_v51, %v4177_v23  ;;  %6344 = vmatpush1.bf16.msra.mxu0 %v7493_v0  ;;  %7371 = vmatpush1.bf16.msra.mxu1 %v7493_v0  ;;  %v4674_v55 = vshrl.u32 %v4628_v33, 16  ;;  %v10720_v0 = vld [vmem:[#allocation3 + $0x84] sm:$0x1]  ;;  %v10722_v23 = vld [vmem:[#allocation3 + $0x80] sm:$0xe] }
 0x41e   :  { %v10695_v44 = vrot.slane %v11945_v13, 5  ;;  %v7252_v2 = vpack.c.bf16 %v4193_v27, %v4193_v27  ;;  %v4662_v16 = vrot.slane %v4660_v28, 4  ;;  %v4665_v6 = vrot.slane %v4663_v17, 5  ;;  %6345 = vmatprep.subr.bf16.mxu0 %v11783_v40  ;;  %7363 = vmatprep.subr.bf16.mxu1 %v11783_v40  ;;  %v4629_v27 = vld [vmem:[#allocation3 + $0x10] sm:$0xf] }
 0x41f   :  { %v11946_v51 = vcombine.low %v10557_v3, %v10521_v9  ;;  %5844 = vrot.lane.b32.xlu0 %v7150_v36, %s7532_s20  ;;  %v10717_v4 = vsel %vm8660_vm13, %v7095_v62, %v4985_v32  ;;  %v4677_v25 = vshll.u32 %v4628_v33, 16  ;;  %v4683_v37 = vshll.u32 %v10377_v53, 16  ;;  %v7495_v3 = vld [vmem:[%s11634_s8 + $0x8] sm:$0xff]   ;;  %v4621_v62 = vld [vmem:[#allocation3 + $0x90] sm:$0xf] }
 0x420   :  { %v4490_v28 = vshrl.u32 %v7252_v2, 16  ;;  %v4666_v17 = vor.u32 %v4665_v6, %v4662_v16  ;;  %v4671_v52 = vrot.slane %v4669_v58, 5  ;;  %v5037_v9 = vshll.u32 %v10331_v41, 16  ;;  %v4630_v16 = vld [vmem:[#allocation3 + $0x18] sm:$0xf] }
 0x421   :  { %5840 = vrot.lane.b32.xlu1 %v11946_v51, %s7532_s20  ;;  %v4493_v36 = vshll.u32 %v7252_v2, 16  ;;  %v4676_v32 = vrot.slane %v4674_v55, 4  ;;  %v4679_v13 = vrot.slane %v4677_v25, 5  ;;  %v5035_v33 = vrot.slane %v5034_v10, 4  ;;  %6346 = vmatpush1.bf16.msra.mxu0 %v7494_v1 }
 0x422   :  { %7372 = vmatpush1.bf16.msra.mxu1 %v7494_v1  ;;  %v10728_v53 = vrot.slane %v4490_v28, 7  ;;  %v4667_v51 = vrot.slane %v4666_v17, 4  ;;  %v4685_v19 = vrot.slane %v4683_v37, 5  ;;  %v5051_v58 = vshll.u32 %v10252_v59, 16  ;;  %6347 = vmatprep.subr.bf16.mxu0 %v11783_v40 }
 0x423   :  { %7364 = vmatprep.subr.bf16.mxu1 %v11783_v40  ;;  %5980 = vrot.lane.b32.xlu0 %v7174_v63, %s7540_s18  ;;  %v4680_v41 = vor.u32 %v4679_v13, %v4676_v32  ;;  %v5039_v10 = vrot.slane %v5037_v9, 5  ;;  %v5049_v1 = vrot.slane %v5048_v39, 4  ;;  %v4316_v2 = vsel %vm8479_vm7, 0, %v4315_v29  ;;  %v7497_v39 = vld [vmem:[%s11634_s8] sm:$0xff]  }
 0x424   :  { %v7152_v59 = vcombine.low %v10701_v18, %v10717_v4  ;;  %v4495_v6 = vor.u32 %v4493_v36, %v10728_v53  ;;  %4317 = vst [vmem:[#allocation3 + $0x8c] sm:$0x1] %v4316_v2  ;;  %v7096_v55 = vrot.slane %v10722_v23, 9  ;;  %v4672_v63 = vsel %vm7677_vm2, %v4667_v51, %v4671_v52  ;;  %v4898_v2 = vld [vmem:[#allocation3 + $0x88] sm:$0xe] }
 0x425   :  { %5846 = vrot.lane.b32.xlu1 %v7151_v54, %s7532_s20  ;;  %v4989_v54 = vrot.slane %v10720_v0, 5  ;;  %v4681_v25 = vrot.slane %v4680_v41, 4  ;;  %v5040_v45 = vsel %vm7677_vm2, %v5035_v33, %v5039_v10  ;;  %v5053_v50 = vrot.slane %v5051_v58, 5  ;;  %6348 = vmatpush1.bf16.msra.mxu0 %v7495_v3  ;;  %v10780_v58 = vld [vmem:[#allocation3 + $0x24] sm:$0x1] }
 0x426   :  { %7373 = vmatpush1.bf16.msra.mxu1 %v7495_v3  ;;  %v4622_v18 = vsel %vm11853_vm0, %v4495_v6, %v4621_v62  ;;  %v4688_v29 = vshrl.u32 %v4629_v27, 16  ;;  %v4691_v4 = vshll.u32 %v4629_v27, 16  ;;  %v4697_v37 = vshll.u32 %v10294_v20, 16  ;;  %6349 = vmatprep.subr.bf16.mxu0 %v11783_v40  ;;  %v7522_v27 = vld [vmem:[#allocation3 + $0x1c] sm:$0x1] }
 0x427   :  { %7365 = vmatprep.subr.bf16.mxu1 %v11783_v40  ;;  %5984 = vrot.lane.b32.xlu0 %v7176_v8, %s7540_s18  ;;  %4623 = vst [vmem:[#allocation3 + $0x90] sm:$0xf] %v4622_v18  ;;  %v4686_v12 = vsel %vm7677_vm2, %v4681_v25, %v4685_v19  ;;  %v5054_v20 = vsel %vm7677_vm2, %v5049_v1, %v5053_v50  ;;  %v4702_v28 = vshrl.u32 %v4630_v16, 16  ;;  %v4705_v17 = vshll.u32 %v4630_v16, 16  ;;  %v7521_v19 = vld [vmem:[#allocation3 + $0x14] sm:$0x1] }
 0x428   :  { %v7138_v52 = vcombine.low %v4672_v63, %v4686_v12  ;;  %v10769_v9 = vcombine.low %v5040_v45, %v5054_v20  ;;  %v4690_v3 = vrot.slane %v4688_v29, 4  ;;  %v4693_v42 = vrot.slane %v4691_v4, 5  ;;  %v7498_v1 = vld [vmem:[%s11634_s8 + $0x40] sm:$0xff]   ;;  %v11950_v29 = vld [vmem:[#allocation30_spill] sm:$0xff]  ;;  %v11951_v4 = vld [vmem:[#allocation31_spill] sm:$0xff]  ;;  %s7541_s8 = smov 112  }
 0x429   :  { %5982 = vrot.lane.b32.xlu1 %v7175_v15, %s7540_s18  ;;  %v4699_v43 = vrot.slane %v4697_v37, 5  ;;  %v4704_v15 = vrot.slane %v4702_v28, 4  ;;  %v4707_v36 = vrot.slane %v4705_v17, 5  ;;  %v4711_v22 = vshll.u32 %v10319_v26, 16  ;;  %6350 = vmatpush1.bf16.msra.mxu0 %v7497_v39 }
 0x42a   :  { %7374 = vmatpush1.bf16.msra.mxu1 %v7497_v39  ;;  %v4694_v31 = vor.u32 %v4693_v42, %v4690_v3  ;;  %v5403_v8 = vor.u32 %v10066_v11, %v10064_v57  ;;  %v5406_v62 = vshll.u32 %v7521_v19, 16  ;;  %v5417_v32 = vor.u32 %v10061_v48, %v10059_v24  ;;  %6365 = vmatprep.subr.bf16.mxu0 %v11783_v40  ;;  %v11947_v57 = vld [vmem:[#allocation28_spill] sm:$0xff]  ;;  %v11948_v11 = vld [vmem:[#allocation29_spill] sm:$0xff] }
 0x42b   :  { %7366 = vmatprep.subr.bf16.mxu1 %v11783_v40  ;;  %5796 = vrot.lane.b32.xlu0 %v7138_v52, %s7533_s12  ;;  %v4618_v26 = vld [vmem:[#allocation3 + $0x8c] sm:$0x1]  ;;  %v4708_v13 = vor.u32 %v4707_v36, %v4704_v15  ;;  %v4713_v33 = vrot.slane %v4711_v22, 5  ;;  %v5420_v51 = vshll.u32 %v7522_v27, 16  ;;  %v5431_v16 = vor.u32 %v11948_v11, %v11947_v57  ;;  %v11956_v27 = vld [vmem:[#allocation32_spill] sm:$0xff] }
 0x42c   :  { %v11949_v24 = vrot.slane %v10390_v38, 4  ;;  %v4695_v40 = vrot.slane %v4694_v31, 4  ;;  %v5404_v41 = vrot.slane %v5403_v8, 4  ;;  %v5408_v10 = vrot.slane %v5406_v62, 5  ;;  %v10797_v39 = vld [vmem:[#allocation3 + $0x2c] sm:$0x1] }
 0x42d   :  { %5848 = vrot.lane.b32.xlu1 %v7152_v59, %s7532_s20  ;;  %v4709_v59 = vrot.slane %v4708_v13, 4  ;;  %v5418_v6 = vrot.slane %v5417_v32, 4  ;;  %v5422_v63 = vrot.slane %v5420_v51, 5  ;;  %v5432_v25 = vrot.slane %v5431_v16, 4  ;;  %6366 = vmatpush2.bf16.msra.mxu0 %v7498_v1  ;;  %v11953_v31 = vld [vmem:[#allocation23_spill] sm:$0xff]  ;;  %v11954_v62 = vld [vmem:[#allocation26_spill] sm:$0xff] }
 0x42e   :  { %v4619_v48 = vsel %vm8473_vm8, %v11949_v24, %v4618_v26  ;;  %v10791_v45 = vld [vmem:[#allocation3 + $0x90] sm:$0xf]  ;;  %v4700_v38 = vsel %vm7677_vm2, %v4695_v40, %v4699_v43  ;;  %v5409_v50 = vsel %vm7677_vm2, %v5404_v41, %v5408_v10  ;;  %v5434_v18 = vshll.u32 %v10780_v58, 16  ;;  %7375 = vmatpush2.bf16.msra.mxu1 %v7498_v1  ;;  %v11955_v32 = vld [vmem:[#allocation27_spill] sm:$0xff]  ;;  %v11957_v51 = vld [vmem:[#allocation33_spill] sm:$0xff] }
 0x42f   :  { %4620 = vst [vmem:[#allocation3 + $0x8c] sm:$0x1] %v4619_v48  ;;  %v5445_v37 = vor.u32 %v11951_v4, %v11950_v29  ;;  %v5227_v12 = vshll.u32 %v10682_v34, 16  ;;  %v7161_v20 = vcombine.low %v10682_v34, %v10791_v45  ;;  %v4990_v28 = vsel %vm8660_vm13, %v7096_v55, %v4989_v54  ;;  %v11952_v54 = vld [vmem:[#allocation6_spill] sm:$0xff]  ;;  %v11958_v11 = vld [vmem:[#allocation60_spill] sm:$0xff]  ;;  %v11959_v1 = vld [vmem:[#allocation39_spill] sm:$0xff] }
 0x430   :  { %v4714_v17 = vsel %vm7677_vm2, %v4709_v59, %v4713_v33  ;;  %v5238_v52 = vshrl.u32 %v10791_v45, 16  ;;  %v7097_v3 = vrot.slane %v4898_v2, 9  ;;  %v5423_v42 = vsel %vm7677_vm2, %v5418_v6, %v5422_v63  ;;  %v10829_v24 = vld [vmem:[#allocation3 + $0x20] sm:$0xf]  ;;  %v10842_v29 = vld [vmem:[#allocation3 + $0x28] sm:$0xf] }
 0x431   :  { %v5436_v43 = vrot.slane %v5434_v18, 5  ;;  %5906 = vrot.lane.b32.xlu1 %v7161_v20, %s7535_s13  ;;  %v7139_v15 = vcombine.low %v4700_v38, %v4714_v17  ;;  %v7186_v36 = vcombine.low %v5409_v50, %v5423_v42  ;;  %v5446_v22 = vrot.slane %v5445_v37, 4  ;;  %v11961_v37 = vld [vmem:[#allocation63_spill] sm:$0xff]  ;;  %v10850_v42 = vld [vmem:[#allocation3 + $0x30] sm:$0xf] }
 0x432   :  { %v5448_v23 = vshll.u32 %v10797_v39, 16  ;;  %v5062_v8 = vor.u32 %v11953_v31, %v11952_v54  ;;  %v5065_v19 = vshll.u32 %v10396_v21, 16  ;;  %v5076_v26 = vor.u32 %v11955_v32, %v11954_v62  ;;  %v11960_v21 = vld [vmem:[#allocation40_spill] sm:$0xff] }
 0x433   :  { %v5437_v55 = vsel %vm7677_vm2, %v5432_v25, %v5436_v43  ;;  %v5079_v33 = vshll.u32 %v10504_v7, 16  ;;  %v5090_v57 = vor.u32 %v11957_v51, %v11956_v27  ;;  %v5093_v16 = vshll.u32 %v11958_v11, 16 }
 0x434   :  { %v5450_v13 = vrot.slane %v5448_v23, 5  ;;  %v5063_v40 = vrot.slane %v5062_v8, 4  ;;  %v5067_v41 = vrot.slane %v5065_v19, 5  ;;  %v5077_v10 = vrot.slane %v5076_v26, 4  ;;  %v10861_v26 = vld [vmem:[#allocation3 + $0x38] sm:$0xf] }
 0x435   :  { %v5104_v2 = vor.u32 %v11960_v21, %v11959_v1  ;;  %5932 = vrot.lane.b32.xlu1 %v10769_v9, %s7537_s24  ;;  %v5081_v6 = vrot.slane %v5079_v33, 5  ;;  %v5091_v63 = vrot.slane %v5090_v57, 4  ;;  %v5095_v50 = vrot.slane %v5093_v16, 5 }
 0x436   :  { %v10831_v48 = vld [vmem:[#allocation3 + $0x8c] sm:$0x1]  ;;  %v5451_v59 = vsel %vm7677_vm2, %v5446_v22, %v5450_v13  ;;  %v5068_v38 = vsel %vm7677_vm2, %v5063_v40, %v5067_v41  ;;  %v5107_v20 = vshll.u32 %v11961_v37, 16  ;;  %v4716_v17 = vshrl.u32 %v10829_v24, 16  ;;  %v11966_v37 = vld [vmem:[#allocation36_spill] sm:$0xff] }
 0x437   :  { %v4993_v7 = vrot.slane %v10831_v48, 5  ;;  %v7187_v25 = vcombine.low %v5437_v55, %v5451_v59  ;;  %v5105_v18 = vrot.slane %v5104_v2, 4  ;;  %v5082_v9 = vsel %vm7677_vm2, %v5077_v10, %v5081_v6  ;;  %v11963_v10 = vld [vmem:[#allocation65_spill] sm:$0xff]  ;;  %v11964_v6 = vld [vmem:[#allocation66_spill] sm:$0xff] }
 0x438   :  { %v7163_v22 = vcombine.low %v5068_v38, %v5082_v9  ;;  %v5096_v23 = vsel %vm7677_vm2, %v5091_v63, %v5095_v50  ;;  %v4719_v55 = vshll.u32 %v10829_v24, 16  ;;  %v5109_v54 = vrot.slane %v5107_v20, 5  ;;  %v10873_v38 = vld [vmem:[#allocation3 + $0x34] sm:$0x1]  ;;  %v11965_v9 = vld [vmem:[#allocation35_spill] sm:$0xff] }
 0x439   :  { %v4994_v4 = vsel %vm8660_vm13, %v7097_v3, %v4993_v7  ;;  %5798 = vrot.lane.b32.xlu1 %v7139_v15, %s7533_s12  ;;  %v4718_v3 = vrot.slane %v4716_v17, 4  ;;  %v4725_v31 = vshll.u32 %v10510_v47, 16  ;;  %v4730_v8 = vshrl.u32 %v10842_v29, 16  ;;  %v10879_v17 = vld [vmem:[#allocation3 + $0x60] sm:$0xf] }
 0x43a   :  { %v7153_v43 = vcombine.low %v4990_v28, %v4994_v4  ;;  %v4721_v19 = vrot.slane %v4719_v55, 5  ;;  %v4733_v62 = vshll.u32 %v10842_v29, 16  ;;  %v11962_v28 = vld [vmem:[#allocation70_spill] sm:$0xff]  ;;  %v4744_v13 = vshrl.u32 %v10850_v42, 16 }
 0x43b   :  { %v4739_v32 = vshll.u32 %v11962_v28, 16  ;;  %v5110_v15 = vsel %vm7677_vm2, %v5105_v18, %v5109_v54  ;;  %v4727_v33 = vrot.slane %v4725_v31, 5  ;;  %v4732_v27 = vrot.slane %v4730_v8, 4  ;;  %v11967_v8 = vld [vmem:[#allocation37_spill] sm:$0xff] }
 0x43c   :  { %5850 = vrot.lane.b32.xlu0 %v7153_v43, %s7532_s20  ;;  %v4747_v47 = vshll.u32 %v10850_v42, 16  ;;  %v7164_v51 = vcombine.low %v5096_v23, %v5110_v15  ;;  %v4722_v57 = vor.u32 %v4721_v19, %v4718_v3  ;;  %v4735_v11 = vrot.slane %v4733_v62, 5  ;;  %v11968_v19 = vld [vmem:[#allocation38_spill] sm:$0xff]  ;;  %v10891_v15 = vld [vmem:[#allocation3 + $0x68] sm:$0xf] }
 0x43d   :  { %v4741_v16 = vrot.slane %v4739_v32, 5  ;;  %6070 = vrot.lane.b32.xlu1 %v7187_v25, %s7541_s8  ;;  %v4746_v40 = vrot.slane %v4744_v13, 4  ;;  %v4753_v1 = vshll.u32 %v11963_v10, 16  ;;  %v4758_v21 = vshrl.u32 %v10861_v26, 16  ;;  %v10875_v25 = vld [vmem:[#allocation3 + $0x3c] sm:$0x1] }
 0x43e   :  { %v4749_v41 = vrot.slane %v4747_v47, 5  ;;  %v4723_v2 = vrot.slane %v4722_v57, 4  ;;  %v4736_v7 = vor.u32 %v4735_v11, %v4732_v27  ;;  %v4761_v59 = vshll.u32 %v10861_v26, 16  ;;  %v11969_v10 = vld [vmem:[#allocation78_spill] sm:$0xff] }
 0x43f   :  { %v4767_v63 = vshll.u32 %v11964_v6, 16  ;;  %v4755_v18 = vrot.slane %v4753_v1, 5  ;;  %v4760_v4 = vrot.slane %v4758_v21, 4  ;;  %v5459_v20 = vor.u32 %v11966_v37, %v11965_v9 }
 0x440   :  { %6068 = vrot.lane.b32.xlu0 %v7186_v36, %s7541_s8  ;;  %v4750_v50 = vor.u32 %v4749_v41, %v4746_v40  ;;  %v4728_v36 = vsel %vm7677_vm2, %v4723_v2, %v4727_v33  ;;  %v4737_v43 = vrot.slane %v4736_v7, 4  ;;  %v4763_v23 = vrot.slane %v4761_v59, 5 }
 0x441   :  { %v4769_v55 = vrot.slane %v4767_v63, 5  ;;  %5936 = vrot.lane.b32.xlu1 %v7164_v51, %s7537_s24  ;;  %v5460_v3 = vrot.slane %v5459_v20, 4  ;;  %v5462_v31 = vshll.u32 %v10873_v38, 16  ;;  %v5473_v62 = vor.u32 %v11968_v19, %v11967_v8  ;;  %v11970_v63 = vld [vmem:[#allocation79_spill] sm:$0xff]  ;;  %v11975_v19 = vld [vmem:[#allocation44_spill] sm:$0xff] }
 0x442   :  { %v4751_v54 = vrot.slane %v4750_v50, 4  ;;  %v4742_v28 = vsel %vm7677_vm2, %v4737_v43, %v4741_v16  ;;  %v4764_v32 = vor.u32 %v4763_v23, %v4760_v4  ;;  %v5476_v13 = vshll.u32 %v10875_v25, 16  ;;  %v11971_v23 = vld [vmem:[#allocation41_spill] sm:$0xff]  ;;  %v11974_v8 = vld [vmem:[#allocation43_spill] sm:$0xff] }
 0x443   :  { %v4800_v33 = vshrl.u32 %v10879_v17, 16  ;;  %v7140_v27 = vcombine.low %v4728_v36, %v4742_v28  ;;  %v5464_v51 = vrot.slane %v5462_v31, 5  ;;  %v5474_v57 = vrot.slane %v5473_v62, 4  ;;  %v11973_v31 = vld [vmem:[#allocation71_spill] sm:$0xff]  ;;  %v11976_v28 = vld [vmem:[#allocation74_spill] sm:$0xff] }
 0x444   :  { %5934 = vrot.lane.b32.xlu0 %v7163_v22, %s7537_s24  ;;  %v4756_v47 = vsel %vm7677_vm2, %v4751_v54, %v4755_v18  ;;  %v4765_v11 = vrot.slane %v4764_v32, 4  ;;  %v5478_v40 = vrot.slane %v5476_v13, 5  ;;  %v4803_v22 = vshll.u32 %v10879_v17, 16  ;;  %v11972_v54 = vld [vmem:[#allocation42_spill] sm:$0xff] }
 0x445   :  { %v4802_v41 = vrot.slane %v4800_v33, 4  ;;  %v5465_v16 = vsel %vm7677_vm2, %v5460_v3, %v5464_v51  ;;  %v4809_v1 = vshll.u32 %v11969_v10, 16  ;;  %v4814_v21 = vshrl.u32 %v10891_v15, 16  ;;  %v11977_v13 = vld [vmem:[#allocation54_spill] sm:$0xff]  ;;  %v11978_v33 = vld [vmem:[#allocation56_spill] sm:$0xff] }
 0x446   :  { %v4817_v2 = vshll.u32 %v10891_v15, 16  ;;  %v4770_v7 = vsel %vm7677_vm2, %v4765_v11, %v4769_v55  ;;  %v5479_v59 = vsel %vm7677_vm2, %v5474_v57, %v5478_v40  ;;  %v4805_v6 = vrot.slane %v4803_v22, 5 }
 0x447   :  { %v4823_v50 = vshll.u32 %v11970_v63, 16  ;;  %v7141_v18 = vcombine.low %v4756_v47, %v4770_v7  ;;  %v7188_v4 = vcombine.low %v5465_v16, %v5479_v59  ;;  %v4811_v9 = vrot.slane %v4809_v1, 5  ;;  %v11980_v7 = vld [vmem:[#allocation25_spill] sm:$0xff] }
 0x448   :  { %5800 = vrot.lane.b32.xlu0 %v7140_v27, %s7533_s12  ;;  %v4816_v37 = vrot.slane %v4814_v21, 4  ;;  %v4806_v20 = vor.u32 %v4805_v6, %v4802_v41  ;;  %v4819_v36 = vrot.slane %v4817_v2, 5  ;;  %v5118_v3 = vor.u32 %v11972_v54, %v11971_v23  ;;  %v11979_v2 = vld [vmem:[#allocation24_spill] sm:$0xff] }
 0x449   :  { %v4825_v43 = vrot.slane %v4823_v50, 5  ;;  %5802 = vrot.lane.b32.xlu1 %v7141_v18, %s7533_s12  ;;  %v5121_v55 = vshll.u32 %v11973_v31, 16  ;;  %v5132_v62 = vor.u32 %v11975_v19, %v11974_v8  ;;  %v5135_v32 = vshll.u32 %v11976_v28, 16  ;;  %v10923_v6 = vld [vmem:[#allocation3 + $0x44] sm:$0x1]  ;;  %v11985_v28 = vld [vmem:[#allocation22_spill] sm:$0xff] }
 0x44a   :  { %v5174_v27 = vor.u32 %v11978_v33, %v11977_v13  ;;  %v4807_v47 = vrot.slane %v4806_v20, 4  ;;  %v4820_v51 = vor.u32 %v4819_v36, %v4816_v37  ;;  %v5119_v57 = vrot.slane %v5118_v3, 4  ;;  %v11981_v50 = vld [vmem:[#allocation72_spill] sm:$0xff]  ;;  %v11983_v37 = vld [vmem:[#allocation46_spill] sm:$0xff]  ;;  %v11987_v33 = vld [vmem:[#allocation47_spill] sm:$0xff] }
 0x44b   :  { %v5177_v11 = vshll.u32 %v10603_v14, 16  ;;  %v5123_v40 = vrot.slane %v5121_v55, 5  ;;  %v5133_v41 = vrot.slane %v5132_v62, 4  ;;  %v5137_v22 = vrot.slane %v5135_v32, 5  ;;  %v10936_v55 = vld [vmem:[#allocation3 + $0x4c] sm:$0x1] }
 0x44c   :  { %6072 = vrot.lane.b32.xlu0 %v7188_v4, %s7541_s8  ;;  %v5175_v16 = vrot.slane %v5174_v27, 4  ;;  %v4812_v10 = vsel %vm7677_vm2, %v4807_v47, %v4811_v9  ;;  %v4821_v1 = vrot.slane %v4820_v51, 4  ;;  %v5188_v59 = vor.u32 %v11980_v7, %v11979_v2  ;;  %v11982_v4 = vld [vmem:[#allocation45_spill] sm:$0xff]  ;;  %v7523_v47 = vld [vmem:[#allocation3 + $0x74] sm:$0x1] }
 0x44d   :  { %v5179_v21 = vrot.slane %v5177_v11, 5  ;;  %v5124_v63 = vsel %vm7677_vm2, %v5119_v57, %v5123_v40  ;;  %v5138_v14 = vsel %vm7677_vm2, %v5133_v41, %v5137_v22  ;;  %v5191_v18 = vshll.u32 %v11981_v50, 16  ;;  %v11984_v62 = vld [vmem:[#allocation21_spill] sm:$0xff]  ;;  %v11988_v40 = vld [vmem:[#allocation48_spill] sm:$0xff] }
 0x44e   :  { %v5487_v20 = vor.u32 %v11983_v37, %v11982_v4  ;;  %v4826_v9 = vsel %vm7677_vm2, %v4821_v1, %v4825_v43  ;;  %v7165_v36 = vcombine.low %v5124_v63, %v5138_v14  ;;  %v5189_v54 = vrot.slane %v5188_v59, 4  ;;  %v11986_v43 = vld [vmem:[#allocation34_spill] sm:$0xff]  ;;  %v11989_v41 = vld [vmem:[#allocation49_spill] sm:$0xff]  ;;  %v10952_v63 = vld [vmem:[#allocation3 + $0x58] sm:$0xf] }
 0x44f   :  { %v5180_v23 = vsel %vm7677_vm2, %v5175_v16, %v5179_v21  ;;  %v7143_v3 = vcombine.low %v4812_v10, %v4826_v9  ;;  %v5193_v31 = vrot.slane %v5191_v18, 5  ;;  %v5490_v19 = vshll.u32 %v10923_v6, 16  ;;  %v7524_v16 = vld [vmem:[#allocation3 + $0x7c] sm:$0x1]  ;;  %v10950_v1 = vld [vmem:[#allocation3 + $0x50] sm:$0xf] }
 0x450   :  { %v5488_v8 = vrot.slane %v5487_v20, 4  ;;  %5938 = vrot.lane.b32.xlu0 %v7165_v36, %s7537_s24  ;;  %v5501_v32 = vor.u32 %v11985_v28, %v11984_v62  ;;  %v5504_v13 = vshll.u32 %v10936_v55, 16  ;;  %v5543_v27 = vor.u32 %v11987_v33, %v11986_v43  ;;  %v7525_v36 = vld [vmem:[#allocation3 + $0x54] sm:$0x1]  ;;  %v10968_v62 = vld [vmem:[#allocation3 + $0x78] sm:$0xf] }
 0x451   :  { %v5546_v51 = vshll.u32 %v7523_v47, 16  ;;  %5806 = vrot.lane.b32.xlu1 %v7143_v3, %s7533_s12  ;;  %v5194_v57 = vsel %vm7677_vm2, %v5189_v54, %v5193_v31  ;;  %v5492_v11 = vrot.slane %v5490_v19, 5  ;;  %v5557_v22 = vor.u32 %v11989_v41, %v11988_v40  ;;  %v10960_v54 = vld [vmem:[#allocation3 + $0x70] sm:$0xf]  ;;  %v11990_v47 = vld [vmem:[#allocation76_spill] sm:$0xff] }
 0x452   :  { %v5560_v10 = vshll.u32 %v7524_v16, 16  ;;  %v7167_v21 = vcombine.low %v5180_v23, %v5194_v57  ;;  %v5502_v2 = vrot.slane %v5501_v32, 4  ;;  %v5506_v7 = vrot.slane %v5504_v13, 5 }
 0x453   :  { %v5544_v59 = vrot.slane %v5543_v27, 4  ;;  %v5493_v14 = vsel %vm7677_vm2, %v5488_v8, %v5492_v11  ;;  %v5548_v50 = vrot.slane %v5546_v51, 5  ;;  %v5558_v18 = vrot.slane %v5557_v22, 4 }
 0x454   :  { %v5562_v4 = vrot.slane %v5560_v10, 5  ;;  %v5507_v37 = vsel %vm7677_vm2, %v5502_v2, %v5506_v7  ;;  %v4772_v20 = vshrl.u32 %v10950_v1, 16  ;;  %v4775_v9 = vshll.u32 %v10950_v1, 16 }
 0x455   :  { %v4781_v23 = vshll.u32 %v7525_v36, 16  ;;  %5942 = vrot.lane.b32.xlu1 %v7167_v21, %s7537_s24  ;;  %v7189_v3 = vcombine.low %v5493_v14, %v5507_v37  ;;  %v5549_v31 = vsel %vm7677_vm2, %v5544_v59, %v5548_v50  ;;  %v4786_v19 = vshrl.u32 %v10952_v63, 16  ;;  %v10982_v36 = vpop.permute.xlu1 %6028 }
 0x456   :  { %v5563_v8 = vsel %vm7677_vm2, %v5558_v18, %v5562_v4  ;;  %v4774_v32 = vrot.slane %v4772_v20, 4  ;;  %v4777_v13 = vrot.slane %v4775_v9, 5  ;;  %v4789_v27 = vshll.u32 %v10952_v63, 16  ;;  %v11991_v20 = vld [vmem:[#allocation61_spill] sm:$0xff]  ;;  %v11992_v9 = vld [vmem:[#allocation62_spill] sm:$0xff] }
 0x457   :  { %v7191_v28 = vcombine.low %v5549_v31, %v5563_v8  ;;  %v4783_v43 = vrot.slane %v4781_v23, 5  ;;  %6074 = vrot.lane.b32.xlu0 %v7189_v3, %s7541_s8  ;;  %v4788_v33 = vrot.slane %v4786_v19, 4  ;;  %v4795_v51 = vshll.u32 %v11990_v47, 16  ;;  %v11993_v31 = vld [vmem:[#allocation77_spill] sm:$0xff]  ;;  %v11994_v19 = vld [vmem:[#allocation64_spill] sm:$0xff] }
 0x458   :  { %v4828_v57 = vshrl.u32 %v10960_v54, 16  ;;  %v4778_v11 = vor.u32 %v4777_v13, %v4774_v32  ;;  %v4831_v40 = vshll.u32 %v10960_v54, 16  ;;  %v4837_v41 = vshll.u32 %v10619_v30, 16 }
 0x459   :  { %v4842_v22 = vshrl.u32 %v10968_v62, 16  ;;  %6078 = vrot.lane.b32.xlu1 %v7191_v28, %s7541_s8  ;;  %v4791_v16 = vrot.slane %v4789_v27, 5  ;;  %v4797_v10 = vrot.slane %v4795_v51, 5  ;;  %v4845_v2 = vshll.u32 %v10968_v62, 16  ;;  %v11995_v28 = vld [vmem:[#allocation67_spill] sm:$0xff]  ;;  %v10989_v51 = vpop.permute.xlu0 %5892 }
 0x45a   :  { %v4830_v21 = vrot.slane %v4828_v57, 4  ;;  %v4779_v7 = vrot.slane %v4778_v11, 4  ;;  %v4833_v59 = vrot.slane %v4831_v40, 5  ;;  %v4839_v14 = vrot.slane %v4837_v41, 5 }
 0x45b   :  { %v4844_v50 = vrot.slane %v4842_v22, 4  ;;  %v4792_v18 = vor.u32 %v4791_v16, %v4788_v33  ;;  %v4847_v4 = vrot.slane %v4845_v2, 5  ;;  %v4851_v37 = vshll.u32 %v10621_v60, 16  ;;  %v11996_v22 = vld [vmem:[#allocation50_spill] sm:$0xff]  ;;  %v11997_v16 = vld [vmem:[#allocation51_spill] sm:$0xff]  ;;  %v11998_v2 = vld [vmem:[#allocation73_spill] sm:$0xff] }
 0x45c   :  { %v5146_v30 = vor.u32 %v11992_v9, %v11991_v20  ;;  %v4784_v23 = vsel %vm7677_vm2, %v4779_v7, %v4783_v43  ;;  %v4834_v3 = vor.u32 %v4833_v59, %v4830_v21  ;;  %v5149_v8 = vshll.u32 %v11993_v31, 16  ;;  %v11999_v9 = vld [vmem:[#allocation52_spill] sm:$0xff]  ;;  %v11007_v31 = vld [vmem:[#allocation3 + $0x6c] sm:$0x1] }
 0x45d   :  { %v5160_v32 = vor.u32 %v11995_v28, %v11994_v19  ;;  %v4793_v13 = vrot.slane %v4792_v18, 4  ;;  %v4848_v27 = vor.u32 %v4847_v4, %v4844_v50  ;;  %v4853_v33 = vrot.slane %v4851_v37, 5  ;;  %v11001_v37 = vld [vmem:[#allocation3 + $0x64] sm:$0x1] }
 0x45e   :  { %v5147_v47 = vrot.slane %v5146_v30, 4  ;;  %v4835_v60 = vrot.slane %v4834_v3, 4  ;;  %v5151_v57 = vrot.slane %v5149_v8, 5  ;;  %v5163_v40 = vshll.u32 %v10601_v61, 16  ;;  %v12000_v30 = vld [vmem:[#allocation53_spill] sm:$0xff]  ;;  %v12001_v28 = vld [vmem:[#allocation68_spill] sm:$0xff] }
 0x45f   :  { %v5161_v11 = vrot.slane %v5160_v32, 4  ;;  %v4798_v43 = vsel %vm7677_vm2, %v4793_v13, %v4797_v10  ;;  %v4849_v41 = vrot.slane %v4848_v27, 4  ;;  %v5202_v21 = vor.u32 %v11997_v16, %v11996_v22  ;;  %v12002_v32 = vld [vmem:[#allocation69_spill] sm:$0xff]  ;;  %v11017_v27 = vld [vmem:[#allocation3 + $0x80] sm:$0xf]  ;;  %v12006_v22 = vld [vmem:[#allocation59_spill] sm:$0xff] }
 0x460   :  { %v5205_v7 = vshll.u32 %v11998_v2, 16  ;;  %v7142_v59 = vcombine.low %v4784_v23, %v4798_v43  ;;  %v4840_v50 = vsel %vm7677_vm2, %v4835_v60, %v4839_v14  ;;  %v5152_v18 = vsel %vm7677_vm2, %v5147_v47, %v5151_v57  ;;  %v11009_v23 = vpop.permute.xlu1 %5894  ;;  %12003 = vst [vmem:[#allocation28_spill] sm:$0xff] %v11017_v27  ;;  %v11024_v43 = vpop.permute.xlu0 %6030 }
 0x461   :  { %v5165_v4 = vrot.slane %v5163_v40, 5  ;;  %v4854_v61 = vsel %vm7677_vm2, %v4849_v41, %v4853_v33  ;;  %v5203_v10 = vrot.slane %v5202_v21, 4  ;;  %v5216_v3 = vor.u32 %v12000_v30, %v11999_v9  ;;  %v11022_v40 = vld [vmem:[#allocation3 + $0x88] sm:$0xf] }
 0x462   :  { %v5207_v20 = vrot.slane %v5205_v7, 5  ;;  %5804 = vrot.lane.b32.xlu0 %v7142_v59, %s7533_s12  ;;  %v7144_v14 = vcombine.low %v4840_v50, %v4854_v61  ;;  %v5219_v19 = vshll.u32 %v10563_v5, 16  ;;  %v5515_v13 = vor.u32 %v12002_v32, %v12001_v28  ;;  %12004 = vst [vmem:[#allocation29_spill] sm:$0xff] %v11022_v40  ;;  %v12005_v41 = vld [vmem:[#allocation57_spill] sm:$0xff] }
 0x463   :  { %v5166_v8 = vsel %vm7677_vm2, %v5161_v11, %v5165_v4  ;;  %v5217_v60 = vrot.slane %v5216_v3, 4  ;;  %v5518_v57 = vshll.u32 %v11001_v37, 16  ;;  %v5529_v16 = vor.u32 %v12006_v22, %v12005_v41 }
 0x464   :  { %v7166_v33 = vcombine.low %v5152_v18, %v5166_v8  ;;  %v5208_v47 = vsel %vm7677_vm2, %v5203_v10, %v5207_v20  ;;  %5808 = vrot.lane.b32.xlu1 %v7144_v14, %s7533_s12  ;;  %v5221_v11 = vrot.slane %v5219_v19, 5  ;;  %v5516_v5 = vrot.slane %v5515_v13, 4  ;;  %v11039_v14 = vld [vmem:[#allocation3 + $0x84] sm:$0x1]  ;;  %v11041_v8 = vld [vmem:[#allocation3 + $0x8c] sm:$0x1]  ;;  %v11053_v22 = vpop.permute.xlu0 %5896 }
 0x465   :  { %v5532_v21 = vshll.u32 %v11007_v31, 16  ;;  %v5520_v2 = vrot.slane %v5518_v57, 5  ;;  %v4856_v7 = vshrl.u32 %v11017_v27, 16  ;;  %v4859_v59 = vshll.u32 %v11017_v27, 16 }
 0x466   :  { %v4865_v50 = vshll.u32 %v10720_v0, 16  ;;  %5940 = vrot.lane.b32.xlu0 %v7166_v33, %s7537_s24  ;;  %v5222_v18 = vsel %vm7677_vm2, %v5217_v60, %v5221_v11  ;;  %v5530_v4 = vrot.slane %v5529_v16, 4  ;;  %v4870_v10 = vshrl.u32 %v11022_v40, 16  ;;  %v11043_v0 = vpop.permute.xlu1 %6032  ;;  %v4318_v33 = vld [vmem:[#allocation3 + $0x94] sm:$0x1]  ;;  %v12007_v11 = vld [vmem:[#allocation55_spill] sm:$0xff] }
 0x467   :  { %v5534_v61 = vrot.slane %v5532_v21, 5  ;;  %v7168_v20 = vcombine.low %v5208_v47, %v5222_v18  ;;  %v5521_v9 = vsel %vm7677_vm2, %v5516_v5, %v5520_v2  ;;  %v4858_v30 = vrot.slane %v4856_v7, 4  ;;  %v12008_v5 = vld [vmem:[#allocation58_spill] sm:$0xff]  ;;  %v12009_v2 = vld [vmem:[#allocation75_spill] sm:$0xff] }
 0x468   :  { %v4861_v3 = vrot.slane %v4859_v59, 5  ;;  %v5241_v19 = vshll.u32 %v10791_v45, 16  ;;  %v4872_v32 = vrot.slane %v4870_v10, 4  ;;  %v4873_v13 = vshll.u32 %v11022_v40, 16  ;;  %v7529_v40 = vld [vmem:[#allocation3 + $0x18] sm:$0xf] }
 0x469   :  { %v5535_v28 = vsel %vm7677_vm2, %v5530_v4, %v5534_v61  ;;  %5944 = vrot.lane.b32.xlu1 %v7168_v20, %s7537_s24  ;;  %v4879_v57 = vshll.u32 %v10831_v48, 16  ;;  %v5571_v41 = vor.u32 %v12008_v5, %v12007_v11  ;;  %v5574_v21 = vshll.u32 %v11039_v14, 16  ;;  %v11066_v11 = vld [vmem:[#allocation3 + $0x90] sm:$0xf]  ;;  %v5265_v5 = vld [vmem:[#allocation3 + $0x88] sm:$0xe] }
 0x46a   :  { %v7190_v47 = vcombine.low %v5521_v9, %v5535_v28  ;;  %v4862_v60 = vor.u32 %v4861_v3, %v4858_v30  ;;  %v4875_v16 = vrot.slane %v4873_v13, 5  ;;  %v5585_v7 = vor.u32 %v10695_v44, %v12009_v2  ;;  %v5025_v2 = vld [vmem:[#allocation3 + $0x8c] sm:$0x1] }
 0x46b   :  { %v5588_v59 = vshll.u32 %v11041_v8, 16  ;;  %v4867_v4 = vrot.slane %v4865_v50, 5  ;;  %v5572_v61 = vrot.slane %v5571_v41, 4  ;;  %v4319_v48 = vsel %vm8479_vm7, 0, %v4318_v33  ;;  %v11081_v41 = vpop.permute.xlu0 %6034 }
 0x46c   :  { %6076 = vrot.lane.b32.xlu0 %v7190_v47, %s7541_s8  ;;  %v4863_v18 = vrot.slane %v4862_v60, 4  ;;  %v4876_v10 = vor.u32 %v4875_v16, %v4872_v32  ;;  %v5576_v20 = vrot.slane %v5574_v21, 5  ;;  %v5586_v9 = vrot.slane %v5585_v7, 4  ;;  %4320 = vst [vmem:[#allocation3 + $0x94] sm:$0x1] %v4319_v48  ;;  %v11068_v47 = vpop.permute.xlu1 %5898 }
 0x46d   :  { %v5590_v30 = vrot.slane %v5588_v59, 5  ;;  %v12010_v3 = vshrl.u32 %v10682_v34, 16  ;;  %v5229_v44 = vrot.slane %v5227_v12, 5  ;;  %v4881_v13 = vrot.slane %v4879_v57, 5  ;;  %v11076_v60 = vld [vmem:[#allocation3 + $0x98] sm:$0xf] }
 0x46e   :  { %v4868_v49 = vsel %vm7677_vm2, %v4863_v18, %v4867_v4  ;;  %v4877_v50 = vrot.slane %v4876_v10, 4  ;;  %v5577_v32 = vsel %vm7677_vm2, %v5572_v61, %v5576_v20  ;;  %v4496_v34 = vrot.slane %v10728_v53, 4  ;;  %v11088_v4 = vld [vmem:[#allocation3 + $0x9c] sm:$0x1] }
 0x46f   :  { %v5226_v28 = vrot.slane %v12010_v3, 4  ;;  %v5591_v33 = vsel %vm7677_vm2, %v5586_v9, %v5590_v30  ;;  %v5240_v12 = vrot.slane %v5238_v52, 4  ;;  %v5243_v16 = vrot.slane %v5241_v19, 5  ;;  %v11091_v52 = vld [vmem:[#allocation3 + $0x90] sm:$0xe] }
 0x470   :  { %v7192_v57 = vcombine.low %v5577_v32, %v5591_v33  ;;  %v4882_v21 = vsel %vm7677_vm2, %v4877_v50, %v4881_v13  ;;  %v5593_v7 = vshrl.u32 %v11066_v11, 16  ;;  %v5596_v59 = vshll.u32 %v11066_v11, 16  ;;  %v5624_v32 = vld [vmem:[#allocation3 + $0x30] sm:$0xe] }
 0x471   :  { %v7145_v18 = vcombine.low %v4868_v49, %v4882_v21  ;;  %v5230_v53 = vor.u32 %v5229_v44, %v5226_v28  ;;  %v5607_v45 = vshrl.u32 %v11076_v60, 16  ;;  %v5610_v48 = vshll.u32 %v11076_v60, 16  ;;  %v11096_v28 = vpop.permute.xlu1 %5902  ;;  %v5625_v21 = vld [vmem:[#allocation3 + $0x38] sm:$0xe] }
 0x472   :  { %6080 = vrot.lane.b32.xlu0 %v7192_v57, %s7541_s8  ;;  %v5595_v61 = vrot.slane %v5593_v7, 4  ;;  %v5598_v19 = vrot.slane %v5596_v59, 5  ;;  %v5616_v10 = vshll.u32 %v11088_v4, 16  ;;  %v7112_v9 = vrot.slane %v5265_v5, 9  ;;  %v11102_v57 = vpop.permute.xlu0 %5900 }
 0x473   :  { %5810 = vrot.lane.b32.xlu1 %v7145_v18, %s7533_s12  ;;  %v4624_v20 = vld [vmem:[#allocation3 + $0x94] sm:$0x1]  ;;  %v5357_v30 = vrot.slane %v5025_v2, 5  ;;  %v5233_v3 = vshll.u32 %v5025_v2, 16  ;;  %v5609_v13 = vrot.slane %v5607_v45, 4  ;;  %v5244_v49 = vor.u32 %v5243_v16, %v5240_v12 }
 0x474   :  { %v4625_v44 = vsel %vm8473_vm8, %v4496_v34, %v4624_v20  ;;  %v5612_v50 = vrot.slane %v5610_v48, 5  ;;  %v11100_v33 = vrot.slane %v5230_v53, 4  ;;  %v7113_v7 = vrot.slane %v11091_v52, 9  ;;  %v5626_v16 = vld [vmem:[#allocation3 + $0x40] sm:$0xe] }
 0x475   :  { %4626 = vst [vmem:[#allocation3 + $0x94] sm:$0x1] %v4625_v44  ;;  %v5599_v5 = vor.u32 %v5598_v19, %v5595_v61  ;;  %v11105_v2 = vrot.slane %v5616_v10, 5  ;;  %v5358_v18 = vsel %vm8660_vm13, %v7112_v9, %v5357_v30  ;;  %v5235_v46 = vrot.slane %v5233_v3, 5  ;;  %v5627_v52 = vld [vmem:[#allocation3 + $0x48] sm:$0xe]  ;;  %v11117_v19 = vpop.permute.xlu1 %6038 }
 0x476   :  { %v5613_v59 = vor.u32 %v5612_v50, %v5609_v13  ;;  %v7118_v12 = vrot.slane %v5624_v32, 9  ;;  %v5245_v53 = vrot.slane %v5244_v49, 4  ;;  %v5686_v48 = vrot.slane %v10873_v38, 5  ;;  %v11119_v10 = vpop.permute.xlu0 %6036  ;;  %v5628_v13 = vld [vmem:[#allocation3 + $0x60] sm:$0xe] }
 0x477   :  { %v7119_v20 = vrot.slane %v5625_v21, 9  ;;  %v5236_v61 = vsel %vm7677_vm2, %v11100_v33, %v5235_v46  ;;  %v5690_v9 = vrot.slane %v10875_v25, 5  ;;  %v5600_v38 = vrot.slane %v5599_v5, 4  ;;  %v5629_v5 = vld [vmem:[#allocation3 + $0x68] sm:$0xe] }
 0x478   :  { %v11111_v45 = vrot.slane %v5613_v59, 4  ;;  %v11132_v49 = vsel %vm8660_vm13, %v7118_v12, %v5686_v48  ;;  %v7120_v50 = vrot.slane %v5626_v16, 9  ;;  %v5694_v32 = vrot.slane %v10923_v6, 5 }
 0x479   :  { %v11136_v25 = vsel %vm8660_vm13, %v7119_v20, %v5690_v9  ;;  %v7121_v33 = vrot.slane %v5627_v52, 9  ;;  %v5698_v21 = vrot.slane %v10936_v55, 5  ;;  %v5702_v16 = vrot.slane %v11001_v37, 5  ;;  %v5632_v55 = vld [vmem:[#allocation3 + $0x80] sm:$0xe] }
 0x47a   :  { %v5619_v44 = vsel %vm7677_vm2, %v11111_v45, %v11105_v2  ;;  %v7122_v45 = vrot.slane %v5628_v13, 9  ;;  %v11145_v3 = vpop.permute.xlu0 %5972  ;;  %v11149_v6 = vsel %vm8660_vm13, %v7120_v50, %v5694_v32  ;;  %v7123_v13 = vrot.slane %v5629_v5, 9  ;;  %v11162_v50 = vpop.permute.xlu1 %5904  ;;  %v5623_v32 = vld [vmem:[#allocation3 + $0x28] sm:$0xe] }
 0x47b   :  { %v11153_v52 = vsel %vm8660_vm13, %v7121_v33, %v5698_v21  ;;  %v5706_v37 = vrot.slane %v11007_v31, 5  ;;  %v5718_v5 = vrot.slane %v11039_v14, 5  ;;  %v5634_v31 = vld [vmem:[#allocation3 + $0x90] sm:$0xe]  ;;  %vm12014_vm7 = vcmask 392192  }
 0x47c   :  { %v5026_v59 = vld [vmem:[#allocation3 + $0x94] sm:$0x1]  ;;  %v11157_v12 = vsel %vm8660_vm13, %v7122_v45, %v5702_v16  ;;  %v7126_v45 = vrot.slane %v5632_v55, 9  ;;  %v5722_v55 = vrot.slane %v11041_v8, 5  ;;  %vm6180_vm8 = vcmask 654336   ;;  %vm12017_vm3 = vmmov %vm12014_vm7 }
 0x47d   :  { %v5394_v46 = vld [vmem:[#allocation3 + $0x94] sm:$0x1]  ;;  %v5361_v48 = vrot.slane %v5026_v59, 5  ;;  %v5247_v20 = vshll.u32 %v5026_v59, 16  ;;  %v5633_v59 = vld [vmem:[#allocation3 + $0x88] sm:$0xe]  ;;  %v11168_v21 = vsel %vm8660_vm13, %v7123_v13, %v5706_v37  ;;  %vm12021_vm11 = vmmov %vm12017_vm3 }
 0x47e   :  { %v5602_v9 = vshll.u32 %v5394_v46, 16  ;;  %v11182_v14 = vsel %vm8660_vm13, %v7126_v45, %v5718_v5  ;;  %v5730_v37 = vrot.slane %v11088_v4, 5  ;;  %vm12015_vm0 = vcmask 523264   ;;  %vm12026_vm1 = vmmov %vm12017_vm3 }
 0x47f   :  { %v5362_v30 = vsel %vm8660_vm13, %v7113_v7, %v5361_v48  ;;  %v5249_v2 = vrot.slane %v5247_v20, 5  ;;  %v11175_v48 = vpop.permute.xlu0 %5838  ;;  %v5622_v20 = vld [vmem:[#allocation3 + $0x20] sm:$0xe]  ;;  %vm12018_vm4 = vmmov %vm12015_vm0 }
 0x480   :  { %v5604_v34 = vrot.slane %v5602_v9, 5  ;;  %v7177_v33 = vcombine.low %v5358_v18, %v5362_v30  ;;  %v7127_v18 = vrot.slane %v5633_v59, 9  ;;  %v5635_v30 = vld [vmem:[#allocation3 + $0x98] sm:$0xe]  ;;  %vm12024_vm15 = vmmov %vm12015_vm0 }
 0x481   :  { %v5250_v16 = vsel %vm7677_vm2, %v5245_v53, %v5249_v2  ;;  %v7128_v53 = vrot.slane %v5634_v31, 9  ;;  %v7129_v13 = vrot.slane %v5635_v30, 9  ;;  %vm12027_vm14 = vmmov %vm12015_vm0 }
 0x482   :  { %v5605_v7 = vsel %vm7677_vm2, %v5600_v38, %v5604_v34  ;;  %5986 = vrot.lane.b32.xlu1 %v7177_v33, %s7540_s18  ;;  %v7169_v9 = vcombine.low %v5236_v61, %v5250_v16  ;;  %v5726_v38 = vrot.slane %v5394_v46, 5  ;;  %v11192_v61 = vsel %vm8660_vm13, %v7127_v18, %v5722_v55  ;;  %v11195_v59 = vpop.permute.xlu1 %6040 }
 0x483   :  { %v7193_v2 = vcombine.low %v5605_v7, %v5619_v44  ;;  %v11197_v8 = vpop.permute.xlu0 %5976  ;;  %v7185_v44 = vcombine.low %v11066_v11, %v11076_v60  ;;  %v11210_v45 = vsel %vm8660_vm13, %v7129_v13, %v5730_v37  ;;  %vm12013_vm2 = vcmask 261120  }
 0x484   :  { %5946 = vrot.lane.b32.xlu0 %v7169_v9, %s7537_s24  ;;  %v11203_v46 = vsel %vm8660_vm13, %v7128_v53, %v5726_v38  ;;  %12012 = vst [vmem:[#allocation31_spill] sm:$0xff] %v11210_v45  ;;  %v7526_v38 = vld [vmem:[#allocation3] sm:$0xf]  ;;  %vm12016_vm12 = vmmov %vm12013_vm2 }
 0x485   :  { %12011 = vst [vmem:[#allocation30_spill] sm:$0xff] %v11203_v46  ;;  %v7528_v46 = vld [vmem:[#allocation3 + $0x10] sm:$0xf]  ;;  %vm12025_vm6 = vmmov %vm12013_vm2 }
 0x486   :  { %6082 = vrot.lane.b32.xlu1 %v7193_v2, %s7541_s8  ;;  %v7527_v2 = vld [vmem:[#allocation3 + $0x8] sm:$0xf]  ;;  %v7131_v27 = vcombine.low %v7528_v46, %v7529_v40 }
 0x487   :  { %v11215_v31 = vpop.permute.xlu0 %5842  ;;  %v7130_v13 = vcombine.low %v7526_v38, %v7527_v2  ;;  %v7116_v38 = vrot.slane %v5622_v20, 9  ;;  %v5678_v2 = vrot.slane %v10780_v58, 5 }
 0x488   :  { %6042 = vrot.lane.b32.xlu0 %v7185_v44, %s7539_s3  ;;  %v5837_v5 = vpop.permute.xlu1 %5836 }
 0x489   :  { %v5679_v40 = vsel %vm8660_vm13, %v7116_v38, %v5678_v2 }
 0x48d   :  { %v5975_v16 = vpop.permute.xlu1 %5974  ;;  %v11217_v7 = vpop.permute.xlu0 %5978 }
 0x491   :  { %v11219_v30 = vpop.permute.xlu0 %5844 }
 0x493   :  { %v5841_v18 = vpop.permute.xlu1 %5840 }
 0x495   :  { %v11223_v11 = vpop.permute.xlu0 %5980 }
 0x497   :  { %v11221_v9 = vpop.permute.xlu1 %5846 }
 0x499   :  { %v11227_v55 = vpop.permute.xlu0 %5984 }
 0x49b   :  { %v11225_v60 = vpop.permute.xlu1 %5982 }
 0x49d   :  { %v5797_v37 = vpop.permute.xlu0 %5796 }
 0x49e   :  { %v6110_v44 = vsel %vm1328_vm5, %v7130_v13, %v5797_v37  ;;  %v7117_v13 = vrot.slane %v5623_v32, 9 }
 0x49f   :  { %v11229_v53 = vpop.permute.xlu1 %5848  ;;  %v6133_v4 = vsel %vm12013_vm2, %v6110_v44, %v5837_v5  ;;  %v5682_v5 = vrot.slane %v10797_v39, 5 }
 0x4a0   :  { %v6149_v56 = vsel %vm12014_vm7, %v6133_v4, %v10989_v51  ;;  %vm12030_vm7 = vmmov %vm12026_vm1 }
 0x4a1   :  { %v5683_v58 = vsel %vm8660_vm13, %v7117_v13, %v5682_v5  ;;  %v12019_v13 = vcombine.low %v10829_v24, %v10842_v29  ;;  %vm12020_vm13 = vmmov %vm12013_vm2 }
 0x4a3   :  { %v11233_v34 = vpop.permute.xlu1 %5906 }
 0x4a7   :  { %v5933_v33 = vpop.permute.xlu1 %5932 }
 0x4a8   :  { %v6165_v45 = vsel %vm12015_vm0, %v6149_v56, %v5933_v33  ;;  %v7195_v33 = vcombine.low %v5679_v40, %v5683_v58  ;;  %v12028_v58 = vcombine.low %v11149_v6, %v11153_v52 }
 0x4a9   :  { %v6182_v37 = vsel %vm6180_vm8, %v6165_v45, %v11145_v3 }
 0x4aa   :  { %v6199_v56 = vsel %vm6197_vm10, %v6182_v37, %v10982_v36 }
 0x4ab   :  { %v5799_v44 = vpop.permute.xlu1 %5798 }
 0x4ac   :  { %v6113_v4 = vsel %vm1328_vm5, %v7131_v27, %v5799_v44  ;;  %v12023_v44 = vcombine.low %v10850_v42, %v10861_v26 }
 0x4ad   :  { %v6135_v39 = vsel %vm12016_vm12, %v6113_v4, %v11175_v48  ;;  %vm12034_vm12 = vmmov %vm12013_vm2 }
 0x4ae   :  { %v11242_v51 = vpop.permute.xlu0 %5850  ;;  %v6151_v27 = vsel %vm12017_vm3, %v6135_v39, %v11009_v23  ;;  %vm12036_vm3 = vmmov %vm12026_vm1 }
 0x4af   :  { %v6071_v3 = vpop.permute.xlu1 %6070 }
 0x4b2   :  { %v6069_v32 = vpop.permute.xlu0 %6068 }
 0x4b3   :  { %v6216_v20 = vsel %vm6214_vm9, %v6199_v56, %v6069_v32  ;;  %v5937_v45 = vpop.permute.xlu1 %5936 }
 0x4b4   :  { %6368 = vmatmul.mubr.bf16.vlgmr.msra.gmra.mxu0 %v6216_v20 }
 0x4b5   :  { %7212 = vmatprep.mubr.msk.bf16.mxu0 %vm1328_vm5, %v7195_v33 }
 0x4b6   :  { %v5935_v36 = vpop.permute.xlu0 %5934 }
 0x4b7   :  { %v6167_v46 = vsel %vm12018_vm4, %v6151_v27, %v5935_v36  ;;  %vm12037_vm4 = vmmov %vm12013_vm2 }
 0x4b8   :  { %v6184_v35 = vsel %vm6180_vm8, %v6167_v46, %v5975_v16  ;;  %v12022_v16 = vcombine.low %v11132_v49, %v11136_v25 }
 0x4b9   :  { %v6201_v48 = vsel %vm6197_vm10, %v6184_v35, %v11024_v43 }
 0x4ba   :  { %v5801_v38 = vpop.permute.xlu0 %5800  ;;  %v6219_v2 = vsel %vm6214_vm9, %v6201_v48, %v6071_v3 }
 0x4bb   :  { %v6116_v5 = vsel %vm1328_vm5, %v12019_v13, %v5801_v38  ;;  %v5803_v43 = vpop.permute.xlu1 %5802  ;;  %v12042_v13 = vld [vmem:[#allocation29_spill] sm:$0xff] }
 0x4bc   :  { %v6137_v23 = vsel %vm12020_vm13, %v6116_v5, %v5841_v18  ;;  %6376 = vmatmul.mubr.bf16.gmra.mxu0 %v6219_v2  ;;  %v6119_v4 = vsel %vm1328_vm5, %v12023_v44, %v5803_v43  ;;  %vm12038_vm13 = vmmov %vm12015_vm0  ;;  %v12041_v2 = vld [vmem:[#allocation28_spill] sm:$0xff] }
 0x4bd   :  { %v6153_v37 = vsel %vm12021_vm11, %v6137_v23, %v11053_v22  ;;  %7213 = vmatprep.mubr.msk.bf16.mxu0 %vm1328_vm5, %v12022_v16  ;;  %v6139_v18 = vsel %vm12025_vm6, %v6119_v4, %v11215_v31  ;;  %vm12039_vm11 = vmmov %vm12026_vm1  ;;  %v12044_v23 = vld [vmem:[#allocation30_spill] sm:$0xff] }
 0x4be   :  { %v6073_v24 = vpop.permute.xlu0 %6072  ;;  %v6169_v29 = vsel %vm12024_vm15, %v6153_v37, %v5937_v45  ;;  %v6155_v25 = vsel %vm12026_vm1, %v6139_v18, %v11068_v47  ;;  %vm12040_vm15 = vmmov %vm12015_vm0  ;;  %v12045_v37 = vld [vmem:[#allocation31_spill] sm:$0xff] }
 0x4bf   :  { %v6186_v22 = vsel %vm6180_vm8, %v6169_v29, %v11197_v8  ;;  %v12029_v8 = vcombine.low %v10879_v17, %v10891_v15  ;;  %v12046_v16 = vcombine.low %v12044_v23, %v12045_v37  ;;  %vm12047_vm6 = vmmov %vm12013_vm2 }
 0x4c0   :  { %v6203_v49 = vsel %vm6197_vm10, %v6186_v22, %v11043_v0 }
 0x4c1   :  { %v6222_v56 = vsel %vm6214_vm9, %v6203_v49, %v6073_v24 }
 0x4c2   :  { %v5939_v42 = vpop.permute.xlu0 %5938 }
 0x4c3   :  { %v5807_v26 = vpop.permute.xlu1 %5806  ;;  %v6171_v40 = vsel %vm12027_vm14, %v6155_v25, %v5939_v42  ;;  %vm12048_vm14 = vmmov %vm12015_vm0 }
 0x4c4   :  { %6384 = vmatmul.mubr.bf16.gmra.mxu0 %v6222_v56  ;;  %v6125_v0 = vsel %vm1328_vm5, %v12029_v8, %v5807_v26  ;;  %v6188_v47 = vsel %vm6180_vm8, %v6171_v40, %v11217_v7 }
 0x4c5   :  { %7214 = vmatprep.mubr.msk.bf16.mxu0 %vm1328_vm5, %v12028_v58  ;;  %v6143_v31 = vsel %vm12013_vm2, %v6125_v0, %v11221_v9  ;;  %v6205_v6 = vsel %vm6197_vm10, %v6188_v47, %v11081_v41  ;;  %v12032_v41 = vcombine.low %v11182_v14, %v11192_v61 }
 0x4c6   :  { %v6159_v39 = vsel %vm12030_vm7, %v6143_v31, %v11096_v28  ;;  %v12031_v28 = vcombine.low %v11157_v12, %v11168_v21  ;;  %v12035_v12 = vcombine.low %v10960_v54, %v10968_v62 }
 0x4c7   :  { %v5943_v3 = vpop.permute.xlu1 %5942 }
 0x4c8   :  { %v6175_v52 = vsel %vm12015_vm0, %v6159_v39, %v5943_v3 }
 0x4c9   :  { %v6192_v17 = vsel %vm6180_vm8, %v6175_v52, %v11225_v60  ;;  %v6075_v15 = vpop.permute.xlu0 %6074 }
 0x4ca   :  { %v6209_v32 = vsel %vm6197_vm10, %v6192_v17, %v11117_v19  ;;  %v6225_v7 = vsel %vm6214_vm9, %v6205_v6, %v6075_v15  ;;  %v12033_v19 = vcombine.low %v10950_v1, %v10952_v63 }
 0x4cb   :  { %v6079_v20 = vpop.permute.xlu1 %6078 }
 0x4cc   :  { %6392 = vmatmul.mubr.bf16.gmra.mxu0 %v6225_v7  ;;  %v6231_v9 = vsel %vm6214_vm9, %v6209_v32, %v6079_v20 }
 0x4cd   :  { %7215 = vmatprep.mubr.msk.bf16.mxu0 %vm1328_vm5, %v12031_v28  ;;  %6408 = vmatmul.mubr.bf16.vlgmr.msra.gmra.mxu1 %v6231_v9 }
 0x4ce   :  { %7217 = vmatprep.mubr.msk.bf16.mxu1 %vm1328_vm5, %v12032_v41 }
 0x4d4   :  { %v5805_v60 = vpop.permute.xlu0 %5804 }
 0x4d5   :  { %v6122_v33 = vsel %vm1328_vm5, %v12033_v19, %v5805_v60 }
 0x4d6   :  { %v6141_v27 = vsel %vm12034_vm12, %v6122_v33, %v11219_v30  ;;  %v5809_v36 = vpop.permute.xlu1 %5808 }
 0x4d7   :  { %v6128_v21 = vsel %vm1328_vm5, %v12035_v12, %v5809_v36  ;;  %v6157_v14 = vsel %vm12036_vm3, %v6141_v27, %v11102_v57 }
 0x4d8   :  { %v6145_v61 = vsel %vm12037_vm4, %v6128_v21, %v11229_v53  ;;  %v5941_v46 = vpop.permute.xlu0 %5940 }
 0x4d9   :  { %v6173_v1 = vsel %vm12038_vm13, %v6157_v14, %v5941_v46  ;;  %v6161_v63 = vsel %vm12039_vm11, %v6145_v61, %v11162_v50 }
 0x4da   :  { %v6190_v30 = vsel %vm6180_vm8, %v6173_v1, %v11223_v11 }
 0x4db   :  { %v5945_v45 = vpop.permute.xlu1 %5944  ;;  %v6207_v54 = vsel %vm6197_vm10, %v6190_v30, %v11119_v10  ;;  %v12043_v10 = vcombine.low %v12041_v2, %v12042_v13 }
 0x4dc   :  { %v6177_v62 = vsel %vm12040_vm15, %v6161_v63, %v5945_v45 }
 0x4dd   :  { %v6194_v57 = vsel %vm6180_vm8, %v6177_v62, %v11227_v55 }
 0x4de   :  { %v6077_v35 = vpop.permute.xlu0 %6076  ;;  %v6211_v48 = vsel %vm6197_vm10, %v6194_v57, %v11195_v59 }
 0x4df   :  { %v6228_v53 = vsel %vm6214_vm9, %v6207_v54, %v6077_v35 }
 0x4e0   :  { %6400 = vmatmul.mubr.bf16.gmra.mxu0 %v6228_v53 }
 0x4e4   :  { %v6081_v50 = vpop.permute.xlu0 %6080 }
 0x4e5   :  { %v6234_v38 = vsel %vm6214_vm9, %v6211_v48, %v6081_v50  ;;  %v5811_v11 = vpop.permute.xlu1 %5810 }
 0x4e6   :  { %6416 = vmatmul.mubr.bf16.gmra.mxu1 %v6234_v38  ;;  %v6131_v5 = vsel %vm1328_vm5, %v12043_v10, %v5811_v11 }
 0x4e7   :  { %7218 = vmatprep.mubr.msk.bf16.mxu1 %vm1328_vm5, %v12046_v16  ;;  %v6147_v55 = vsel %vm12047_vm6, %v6131_v5, %v11242_v51 }
 0x4e8   :  { %v6163_v59 = vsel %vm12026_vm1, %v6147_v55, %v11233_v34 }
 0x4f4   :  { %v5987_v43 = vpop.permute.xlu1 %5986 }
 0x4f6   :  { %v5947_v44 = vpop.permute.xlu0 %5946 }
 0x4f7   :  { %v6179_v4 = vsel %vm12048_vm14, %v6163_v59, %v5947_v44 }
 0x4f8   :  { %v6083_v24 = vpop.permute.xlu1 %6082  ;;  %v6196_v29 = vsel %vm6180_vm8, %v6179_v4, %v5987_v43 }
 0x4fa   :  { %v6043_v18 = vpop.permute.xlu0 %6042 }
 0x4fb   :  { %v6213_v22 = vsel %vm6197_vm10, %v6196_v29, %v6043_v18 }
 0x4fc   :  { %v6237_v49 = vsel %vm6214_vm9, %v6213_v22, %v6083_v24 }
 0x4fd   :  { %6424 = vmatmul.mubr.bf16.gmra.mxu1 %v6237_v49 }
 0x574   :  { %v11363_v25 = vpop.f32.mrf.mxu0 }
 0x575   :  { %v6472_v9 = vmul.f32 %v11363_v25, %v11363_v25  ;;  %v6434_v60 = vsel %vm1328_vm5, %v11363_v25, 0.0 }
 0x576   :  { %v6371_v56 = vpop.f32.mrf.mxu0 }
 0x577   :  { %v6488_v12 = vsel %vm1328_vm5, %v6472_v9, 0.0 }
 0x578   :  { %v11365_v51 = vpop.f32.mrf.mxu0 }
 0x579   :  { %v6473_v20 = vmul.f32 %v11365_v51, %v11365_v51  ;;  %v6435_v28 = vsel %vm1328_vm5, %v11365_v51, 0.0 }
 0x57a   :  { %v6374_v42 = vpop.f32.mrf.mxu0  ;;  %v6436_v36 = vadd.f32 %v6435_v28, %v6434_v60 }
 0x57b   :  { %v6489_v19 = vsel %vm1328_vm5, %v6473_v20, 0.0 }
 0x57c   :  { %v11367_v26 = vpop.f32.mrf.mxu0  ;;  %v6490_v46 = vadd.f32 %v6489_v19, %v6488_v12 }
 0x57d   :  { %v6474_v41 = vmul.f32 %v11367_v26, %v11367_v26  ;;  %v6437_v33 = vsel %vm1328_vm5, %v11367_v26, 0.0 }
 0x57e   :  { %v6379_v34 = vpop.f32.mrf.mxu0  ;;  %v6438_v1 = vadd.f32 %v6437_v33, %v6436_v36 }
 0x57f   :  { %v6491_v21 = vsel %vm1328_vm5, %v6474_v41, 0.0 }
 0x580   :  { %v11369_v40 = vpop.f32.mrf.mxu0  ;;  %v6492_v54 = vadd.f32 %v6491_v21, %v6490_v46 }
 0x581   :  { %v6475_v27 = vmul.f32 %v11369_v40, %v11369_v40  ;;  %v6439_v14 = vsel %vm1328_vm5, %v11369_v40, 0.0 }
 0x582   :  { %v6382_v58 = vpop.f32.mrf.mxu0  ;;  %v6440_v62 = vadd.f32 %v6439_v14, %v6438_v1 }
 0x583   :  { %v6493_v63 = vsel %vm1328_vm5, %v6475_v27, 0.0 }
 0x584   :  { %v11371_v8 = vpop.f32.mrf.mxu0  ;;  %v6494_v50 = vadd.f32 %v6493_v63, %v6492_v54 }
 0x585   :  { %v6476_v61 = vmul.f32 %v11371_v8, %v11371_v8  ;;  %v6441_v30 = vsel %vm1328_vm5, %v11371_v8, 0.0 }
 0x586   :  { %v6387_v0 = vpop.f32.mrf.mxu0  ;;  %v6442_v38 = vadd.f32 %v6441_v30, %v6440_v62 }
 0x587   :  { %v6495_v57 = vsel %vm1328_vm5, %v6476_v61, 0.0 }
 0x588   :  { %v11373_v47 = vpop.f32.mrf.mxu0  ;;  %v6496_v5 = vadd.f32 %v6495_v57, %v6494_v50 }
 0x589   :  { %v6477_v45 = vmul.f32 %v11373_v47, %v11373_v47  ;;  %v6443_v53 = vsel %vm1328_vm5, %v11373_v47, 0.0 }
 0x58a   :  { %v6390_v31 = vpop.f32.mrf.mxu0  ;;  %v6444_v23 = vadd.f32 %v6443_v53, %v6442_v38 }
 0x58b   :  { %v6497_v2 = vsel %vm1328_vm5, %v6477_v45, 0.0 }
 0x58c   :  { %v11375_v39 = vpop.f32.mrf.mxu0  ;;  %v6498_v59 = vadd.f32 %v6497_v2, %v6496_v5 }
 0x58d   :  { %v11377_v3 = vpop.f32.mrf.mxu1  ;;  %v6478_v48 = vmul.f32 %v11375_v39, %v11375_v39  ;;  %v6445_v13 = vsel %vm1328_vm5, %v11375_v39, 0.0 }
 0x58e   :  { %v6395_v6 = vpop.f32.mrf.mxu0  ;;  %v6446_v44 = vadd.f32 %v6445_v13, %v6444_v23  ;;  %v6482_v9 = vmul.f32 %v11377_v3, %v11377_v3  ;;  %v6453_v41 = vsel %vm1328_vm5, %v11377_v3, 0.0 }
 0x58f   :  { %v6411_v52 = vpop.f32.mrf.mxu1  ;;  %v6499_v16 = vsel %vm1328_vm5, %v6478_v48, 0.0 }
 0x590   :  { %v11379_v17 = vpop.f32.mrf.mxu0  ;;  %v6500_v49 = vadd.f32 %v6499_v16, %v6498_v59  ;;  %v6507_v19 = vsel %vm1328_vm5, %v6482_v9, 0.0 }
 0x591   :  { %v11381_v15 = vpop.f32.mrf.mxu1  ;;  %v6479_v10 = vmul.f32 %v11379_v17, %v11379_v17  ;;  %v6447_v55 = vsel %vm1328_vm5, %v11379_v17, 0.0 }
 0x592   :  { %v6398_v32 = vpop.f32.mrf.mxu0  ;;  %v6448_v56 = vadd.f32 %v6447_v55, %v6446_v44  ;;  %v6483_v33 = vmul.f32 %v11381_v15, %v11381_v15  ;;  %v6455_v36 = vsel %vm1328_vm5, %v11381_v15, 0.0 }
 0x593   :  { %v6414_v7 = vpop.f32.mrf.mxu1  ;;  %v6501_v29 = vsel %vm1328_vm5, %v6479_v10, 0.0 }
 0x594   :  { %v6502_v0 = vadd.f32 %v6501_v29, %v6500_v49  ;;  %v6509_v21 = vsel %vm1328_vm5, %v6483_v33, 0.0 }
 0x5a0   :  { %v11409_v35 = vpop.f32.mrf.mxu0 }
 0x5a1   :  { %v6480_v43 = vmul.f32 %v11409_v35, %v11409_v35  ;;  %v6449_v18 = vsel %vm1328_vm5, %v11409_v35, 0.0 }
 0x5a2   :  { %v6403_v11 = vpop.f32.mrf.mxu0  ;;  %v6450_v31 = vadd.f32 %v6449_v18, %v6448_v56 }
 0x5a3   :  { %v6503_v34 = vsel %vm1328_vm5, %v6480_v43, 0.0 }
 0x5a4   :  { %v11421_v37 = vpop.f32.mrf.mxu0  ;;  %v6504_v32 = vadd.f32 %v6503_v34, %v6502_v0 }
 0x5a5   :  { %v6481_v22 = vmul.f32 %v11421_v37, %v11421_v37  ;;  %v6451_v58 = vsel %vm1328_vm5, %v11421_v37, 0.0 }
 0x5a6   :  { %v11428_v4 = vpop.f32.mrf.mxu1  ;;  %v6406_v24 = vpop.f32.mrf.mxu0  ;;  %v6452_v7 = vadd.f32 %v6451_v58, %v6450_v31 }
 0x5a7   :  { %v6505_v52 = vsel %vm1328_vm5, %v6481_v22, 0.0  ;;  %v6484_v14 = vmul.f32 %v11428_v4, %v11428_v4  ;;  %v6457_v46 = vsel %vm1328_vm5, %v11428_v4, 0.0 }
 0x5a8   :  { %v6419_v42 = vpop.f32.mrf.mxu1  ;;  %v6506_v28 = vadd.f32 %v6505_v52, %v6504_v32  ;;  %v6454_v60 = vadd.f32 %v6453_v41, %v6452_v7 }
 0x5a9   :  { %v6511_v63 = vsel %vm1328_vm5, %v6484_v14, 0.0 }
 0x5aa   :  { %v11438_v6 = vpop.f32.mrf.mxu1  ;;  %v6508_v27 = vadd.f32 %v6507_v19, %v6506_v28  ;;  %v6456_v12 = vadd.f32 %v6455_v36, %v6454_v60 }
 0x5ab   :  { %v6485_v30 = vmul.f32 %v11438_v6, %v11438_v6  ;;  %v6459_v54 = vsel %vm1328_vm5, %v11438_v6, 0.0 }
 0x5ac   :  { %v6422_v20 = vpop.f32.mrf.mxu1  ;;  %v6510_v61 = vadd.f32 %v6509_v21, %v6508_v27  ;;  %v6458_v1 = vadd.f32 %v6457_v46, %v6456_v12 }
 0x5ad   :  { %v6513_v57 = vsel %vm1328_vm5, %v6485_v30, 0.0 }
 0x5ae   :  { %v6512_v45 = vadd.f32 %v6511_v63, %v6510_v61  ;;  %v6460_v62 = vadd.f32 %v6459_v54, %v6458_v1 }
 0x5b0   :  { %v6514_v53 = vadd.f32 %v6513_v57, %v6512_v45  ;;  %v11512_v45 = vld [vmem:[%s11637_s4] ss:$0 sm:$0xff] }
 0x5bd   :  { %v11461_v48 = vpop.f32.mrf.mxu1 }
 0x5be   :  { %v6461_v50 = vsel %vm1328_vm5, %v11461_v48, 0.0  ;;  %v6486_v38 = vmul.f32 %v11461_v48, %v11461_v48 }
 0x5bf   :  { %v6462_v11 = vadd.f32 %v6461_v50, %v6460_v62  ;;  %v6427_v2 = vpop.f32.mrf.mxu1  ;;  %v12049_v62 = vld [vmem:[#allocation7_spill] sm:$0xff] }
 0x5c0   :  { %v6515_v13 = vsel %vm1328_vm5, %v6486_v38, 0.0  ;;  %v1686_v57 = vadd.f32 %v11512_v45, %v12049_v62 }
 0x5c1   :  { %v6516_v10 = vadd.f32 %v6515_v13, %v6514_v53  ;;  %v6428_v5 = vpop.f32.mrf.mxu1  ;;  %v12050_v53 = vld [vmem:[#allocation9_spill] sm:$0xff] }
 0x5c2   :  { %v6463_v23 = vsel %vm1328_vm5, %v6428_v5, 0.0  ;;  %v6487_v16 = vmul.f32 %v6428_v5, %v6428_v5  ;;  %v1689_v50 = vadd.f32 %v11512_v45, %v12050_v53 }
 0x5c3   :  { %v6464_v55 = vadd.f32 %v6463_v23, %v6462_v11  ;;  %v6430_v43 = vpop.f32.mrf.mxu1 }
 0x5c4   :  { %v6517_v59 = vsel %vm1328_vm5, %v6487_v16, 0.0  ;;  %v12051_v16 = vld [vmem:[#allocation12_spill] sm:$0xff]  ;;  %v12052_v43 = vld [vmem:[#allocation13_spill] sm:$0xff] }
 0x5c5   :  { %v6465_v44 = vrot.slane %v6464_v55, 4  ;;  %v6518_v24 = vadd.f32 %v6517_v59, %v6516_v10  ;;  %v1697_v59 = vadd.f32 %v12052_v43, %v11512_v45  ;;  %v12058_v43 = vld [vmem:[#allocation8_spill] sm:$0xff] }
 0x5c7   :  { %v6466_v29 = vadd.f32 %v6465_v44, %v6464_v55  ;;  %v6519_v18 = vrot.slane %v6518_v24, 4  ;;  %v1694_v55 = vadd.f32 %v12051_v16, %v11512_v45 }
 0x5c9   :  { %v6467_v22 = vrot.slane %v6466_v29, 2  ;;  %v6520_v49 = vadd.f32 %v6519_v18, %v6518_v24  ;;  %v12053_v24 = vld [vmem:[#allocation14_spill] sm:$0xff] }
 0x5cb   :  { %v6468_v56 = vadd.f32 %v6467_v22, %v6466_v29  ;;  %v6521_v42 = vrot.slane %v6520_v49, 2  ;;  %v1702_v29 = vadd.f32 %v11512_v45, %v12053_v24 }
 0x5cd   :  { %v6469_v34 = vrot.slane %v6468_v56, 1  ;;  %v6522_v58 = vadd.f32 %v6521_v42, %v6520_v49 }
 0x5cf   :  { %v6470_v0 = vadd.f32 %v6469_v34, %v6468_v56  ;;  %v6523_v31 = vrot.slane %v6522_v58, 1 }
 0x5d1   :  { %v11470_v52 = vmul.f32 0.0078125, %v6470_v0  ;;  %v6524_v32 = vadd.f32 %v6523_v31, %v6522_v58  ;;  %v12054_v58 = vld [vmem:[#allocation16_spill] sm:$0xff] }
 0x5d2   :  { %v1718_v0 = vadd.f32 %v11512_v45, %v12054_v58 }
 0x5d3   :  { %v6525_v7 = vmul.f32 0.0078125, %v6524_v32  ;;  %v6526_v20 = vmul.f32 %v11470_v52, %v11470_v52  ;;  %v6543_v9 = vsub.f32 %v6428_v5, %v11470_v52  ;;  %v6540_v60 = vsub.f32 %v11428_v4, %v11470_v52  ;;  %v11492_v4 = vld [vmem:[%s11635_s9] ss:$0 sm:$0xff] }
 0x5d4   :  { %v6541_v19 = vsub.f32 %v11438_v6, %v11470_v52  ;;  %v6542_v33 = vsub.f32 %v11461_v48, %v11470_v52  ;;  %v6528_v27 = vsub.f32 %v11363_v25, %v11470_v52  ;;  %v6529_v36 = vsub.f32 %v11365_v51, %v11470_v52 }
 0x5d5   :  { %v6527_v28 = vsub.f32 %v6525_v7, %v6526_v20  ;;  %v6530_v12 = vsub.f32 %v11367_v26, %v11470_v52  ;;  %v6531_v14 = vsub.f32 %v11369_v40, %v11470_v52  ;;  %v11503_v26 = vld [vmem:[%s11636_s10] ss:$0 sm:$0xff]  ;;  %v6532_v54 = vsub.f32 %v11371_v8, %v11470_v52 }
 0x5d6   :  { %v6533_v8 = vsub.f32 %v11373_v47, %v11470_v52  ;;  %v6534_v49 = vsub.f32 %v11375_v39, %v11470_v52  ;;  %v6536_v31 = vsub.f32 %v11409_v35, %v11470_v52  ;;  %v6537_v32 = vsub.f32 %v11421_v37, %v11470_v52  ;;  %v12055_v7 = vld [vmem:[#allocation4_spill] sm:$0xff]  ;;  %v12056_v39 = vld [vmem:[#allocation18_spill] sm:$0xff] }
 0x5d7   :  { %v6544_v41 = vadd.f32 1e-05, %v6527_v28  ;;  %v1721_v20 = vadd.f32 %v11512_v45, %v12055_v7 }
 0x5d9   :  { %7508 = vrsqrt.f32 %v6544_v41  ;;  %v6535_v41 = vsub.f32 %v11379_v17, %v11470_v52 }
 0x5e6   :  { %v11487_v21 = vpop.eup %7508 }
 0x5e7   :  { %v6561_v61 = vmul.f32 %v11487_v21, %v6543_v9  ;;  %v6546_v25 = vmul.f32 %v11487_v21, %v6528_v27  ;;  %v6547_v46 = vmul.f32 %v11487_v21, %v6529_v36  ;;  %v6548_v51 = vmul.f32 %v11487_v21, %v6530_v12 }
 0x5e8   :  { %v6549_v40 = vmul.f32 %v11487_v21, %v6531_v14  ;;  %v6550_v2 = vmul.f32 %v11487_v21, %v6532_v54  ;;  %v6551_v22 = vmul.f32 %v11487_v21, %v6533_v8  ;;  %v1734_v9 = vadd.f32 %v11512_v45, %v12056_v39 }
 0x5e9   :  { %v6568_v1 = vmul.f32 %v11492_v4, %v6546_v25  ;;  %v6569_v63 = vmul.f32 %v11492_v4, %v6547_v46  ;;  %v6570_v30 = vmul.f32 %v11492_v4, %v6548_v51  ;;  %v6552_v28 = vmul.f32 %v11487_v21, %v6534_v49 }
 0x5ea   :  { %v6571_v23 = vmul.f32 %v11492_v4, %v6549_v40  ;;  %v6572_v18 = vmul.f32 %v11492_v4, %v6550_v2  ;;  %v6573_v36 = vmul.f32 %v11492_v4, %v6551_v22  ;;  %v6554_v35 = vmul.f32 %v11487_v21, %v6536_v31  ;;  %v12057_v2 = vld [vmem:[#allocation10_spill] sm:$0xff] }
 0x5eb   :  { %v6590_v38 = vadd.f32 %v11503_v26, %v6568_v1  ;;  %v6591_v11 = vadd.f32 %v11503_v26, %v6569_v63  ;;  %v6592_v5 = vadd.f32 %v11503_v26, %v6570_v30  ;;  %v6555_v12 = vmul.f32 %v11487_v21, %v6537_v32 }
 0x5ec   :  { %v6593_v34 = vadd.f32 %v11503_v26, %v6571_v23  ;;  %v6594_v27 = vadd.f32 %v11503_v26, %v6572_v18  ;;  %v6558_v46 = vmul.f32 %v11487_v21, %v6540_v60  ;;  %v6576_v51 = vmul.f32 %v11492_v4, %v6554_v35 }
 0x5ed   :  { %v6606_v13 = vadd.f32 %v6590_v38, %v1686_v57  ;;  %v6607_v10 = vadd.f32 %v6591_v11, %v1689_v50  ;;  %v6608_v42 = vadd.f32 %v6592_v5, %v1694_v55  ;;  %v6577_v1 = vmul.f32 %v11492_v4, %v6555_v12 }
 0x5ee   :  { %v6609_v25 = vadd.f32 %v6593_v34, %v1697_v59  ;;  %v11562_v17 = vmul.f32 %v11487_v21, %v6541_v19  ;;  %v6583_v63 = vmul.f32 %v11492_v4, %v6561_v61  ;;  %v6574_v30 = vmul.f32 %v11492_v4, %v6552_v28 }
 0x5ef   :  { %vm6622_vm5 = vcmp.gt.f32.partialorder %v6606_v13, 0.0  ;;  %v6638_v44 = vmul.f32 0.2, %v6606_v13  ;;  %v6639_v47 = vmul.f32 0.2, %v6607_v10  ;;  %vm6623_vm8 = vcmp.gt.f32.partialorder %v6607_v10, 0.0 }
 0x5f0   :  { %v6640_v14 = vmul.f32 0.2, %v6608_v42  ;;  %vm6624_vm10 = vcmp.gt.f32.partialorder %v6608_v42, 0.0  ;;  %v6553_v40 = vmul.f32 %v11487_v21, %v6535_v41  ;;  %v6580_v60 = vmul.f32 %v11492_v4, %v6558_v46 }
 0x5f1   :  { %v6654_v56 = vsel %vm6622_vm5, %v6606_v13, %v6638_v44  ;;  %v6655_v37 = vsel %vm6623_vm8, %v6607_v10, %v6639_v47  ;;  %v6610_v54 = vadd.f32 %v6594_v27, %v1702_v29  ;;  %v6595_v62 = vadd.f32 %v11503_v26, %v6573_v36  ;;  %v12059_v44 = vld [vmem:[#allocation19_spill] sm:$0xff]  ;;  %v12060_v29 = vld [vmem:[#allocation5_spill] sm:$0xff] }
 0x5f2   :  { %6670 = vxpose.xlu0.b32.start [1/16] (narrow) %v6654_v56, 16  ;;  %v6598_v57 = vadd.f32 %v11503_v26, %v6576_v51  ;;  %v6599_v53 = vadd.f32 %v11503_v26, %v6577_v1  ;;  %v6656_v50 = vsel %vm6624_vm10, %v6608_v42, %v6640_v14  ;;  %v6641_v6 = vmul.f32 0.2, %v6609_v25 }
 0x5f3   :  { %v6602_v19 = vadd.f32 %v11503_v26, %v6580_v60  ;;  %v6560_v61 = vmul.f32 %v11487_v21, %v6542_v33  ;;  %vm6625_vm9 = vcmp.gt.f32.partialorder %v6609_v25, 0.0  ;;  %v1705_v13 = vadd.f32 %v11512_v45, %v12057_v2 }
 0x5f4   :  { %v6614_v38 = vadd.f32 %v6598_v57, %v1718_v0  ;;  %v6615_v11 = vadd.f32 %v6599_v53, %v1721_v20  ;;  %v6596_v23 = vadd.f32 %v11503_v26, %v6574_v30  ;;  %v6605_v8 = vadd.f32 %v11503_v26, %v6583_v63  ;;  %v12061_v0 = vld [vmem:[#allocation11_spill] sm:$0xff] }
 0x5f5   :  { %v11578_v10 = vadd.f32 %v6602_v19, %v1734_v9  ;;  %v6582_v5 = vmul.f32 %v11492_v4, %v6560_v61  ;;  %v6657_v16 = vsel %vm6625_vm9, %v6609_v25, %v6641_v6  ;;  %v6642_v55 = vmul.f32 0.2, %v6610_v54  ;;  %v12062_v25 = vld [vmem:[#allocation15_spill] sm:$0xff] }
 0x5f6   :  { %6671 = vxpose.xlu0.b32.cont [2/16] (narrow) %v6655_v37, 16  ;;  %v6611_v48 = vadd.f32 %v6595_v62, %v1705_v13  ;;  %v6575_v33 = vmul.f32 %v11492_v4, %v6553_v40  ;;  %v1710_v59 = vadd.f32 %v12058_v43, %v11512_v45  ;;  %v1745_v24 = vadd.f32 %v12059_v44, %v11512_v45 }
 0x5f7   :  { %vm6626_vm2 = vcmp.gt.f32.partialorder %v6610_v54, 0.0  ;;  %v1742_v18 = vadd.f32 %v12060_v29, %v11512_v45  ;;  %v6604_v22 = vadd.f32 %v11503_v26, %v6582_v5  ;;  %v1713_v31 = vadd.f32 %v12061_v0, %v11512_v45 }
 0x5f8   :  { %v6612_v49 = vadd.f32 %v6596_v23, %v1710_v59  ;;  %v11591_v56 = vadd.f32 %v6605_v8, %v1745_v24  ;;  %v6658_v47 = vsel %vm6626_vm2, %v6610_v54, %v6642_v55  ;;  %v6643_v42 = vmul.f32 0.2, %v6611_v48 }
 0x5f9   :  { %v6597_v34 = vadd.f32 %v11503_v26, %v6575_v33  ;;  %v6620_v58 = vadd.f32 %v6604_v22, %v1742_v18  ;;  %vm6627_vm7 = vcmp.gt.f32.partialorder %v6611_v48, 0.0  ;;  %v6538_v32 = vsub.f32 %v11377_v3, %v11470_v52 }
 0x5fa   :  { %6672 = vxpose.xlu0.b32.cont [3/16] (narrow) %v6656_v50, 16  ;;  %v6659_v7 = vsel %vm6627_vm7, %v6611_v48, %v6643_v42  ;;  %v6644_v20 = vmul.f32 0.2, %v6612_v49  ;;  %vm6628_vm0 = vcmp.gt.f32.partialorder %v6612_v49, 0.0  ;;  %v6539_v28 = vsub.f32 %v11381_v15, %v11470_v52  ;;  %v12064_v50 = vld [vmem:[#allocation20_spill] sm:$0xff] }
 0x5fb   :  { %v6613_v39 = vadd.f32 %v6597_v34, %v1713_v31  ;;  %v6556_v9 = vmul.f32 %v11487_v21, %v6538_v32  ;;  %v6646_v3 = vmul.f32 0.2, %v6614_v38  ;;  %vm6630_vm3 = vcmp.gt.f32.partialorder %v6614_v38, 0.0 }
 0x5fc   :  { %v6660_v41 = vsel %vm6628_vm0, %v6612_v49, %v6644_v20  ;;  %v6557_v35 = vmul.f32 %v11487_v21, %v6539_v28  ;;  %v1726_v46 = vadd.f32 %v12062_v25, %v11512_v45  ;;  %v6647_v52 = vmul.f32 0.2, %v6615_v11  ;;  %v12063_v21 = vld [vmem:[#allocation17_spill] sm:$0xff] }
 0x5fd   :  { %v6645_v27 = vmul.f32 0.2, %v6613_v39  ;;  %v6578_v36 = vmul.f32 %v11492_v4, %v6556_v9  ;;  %vm6629_vm12 = vcmp.gt.f32.partialorder %v6613_v39, 0.0  ;;  %v6662_v15 = vsel %vm6630_vm3, %v6614_v38, %v6646_v3 }
 0x5fe   :  { %6673 = vxpose.xlu0.b32.cont [4/16] (narrow) %v6657_v16, 16  ;;  %v6579_v14 = vmul.f32 %v11492_v4, %v6557_v35  ;;  %vm6631_vm4 = vcmp.gt.f32.partialorder %v6615_v11, 0.0  ;;  %v1729_v63 = vadd.f32 %v12063_v21, %v11512_v45  ;;  %v6581_v54 = vmul.f32 %v11492_v4, %v11562_v17 }
 0x5ff   :  { %v6661_v12 = vsel %vm6629_vm12, %v6613_v39, %v6645_v27  ;;  %v6600_v37 = vadd.f32 %v11503_v26, %v6578_v36  ;;  %v6663_v30 = vsel %vm6631_vm4, %v6615_v11, %v6647_v52  ;;  %v1737_v6 = vadd.f32 %v11512_v45, %v12064_v50 }
 0x600   :  { %v6601_v1 = vadd.f32 %v11503_v26, %v6579_v14  ;;  %v6603_v53 = vadd.f32 %v11503_v26, %v6581_v54  ;;  %v6650_v61 = vmul.f32 0.2, %v11578_v10  ;;  %vm6634_vm15 = vcmp.gt.f32.partialorder %v11578_v10, 0.0 }
 0x601   :  { %v6616_v51 = vadd.f32 %v6600_v37, %v1726_v46  ;;  %v6652_v2 = vmul.f32 0.2, %v6620_v58  ;;  %vm6636_vm1 = vcmp.gt.f32.partialorder %v6620_v58, 0.0  ;;  %v6653_v13 = vmul.f32 0.2, %v11591_v56 }
 0x602   :  { %6674 = vxpose.xlu0.b32.cont [5/16] (narrow) %v6658_v47, 16  ;;  %v6617_v60 = vadd.f32 %v6601_v1, %v1729_v63  ;;  %v6619_v38 = vadd.f32 %v6603_v53, %v1737_v6  ;;  %v6666_v4 = vsel %vm6634_vm15, %v11578_v10, %v6650_v61  ;;  %vm6637_vm14 = vcmp.gt.f32.partialorder %v11591_v56, 0.0 }
 0x603   :  { %v6648_v40 = vmul.f32 0.2, %v6616_v51  ;;  %vm6632_vm13 = vcmp.gt.f32.partialorder %v6616_v51, 0.0  ;;  %v6668_v26 = vsel %vm6636_vm1, %v6620_v58, %v6652_v2  ;;  %v6669_v45 = vsel %vm6637_vm14, %v11591_v56, %v6653_v13 }
 0x604   :  { %v6649_v57 = vmul.f32 0.2, %v6617_v60  ;;  %vm6633_vm11 = vcmp.gt.f32.partialorder %v6617_v60, 0.0  ;;  %v6651_v17 = vmul.f32 0.2, %v6619_v38  ;;  %vm6635_vm6 = vcmp.gt.f32.partialorder %v6619_v38, 0.0 }
 0x605   :  { %v6664_v62 = vsel %vm6632_vm13, %v6616_v51, %v6648_v40 }
 0x606   :  { %6675 = vxpose.xlu0.b32.cont [6/16] (narrow) %v6659_v7, 16  ;;  %v6665_v19 = vsel %vm6633_vm11, %v6617_v60, %v6649_v57  ;;  %v6667_v11 = vsel %vm6635_vm6, %v6619_v38, %v6651_v17 }
 0x60a   :  { %6676 = vxpose.xlu0.b32.cont [7/16] (narrow) %v6660_v41, 16 }
 0x60e   :  { %6677 = vxpose.xlu0.b32.cont [8/16] (narrow) %v6661_v12, 16 }
 0x612   :  { %6678 = vxpose.xlu0.b32.cont [9/16] (narrow) %v6662_v15, 16 }
 0x616   :  { %6679 = vxpose.xlu0.b32.cont [10/16] (narrow) %v6663_v30, 16 }
 0x61a   :  { %6680 = vxpose.xlu0.b32.cont [11/16] (narrow) %v6664_v62, 16 }
 0x61e   :  { %6681 = vxpose.xlu0.b32.cont [12/16] (narrow) %v6665_v19, 16 }
 0x622   :  { %6682 = vxpose.xlu0.b32.cont [13/16] (narrow) %v6666_v4, 16 }
 0x626   :  { %6683 = vxpose.xlu0.b32.cont [14/16] (narrow) %v6667_v11, 16 }
 0x62a   :  { %6684 = vxpose.xlu0.b32.cont [15/16] (narrow) %v6668_v26, 16 }
 0x62e   :  { %6685 = vxpose.xlu0.b32.end [16/16] (narrow) %v6669_v45, 16 }
 0x66e   :  { %v6686_v5 = vpop.trf.xlu0 }
 0x66f   :  { %6702 = vst [vmem:[%s11638_s11] sm:$0xff] %v6686_v5 }
 0x672   :  { %v6687_v10 = vpop.trf.xlu0 }
 0x673   :  { %6703 = vst [vmem:[%s11638_s11 + $0x8] sm:$0xff] %v6687_v10 }

</bundles_post_ra>
